<compile_context>
chip_gen: v5e
topology: v5e:2x2
jax: 0.10.0
libtpu: 0.0.40
codegen_flags: <defaults>
</compile_context>

<pallas_src>
import functools
import math

import jax
import jax.numpy as jnp
from jax.experimental import pallas as pl
from jax.experimental.pallas import tpu as pltpu


# --------------------------------------------------------------------------
# Tile-size helpers
# --------------------------------------------------------------------------
def _round_up(x, m):
    return (x + m - 1) // m * m


def _pick_tile(dim, target, aligns):
    """Largest aligned divisor of dim that is <= target, else full dim."""
    if dim <= target:
        return dim
    for align in aligns:
        t = (min(target, dim) // align) * align
        while t >= align:
            if dim % t == 0:
                return t
            t -= align
    return dim


def _row_tile(m):
    # Transformer token counts are padded to multiples of 256 upstream, so the
    # common case is a clean 256-row (16-aligned for bf16) tile.
    if m % 256 == 0:
        return 256
    return _pick_tile(m, 256, (16, 8))


# --------------------------------------------------------------------------
# Tiled linear (+ optional fused residual / gelu epilogue)
# --------------------------------------------------------------------------
def _linear_kernel(x_ref, w_ref, b_ref, *rest, activation, has_residual):
    if has_residual:
        res_ref, o_ref, acc_ref = rest
    else:
        o_ref, acc_ref = rest

    @pl.when(pl.program_id(2) == 0)
    def _():
        acc_ref[...] = jnp.zeros_like(acc_ref)

    acc_ref[...] += jnp.dot(x_ref[...], w_ref[...],
                            preferred_element_type=jnp.float32)

    @pl.when(pl.program_id(2) == pl.num_programs(2) - 1)
    def _():
        y = acc_ref[...] + b_ref[...].astype(jnp.float32)
        if activation == "gelu":
            y = jax.nn.gelu(y)
        if has_residual:
            y = y + res_ref[...].astype(jnp.float32)
        o_ref[...] = y.astype(o_ref.dtype)


def pallas_linear(x, w, b, activation=None, residual=None, out_dtype=None):
    """x: (M, K) @ w: (K, N) + b, optionally +residual / gelu -> (M, N)."""
    M, K = x.shape
    _, N = w.shape
    out_dtype = out_dtype or x.dtype
    tm = _row_tile(M)
    tn = _pick_tile(N, 512, (256, 128))
    tk = _pick_tile(K, 1024, (256, 128))

    in_specs = [
        pl.BlockSpec((tm, tk), lambda i, j, k: (i, k)),
        pl.BlockSpec((tk, tn), lambda i, j, k: (k, j)),
        pl.BlockSpec((1, tn), lambda i, j, k: (0, j)),
    ]
    args = [x, w, b.reshape(1, N)]
    if residual is not None:
        in_specs.append(pl.BlockSpec((tm, tn), lambda i, j, k: (i, j)))
        args.append(residual)

    return pl.pallas_call(
        functools.partial(_linear_kernel, activation=activation,
                          has_residual=residual is not None),
        out_shape=jax.ShapeDtypeStruct((M, N), out_dtype),
        grid=(M // tm, N // tn, K // tk),
        in_specs=in_specs,
        out_specs=pl.BlockSpec((tm, tn), lambda i, j, k: (i, j)),
        scratch_shapes=[pltpu.VMEM((tm, tn), jnp.float32)],
        compiler_params=pltpu.CompilerParams(
            dimension_semantics=("parallel", "parallel", "arbitrary")),
    )(*args)


# --------------------------------------------------------------------------
# Fused LayerNorm + linear.  LN is computed once per row tile (j == 0) into a
# VMEM scratch and reused across all N tiles; small weight panels stay fully
# resident (tn = N) so they are DMA'd exactly once.
# --------------------------------------------------------------------------
def _ln_linear_kernel(x_ref, g_ref, bln_ref, w_ref, b_ref, o_ref, xn_ref, *,
                      activation, eps):
    @pl.when(pl.program_id(1) == 0)
    def _():
        x = x_ref[...].astype(jnp.float32)
        mu = jnp.mean(x, axis=-1, keepdims=True)
        var = jnp.mean(jnp.square(x - mu), axis=-1, keepdims=True)
        xn = (x - mu) * jax.lax.rsqrt(var + eps)
        xn = xn * g_ref[...].astype(jnp.float32) + bln_ref[...].astype(jnp.float32)
        xn_ref[...] = xn.astype(xn_ref.dtype)

    y = jnp.dot(xn_ref[...], w_ref[...], preferred_element_type=jnp.float32)
    y = y + b_ref[...].astype(jnp.float32)
    if activation == "gelu":
        y = jax.nn.gelu(y)
    o_ref[...] = y.astype(o_ref.dtype)


def pallas_ln_linear(x, gamma, beta, w, b, activation=None, eps=1e-6):
    """LayerNorm(x) @ w + b (K = model dim kept whole so LN sees full rows)."""
    M, D = x.shape
    _, N = w.shape
    tm = _row_tile(M)
    if D * N * w.dtype.itemsize <= 4 * 1024 * 1024:
        tn = N                                    # weight panel stays resident
    else:
        tn = _pick_tile(N, 512, (256, 128))
    return pl.pallas_call(
        functools.partial(_ln_linear_kernel, activation=activation, eps=eps),
        out_shape=jax.ShapeDtypeStruct((M, N), x.dtype),
        grid=(M // tm, N // tn),
        in_specs=[
            pl.BlockSpec((tm, D), lambda i, j: (i, 0)),
            pl.BlockSpec((1, D), lambda i, j: (0, 0)),
            pl.BlockSpec((1, D), lambda i, j: (0, 0)),
            pl.BlockSpec((D, tn), lambda i, j: (0, j)),
            pl.BlockSpec((1, tn), lambda i, j: (0, j)),
        ],
        out_specs=pl.BlockSpec((tm, tn), lambda i, j: (i, j)),
        scratch_shapes=[pltpu.VMEM((tm, D), x.dtype)],
        compiler_params=pltpu.CompilerParams(
            dimension_semantics=("parallel", "arbitrary")),
    )(x, gamma.reshape(1, D), beta.reshape(1, D), w, b.reshape(1, N))


# --------------------------------------------------------------------------
# Standalone LayerNorm (final norm only), row-tiled
# --------------------------------------------------------------------------
def _layernorm_kernel(x_ref, g_ref, b_ref, o_ref, *, eps):
    x = x_ref[...].astype(jnp.float32)
    mu = jnp.mean(x, axis=-1, keepdims=True)
    var = jnp.mean(jnp.square(x - mu), axis=-1, keepdims=True)
    y = (x - mu) * jax.lax.rsqrt(var + eps)
    y = y * g_ref[...].astype(jnp.float32) + b_ref[...].astype(jnp.float32)
    o_ref[...] = y.astype(o_ref.dtype)


def pallas_layernorm(x, gamma, beta, eps=1e-6, out_dtype=None):
    M, D = x.shape
    out_dtype = out_dtype or x.dtype
    tm = _pick_tile(M, 512, (16, 8))
    return pl.pallas_call(
        functools.partial(_layernorm_kernel, eps=eps),
        out_shape=jax.ShapeDtypeStruct((M, D), out_dtype),
        grid=(M // tm,),
        in_specs=[
            pl.BlockSpec((tm, D), lambda i: (i, 0)),
            pl.BlockSpec((1, D), lambda i: (0, 0)),
            pl.BlockSpec((1, D), lambda i: (0, 0)),
        ],
        out_specs=pl.BlockSpec((tm, D), lambda i: (i, 0)),
        compiler_params=pltpu.CompilerParams(dimension_semantics=("parallel",)),
    )(x, gamma.reshape(1, D), beta.reshape(1, D))


# --------------------------------------------------------------------------
# Multi-head attention: one batch element per grid step.  Per-head q/k/v are
# read as ref slices, each head's output is stored directly into its o_ref
# lane window (no concatenate, bounded temporaries), padded keys are masked.
# --------------------------------------------------------------------------
def _attention_kernel(qkv_ref, o_ref, *, num_heads, scale, seq_len):
    S = qkv_ref.shape[1]
    D3 = qkv_ref.shape[2]
    D = D3 // 3
    Dh = D // num_heads
    masked = seq_len < S
    if masked:
        key_idx = jax.lax.broadcasted_iota(jnp.int32, (S, S), 1)

    for h in range(num_heads):                   # static unroll over heads
        qh = qkv_ref[0, :, h * Dh:(h + 1) * Dh]
        kh = qkv_ref[0, :, D + h * Dh:D + (h + 1) * Dh]
        vh = qkv_ref[0, :, 2 * D + h * Dh:2 * D + (h + 1) * Dh]
        s = jax.lax.dot_general(qh, kh, (((1,), (1,)), ((), ())),
                                preferred_element_type=jnp.float32) * scale
        if masked:
            s = jnp.where(key_idx < seq_len, s, jnp.float32(-1e30))
        s = s - jnp.max(s, axis=-1, keepdims=True)
        p = jnp.exp(s)
        p = p * pl.reciprocal(jnp.sum(p, axis=-1, keepdims=True), approx=True)
        o_ref[0, :, h * Dh:(h + 1) * Dh] = jnp.dot(
            p.astype(vh.dtype), vh,
            preferred_element_type=jnp.float32).astype(o_ref.dtype)


def pallas_attention(qkv, num_heads, seq_len):
    """qkv: (B, S_pad, 3D) packed [q | k | v]; keys >= seq_len are masked."""
    B, S, D3 = qkv.shape
    D = D3 // 3
    Dh = D // num_heads
    scale = 1.0 / math.sqrt(Dh)
    return pl.pallas_call(
        functools.partial(_attention_kernel, num_heads=num_heads, scale=scale,
                          seq_len=seq_len),
        out_shape=jax.ShapeDtypeStruct((B, S, D), qkv.dtype),
        grid=(B,),
        in_specs=[pl.BlockSpec((1, S, D3), lambda b: (b, 0, 0))],
        out_specs=pl.BlockSpec((1, S, D), lambda b: (b, 0, 0)),
        compiler_params=pltpu.CompilerParams(dimension_semantics=("parallel",)),
    )(qkv)


# --------------------------------------------------------------------------
# Parameter construction (deterministic, synthetic, bf16 storage)
# --------------------------------------------------------------------------
def init_vit_params(key, *, img_size, patch_size, in_channels, embed_dim,
                    depth, num_heads, mlp_ratio, num_register_tokens):
    fmap = img_size // patch_size
    num_patches = fmap * fmap
    hidden = int(embed_dim * mlp_ratio)
    keys = iter(jax.random.split(key, 8 + depth * 8))
    dt = jnp.bfloat16

    def nrm(k, shape, std):
        return (jax.random.normal(k, shape, jnp.float32) * std).astype(dt)

    params = {}
    # PatchEmbed conv: kaiming_normal, fan_in = C * P * P.
    # Stored pre-flattened / pre-transposed as (C*P*P, D) so the forward pass
    # needs no runtime reshape/transpose of the weight.
    fan_in = in_channels * patch_size * patch_size
    params["patch_w"] = nrm(next(keys), (fan_in, embed_dim),
                            math.sqrt(2.0 / fan_in))
    params["patch_b"] = jnp.zeros((embed_dim,), dt)
    params["pos_embed"] = nrm(next(keys), (1, num_patches, embed_dim), 0.02)
    params["register_tokens"] = nrm(next(keys),
                                    (1, num_register_tokens, embed_dim), 0.02)
    params["final_ln_g"] = jnp.ones((embed_dim,), dt)
    params["final_ln_b"] = jnp.zeros((embed_dim,), dt)

    blocks = []
    for _ in range(depth):
        blocks.append({
            "ln1_g": jnp.ones((embed_dim,), dt),
            "ln1_b": jnp.zeros((embed_dim,), dt),
            "qkv_w": nrm(next(keys), (embed_dim, 3 * embed_dim), 0.02),
            "qkv_b": jnp.zeros((3 * embed_dim,), dt),
            "proj_w": nrm(next(keys), (embed_dim, embed_dim), 0.02),
            "proj_b": jnp.zeros((embed_dim,), dt),
            "ln2_g": jnp.ones((embed_dim,), dt),
            "ln2_b": jnp.zeros((embed_dim,), dt),
            "fc1_w": nrm(next(keys), (embed_dim, hidden), 0.02),
            "fc1_b": jnp.zeros((hidden,), dt),
            "fc2_w": nrm(next(keys), (hidden, embed_dim), 0.02),
            "fc2_b": jnp.zeros((embed_dim,), dt),
        })
    params["blocks"] = blocks
    return params


# --------------------------------------------------------------------------
# Forward pass
# --------------------------------------------------------------------------
def patch_embed(x, params, patch_size):
    """(B, C, H, W) NCHW -> (B, N, D). Patchify in JAX glue, projection in Pallas."""
    B, C, H, W = x.shape
    P = patch_size
    Hp, Wp = H // P, W // P
    patches = x.reshape(B, C, Hp, P, Wp, P).transpose(0, 2, 4, 1, 3, 5)
    patches = patches.reshape(B * Hp * Wp, C * P * P).astype(jnp.bfloat16)
    out = pallas_linear(patches, params["patch_w"], params["patch_b"])
    return out.reshape(B, Hp * Wp, -1)


def transformer_block(x2, blk, num_heads, B, S_pad, S, D):
    """x2: (B*S_pad, D) bf16 -> (B*S_pad, D) bf16."""
    # --- attention: LN fused into QKV matmul, residual fused into proj matmul ---
    qkv = pallas_ln_linear(x2, blk["ln1_g"], blk["ln1_b"],
                           blk["qkv_w"], blk["qkv_b"])            # (B*S_pad, 3D)
    attn = pallas_attention(qkv.reshape(B, S_pad, 3 * D), num_heads, seq_len=S)
    x2 = pallas_linear(attn.reshape(B * S_pad, D), blk["proj_w"], blk["proj_b"],
                       residual=x2)
    # --- MLP: LN fused into fc1 (+gelu), residual fused into fc2 ---
    h = pallas_ln_linear(x2, blk["ln2_g"], blk["ln2_b"],
                         blk["fc1_w"], blk["fc1_b"], activation="gelu")
    x2 = pallas_linear(h, blk["fc2_w"], blk["fc2_b"], residual=x2)
    return x2


def vit_forward(x, params, *, patch_size, num_heads, num_register_tokens):
    # 1) tokenizer: (B, C, H, W) -> (B, N, D)
    tokens = patch_embed(x, params, patch_size)
    B, N, D = tokens.shape

    # 2) positional embedding on patch tokens, prepend register tokens
    tokens = tokens + params["pos_embed"].astype(tokens.dtype)
    regs = jnp.broadcast_to(params["register_tokens"].astype(tokens.dtype),
                            (B, num_register_tokens, D))
    tokens = jnp.concatenate([regs, tokens], axis=1)              # (B, S, D)
    S = num_register_tokens + N

    # 3) pad the sequence so B*S_pad is a multiple of 256: every transformer
    #    linear then runs on clean 256-row tiles on all TPU generations.
    #    Padded keys are masked in attention; padded rows are dropped at the end.
    seq_mult = 256 // math.gcd(B, 256)
    S_pad = _round_up(S, seq_mult)
    if S_pad != S:
        tokens = jnp.pad(tokens, ((0, 0), (0, S_pad - S), (0, 0)))

    x2 = tokens.reshape(B * S_pad, D)

    # 4) transformer blocks
    for blk in params["blocks"]:
        x2 = transformer_block(x2, blk, num_heads, B, S_pad, S, D)

    # 5) final layernorm on patch tokens only (registers + padding dropped first)
    patch_tok = x2.reshape(B, S_pad, D)[:, num_register_tokens:S, :]
    out = pallas_layernorm(patch_tok.reshape(B * N, D),
                           params["final_ln_g"], params["final_ln_b"],
                           out_dtype=jnp.float32)
    return out.reshape(B, N, D)                                   # (B, N, D)


# --------------------------------------------------------------------------
# Main
# --------------------------------------------------------------------------
if __name__ == "__main__":
    img_size = 16
    patch_size = 4
    in_channels = 4
    embed_dim = 32
    depth = 2
    num_heads = 4
    mlp_ratio = 2.0
    num_register_tokens = 2
    batch = 2

    key = jax.random.PRNGKey(0)
    k_x, k_p = jax.random.split(key)
    x = jax.random.normal(k_x, (batch, in_channels, img_size, img_size),
                          jnp.float32)

    params = init_vit_params(
        k_p, img_size=img_size, patch_size=patch_size, in_channels=in_channels,
        embed_dim=embed_dim, depth=depth, num_heads=num_heads,
        mlp_ratio=mlp_ratio, num_register_tokens=num_register_tokens)

    fwd = jax.jit(functools.partial(
        vit_forward, patch_size=patch_size, num_heads=num_heads,
        num_register_tokens=num_register_tokens))

    out = fwd(x, params)
    jax.block_until_ready(out)

    num_patches = (img_size // patch_size) ** 2
    assert out.shape == (batch, num_patches, embed_dim), out.shape
    assert jnp.all(jnp.isfinite(out))
    print("KERNEL_OK")
</pallas_src>

<mosaic_0001>
module attributes {stable_mosaic.version = 11 : i64} {
  func.func @_linear_kernel(%arg0: i32, %arg1: i32, %arg2: i32, %arg3: memref<32x64xbf16, #tpu.memory_space<vmem>>, %arg4: memref<64x32xbf16, #tpu.memory_space<vmem>>, %arg5: memref<1x32xbf16, #tpu.memory_space<vmem>>, %arg6: memref<32x32xbf16, #tpu.memory_space<vmem>>, %arg7: memref<32x32xf32, #tpu.memory_space<vmem>>) attributes {dimension_semantics = [#tpu.dimension_semantics<parallel>, #tpu.dimension_semantics<parallel>, #tpu.dimension_semantics<arbitrary>], iteration_bounds = array<i64: 1, 1, 1>, scalar_prefetch = 0 : i64, scratch_operands = 1 : i64, tpu.core_type = #tpu.core_type<tc>, window_params = [{transform_indices = @transform_0, window_bounds = array<i64: 32, 64>}, {transform_indices = @transform_1, window_bounds = array<i64: 64, 32>}, {transform_indices = @transform_2, window_bounds = array<i64: 1, 32>}, {transform_indices = @transform_3, window_bounds = array<i64: 32, 32>}]} {
    %c0_i32 = arith.constant 0 : i32
    %0 = arith.cmpi eq, %arg2, %c0_i32 : i32
    %1 = arith.extui %0 : i1 to i32
    %c0_i32_0 = arith.constant 0 : i32
    %2 = arith.cmpi ne, %1, %c0_i32_0 : i32
    scf.if %2 {
      %cst_10 = arith.constant 0.000000e+00 : f32
      %12 = vector.broadcast %cst_10 : f32 to vector<32x32xf32>
      %c0_11 = arith.constant 0 : index
      %c0_12 = arith.constant 0 : index
      %13 = vector.load %arg7[%c0_11, %c0_12] : memref<32x32xf32, #tpu.memory_space<vmem>>, vector<32x32xf32>
      tpu.vector_store %arg7[%c0_11, %c0_12], %12 {strides = array<i32>} : memref<32x32xf32, #tpu.memory_space<vmem>>, vector<32x32xf32>,
    } else {
    }
    %c0 = arith.constant 0 : index
    %c0_1 = arith.constant 0 : index
    %3 = vector.load %arg7[%c0, %c0_1] : memref<32x32xf32, #tpu.memory_space<vmem>>, vector<32x32xf32>
    %c0_2 = arith.constant 0 : index
    %c0_3 = arith.constant 0 : index
    %4 = vector.load %arg3[%c0_2, %c0_3] : memref<32x64xbf16, #tpu.memory_space<vmem>>, vector<32x64xbf16>
    %c0_4 = arith.constant 0 : index
    %c0_5 = arith.constant 0 : index
    %5 = vector.load %arg4[%c0_4, %c0_5] : memref<64x32xbf16, #tpu.memory_space<vmem>>, vector<64x32xbf16>
    %cst = arith.constant dense<0.000000e+00> : vector<32x32xf32>
    %6 = tpu.matmul %4, %5, %cst {dimension_numbers = #tpu.dot_dimension_numbers<[1], [0], [0], [1], [0, 0, 1, 1], [], []>} : vector<32x64xbf16>, vector<64x32xbf16>, vector<32x32xf32> -> vector<32x32xf32>
    %7 = arith.addf %3, %6 : vector<32x32xf32>
    %c0_6 = arith.constant 0 : index
    %c0_7 = arith.constant 0 : index
    %8 = vector.load %arg7[%c0_6, %c0_7] : memref<32x32xf32, #tpu.memory_space<vmem>>, vector<32x32xf32>
    tpu.vector_store %arg7[%c0_6, %c0_7], %7 {strides = array<i32>} : memref<32x32xf32, #tpu.memory_space<vmem>>, vector<32x32xf32>,
    %c0_i32_8 = arith.constant 0 : i32
    %9 = arith.cmpi eq, %arg2, %c0_i32_8 : i32
    %10 = arith.extui %9 : i1 to i32
    %c0_i32_9 = arith.constant 0 : i32
    %11 = arith.cmpi ne, %10, %c0_i32_9 : i32
    scf.if %11 {
      %c0_10 = arith.constant 0 : index
      %c0_11 = arith.constant 0 : index
      %12 = vector.load %arg7[%c0_10, %c0_11] : memref<32x32xf32, #tpu.memory_space<vmem>>, vector<32x32xf32>
      %c0_12 = arith.constant 0 : index
      %c0_13 = arith.constant 0 : index
      %13 = vector.load %arg5[%c0_12, %c0_13] : memref<1x32xbf16, #tpu.memory_space<vmem>>, vector<1x32xbf16>
      %14 = arith.extf %13 : vector<1x32xbf16> to vector<1x32xf32>
      %15 = vector.broadcast %14 : vector<1x32xf32> to vector<32x32xf32>
      %16 = arith.addf %12, %15 : vector<32x32xf32>
      %17 = arith.truncf %16 : vector<32x32xf32> to vector<32x32xbf16>
      %c0_14 = arith.constant 0 : index
      %c0_15 = arith.constant 0 : index
      %18 = vector.load %arg6[%c0_14, %c0_15] : memref<32x32xbf16, #tpu.memory_space<vmem>>, vector<32x32xbf16>
      tpu.vector_store %arg6[%c0_14, %c0_15], %17 {strides = array<i32>} : memref<32x32xbf16, #tpu.memory_space<vmem>>, vector<32x32xbf16>,
    } else {
    }
    return
  }
  func.func @transform_0(%arg0: i32, %arg1: i32, %arg2: i32) -> (i32, i32) {
    %c0_i32 = arith.constant 0 : i32
    return %arg0, %arg2 : i32, i32
  }
  func.func @transform_1(%arg0: i32, %arg1: i32, %arg2: i32) -> (i32, i32) {
    %c0_i32 = arith.constant 0 : i32
    return %arg2, %arg1 : i32, i32
  }
  func.func @transform_2(%arg0: i32, %arg1: i32, %arg2: i32) -> (i32, i32) {
    %c0_i32 = arith.constant 0 : i32
    %c0_i32_0 = arith.constant 0 : i32
    return %c0_i32, %arg1 : i32, i32
  }
  func.func @transform_3(%arg0: i32, %arg1: i32, %arg2: i32) -> (i32, i32) {
    %c0_i32 = arith.constant 0 : i32
    return %arg0, %arg1 : i32, i32
  }
}

module attributes {stable_mosaic.version = 11 : i64} {
  func.func @_ln_linear_kernel(%arg0: i32, %arg1: i32, %arg2: memref<256x32xbf16, #tpu.memory_space<vmem>>, %arg3: memref<1x32xbf16, #tpu.memory_space<vmem>>, %arg4: memref<1x32xbf16, #tpu.memory_space<vmem>>, %arg5: memref<32x96xbf16, #tpu.memory_space<vmem>>, %arg6: memref<1x96xbf16, #tpu.memory_space<vmem>>, %arg7: memref<256x96xbf16, #tpu.memory_space<vmem>>, %arg8: memref<256x32xbf16, #tpu.memory_space<vmem>>) attributes {dimension_semantics = [#tpu.dimension_semantics<parallel>, #tpu.dimension_semantics<arbitrary>], iteration_bounds = array<i64: 1, 1>, scalar_prefetch = 0 : i64, scratch_operands = 1 : i64, tpu.core_type = #tpu.core_type<tc>, window_params = [{transform_indices = @transform_0, window_bounds = array<i64: 256, 32>}, {pipeline_mode = #tpu.pipeline_mode<synchronous>, transform_indices = @transform_1, window_bounds = array<i64: 1, 32>}, {pipeline_mode = #tpu.pipeline_mode<synchronous>, transform_indices = @transform_2, window_bounds = array<i64: 1, 32>}, {transform_indices = @transform_3, window_bounds = array<i64: 32, 96>}, {transform_indices = @transform_4, window_bounds = array<i64: 1, 96>}, {transform_indices = @transform_5, window_bounds = array<i64: 256, 96>}]} {
    %c0_i32 = arith.constant 0 : i32
    %0 = arith.cmpi eq, %arg1, %c0_i32 : i32
    %1 = arith.extui %0 : i1 to i32
    %c0_i32_0 = arith.constant 0 : i32
    %2 = arith.cmpi ne, %1, %c0_i32_0 : i32
    scf.if %2 {
      %c0_8 = arith.constant 0 : index
      %c0_9 = arith.constant 0 : index
      %12 = vector.load %arg2[%c0_8, %c0_9] : memref<256x32xbf16, #tpu.memory_space<vmem>>, vector<256x32xbf16>
      %13 = arith.extf %12 : vector<256x32xbf16> to vector<256x32xf32>
      %cst_10 = arith.constant dense<0.000000e+00> : vector<256xf32>
      %14 = vector.multi_reduction <add>, %13, %cst_10 [1] : vector<256x32xf32> to vector<256xf32>
      %15 = vector.shape_cast %14 : vector<256xf32> to vector<256x1xf32>
      %cst_11 = arith.constant 3.200000e+01 : f32
      %16 = vector.broadcast %cst_11 : f32 to vector<256x1xf32>
      %17 = arith.divf %15, %16 : vector<256x1xf32>
      %18 = vector.broadcast %17 : vector<256x1xf32> to vector<256x32xf32>
      %19 = arith.subf %13, %18 : vector<256x32xf32>
      %20 = arith.mulf %19, %19 : vector<256x32xf32>
      %cst_12 = arith.constant dense<0.000000e+00> : vector<256xf32>
      %21 = vector.multi_reduction <add>, %20, %cst_12 [1] : vector<256x32xf32> to vector<256xf32>
      %22 = vector.shape_cast %21 : vector<256xf32> to vector<256x1xf32>
      %cst_13 = arith.constant 3.200000e+01 : f32
      %23 = vector.broadcast %cst_13 : f32 to vector<256x1xf32>
      %24 = arith.divf %22, %23 : vector<256x1xf32>
      %25 = vector.broadcast %17 : vector<256x1xf32> to vector<256x32xf32>
      %26 = arith.subf %13, %25 : vector<256x32xf32>
      %cst_14 = arith.constant 9.99999997E-7 : f32
      %27 = vector.broadcast %cst_14 : f32 to vector<256x1xf32>
      %28 = arith.addf %24, %27 : vector<256x1xf32>
      %29 = math.rsqrt %28 : vector<256x1xf32>
      %30 = vector.broadcast %29 : vector<256x1xf32> to vector<256x32xf32>
      %31 = arith.mulf %26, %30 : vector<256x32xf32>
      %c0_15 = arith.constant 0 : index
      %c0_16 = arith.constant 0 : index
      %32 = vector.load %arg3[%c0_15, %c0_16] : memref<1x32xbf16, #tpu.memory_space<vmem>>, vector<1x32xbf16>
      %33 = arith.extf %32 : vector<1x32xbf16> to vector<1x32xf32>
      %34 = vector.broadcast %33 : vector<1x32xf32> to vector<256x32xf32>
      %35 = arith.mulf %31, %34 : vector<256x32xf32>
      %c0_17 = arith.constant 0 : index
      %c0_18 = arith.constant 0 : index
      %36 = vector.load %arg4[%c0_17, %c0_18] : memref<1x32xbf16, #tpu.memory_space<vmem>>, vector<1x32xbf16>
      %37 = arith.extf %36 : vector<1x32xbf16> to vector<1x32xf32>
      %38 = vector.broadcast %37 : vector<1x32xf32> to vector<256x32xf32>
      %39 = arith.addf %35, %38 : vector<256x32xf32>
      %40 = arith.truncf %39 : vector<256x32xf32> to vector<256x32xbf16>
      %c0_19 = arith.constant 0 : index
      %c0_20 = arith.constant 0 : index
      %41 = vector.load %arg8[%c0_19, %c0_20] : memref<256x32xbf16, #tpu.memory_space<vmem>>, vector<256x32xbf16>
      tpu.vector_store %arg8[%c0_19, %c0_20], %40 {strides = array<i32>} : memref<256x32xbf16, #tpu.memory_space<vmem>>, vector<256x32xbf16>,
    } else {
    }
    %c0 = arith.constant 0 : index
    %c0_1 = arith.constant 0 : index
    %3 = vector.load %arg8[%c0, %c0_1] : memref<256x32xbf16, #tpu.memory_space<vmem>>, vector<256x32xbf16>
    %c0_2 = arith.constant 0 : index
    %c0_3 = arith.constant 0 : index
    %4 = vector.load %arg5[%c0_2, %c0_3] : memref<32x96xbf16, #tpu.memory_space<vmem>>, vector<32x96xbf16>
    %cst = arith.constant dense<0.000000e+00> : vector<256x96xf32>
    %5 = tpu.matmul %3, %4, %cst {dimension_numbers = #tpu.dot_dimension_numbers<[1], [0], [0], [1], [0, 0, 1, 1], [], []>} : vector<256x32xbf16>, vector<32x96xbf16>, vector<256x96xf32> -> vector<256x96xf32>
    %c0_4 = arith.constant 0 : index
    %c0_5 = arith.constant 0 : index
    %6 = vector.load %arg6[%c0_4, %c0_5] : memref<1x96xbf16, #tpu.memory_space<vmem>>, vector<1x96xbf16>
    %7 = arith.extf %6 : vector<1x96xbf16> to vector<1x96xf32>
    %8 = vector.broadcast %7 : vector<1x96xf32> to vector<256x96xf32>
    %9 = arith.addf %5, %8 : vector<256x96xf32>
    %10 = arith.truncf %9 : vector<256x96xf32> to vector<256x96xbf16>
    %c0_6 = arith.constant 0 : index
    %c0_7 = arith.constant 0 : index
    %11 = vector.load %arg7[%c0_6, %c0_7] : memref<256x96xbf16, #tpu.memory_space<vmem>>, vector<256x96xbf16>
    tpu.vector_store %arg7[%c0_6, %c0_7], %10 {strides = array<i32>} : memref<256x96xbf16, #tpu.memory_space<vmem>>, vector<256x96xbf16>,
    return
  }
  func.func @transform_0(%arg0: i32, %arg1: i32) -> (i32, i32) {
    %c0_i32 = arith.constant 0 : i32
    %c0_i32_0 = arith.constant 0 : i32
    return %arg0, %c0_i32 : i32, i32
  }
  func.func @transform_1(%arg0: i32, %arg1: i32) -> (i32, i32) {
    %c0_i32 = arith.constant 0 : i32
    %c0_i32_0 = arith.constant 0 : i32
    %c0_i32_1 = arith.constant 0 : i32
    return %c0_i32, %c0_i32_0 : i32, i32
  }
  func.func @transform_2(%arg0: i32, %arg1: i32) -> (i32, i32) {
    %c0_i32 = arith.constant 0 : i32
    %c0_i32_0 = arith.constant 0 : i32
    %c0_i32_1 = arith.constant 0 : i32
    return %c0_i32, %c0_i32_0 : i32, i32
  }
  func.func @transform_3(%arg0: i32, %arg1: i32) -> (i32, i32) {
    %c0_i32 = arith.constant 0 : i32
    %c0_i32_0 = arith.constant 0 : i32
    return %c0_i32, %arg1 : i32, i32
  }
  func.func @transform_4(%arg0: i32, %arg1: i32) -> (i32, i32) {
    %c0_i32 = arith.constant 0 : i32
    %c0_i32_0 = arith.constant 0 : i32
    return %c0_i32, %arg1 : i32, i32
  }
  func.func @transform_5(%arg0: i32, %arg1: i32) -> (i32, i32) {
    %c0_i32 = arith.constant 0 : i32
    return %arg0, %arg1 : i32, i32
  }
}

module attributes {stable_mosaic.version = 11 : i64} {
  func.func @_attention_kernel(%arg0: i32, %arg1: memref<1x128x96xbf16, #tpu.memory_space<vmem>>, %arg2: memref<1x128x32xbf16, #tpu.memory_space<vmem>>) attributes {dimension_semantics = [#tpu.dimension_semantics<parallel>], iteration_bounds = array<i64: 2>, scalar_prefetch = 0 : i64, scratch_operands = 0 : i64, tpu.core_type = #tpu.core_type<tc>, window_params = [{transform_indices = @transform_0, window_bounds = array<i64: 1, 128, 96>}, {transform_indices = @transform_1, window_bounds = array<i64: 1, 128, 32>}]} {
    %0 = tpu.iota {dimensions = array<i32: 1>} : vector<128x128xi32>
    %c0 = arith.constant 0 : index
    %c0_0 = arith.constant 0 : index
    %c0_1 = arith.constant 0 : index
    %1 = vector.load %arg1[%c0, %c0_0, %c0_1] : memref<1x128x96xbf16, #tpu.memory_space<vmem>>, vector<1x128x8xbf16>
    %2 = vector.shape_cast %1 : vector<1x128x8xbf16> to vector<128x8xbf16>
    %c0_2 = arith.constant 0 : index
    %c0_3 = arith.constant 0 : index
    %c32 = arith.constant 32 : index
    %3 = vector.load %arg1[%c0_2, %c0_3, %c32] : memref<1x128x96xbf16, #tpu.memory_space<vmem>>, vector<1x128x8xbf16>
    %4 = vector.shape_cast %3 : vector<1x128x8xbf16> to vector<128x8xbf16>
    %c0_4 = arith.constant 0 : index
    %c0_5 = arith.constant 0 : index
    %c64 = arith.constant 64 : index
    %5 = vector.load %arg1[%c0_4, %c0_5, %c64] : memref<1x128x96xbf16, #tpu.memory_space<vmem>>, vector<1x128x8xbf16>
    %6 = vector.shape_cast %5 : vector<1x128x8xbf16> to vector<128x8xbf16>
    %cst = arith.constant dense<0.000000e+00> : vector<128x128xf32>
    %7 = tpu.matmul %2, %4, %cst {dimension_numbers = #tpu.dot_dimension_numbers<[1], [1], [0], [0], [0, 0, 1, 0], [], []>} : vector<128x8xbf16>, vector<128x8xbf16>, vector<128x128xf32> -> vector<128x128xf32>
    %cst_6 = arith.constant 0.353553385 : f32
    %8 = vector.broadcast %cst_6 : f32 to vector<128x128xf32>
    %9 = arith.mulf %7, %8 : vector<128x128xf32>
    %c18_i32 = arith.constant 18 : i32
    %10 = vector.broadcast %c18_i32 : i32 to vector<128x128xi32>
    %11 = arith.cmpi slt, %0, %10 : vector<128x128xi32>
    %cst_7 = arith.constant -1.000000e+30 : f32
    %12 = vector.broadcast %cst_7 : f32 to vector<128x128xf32>
    %13 = arith.select %11, %9, %12 : vector<128x128xi1>, vector<128x128xf32>
    %cst_8 = arith.constant dense<0xFF800000> : vector<128xf32>
    %14 = vector.multi_reduction <maximumf>, %13, %cst_8 [1] : vector<128x128xf32> to vector<128xf32>
    %15 = vector.shape_cast %14 : vector<128xf32> to vector<128x1xf32>
    %16 = vector.broadcast %15 : vector<128x1xf32> to vector<128x128xf32>
    %17 = arith.subf %13, %16 : vector<128x128xf32>
    %18 = math.exp %17 : vector<128x128xf32>
    %cst_9 = arith.constant dense<0.000000e+00> : vector<128xf32>
    %19 = vector.multi_reduction <add>, %18, %cst_9 [1] : vector<128x128xf32> to vector<128xf32>
    %20 = vector.shape_cast %19 : vector<128xf32> to vector<128x1xf32>
    %21 = tpu.reciprocal %20 {approx = true} : vector<128x1xf32> -> vector<128x1xf32>
    %22 = vector.broadcast %21 : vector<128x1xf32> to vector<128x128xf32>
    %23 = arith.mulf %18, %22 : vector<128x128xf32>
    %24 = arith.truncf %23 : vector<128x128xf32> to vector<128x128xbf16>
    %cst_10 = arith.constant dense<0.000000e+00> : vector<128x8xf32>
    %25 = tpu.matmul %24, %6, %cst_10 {dimension_numbers = #tpu.dot_dimension_numbers<[1], [0], [0], [1], [0, 0, 1, 1], [], []>} : vector<128x128xbf16>, vector<128x8xbf16>, vector<128x8xf32> -> vector<128x8xf32>
    %26 = arith.truncf %25 : vector<128x8xf32> to vector<128x8xbf16>
    %c0_11 = arith.constant 0 : index
    %c0_12 = arith.constant 0 : index
    %c0_13 = arith.constant 0 : index
    %27 = vector.load %arg2[%c0_11, %c0_12, %c0_13] : memref<1x128x32xbf16, #tpu.memory_space<vmem>>, vector<1x128x8xbf16>
    %28 = vector.shape_cast %27 : vector<1x128x8xbf16> to vector<128x8xbf16>
    %29 = vector.shape_cast %26 : vector<128x8xbf16> to vector<1x128x8xbf16>
    tpu.vector_store %arg2[%c0_11, %c0_12, %c0_13], %29 {strides = array<i32>} : memref<1x128x32xbf16, #tpu.memory_space<vmem>>, vector<1x128x8xbf16>,
    %c0_14 = arith.constant 0 : index
    %c0_15 = arith.constant 0 : index
    %c8 = arith.constant 8 : index
    %30 = vector.load %arg1[%c0_14, %c0_15, %c8] : memref<1x128x96xbf16, #tpu.memory_space<vmem>>, vector<1x128x8xbf16>
    %31 = vector.shape_cast %30 : vector<1x128x8xbf16> to vector<128x8xbf16>
    %c0_16 = arith.constant 0 : index
    %c0_17 = arith.constant 0 : index
    %c40 = arith.constant 40 : index
    %32 = vector.load %arg1[%c0_16, %c0_17, %c40] : memref<1x128x96xbf16, #tpu.memory_space<vmem>>, vector<1x128x8xbf16>
    %33 = vector.shape_cast %32 : vector<1x128x8xbf16> to vector<128x8xbf16>
    %c0_18 = arith.constant 0 : index
    %c0_19 = arith.constant 0 : index
    %c72 = arith.constant 72 : index
    %34 = vector.load %arg1[%c0_18, %c0_19, %c72] : memref<1x128x96xbf16, #tpu.memory_space<vmem>>, vector<1x128x8xbf16>
    %35 = vector.shape_cast %34 : vector<1x128x8xbf16> to vector<128x8xbf16>
    %cst_20 = arith.constant dense<0.000000e+00> : vector<128x128xf32>
    %36 = tpu.matmul %31, %33, %cst_20 {dimension_numbers = #tpu.dot_dimension_numbers<[1], [1], [0], [0], [0, 0, 1, 0], [], []>} : vector<128x8xbf16>, vector<128x8xbf16>, vector<128x128xf32> -> vector<128x128xf32>
    %cst_21 = arith.constant 0.353553385 : f32
    %37 = vector.broadcast %cst_21 : f32 to vector<128x128xf32>
    %38 = arith.mulf %36, %37 : vector<128x128xf32>
    %c18_i32_22 = arith.constant 18 : i32
    %39 = vector.broadcast %c18_i32_22 : i32 to vector<128x128xi32>
    %40 = arith.cmpi slt, %0, %39 : vector<128x128xi32>
    %cst_23 = arith.constant -1.000000e+30 : f32
    %41 = vector.broadcast %cst_23 : f32 to vector<128x128xf32>
    %42 = arith.select %40, %38, %41 : vector<128x128xi1>, vector<128x128xf32>
    %cst_24 = arith.constant dense<0xFF800000> : vector<128xf32>
    %43 = vector.multi_reduction <maximumf>, %42, %cst_24 [1] : vector<128x128xf32> to vector<128xf32>
    %44 = vector.shape_cast %43 : vector<128xf32> to vector<128x1xf32>
    %45 = vector.broadcast %44 : vector<128x1xf32> to vector<128x128xf32>
    %46 = arith.subf %42, %45 : vector<128x128xf32>
    %47 = math.exp %46 : vector<128x128xf32>
    %cst_25 = arith.constant dense<0.000000e+00> : vector<128xf32>
    %48 = vector.multi_reduction <add>, %47, %cst_25 [1] : vector<128x128xf32> to vector<128xf32>
    %49 = vector.shape_cast %48 : vector<128xf32> to vector<128x1xf32>
    %50 = tpu.reciprocal %49 {approx = true} : vector<128x1xf32> -> vector<128x1xf32>
    %51 = vector.broadcast %50 : vector<128x1xf32> to vector<128x128xf32>
    %52 = arith.mulf %47, %51 : vector<128x128xf32>
    %53 = arith.truncf %52 : vector<128x128xf32> to vector<128x128xbf16>
    %cst_26 = arith.constant dense<0.000000e+00> : vector<128x8xf32>
    %54 = tpu.matmul %53, %35, %cst_26 {dimension_numbers = #tpu.dot_dimension_numbers<[1], [0], [0], [1], [0, 0, 1, 1], [], []>} : vector<128x128xbf16>, vector<128x8xbf16>, vector<128x8xf32> -> vector<128x8xf32>
    %55 = arith.truncf %54 : vector<128x8xf32> to vector<128x8xbf16>
    %c0_27 = arith.constant 0 : index
    %c0_28 = arith.constant 0 : index
    %c8_29 = arith.constant 8 : index
    %56 = vector.load %arg2[%c0_27, %c0_28, %c8_29] : memref<1x128x32xbf16, #tpu.memory_space<vmem>>, vector<1x128x8xbf16>
    %57 = vector.shape_cast %56 : vector<1x128x8xbf16> to vector<128x8xbf16>
    %58 = vector.shape_cast %55 : vector<128x8xbf16> to vector<1x128x8xbf16>
    tpu.vector_store %arg2[%c0_27, %c0_28, %c8_29], %58 {strides = array<i32>} : memref<1x128x32xbf16, #tpu.memory_space<vmem>>, vector<1x128x8xbf16>,
    %c0_30 = arith.constant 0 : index
    %c0_31 = arith.constant 0 : index
    %c16 = arith.constant 16 : index
    %59 = vector.load %arg1[%c0_30, %c0_31, %c16] : memref<1x128x96xbf16, #tpu.memory_space<vmem>>, vector<1x128x8xbf16>
    %60 = vector.shape_cast %59 : vector<1x128x8xbf16> to vector<128x8xbf16>
    %c0_32 = arith.constant 0 : index
    %c0_33 = arith.constant 0 : index
    %c48 = arith.constant 48 : index
    %61 = vector.load %arg1[%c0_32, %c0_33, %c48] : memref<1x128x96xbf16, #tpu.memory_space<vmem>>, vector<1x128x8xbf16>
    %62 = vector.shape_cast %61 : vector<1x128x8xbf16> to vector<128x8xbf16>
    %c0_34 = arith.constant 0 : index
    %c0_35 = arith.constant 0 : index
    %c80 = arith.constant 80 : index
    %63 = vector.load %arg1[%c0_34, %c0_35, %c80] : memref<1x128x96xbf16, #tpu.memory_space<vmem>>, vector<1x128x8xbf16>
    %64 = vector.shape_cast %63 : vector<1x128x8xbf16> to vector<128x8xbf16>
    %cst_36 = arith.constant dense<0.000000e+00> : vector<128x128xf32>
    %65 = tpu.matmul %60, %62, %cst_36 {dimension_numbers = #tpu.dot_dimension_numbers<[1], [1], [0], [0], [0, 0, 1, 0], [], []>} : vector<128x8xbf16>, vector<128x8xbf16>, vector<128x128xf32> -> vector<128x128xf32>
    %cst_37 = arith.constant 0.353553385 : f32
    %66 = vector.broadcast %cst_37 : f32 to vector<128x128xf32>
    %67 = arith.mulf %65, %66 : vector<128x128xf32>
    %c18_i32_38 = arith.constant 18 : i32
    %68 = vector.broadcast %c18_i32_38 : i32 to vector<128x128xi32>
    %69 = arith.cmpi slt, %0, %68 : vector<128x128xi32>
    %cst_39 = arith.constant -1.000000e+30 : f32
    %70 = vector.broadcast %cst_39 : f32 to vector<128x128xf32>
    %71 = arith.select %69, %67, %70 : vector<128x128xi1>, vector<128x128xf32>
    %cst_40 = arith.constant dense<0xFF800000> : vector<128xf32>
    %72 = vector.multi_reduction <maximumf>, %71, %cst_40 [1] : vector<128x128xf32> to vector<128xf32>
    %73 = vector.shape_cast %72 : vector<128xf32> to vector<128x1xf32>
    %74 = vector.broadcast %73 : vector<128x1xf32> to vector<128x128xf32>
    %75 = arith.subf %71, %74 : vector<128x128xf32>
    %76 = math.exp %75 : vector<128x128xf32>
    %cst_41 = arith.constant dense<0.000000e+00> : vector<128xf32>
    %77 = vector.multi_reduction <add>, %76, %cst_41 [1] : vector<128x128xf32> to vector<128xf32>
    %78 = vector.shape_cast %77 : vector<128xf32> to vector<128x1xf32>
    %79 = tpu.reciprocal %78 {approx = true} : vector<128x1xf32> -> vector<128x1xf32>
    %80 = vector.broadcast %79 : vector<128x1xf32> to vector<128x128xf32>
    %81 = arith.mulf %76, %80 : vector<128x128xf32>
    %82 = arith.truncf %81 : vector<128x128xf32> to vector<128x128xbf16>
    %cst_42 = arith.constant dense<0.000000e+00> : vector<128x8xf32>
    %83 = tpu.matmul %82, %64, %cst_42 {dimension_numbers = #tpu.dot_dimension_numbers<[1], [0], [0], [1], [0, 0, 1, 1], [], []>} : vector<128x128xbf16>, vector<128x8xbf16>, vector<128x8xf32> -> vector<128x8xf32>
    %84 = arith.truncf %83 : vector<128x8xf32> to vector<128x8xbf16>
    %c0_43 = arith.constant 0 : index
    %c0_44 = arith.constant 0 : index
    %c16_45 = arith.constant 16 : index
    %85 = vector.load %arg2[%c0_43, %c0_44, %c16_45] : memref<1x128x32xbf16, #tpu.memory_space<vmem>>, vector<1x128x8xbf16>
    %86 = vector.shape_cast %85 : vector<1x128x8xbf16> to vector<128x8xbf16>
    %87 = vector.shape_cast %84 : vector<128x8xbf16> to vector<1x128x8xbf16>
    tpu.vector_store %arg2[%c0_43, %c0_44, %c16_45], %87 {strides = array<i32>} : memref<1x128x32xbf16, #tpu.memory_space<vmem>>, vector<1x128x8xbf16>,
    %c0_46 = arith.constant 0 : index
    %c0_47 = arith.constant 0 : index
    %c24 = arith.constant 24 : index
    %88 = vector.load %arg1[%c0_46, %c0_47, %c24] : memref<1x128x96xbf16, #tpu.memory_space<vmem>>, vector<1x128x8xbf16>
    %89 = vector.shape_cast %88 : vector<1x128x8xbf16> to vector<128x8xbf16>
    %c0_48 = arith.constant 0 : index
    %c0_49 = arith.constant 0 : index
    %c56 = arith.constant 56 : index
    %90 = vector.load %arg1[%c0_48, %c0_49, %c56] : memref<1x128x96xbf16, #tpu.memory_space<vmem>>, vector<1x128x8xbf16>
    %91 = vector.shape_cast %90 : vector<1x128x8xbf16> to vector<128x8xbf16>
    %c0_50 = arith.constant 0 : index
    %c0_51 = arith.constant 0 : index
    %c88 = arith.constant 88 : index
    %92 = vector.load %arg1[%c0_50, %c0_51, %c88] : memref<1x128x96xbf16, #tpu.memory_space<vmem>>, vector<1x128x8xbf16>
    %93 = vector.shape_cast %92 : vector<1x128x8xbf16> to vector<128x8xbf16>
    %cst_52 = arith.constant dense<0.000000e+00> : vector<128x128xf32>
    %94 = tpu.matmul %89, %91, %cst_52 {dimension_numbers = #tpu.dot_dimension_numbers<[1], [1], [0], [0], [0, 0, 1, 0], [], []>} : vector<128x8xbf16>, vector<128x8xbf16>, vector<128x128xf32> -> vector<128x128xf32>
    %cst_53 = arith.constant 0.353553385 : f32
    %95 = vector.broadcast %cst_53 : f32 to vector<128x128xf32>
    %96 = arith.mulf %94, %95 : vector<128x128xf32>
    %c18_i32_54 = arith.constant 18 : i32
    %97 = vector.broadcast %c18_i32_54 : i32 to vector<128x128xi32>
    %98 = arith.cmpi slt, %0, %97 : vector<128x128xi32>
    %cst_55 = arith.constant -1.000000e+30 : f32
    %99 = vector.broadcast %cst_55 : f32 to vector<128x128xf32>
    %100 = arith.select %98, %96, %99 : vector<128x128xi1>, vector<128x128xf32>
    %cst_56 = arith.constant dense<0xFF800000> : vector<128xf32>
    %101 = vector.multi_reduction <maximumf>, %100, %cst_56 [1] : vector<128x128xf32> to vector<128xf32>
    %102 = vector.shape_cast %101 : vector<128xf32> to vector<128x1xf32>
    %103 = vector.broadcast %102 : vector<128x1xf32> to vector<128x128xf32>
    %104 = arith.subf %100, %103 : vector<128x128xf32>
    %105 = math.exp %104 : vector<128x128xf32>
    %cst_57 = arith.constant dense<0.000000e+00> : vector<128xf32>
    %106 = vector.multi_reduction <add>, %105, %cst_57 [1] : vector<128x128xf32> to vector<128xf32>
    %107 = vector.shape_cast %106 : vector<128xf32> to vector<128x1xf32>
    %108 = tpu.reciprocal %107 {approx = true} : vector<128x1xf32> -> vector<128x1xf32>
    %109 = vector.broadcast %108 : vector<128x1xf32> to vector<128x128xf32>
    %110 = arith.mulf %105, %109 : vector<128x128xf32>
    %111 = arith.truncf %110 : vector<128x128xf32> to vector<128x128xbf16>
    %cst_58 = arith.constant dense<0.000000e+00> : vector<128x8xf32>
    %112 = tpu.matmul %111, %93, %cst_58 {dimension_numbers = #tpu.dot_dimension_numbers<[1], [0], [0], [1], [0, 0, 1, 1], [], []>} : vector<128x128xbf16>, vector<128x8xbf16>, vector<128x8xf32> -> vector<128x8xf32>
    %113 = arith.truncf %112 : vector<128x8xf32> to vector<128x8xbf16>
    %c0_59 = arith.constant 0 : index
    %c0_60 = arith.constant 0 : index
    %c24_61 = arith.constant 24 : index
    %114 = vector.load %arg2[%c0_59, %c0_60, %c24_61] : memref<1x128x32xbf16, #tpu.memory_space<vmem>>, vector<1x128x8xbf16>
    %115 = vector.shape_cast %114 : vector<1x128x8xbf16> to vector<128x8xbf16>
    %116 = vector.shape_cast %113 : vector<128x8xbf16> to vector<1x128x8xbf16>
    tpu.vector_store %arg2[%c0_59, %c0_60, %c24_61], %116 {strides = array<i32>} : memref<1x128x32xbf16, #tpu.memory_space<vmem>>, vector<1x128x8xbf16>,
    return
  }
  func.func @transform_0(%arg0: i32) -> (i32, i32, i32) {
    %c0_i32 = arith.constant 0 : i32
    %c0_i32_0 = arith.constant 0 : i32
    %c0_i32_1 = arith.constant 0 : i32
    return %arg0, %c0_i32, %c0_i32_0 : i32, i32, i32
  }
  func.func @transform_1(%arg0: i32) -> (i32, i32, i32) {
    %c0_i32 = arith.constant 0 : i32
    %c0_i32_0 = arith.constant 0 : i32
    %c0_i32_1 = arith.constant 0 : i32
    return %arg0, %c0_i32, %c0_i32_0 : i32, i32, i32
  }
}

module attributes {stable_mosaic.version = 11 : i64} {
  func.func @_linear_kernel(%arg0: i32, %arg1: i32, %arg2: i32, %arg3: memref<256x32xbf16, #tpu.memory_space<vmem>>, %arg4: memref<32x32xbf16, #tpu.memory_space<vmem>>, %arg5: memref<1x32xbf16, #tpu.memory_space<vmem>>, %arg6: memref<256x32xbf16, #tpu.memory_space<vmem>>, %arg7: memref<256x32xbf16, #tpu.memory_space<vmem>>, %arg8: memref<256x32xf32, #tpu.memory_space<vmem>>) attributes {dimension_semantics = [#tpu.dimension_semantics<parallel>, #tpu.dimension_semantics<parallel>, #tpu.dimension_semantics<arbitrary>], iteration_bounds = array<i64: 1, 1, 1>, scalar_prefetch = 0 : i64, scratch_operands = 1 : i64, tpu.core_type = #tpu.core_type<tc>, window_params = [{transform_indices = @transform_0, window_bounds = array<i64: 256, 32>}, {transform_indices = @transform_1, window_bounds = array<i64: 32, 32>}, {transform_indices = @transform_2, window_bounds = array<i64: 1, 32>}, {transform_indices = @transform_3, window_bounds = array<i64: 256, 32>}, {transform_indices = @transform_4, window_bounds = array<i64: 256, 32>}]} {
    %c0_i32 = arith.constant 0 : i32
    %0 = arith.cmpi eq, %arg2, %c0_i32 : i32
    %1 = arith.extui %0 : i1 to i32
    %c0_i32_0 = arith.constant 0 : i32
    %2 = arith.cmpi ne, %1, %c0_i32_0 : i32
    scf.if %2 {
      %cst_10 = arith.constant 0.000000e+00 : f32
      %12 = vector.broadcast %cst_10 : f32 to vector<256x32xf32>
      %c0_11 = arith.constant 0 : index
      %c0_12 = arith.constant 0 : index
      %13 = vector.load %arg8[%c0_11, %c0_12] : memref<256x32xf32, #tpu.memory_space<vmem>>, vector<256x32xf32>
      tpu.vector_store %arg8[%c0_11, %c0_12], %12 {strides = array<i32>} : memref<256x32xf32, #tpu.memory_space<vmem>>, vector<256x32xf32>,
    } else {
    }
    %c0 = arith.constant 0 : index
    %c0_1 = arith.constant 0 : index
    %3 = vector.load %arg8[%c0, %c0_1] : memref<256x32xf32, #tpu.memory_space<vmem>>, vector<256x32xf32>
    %c0_2 = arith.constant 0 : index
    %c0_3 = arith.constant 0 : index
    %4 = vector.load %arg3[%c0_2, %c0_3] : memref<256x32xbf16, #tpu.memory_space<vmem>>, vector<256x32xbf16>
    %c0_4 = arith.constant 0 : index
    %c0_5 = arith.constant 0 : index
    %5 = vector.load %arg4[%c0_4, %c0_5] : memref<32x32xbf16, #tpu.memory_space<vmem>>, vector<32x32xbf16>
    %cst = arith.constant dense<0.000000e+00> : vector<256x32xf32>
    %6 = tpu.matmul %4, %5, %cst {dimension_numbers = #tpu.dot_dimension_numbers<[1], [0], [0], [1], [0, 0, 1, 1], [], []>} : vector<256x32xbf16>, vector<32x32xbf16>, vector<256x32xf32> -> vector<256x32xf32>
    %7 = arith.addf %3, %6 : vector<256x32xf32>
    %c0_6 = arith.constant 0 : index
    %c0_7 = arith.constant 0 : index
    %8 = vector.load %arg8[%c0_6, %c0_7] : memref<256x32xf32, #tpu.memory_space<vmem>>, vector<256x32xf32>
    tpu.vector_store %arg8[%c0_6, %c0_7], %7 {strides = array<i32>} : memref<256x32xf32, #tpu.memory_space<vmem>>, vector<256x32xf32>,
    %c0_i32_8 = arith.constant 0 : i32
    %9 = arith.cmpi eq, %arg2, %c0_i32_8 : i32
    %10 = arith.extui %9 : i1 to i32
    %c0_i32_9 = arith.constant 0 : i32
    %11 = arith.cmpi ne, %10, %c0_i32_9 : i32
    scf.if %11 {
      %c0_10 = arith.constant 0 : index
      %c0_11 = arith.constant 0 : index
      %12 = vector.load %arg8[%c0_10, %c0_11] : memref<256x32xf32, #tpu.memory_space<vmem>>, vector<256x32xf32>
      %c0_12 = arith.constant 0 : index
      %c0_13 = arith.constant 0 : index
      %13 = vector.load %arg5[%c0_12, %c0_13] : memref<1x32xbf16, #tpu.memory_space<vmem>>, vector<1x32xbf16>
      %14 = arith.extf %13 : vector<1x32xbf16> to vector<1x32xf32>
      %15 = vector.broadcast %14 : vector<1x32xf32> to vector<256x32xf32>
      %16 = arith.addf %12, %15 : vector<256x32xf32>
      %c0_14 = arith.constant 0 : index
      %c0_15 = arith.constant 0 : index
      %17 = vector.load %arg6[%c0_14, %c0_15] : memref<256x32xbf16, #tpu.memory_space<vmem>>, vector<256x32xbf16>
      %18 = arith.extf %17 : vector<256x32xbf16> to vector<256x32xf32>
      %19 = arith.addf %16, %18 : vector<256x32xf32>
      %20 = arith.truncf %19 : vector<256x32xf32> to vector<256x32xbf16>
      %c0_16 = arith.constant 0 : index
      %c0_17 = arith.constant 0 : index
      %21 = vector.load %arg7[%c0_16, %c0_17] : memref<256x32xbf16, #tpu.memory_space<vmem>>, vector<256x32xbf16>
      tpu.vector_store %arg7[%c0_16, %c0_17], %20 {strides = array<i32>} : memref<256x32xbf16, #tpu.memory_space<vmem>>, vector<256x32xbf16>,
    } else {
    }
    return
  }
  func.func @transform_0(%arg0: i32, %arg1: i32, %arg2: i32) -> (i32, i32) {
    %c0_i32 = arith.constant 0 : i32
    return %arg0, %arg2 : i32, i32
  }
  func.func @transform_1(%arg0: i32, %arg1: i32, %arg2: i32) -> (i32, i32) {
    %c0_i32 = arith.constant 0 : i32
    return %arg2, %arg1 : i32, i32
  }
  func.func @transform_2(%arg0: i32, %arg1: i32, %arg2: i32) -> (i32, i32) {
    %c0_i32 = arith.constant 0 : i32
    %c0_i32_0 = arith.constant 0 : i32
    return %c0_i32, %arg1 : i32, i32
  }
  func.func @transform_3(%arg0: i32, %arg1: i32, %arg2: i32) -> (i32, i32) {
    %c0_i32 = arith.constant 0 : i32
    return %arg0, %arg1 : i32, i32
  }
  func.func @transform_4(%arg0: i32, %arg1: i32, %arg2: i32) -> (i32, i32) {
    %c0_i32 = arith.constant 0 : i32
    return %arg0, %arg1 : i32, i32
  }
}

module attributes {stable_mosaic.version = 11 : i64} {
  func.func @_ln_linear_kernel(%arg0: i32, %arg1: i32, %arg2: memref<256x32xbf16, #tpu.memory_space<vmem>>, %arg3: memref<1x32xbf16, #tpu.memory_space<vmem>>, %arg4: memref<1x32xbf16, #tpu.memory_space<vmem>>, %arg5: memref<32x64xbf16, #tpu.memory_space<vmem>>, %arg6: memref<1x64xbf16, #tpu.memory_space<vmem>>, %arg7: memref<256x64xbf16, #tpu.memory_space<vmem>>, %arg8: memref<256x32xbf16, #tpu.memory_space<vmem>>) attributes {dimension_semantics = [#tpu.dimension_semantics<parallel>, #tpu.dimension_semantics<arbitrary>], iteration_bounds = array<i64: 1, 1>, scalar_prefetch = 0 : i64, scratch_operands = 1 : i64, tpu.core_type = #tpu.core_type<tc>, window_params = [{transform_indices = @transform_0, window_bounds = array<i64: 256, 32>}, {pipeline_mode = #tpu.pipeline_mode<synchronous>, transform_indices = @transform_1, window_bounds = array<i64: 1, 32>}, {pipeline_mode = #tpu.pipeline_mode<synchronous>, transform_indices = @transform_2, window_bounds = array<i64: 1, 32>}, {transform_indices = @transform_3, window_bounds = array<i64: 32, 64>}, {transform_indices = @transform_4, window_bounds = array<i64: 1, 64>}, {transform_indices = @transform_5, window_bounds = array<i64: 256, 64>}]} {
    %c0_i32 = arith.constant 0 : i32
    %0 = arith.cmpi eq, %arg1, %c0_i32 : i32
    %1 = arith.extui %0 : i1 to i32
    %c0_i32_0 = arith.constant 0 : i32
    %2 = arith.cmpi ne, %1, %c0_i32_0 : i32
    scf.if %2 {
      %c0_12 = arith.constant 0 : index
      %c0_13 = arith.constant 0 : index
      %25 = vector.load %arg2[%c0_12, %c0_13] : memref<256x32xbf16, #tpu.memory_space<vmem>>, vector<256x32xbf16>
      %26 = arith.extf %25 : vector<256x32xbf16> to vector<256x32xf32>
      %cst_14 = arith.constant dense<0.000000e+00> : vector<256xf32>
      %27 = vector.multi_reduction <add>, %26, %cst_14 [1] : vector<256x32xf32> to vector<256xf32>
      %28 = vector.shape_cast %27 : vector<256xf32> to vector<256x1xf32>
      %cst_15 = arith.constant 3.200000e+01 : f32
      %29 = vector.broadcast %cst_15 : f32 to vector<256x1xf32>
      %30 = arith.divf %28, %29 : vector<256x1xf32>
      %31 = vector.broadcast %30 : vector<256x1xf32> to vector<256x32xf32>
      %32 = arith.subf %26, %31 : vector<256x32xf32>
      %33 = arith.mulf %32, %32 : vector<256x32xf32>
      %cst_16 = arith.constant dense<0.000000e+00> : vector<256xf32>
      %34 = vector.multi_reduction <add>, %33, %cst_16 [1] : vector<256x32xf32> to vector<256xf32>
      %35 = vector.shape_cast %34 : vector<256xf32> to vector<256x1xf32>
      %cst_17 = arith.constant 3.200000e+01 : f32
      %36 = vector.broadcast %cst_17 : f32 to vector<256x1xf32>
      %37 = arith.divf %35, %36 : vector<256x1xf32>
      %38 = vector.broadcast %30 : vector<256x1xf32> to vector<256x32xf32>
      %39 = arith.subf %26, %38 : vector<256x32xf32>
      %cst_18 = arith.constant 9.99999997E-7 : f32
      %40 = vector.broadcast %cst_18 : f32 to vector<256x1xf32>
      %41 = arith.addf %37, %40 : vector<256x1xf32>
      %42 = math.rsqrt %41 : vector<256x1xf32>
      %43 = vector.broadcast %42 : vector<256x1xf32> to vector<256x32xf32>
      %44 = arith.mulf %39, %43 : vector<256x32xf32>
      %c0_19 = arith.constant 0 : index
      %c0_20 = arith.constant 0 : index
      %45 = vector.load %arg3[%c0_19, %c0_20] : memref<1x32xbf16, #tpu.memory_space<vmem>>, vector<1x32xbf16>
      %46 = arith.extf %45 : vector<1x32xbf16> to vector<1x32xf32>
      %47 = vector.broadcast %46 : vector<1x32xf32> to vector<256x32xf32>
      %48 = arith.mulf %44, %47 : vector<256x32xf32>
      %c0_21 = arith.constant 0 : index
      %c0_22 = arith.constant 0 : index
      %49 = vector.load %arg4[%c0_21, %c0_22] : memref<1x32xbf16, #tpu.memory_space<vmem>>, vector<1x32xbf16>
      %50 = arith.extf %49 : vector<1x32xbf16> to vector<1x32xf32>
      %51 = vector.broadcast %50 : vector<1x32xf32> to vector<256x32xf32>
      %52 = arith.addf %48, %51 : vector<256x32xf32>
      %53 = arith.truncf %52 : vector<256x32xf32> to vector<256x32xbf16>
      %c0_23 = arith.constant 0 : index
      %c0_24 = arith.constant 0 : index
      %54 = vector.load %arg8[%c0_23, %c0_24] : memref<256x32xbf16, #tpu.memory_space<vmem>>, vector<256x32xbf16>
      tpu.vector_store %arg8[%c0_23, %c0_24], %53 {strides = array<i32>} : memref<256x32xbf16, #tpu.memory_space<vmem>>, vector<256x32xbf16>,
    } else {
    }
    %c0 = arith.constant 0 : index
    %c0_1 = arith.constant 0 : index
    %3 = vector.load %arg8[%c0, %c0_1] : memref<256x32xbf16, #tpu.memory_space<vmem>>, vector<256x32xbf16>
    %c0_2 = arith.constant 0 : index
    %c0_3 = arith.constant 0 : index
    %4 = vector.load %arg5[%c0_2, %c0_3] : memref<32x64xbf16, #tpu.memory_space<vmem>>, vector<32x64xbf16>
    %cst = arith.constant dense<0.000000e+00> : vector<256x64xf32>
    %5 = tpu.matmul %3, %4, %cst {dimension_numbers = #tpu.dot_dimension_numbers<[1], [0], [0], [1], [0, 0, 1, 1], [], []>} : vector<256x32xbf16>, vector<32x64xbf16>, vector<256x64xf32> -> vector<256x64xf32>
    %c0_4 = arith.constant 0 : index
    %c0_5 = arith.constant 0 : index
    %6 = vector.load %arg6[%c0_4, %c0_5] : memref<1x64xbf16, #tpu.memory_space<vmem>>, vector<1x64xbf16>
    %7 = arith.extf %6 : vector<1x64xbf16> to vector<1x64xf32>
    %8 = vector.broadcast %7 : vector<1x64xf32> to vector<256x64xf32>
    %9 = arith.addf %5, %8 : vector<256x64xf32>
    %10 = arith.mulf %9, %9 : vector<256x64xf32>
    %11 = arith.mulf %9, %10 : vector<256x64xf32>
    %cst_6 = arith.constant 4.471500e-02 : f32
    %12 = vector.broadcast %cst_6 : f32 to vector<256x64xf32>
    %13 = arith.mulf %12, %11 : vector<256x64xf32>
    %14 = arith.addf %9, %13 : vector<256x64xf32>
    %cst_7 = arith.constant 0.797884583 : f32
    %15 = vector.broadcast %cst_7 : f32 to vector<256x64xf32>
    %16 = arith.mulf %15, %14 : vector<256x64xf32>
    %17 = math.tanh %16 : vector<256x64xf32>
    %cst_8 = arith.constant 1.000000e+00 : f32
    %18 = vector.broadcast %cst_8 : f32 to vector<256x64xf32>
    %19 = arith.addf %18, %17 : vector<256x64xf32>
    %cst_9 = arith.constant 5.000000e-01 : f32
    %20 = vector.broadcast %cst_9 : f32 to vector<256x64xf32>
    %21 = arith.mulf %20, %19 : vector<256x64xf32>
    %22 = arith.mulf %9, %21 : vector<256x64xf32>
    %23 = arith.truncf %22 : vector<256x64xf32> to vector<256x64xbf16>
    %c0_10 = arith.constant 0 : index
    %c0_11 = arith.constant 0 : index
    %24 = vector.load %arg7[%c0_10, %c0_11] : memref<256x64xbf16, #tpu.memory_space<vmem>>, vector<256x64xbf16>
    tpu.vector_store %arg7[%c0_10, %c0_11], %23 {strides = array<i32>} : memref<256x64xbf16, #tpu.memory_space<vmem>>, vector<256x64xbf16>,
    return
  }
  func.func @transform_0(%arg0: i32, %arg1: i32) -> (i32, i32) {
    %c0_i32 = arith.constant 0 : i32
    %c0_i32_0 = arith.constant 0 : i32
    return %arg0, %c0_i32 : i32, i32
  }
  func.func @transform_1(%arg0: i32, %arg1: i32) -> (i32, i32) {
    %c0_i32 = arith.constant 0 : i32
    %c0_i32_0 = arith.constant 0 : i32
    %c0_i32_1 = arith.constant 0 : i32
    return %c0_i32, %c0_i32_0 : i32, i32
  }
  func.func @transform_2(%arg0: i32, %arg1: i32) -> (i32, i32) {
    %c0_i32 = arith.constant 0 : i32
    %c0_i32_0 = arith.constant 0 : i32
    %c0_i32_1 = arith.constant 0 : i32
    return %c0_i32, %c0_i32_0 : i32, i32
  }
  func.func @transform_3(%arg0: i32, %arg1: i32) -> (i32, i32) {
    %c0_i32 = arith.constant 0 : i32
    %c0_i32_0 = arith.constant 0 : i32
    return %c0_i32, %arg1 : i32, i32
  }
  func.func @transform_4(%arg0: i32, %arg1: i32) -> (i32, i32) {
    %c0_i32 = arith.constant 0 : i32
    %c0_i32_0 = arith.constant 0 : i32
    return %c0_i32, %arg1 : i32, i32
  }
  func.func @transform_5(%arg0: i32, %arg1: i32) -> (i32, i32) {
    %c0_i32 = arith.constant 0 : i32
    return %arg0, %arg1 : i32, i32
  }
}

module attributes {stable_mosaic.version = 11 : i64} {
  func.func @_layernorm_kernel(%arg0: i32, %arg1: memref<32x32xbf16, #tpu.memory_space<vmem>>, %arg2: memref<1x32xbf16, #tpu.memory_space<vmem>>, %arg3: memref<1x32xbf16, #tpu.memory_space<vmem>>, %arg4: memref<32x32xf32, #tpu.memory_space<vmem>>) attributes {dimension_semantics = [#tpu.dimension_semantics<parallel>], iteration_bounds = array<i64: 1>, scalar_prefetch = 0 : i64, scratch_operands = 0 : i64, tpu.core_type = #tpu.core_type<tc>, window_params = [{transform_indices = @transform_0, window_bounds = array<i64: 32, 32>}, {pipeline_mode = #tpu.pipeline_mode<synchronous>, transform_indices = @transform_1, window_bounds = array<i64: 1, 32>}, {pipeline_mode = #tpu.pipeline_mode<synchronous>, transform_indices = @transform_2, window_bounds = array<i64: 1, 32>}, {transform_indices = @transform_3, window_bounds = array<i64: 32, 32>}]} {
    %c0 = arith.constant 0 : index
    %c0_0 = arith.constant 0 : index
    %0 = vector.load %arg1[%c0, %c0_0] : memref<32x32xbf16, #tpu.memory_space<vmem>>, vector<32x32xbf16>
    %1 = arith.extf %0 : vector<32x32xbf16> to vector<32x32xf32>
    %cst = arith.constant dense<0.000000e+00> : vector<32xf32>
    %2 = vector.multi_reduction <add>, %1, %cst [1] : vector<32x32xf32> to vector<32xf32>
    %3 = vector.shape_cast %2 : vector<32xf32> to vector<32x1xf32>
    %cst_1 = arith.constant 3.200000e+01 : f32
    %4 = vector.broadcast %cst_1 : f32 to vector<32x1xf32>
    %5 = arith.divf %3, %4 : vector<32x1xf32>
    %6 = vector.broadcast %5 : vector<32x1xf32> to vector<32x32xf32>
    %7 = arith.subf %1, %6 : vector<32x32xf32>
    %8 = arith.mulf %7, %7 : vector<32x32xf32>
    %cst_2 = arith.constant dense<0.000000e+00> : vector<32xf32>
    %9 = vector.multi_reduction <add>, %8, %cst_2 [1] : vector<32x32xf32> to vector<32xf32>
    %10 = vector.shape_cast %9 : vector<32xf32> to vector<32x1xf32>
    %cst_3 = arith.constant 3.200000e+01 : f32
    %11 = vector.broadcast %cst_3 : f32 to vector<32x1xf32>
    %12 = arith.divf %10, %11 : vector<32x1xf32>
    %13 = vector.broadcast %5 : vector<32x1xf32> to vector<32x32xf32>
    %14 = arith.subf %1, %13 : vector<32x32xf32>
    %cst_4 = arith.constant 9.99999997E-7 : f32
    %15 = vector.broadcast %cst_4 : f32 to vector<32x1xf32>
    %16 = arith.addf %12, %15 : vector<32x1xf32>
    %17 = math.rsqrt %16 : vector<32x1xf32>
    %18 = vector.broadcast %17 : vector<32x1xf32> to vector<32x32xf32>
    %19 = arith.mulf %14, %18 : vector<32x32xf32>
    %c0_5 = arith.constant 0 : index
    %c0_6 = arith.constant 0 : index
    %20 = vector.load %arg2[%c0_5, %c0_6] : memref<1x32xbf16, #tpu.memory_space<vmem>>, vector<1x32xbf16>
    %21 = arith.extf %20 : vector<1x32xbf16> to vector<1x32xf32>
    %22 = vector.broadcast %21 : vector<1x32xf32> to vector<32x32xf32>
    %23 = arith.mulf %19, %22 : vector<32x32xf32>
    %c0_7 = arith.constant 0 : index
    %c0_8 = arith.constant 0 : index
    %24 = vector.load %arg3[%c0_7, %c0_8] : memref<1x32xbf16, #tpu.memory_space<vmem>>, vector<1x32xbf16>
    %25 = arith.extf %24 : vector<1x32xbf16> to vector<1x32xf32>
    %26 = vector.broadcast %25 : vector<1x32xf32> to vector<32x32xf32>
    %27 = arith.addf %23, %26 : vector<32x32xf32>
    %c0_9 = arith.constant 0 : index
    %c0_10 = arith.constant 0 : index
    %28 = vector.load %arg4[%c0_9, %c0_10] : memref<32x32xf32, #tpu.memory_space<vmem>>, vector<32x32xf32>
    tpu.vector_store %arg4[%c0_9, %c0_10], %27 {strides = array<i32>} : memref<32x32xf32, #tpu.memory_space<vmem>>, vector<32x32xf32>,
    return
  }
  func.func @transform_0(%arg0: i32) -> (i32, i32) {
    %c0_i32 = arith.constant 0 : i32
    %c0_i32_0 = arith.constant 0 : i32
    return %arg0, %c0_i32 : i32, i32
  }
  func.func @transform_1(%arg0: i32) -> (i32, i32) {
    %c0_i32 = arith.constant 0 : i32
    %c0_i32_0 = arith.constant 0 : i32
    %c0_i32_1 = arith.constant 0 : i32
    return %c0_i32, %c0_i32_0 : i32, i32
  }
  func.func @transform_2(%arg0: i32) -> (i32, i32) {
    %c0_i32 = arith.constant 0 : i32
    %c0_i32_0 = arith.constant 0 : i32
    %c0_i32_1 = arith.constant 0 : i32
    return %c0_i32, %c0_i32_0 : i32, i32
  }
  func.func @transform_3(%arg0: i32) -> (i32, i32) {
    %c0_i32 = arith.constant 0 : i32
    %c0_i32_0 = arith.constant 0 : i32
    return %arg0, %c0_i32 : i32, i32
  }
}

module attributes {stable_mosaic.version = 11 : i64} {
  func.func @_linear_kernel(%arg0: i32, %arg1: i32, %arg2: i32, %arg3: memref<256x64xbf16, #tpu.memory_space<vmem>>, %arg4: memref<64x32xbf16, #tpu.memory_space<vmem>>, %arg5: memref<1x32xbf16, #tpu.memory_space<vmem>>, %arg6: memref<256x32xbf16, #tpu.memory_space<vmem>>, %arg7: memref<256x32xbf16, #tpu.memory_space<vmem>>, %arg8: memref<256x32xf32, #tpu.memory_space<vmem>>) attributes {dimension_semantics = [#tpu.dimension_semantics<parallel>, #tpu.dimension_semantics<parallel>, #tpu.dimension_semantics<arbitrary>], iteration_bounds = array<i64: 1, 1, 1>, scalar_prefetch = 0 : i64, scratch_operands = 1 : i64, tpu.core_type = #tpu.core_type<tc>, window_params = [{transform_indices = @transform_0, window_bounds = array<i64: 256, 64>}, {transform_indices = @transform_1, window_bounds = array<i64: 64, 32>}, {transform_indices = @transform_2, window_bounds = array<i64: 1, 32>}, {transform_indices = @transform_3, window_bounds = array<i64: 256, 32>}, {transform_indices = @transform_4, window_bounds = array<i64: 256, 32>}]} {
    %c0_i32 = arith.constant 0 : i32
    %0 = arith.cmpi eq, %arg2, %c0_i32 : i32
    %1 = arith.extui %0 : i1 to i32
    %c0_i32_0 = arith.constant 0 : i32
    %2 = arith.cmpi ne, %1, %c0_i32_0 : i32
    scf.if %2 {
      %cst_10 = arith.constant 0.000000e+00 : f32
      %12 = vector.broadcast %cst_10 : f32 to vector<256x32xf32>
      %c0_11 = arith.constant 0 : index
      %c0_12 = arith.constant 0 : index
      %13 = vector.load %arg8[%c0_11, %c0_12] : memref<256x32xf32, #tpu.memory_space<vmem>>, vector<256x32xf32>
      tpu.vector_store %arg8[%c0_11, %c0_12], %12 {strides = array<i32>} : memref<256x32xf32, #tpu.memory_space<vmem>>, vector<256x32xf32>,
    } else {
    }
    %c0 = arith.constant 0 : index
    %c0_1 = arith.constant 0 : index
    %3 = vector.load %arg8[%c0, %c0_1] : memref<256x32xf32, #tpu.memory_space<vmem>>, vector<256x32xf32>
    %c0_2 = arith.constant 0 : index
    %c0_3 = arith.constant 0 : index
    %4 = vector.load %arg3[%c0_2, %c0_3] : memref<256x64xbf16, #tpu.memory_space<vmem>>, vector<256x64xbf16>
    %c0_4 = arith.constant 0 : index
    %c0_5 = arith.constant 0 : index
    %5 = vector.load %arg4[%c0_4, %c0_5] : memref<64x32xbf16, #tpu.memory_space<vmem>>, vector<64x32xbf16>
    %cst = arith.constant dense<0.000000e+00> : vector<256x32xf32>
    %6 = tpu.matmul %4, %5, %cst {dimension_numbers = #tpu.dot_dimension_numbers<[1], [0], [0], [1], [0, 0, 1, 1], [], []>} : vector<256x64xbf16>, vector<64x32xbf16>, vector<256x32xf32> -> vector<256x32xf32>
    %7 = arith.addf %3, %6 : vector<256x32xf32>
    %c0_6 = arith.constant 0 : index
    %c0_7 = arith.constant 0 : index
    %8 = vector.load %arg8[%c0_6, %c0_7] : memref<256x32xf32, #tpu.memory_space<vmem>>, vector<256x32xf32>
    tpu.vector_store %arg8[%c0_6, %c0_7], %7 {strides = array<i32>} : memref<256x32xf32, #tpu.memory_space<vmem>>, vector<256x32xf32>,
    %c0_i32_8 = arith.constant 0 : i32
    %9 = arith.cmpi eq, %arg2, %c0_i32_8 : i32
    %10 = arith.extui %9 : i1 to i32
    %c0_i32_9 = arith.constant 0 : i32
    %11 = arith.cmpi ne, %10, %c0_i32_9 : i32
    scf.if %11 {
      %c0_10 = arith.constant 0 : index
      %c0_11 = arith.constant 0 : index
      %12 = vector.load %arg8[%c0_10, %c0_11] : memref<256x32xf32, #tpu.memory_space<vmem>>, vector<256x32xf32>
      %c0_12 = arith.constant 0 : index
      %c0_13 = arith.constant 0 : index
      %13 = vector.load %arg5[%c0_12, %c0_13] : memref<1x32xbf16, #tpu.memory_space<vmem>>, vector<1x32xbf16>
      %14 = arith.extf %13 : vector<1x32xbf16> to vector<1x32xf32>
      %15 = vector.broadcast %14 : vector<1x32xf32> to vector<256x32xf32>
      %16 = arith.addf %12, %15 : vector<256x32xf32>
      %c0_14 = arith.constant 0 : index
      %c0_15 = arith.constant 0 : index
      %17 = vector.load %arg6[%c0_14, %c0_15] : memref<256x32xbf16, #tpu.memory_space<vmem>>, vector<256x32xbf16>
      %18 = arith.extf %17 : vector<256x32xbf16> to vector<256x32xf32>
      %19 = arith.addf %16, %18 : vector<256x32xf32>
      %20 = arith.truncf %19 : vector<256x32xf32> to vector<256x32xbf16>
      %c0_16 = arith.constant 0 : index
      %c0_17 = arith.constant 0 : index
      %21 = vector.load %arg7[%c0_16, %c0_17] : memref<256x32xbf16, #tpu.memory_space<vmem>>, vector<256x32xbf16>
      tpu.vector_store %arg7[%c0_16, %c0_17], %20 {strides = array<i32>} : memref<256x32xbf16, #tpu.memory_space<vmem>>, vector<256x32xbf16>,
    } else {
    }
    return
  }
  func.func @transform_0(%arg0: i32, %arg1: i32, %arg2: i32) -> (i32, i32) {
    %c0_i32 = arith.constant 0 : i32
    return %arg0, %arg2 : i32, i32
  }
  func.func @transform_1(%arg0: i32, %arg1: i32, %arg2: i32) -> (i32, i32) {
    %c0_i32 = arith.constant 0 : i32
    return %arg2, %arg1 : i32, i32
  }
  func.func @transform_2(%arg0: i32, %arg1: i32, %arg2: i32) -> (i32, i32) {
    %c0_i32 = arith.constant 0 : i32
    %c0_i32_0 = arith.constant 0 : i32
    return %c0_i32, %arg1 : i32, i32
  }
  func.func @transform_3(%arg0: i32, %arg1: i32, %arg2: i32) -> (i32, i32) {
    %c0_i32 = arith.constant 0 : i32
    return %arg0, %arg1 : i32, i32
  }
  func.func @transform_4(%arg0: i32, %arg1: i32, %arg2: i32) -> (i32, i32) {
    %c0_i32 = arith.constant 0 : i32
    return %arg0, %arg1 : i32, i32
  }
}

</mosaic_0001>

<bundles_post_ra>
// kernel: vit_forward.12
= control target key start
LH: loop header
LB: loop body
LE: loop exit
PB: predicated region body
PF: predicated region fallthrough
CT: control target
= control target key end

     0   :  { %vm19_vm0 = vcmask 261120   ;;  %v173_v1 = vmov 0.0   ;;  %vm74_vm1 = vcmask 523264   ;;  %vm127_vm2 = vcmask 257024   ;;  %s235_s1 = inlined_call_operand.vmem [shape: bf16[64,32], index: 1, kind: input, shape index: {}]   ;;  %s236_s0 = inlined_call_operand.vmem [shape: bf16[32,64], index: 0, kind: input, shape index: {}]   ;;  %s237_s2 = inlined_call_operand.vmem [shape: bf16[1,32], index: 2, kind: input, shape index: {}]   ;;  %s238_s3 = inlined_call_operand.vmem [shape: bf16[32,32], index: 3, kind: output, shape index: {}]  }
   0x1   :  { %v167_v0 = vld [vmem:[%s235_s1 + $0x18] sm:$0xff]  ;;  %20 = vst.msk [vmem:[#allocation2] sm:$0xff] %vm19_vm0, %v173_v1  ;;  %v166_v2 = vld [vmem:[%s235_s1 + $0x10] sm:$0xff]  ;;  %v165_v3 = vld [vmem:[%s235_s1 + $0x8] sm:$0xff] }
   0x2   :  { %21 = vst.msk [vmem:[#allocation2 + $0x8] sm:$0xff] %vm19_vm0, %v173_v1  ;;  %85 = vmatpush.bf16.msra.mxu0 %v167_v0  ;;  %168 = vmatpush.bf16.msra.mxu1 %v167_v0  ;;  %v164_v4 = vld [vmem:[%s235_s1] sm:$0xff]  ;;  %v163_v6 = vld [vmem:[%s236_s0 + $0x8] sm:$0xff] }
   0x3   :  { %22 = vst.msk [vmem:[#allocation2 + $0x10] sm:$0xff] %vm19_vm0, %v173_v1  ;;  %v162_v5 = vld [vmem:[%s236_s0] sm:$0xff] }
   0x4   :  { %23 = vst.msk [vmem:[#allocation2 + $0x18] sm:$0xff] %vm19_vm0, %v173_v1  ;;  %v116_v10 = vld [vmem:[%s237_s2] sm:$0x1] }
   0x5   :  { %v117_v14 = vunpack.c.l.bf16 %v116_v10 }
   0x6   :  { %86 = vmatpush.bf16.msra.mxu0 %v166_v2  ;;  %169 = vmatpush.bf16.msra.mxu1 %v166_v2 }
   0x7   :  { %v118_v17 = vperm.slane %v117_v14, 0 }
   0x8   :  { %v24_v7 = vld [vmem:[#allocation2] sm:$0xff] }
   0x9   :  { %v25_v15 = vld [vmem:[#allocation2 + $0x8] sm:$0xff] }
   0xa   :  { %87 = vmatpush.bf16.msra.mxu0 %v165_v3  ;;  %170 = vmatpush.bf16.msra.mxu1 %v165_v3  ;;  %v26_v8 = vld [vmem:[#allocation2 + $0x10] sm:$0xff] }
   0xb   :  { %v27_v16 = vld [vmem:[#allocation2 + $0x18] sm:$0xff] }
   0xe   :  { %88 = vmatpush.bf16.msra.mxu0 %v164_v4  ;;  %171 = vmatpush.bf16.msra.mxu1 %v164_v4 }
  0x11   :  { %160 = vmatmul.msk.bf16.vlgmr.msra.gmra.mxu0 %vm74_vm1, %v162_v5  ;;  %161 = vmatmul.msk.bf16.vlgmr.msra.gmra.mxu1 %vm74_vm1, %v163_v6 }
  0x8e   :  { %v90_v9 = vpop.f32.mrf.mxu0  ;;  %v95_v11 = vpop.f32.mrf.mxu1 }
  0x8f   :  { %v100_v12 = vadd.f32 %v90_v9, %v24_v7  ;;  %v102_v13 = vadd.f32 %v95_v11, %v26_v8 }
  0x91   :  { %105 = vst.msk [vmem:[#allocation2] sm:$0xff] %vm19_vm0, %v100_v12 }
  0x92   :  { %107 = vst.msk [vmem:[#allocation2 + $0x10] sm:$0xff] %vm19_vm0, %v102_v13 }
  0x96   :  { %v92_v18 = vpop.f32.mrf.mxu0  ;;  %v97_v19 = vpop.f32.mrf.mxu1 }
  0x97   :  { %v101_v20 = vadd.f32 %v92_v18, %v25_v15  ;;  %v103_v21 = vadd.f32 %v97_v19, %v27_v16 }
  0x98   :  { %v112_v22 = vld [vmem:[#allocation2] sm:$0xff] }
  0x99   :  { %v119_v23 = vadd.f32 %v118_v17, %v112_v22  ;;  %v114_v24 = vld [vmem:[#allocation2 + $0x10] sm:$0xff]  ;;  %106 = vst.msk [vmem:[#allocation2 + $0x8] sm:$0xff] %vm19_vm0, %v101_v20 }
  0x9a   :  { %v121_v25 = vadd.f32 %v118_v17, %v114_v24  ;;  %108 = vst.msk [vmem:[#allocation2 + $0x18] sm:$0xff] %vm19_vm0, %v103_v21 }
  0x9b   :  { %v123_v26 = vpack.c.bf16 %v119_v23, %v119_v23 }
  0x9c   :  { %v125_v27 = vpack.c.bf16 %v121_v25, %v121_v25 }
  0x9d   :  { %128 = vst.msk [vmem:[%s238_s3] sm:$0xf] %vm127_vm2, %v123_v26 }
  0x9e   :  { %130 = vst.msk [vmem:[%s238_s3 + $0x8] sm:$0xf] %vm127_vm2, %v125_v27 }
  0xa0   :  { %v113_v28 = vld [vmem:[#allocation2 + $0x8] sm:$0xff] }
  0xa1   :  { %v120_v29 = vadd.f32 %v118_v17, %v113_v28  ;;  %v115_v30 = vld [vmem:[#allocation2 + $0x18] sm:$0xff] }
  0xa2   :  { %v122_v31 = vadd.f32 %v118_v17, %v115_v30 }
  0xa3   :  { %v124_v32 = vpack.c.bf16 %v120_v29, %v120_v29 }
  0xa4   :  { %v126_v33 = vpack.c.bf16 %v122_v31, %v122_v31 }
  0xa5   :  { %129 = vst.msk [vmem:[%s238_s3 + $0x4] sm:$0xf] %vm127_vm2, %v124_v32 }
  0xa6   :  { %131 = vst.msk [vmem:[%s238_s3 + $0xc] sm:$0xf] %vm127_vm2, %v126_v33 }

// kernel: vit_forward.15
= control target key start
LH: loop header
LB: loop body
LE: loop exit
PB: predicated region body
PF: predicated region fallthrough
CT: control target
= control target key end

     0   :  { %vm22_vm0 = vcmask 261120   ;;  %v844_v10 = vmov 0.0   ;;  %vm615_vm1 = vcmask 257024   ;;  %s1273_s1 = inlined_call_operand.vmem [shape: bf16[32,32], index: 1, kind: input, shape index: {}]   ;;  %s1274_s0 = inlined_call_operand.vmem [shape: bf16[256,32], index: 0, kind: input, shape index: {}]   ;;  %s1275_s2 = inlined_call_operand.vmem [shape: bf16[1,32], index: 2, kind: input, shape index: {}]   ;;  %s1276_s3 = inlined_call_operand.vmem [shape: bf16[256,32], index: 3, kind: input, shape index: {}]   ;;  %s1277_s4 = inlined_call_operand.vmem [shape: bf16[256,32], index: 4, kind: output, shape index: {}]  }
   0x1   :  { %v757_v0 = vld [vmem:[%s1273_s1 + $0x8] sm:$0xff]  ;;  %v756_v1 = vld [vmem:[%s1273_s1] sm:$0xff]  ;;  %23 = vst.msk [vmem:[#allocation2] sm:$0xff] %vm22_vm0, %v844_v10  ;;  %v742_v11 = vld [vmem:[%s1274_s0 + $0x10] sm:$0xff] }
   0x2   :  { %270 = vmatpush.bf16.msra.mxu0 %v757_v0  ;;  %837 = vmatpush.bf16.msra.mxu1 %v757_v0  ;;  %v740_v2 = vld [vmem:[%s1274_s0] sm:$0xff]  ;;  %v741_v6 = vld [vmem:[%s1274_s0 + $0x8] sm:$0xff]  ;;  %24 = vst.msk [vmem:[#allocation2 + $0x8] sm:$0xff] %vm22_vm0, %v844_v10  ;;  %v746_v12 = vld [vmem:[%s1274_s0 + $0x30] sm:$0xff] }
   0x3   :  { %838 = vmatpush.bf16.msra.mxu2 %v757_v0  ;;  %839 = vmatpush.bf16.msra.mxu3 %v757_v0  ;;  %v744_v3 = vld [vmem:[%s1274_s0 + $0x20] sm:$0xff]  ;;  %v745_v7 = vld [vmem:[%s1274_s0 + $0x28] sm:$0xff]  ;;  %25 = vst.msk [vmem:[#allocation2 + $0x10] sm:$0xff] %vm22_vm0, %v844_v10  ;;  %v750_v13 = vld [vmem:[%s1274_s0 + $0x50] sm:$0xff] }
   0x4   :  { %v748_v4 = vld [vmem:[%s1274_s0 + $0x40] sm:$0xff]  ;;  %v749_v8 = vld [vmem:[%s1274_s0 + $0x48] sm:$0xff]  ;;  %26 = vst.msk [vmem:[#allocation2 + $0x18] sm:$0xff] %vm22_vm0, %v844_v10  ;;  %v754_v14 = vld [vmem:[%s1274_s0 + $0x70] sm:$0xff] }
   0x5   :  { %v752_v5 = vld [vmem:[%s1274_s0 + $0x60] sm:$0xff]  ;;  %v753_v9 = vld [vmem:[%s1274_s0 + $0x68] sm:$0xff]  ;;  %27 = vst.msk [vmem:[#allocation2 + $0x20] sm:$0xff] %vm22_vm0, %v844_v10  ;;  %v743_v15 = vld [vmem:[%s1274_s0 + $0x18] sm:$0xff] }
   0x6   :  { %271 = vmatpush.bf16.msra.mxu0 %v756_v1  ;;  %840 = vmatpush.bf16.msra.mxu1 %v756_v1  ;;  %28 = vst.msk [vmem:[#allocation2 + $0x28] sm:$0xff] %vm22_vm0, %v844_v10  ;;  %v747_v16 = vld [vmem:[%s1274_s0 + $0x38] sm:$0xff]  ;;  %v452_v22 = vld [vmem:[%s1275_s2] sm:$0x1] }
   0x7   :  { %841 = vmatpush.bf16.msra.mxu2 %v756_v1  ;;  %842 = vmatpush.bf16.msra.mxu3 %v756_v1  ;;  %29 = vst.msk [vmem:[#allocation2 + $0x30] sm:$0xff] %vm22_vm0, %v844_v10  ;;  %v751_v17 = vld [vmem:[%s1274_s0 + $0x58] sm:$0xff]  ;;  %v453_v26 = vunpack.c.l.bf16 %v452_v22  ;;  %v980_v29 = vld [vmem:[%s1276_s3] sm:$0xff]  }
   0x8   :  { %30 = vst.msk [vmem:[#allocation2 + $0x38] sm:$0xff] %vm22_vm0, %v844_v10  ;;  %v755_v18 = vld [vmem:[%s1274_s0 + $0x78] sm:$0xff]  ;;  %v55_v19 = vld [vmem:[#allocation2] sm:$0xff]  ;;  %v760_v40 = vunpack.c.l.bf16 %v980_v29 }
   0x9   :  { %724 = vmatmul.msk.bf16.vlgmr.msra.gmra.mxu0 %vm22_vm0, %v740_v2  ;;  %728 = vmatmul.msk.bf16.vlgmr.msra.gmra.mxu1 %vm22_vm0, %v744_v3  ;;  %31 = vst.msk [vmem:[#allocation2 + $0x40] sm:$0xff] %vm22_vm0, %v844_v10  ;;  %v56_v30 = vld [vmem:[#allocation2 + $0x8] sm:$0xff]  ;;  %v982_v32 = vperm.slane %v453_v26, 0  ;;  %v987_v33 = vld [vmem:[%s1276_s3 + $0x20] sm:$0xff]  }
   0xa   :  { %732 = vmatmul.msk.bf16.vlgmr.msra.gmra.mxu2 %vm22_vm0, %v748_v4  ;;  %736 = vmatmul.msk.bf16.vlgmr.msra.gmra.mxu3 %vm22_vm0, %v752_v5  ;;  %32 = vst.msk [vmem:[#allocation2 + $0x48] sm:$0xff] %vm22_vm0, %v844_v10  ;;  %v776_v44 = vunpack.c.l.bf16 %v987_v33  ;;  %v999_v49 = vld [vmem:[%s1276_s3 + $0x40] sm:$0xff]   ;;  %v57_v54 = vld [vmem:[#allocation2 + $0x10] sm:$0xff]  ;;  %v1034_v26 = vld [vmem:[%s1276_s3 + $0x8] sm:$0xff]  }
   0xb   :  { %33 = vst.msk [vmem:[#allocation2 + $0x50] sm:$0xff] %vm22_vm0, %v844_v10  ;;  %v1005_v53 = vld [vmem:[%s1276_s3 + $0x60] sm:$0xff]   ;;  %v792_v60 = vunpack.c.l.bf16 %v999_v49 }
   0xc   :  { %34 = vst.msk [vmem:[#allocation2 + $0x58] sm:$0xff] %vm22_vm0, %v844_v10  ;;  %v808_v2 = vunpack.c.l.bf16 %v1005_v53 }
   0xd   :  { %35 = vst.msk [vmem:[#allocation2 + $0x60] sm:$0xff] %vm22_vm0, %v844_v10 }
   0xe   :  { %36 = vst.msk [vmem:[#allocation2 + $0x68] sm:$0xff] %vm22_vm0, %v844_v10 }
   0xf   :  { %37 = vst.msk [vmem:[#allocation2 + $0x70] sm:$0xff] %vm22_vm0, %v844_v10 }
  0x10   :  { %38 = vst.msk [vmem:[#allocation2 + $0x78] sm:$0xff] %vm22_vm0, %v844_v10  ;;  %v63_v20 = vld [vmem:[#allocation2 + $0x40] sm:$0xff] }
  0x11   :  { %39 = vst.msk [vmem:[#allocation2 + $0x80] sm:$0xff] %vm22_vm0, %v844_v10  ;;  %v64_v31 = vld [vmem:[#allocation2 + $0x48] sm:$0xff] }
  0x12   :  { %40 = vst.msk [vmem:[#allocation2 + $0x88] sm:$0xff] %vm22_vm0, %v844_v10  ;;  %v65_v58 = vld [vmem:[#allocation2 + $0x50] sm:$0xff] }
  0x13   :  { %41 = vst.msk [vmem:[#allocation2 + $0x90] sm:$0xff] %vm22_vm0, %v844_v10 }
  0x14   :  { %42 = vst.msk [vmem:[#allocation2 + $0x98] sm:$0xff] %vm22_vm0, %v844_v10 }
  0x15   :  { %43 = vst.msk [vmem:[#allocation2 + $0xa0] sm:$0xff] %vm22_vm0, %v844_v10 }
  0x16   :  { %44 = vst.msk [vmem:[#allocation2 + $0xa8] sm:$0xff] %vm22_vm0, %v844_v10 }
  0x17   :  { %45 = vst.msk [vmem:[#allocation2 + $0xb0] sm:$0xff] %vm22_vm0, %v844_v10 }
  0x18   :  { %46 = vst.msk [vmem:[#allocation2 + $0xb8] sm:$0xff] %vm22_vm0, %v844_v10  ;;  %v71_v27 = vld [vmem:[#allocation2 + $0x80] sm:$0xff] }
  0x19   :  { %725 = vmatmul.msk.bf16.gmra.mxu0 %vm22_vm0, %v741_v6  ;;  %729 = vmatmul.msk.bf16.gmra.mxu1 %vm22_vm0, %v745_v7  ;;  %47 = vst.msk [vmem:[#allocation2 + $0xc0] sm:$0xff] %vm22_vm0, %v844_v10  ;;  %v72_v50 = vld [vmem:[#allocation2 + $0x88] sm:$0xff]  ;;  %v761_v6 = vunpack.c.h.bf16 %v980_v29  ;;  %v66_v29 = vld [vmem:[#allocation2 + $0x58] sm:$0xff] }
  0x1a   :  { %733 = vmatmul.msk.bf16.gmra.mxu2 %vm22_vm0, %v749_v8  ;;  %737 = vmatmul.msk.bf16.gmra.mxu3 %vm22_vm0, %v753_v9  ;;  %48 = vst.msk [vmem:[#allocation2 + $0xc8] sm:$0xff] %vm22_vm0, %v844_v10 }
  0x1b   :  { %49 = vst.msk [vmem:[#allocation2 + $0xd0] sm:$0xff] %vm22_vm0, %v844_v10 }
  0x1c   :  { %50 = vst.msk [vmem:[#allocation2 + $0xd8] sm:$0xff] %vm22_vm0, %v844_v10 }
  0x1d   :  { %51 = vst.msk [vmem:[#allocation2 + $0xe0] sm:$0xff] %vm22_vm0, %v844_v10 }
  0x1e   :  { %52 = vst.msk [vmem:[#allocation2 + $0xe8] sm:$0xff] %vm22_vm0, %v844_v10 }
  0x1f   :  { %53 = vst.msk [vmem:[#allocation2 + $0xf0] sm:$0xff] %vm22_vm0, %v844_v10 }
  0x20   :  { %54 = vst.msk [vmem:[#allocation2 + $0xf8] sm:$0xff] %vm22_vm0, %v844_v10  ;;  %v79_v28 = vld [vmem:[#allocation2 + $0xc0] sm:$0xff]  ;;  %v777_v10 = vunpack.c.h.bf16 %v987_v33  ;;  %v793_v33 = vunpack.c.h.bf16 %v999_v49 }
  0x21   :  { %v80_v51 = vld [vmem:[#allocation2 + $0xc8] sm:$0xff] }
  0x29   :  { %726 = vmatmul.msk.bf16.gmra.mxu0 %vm22_vm0, %v742_v11  ;;  %730 = vmatmul.msk.bf16.gmra.mxu1 %vm22_vm0, %v746_v12 }
  0x2a   :  { %734 = vmatmul.msk.bf16.gmra.mxu2 %vm22_vm0, %v750_v13  ;;  %738 = vmatmul.msk.bf16.gmra.mxu3 %vm22_vm0, %v754_v14 }
  0x39   :  { %727 = vmatmul.msk.bf16.gmra.mxu0 %vm22_vm0, %v743_v15  ;;  %731 = vmatmul.msk.bf16.gmra.mxu1 %vm22_vm0, %v747_v16  ;;  %v73_v16 = vld [vmem:[#allocation2 + $0x90] sm:$0xff] }
  0x3a   :  { %735 = vmatmul.msk.bf16.gmra.mxu2 %vm22_vm0, %v751_v17  ;;  %739 = vmatmul.msk.bf16.gmra.mxu3 %vm22_vm0, %v755_v18 }
  0x86   :  { %v273_v21 = vpop.f32.mrf.mxu0  ;;  %v293_v23 = vpop.f32.mrf.mxu1 }
  0x87   :  { %v353_v24 = vadd.f32 %v273_v21, %v55_v19  ;;  %v361_v25 = vadd.f32 %v293_v23, %v63_v20  ;;  %v81_v19 = vld [vmem:[#allocation2 + $0xd0] sm:$0xff] }
  0x89   :  { %385 = vst.msk [vmem:[#allocation2] sm:$0xff] %vm22_vm0, %v353_v24  ;;  %v58_v24 = vld [vmem:[#allocation2 + $0x18] sm:$0xff] }
  0x8a   :  { %393 = vst.msk [vmem:[#allocation2 + $0x40] sm:$0xff] %vm22_vm0, %v361_v25 }
  0x8d   :  { %v313_v34 = vpop.f32.mrf.mxu2  ;;  %v333_v35 = vpop.f32.mrf.mxu3 }
  0x8e   :  { %v369_v36 = vadd.f32 %v313_v34, %v71_v27  ;;  %v377_v37 = vadd.f32 %v333_v35, %v79_v28  ;;  %v275_v38 = vpop.f32.mrf.mxu0  ;;  %v295_v39 = vpop.f32.mrf.mxu1  ;;  %v1044_v34 = vld [vmem:[%s1276_s3 + $0x28] sm:$0xff]  }
  0x8f   :  { %v354_v41 = vadd.f32 %v275_v38, %v56_v30  ;;  %v362_v42 = vadd.f32 %v295_v39, %v64_v31 }
  0x90   :  { %v420_v43 = vld [vmem:[#allocation2] sm:$0xff]  ;;  %401 = vst.msk [vmem:[#allocation2 + $0x80] sm:$0xff] %vm22_vm0, %v369_v36 }
  0x91   :  { %v455_v45 = vadd.f32 %v982_v32, %v420_v43  ;;  %v428_v46 = vld [vmem:[#allocation2 + $0x40] sm:$0xff]  ;;  %409 = vst.msk [vmem:[#allocation2 + $0xc0] sm:$0xff] %vm22_vm0, %v377_v37  ;;  %v809_v37 = vunpack.c.h.bf16 %v1005_v53 }
  0x92   :  { %v463_v47 = vadd.f32 %v982_v32, %v428_v46  ;;  %386 = vst.msk [vmem:[#allocation2 + $0x8] sm:$0xff] %vm22_vm0, %v354_v41  ;;  %v764_v41 = vunpack.c.l.bf16 %v1034_v26 }
  0x93   :  { %v551_v48 = vadd.f32 %v760_v40, %v455_v45  ;;  %394 = vst.msk [vmem:[#allocation2 + $0x48] sm:$0xff] %vm22_vm0, %v362_v42  ;;  %v780_v45 = vunpack.c.l.bf16 %v1044_v34 }
  0x94   :  { %v559_v52 = vadd.f32 %v776_v44, %v463_v47 }
  0x95   :  { %v583_v55 = vpack.c.bf16 %v551_v48, %v551_v48  ;;  %v315_v56 = vpop.f32.mrf.mxu2  ;;  %v335_v57 = vpop.f32.mrf.mxu3 }
  0x96   :  { %v591_v59 = vpack.c.bf16 %v559_v52, %v559_v52  ;;  %v370_v61 = vadd.f32 %v315_v56, %v72_v50  ;;  %v378_v62 = vadd.f32 %v335_v57, %v80_v51  ;;  %v278_v63 = vpop.f32.mrf.mxu0  ;;  %v298_v0 = vpop.f32.mrf.mxu1  ;;  %v74_v51 = vld [vmem:[#allocation2 + $0x98] sm:$0xff] }
  0x97   :  { %616 = vst.msk [vmem:[%s1277_s4] sm:$0xf] %vm615_vm1, %v583_v55  ;;  %v436_v1 = vld [vmem:[#allocation2 + $0x80] sm:$0xff]  ;;  %v355_v3 = vadd.f32 %v278_v63, %v57_v54  ;;  %v363_v7 = vadd.f32 %v298_v0, %v65_v58  ;;  %v1067_v54 = vld [vmem:[%s1276_s3 + $0x48] sm:$0xff]   ;;  %v82_v56 = vld [vmem:[#allocation2 + $0xd8] sm:$0xff] }
  0x98   :  { %624 = vst.msk [vmem:[%s1277_s4 + $0x20] sm:$0xf] %vm615_vm1, %v591_v59  ;;  %v471_v4 = vadd.f32 %v982_v32, %v436_v1  ;;  %v444_v5 = vld [vmem:[#allocation2 + $0xc0] sm:$0xff] }
  0x99   :  { %v479_v8 = vadd.f32 %v982_v32, %v444_v5  ;;  %v421_v9 = vld [vmem:[#allocation2 + $0x8] sm:$0xff]  ;;  %402 = vst.msk [vmem:[#allocation2 + $0x88] sm:$0xff] %vm22_vm0, %v370_v61  ;;  %v59_v61 = vld [vmem:[#allocation2 + $0x20] sm:$0xff] }
  0x9a   :  { %v567_v11 = vadd.f32 %v792_v60, %v471_v4  ;;  %v456_v12 = vadd.f32 %v982_v32, %v421_v9  ;;  %v429_v13 = vld [vmem:[#allocation2 + $0x48] sm:$0xff]  ;;  %410 = vst.msk [vmem:[#allocation2 + $0xc8] sm:$0xff] %vm22_vm0, %v378_v62  ;;  %v796_v4 = vunpack.c.l.bf16 %v1067_v54 }
  0x9b   :  { %v575_v14 = vadd.f32 %v808_v2, %v479_v8  ;;  %v464_v15 = vadd.f32 %v982_v32, %v429_v13  ;;  %387 = vst.msk [vmem:[#allocation2 + $0x10] sm:$0xff] %vm22_vm0, %v355_v3  ;;  %v1073_v60 = vld [vmem:[%s1276_s3 + $0x68] sm:$0xff]   ;;  %v67_v2 = vld [vmem:[#allocation2 + $0x60] sm:$0xff] }
  0x9c   :  { %v599_v17 = vpack.c.bf16 %v567_v11, %v567_v11  ;;  %v552_v18 = vadd.f32 %v761_v6, %v456_v12  ;;  %395 = vst.msk [vmem:[#allocation2 + $0x50] sm:$0xff] %vm22_vm0, %v363_v7  ;;  %v812_v7 = vunpack.c.l.bf16 %v1073_v60  ;;  %v765_v11 = vunpack.c.h.bf16 %v1034_v26  ;;  %v83_v26 = vld [vmem:[#allocation2 + $0xe0] sm:$0xff] }
  0x9d   :  { %v607_v20 = vpack.c.bf16 %v575_v14, %v575_v14  ;;  %v560_v21 = vadd.f32 %v777_v10, %v464_v15  ;;  %v318_v22 = vpop.f32.mrf.mxu2  ;;  %v338_v23 = vpop.f32.mrf.mxu3  ;;  %v781_v15 = vunpack.c.h.bf16 %v1044_v34  ;;  %v1110_v34 = vld [vmem:[%s1276_s3 + $0x10] sm:$0xff]  }
  0x9e   :  { %632 = vst.msk [vmem:[%s1277_s4 + $0x40] sm:$0xf] %vm615_vm1, %v599_v17  ;;  %v584_v25 = vpack.c.bf16 %v552_v18, %v552_v18  ;;  %v371_v27 = vadd.f32 %v318_v22, %v73_v16  ;;  %v280_v28 = vpop.f32.mrf.mxu0  ;;  %v300_v30 = vpop.f32.mrf.mxu1  ;;  %v379_v35 = vadd.f32 %v338_v23, %v81_v19 }
  0x9f   :  { %640 = vst.msk [vmem:[%s1277_s4 + $0x60] sm:$0xf] %vm615_vm1, %v607_v20  ;;  %v592_v31 = vpack.c.bf16 %v560_v21, %v560_v21  ;;  %v356_v38 = vadd.f32 %v280_v28, %v58_v24  ;;  %v364_v42 = vadd.f32 %v300_v30, %v66_v29  ;;  %v75_v21 = vld [vmem:[#allocation2 + $0xa0] sm:$0xff] }
  0xa0   :  { %617 = vst.msk [vmem:[%s1277_s4 + $0x4] sm:$0xf] %vm615_vm1, %v584_v25  ;;  %v437_v36 = vld [vmem:[#allocation2 + $0x88] sm:$0xff] }
  0xa1   :  { %625 = vst.msk [vmem:[%s1277_s4 + $0x24] sm:$0xf] %vm615_vm1, %v592_v31  ;;  %v472_v39 = vadd.f32 %v982_v32, %v437_v36  ;;  %v445_v40 = vld [vmem:[#allocation2 + $0xc8] sm:$0xff] }
  0xa2   :  { %v480_v43 = vadd.f32 %v982_v32, %v445_v40  ;;  %v422_v44 = vld [vmem:[#allocation2 + $0x10] sm:$0xff]  ;;  %403 = vst.msk [vmem:[#allocation2 + $0x90] sm:$0xff] %vm22_vm0, %v371_v27  ;;  %v60_v31 = vld [vmem:[#allocation2 + $0x28] sm:$0xff] }
  0xa3   :  { %v568_v46 = vadd.f32 %v793_v33, %v472_v39  ;;  %v457_v47 = vadd.f32 %v982_v32, %v422_v44  ;;  %v430_v48 = vld [vmem:[#allocation2 + $0x50] sm:$0xff]  ;;  %411 = vst.msk [vmem:[#allocation2 + $0xd0] sm:$0xff] %vm22_vm0, %v379_v35  ;;  %v68_v36 = vld [vmem:[#allocation2 + $0x68] sm:$0xff] }
  0xa4   :  { %v576_v49 = vadd.f32 %v809_v37, %v480_v43  ;;  %v465_v50 = vadd.f32 %v982_v32, %v430_v48  ;;  %388 = vst.msk [vmem:[#allocation2 + $0x18] sm:$0xff] %vm22_vm0, %v356_v38  ;;  %v797_v38 = vunpack.c.h.bf16 %v1067_v54  ;;  %v1120_v39 = vld [vmem:[%s1276_s3 + $0x30] sm:$0xff]   ;;  %v76_v48 = vld [vmem:[#allocation2 + $0xa8] sm:$0xff] }
  0xa5   :  { %v600_v52 = vpack.c.bf16 %v568_v46, %v568_v46  ;;  %v553_v53 = vadd.f32 %v764_v41, %v457_v47  ;;  %396 = vst.msk [vmem:[#allocation2 + $0x58] sm:$0xff] %vm22_vm0, %v364_v42  ;;  %v320_v55 = vpop.f32.mrf.mxu2  ;;  %v340_v57 = vpop.f32.mrf.mxu3  ;;  %v813_v42 = vunpack.c.h.bf16 %v1073_v60  ;;  %v768_v46 = vunpack.c.l.bf16 %v1110_v34  ;;  %v84_v60 = vld [vmem:[#allocation2 + $0xe8] sm:$0xff] }
  0xa6   :  { %v608_v58 = vpack.c.bf16 %v576_v49, %v576_v49  ;;  %v561_v59 = vadd.f32 %v780_v45, %v465_v50  ;;  %v283_v62 = vpop.f32.mrf.mxu0  ;;  %v303_v63 = vpop.f32.mrf.mxu1  ;;  %v372_v1 = vadd.f32 %v320_v55, %v74_v51  ;;  %v380_v5 = vadd.f32 %v340_v57, %v82_v56 }
  0xa7   :  { %633 = vst.msk [vmem:[%s1277_s4 + $0x44] sm:$0xf] %vm615_vm1, %v600_v52  ;;  %v585_v0 = vpack.c.bf16 %v553_v53, %v553_v53  ;;  %v357_v8 = vadd.f32 %v283_v62, %v59_v61  ;;  %v365_v12 = vadd.f32 %v303_v63, %v67_v2  ;;  %v784_v51 = vunpack.c.l.bf16 %v1120_v39 }
  0xa8   :  { %641 = vst.msk [vmem:[%s1277_s4 + $0x64] sm:$0xf] %vm615_vm1, %v608_v58  ;;  %v593_v3 = vpack.c.bf16 %v561_v59, %v561_v59 }
  0xa9   :  { %618 = vst.msk [vmem:[%s1277_s4 + $0x8] sm:$0xf] %vm615_vm1, %v585_v0  ;;  %v438_v6 = vld [vmem:[#allocation2 + $0x90] sm:$0xff] }
  0xaa   :  { %626 = vst.msk [vmem:[%s1277_s4 + $0x28] sm:$0xf] %vm615_vm1, %v593_v3  ;;  %v473_v9 = vadd.f32 %v982_v32, %v438_v6  ;;  %v446_v10 = vld [vmem:[#allocation2 + $0xd0] sm:$0xff] }
  0xab   :  { %v481_v13 = vadd.f32 %v982_v32, %v446_v10  ;;  %v423_v14 = vld [vmem:[#allocation2 + $0x18] sm:$0xff]  ;;  %404 = vst.msk [vmem:[#allocation2 + $0x98] sm:$0xff] %vm22_vm0, %v372_v1  ;;  %v831_v0 = vld [vmem:[%s1276_s3 + $0x50] sm:$0xff]  }
  0xac   :  { %v569_v16 = vadd.f32 %v796_v4, %v473_v9  ;;  %v458_v17 = vadd.f32 %v982_v32, %v423_v14  ;;  %v431_v18 = vld [vmem:[#allocation2 + $0x58] sm:$0xff]  ;;  %412 = vst.msk [vmem:[#allocation2 + $0xd8] sm:$0xff] %vm22_vm0, %v380_v5  ;;  %v61_v1 = vld [vmem:[#allocation2 + $0x30] sm:$0xff]  ;;  %v800_v10 = vunpack.c.l.bf16 %v831_v0 }
  0xad   :  { %v577_v19 = vadd.f32 %v812_v7, %v481_v13  ;;  %v466_v20 = vadd.f32 %v982_v32, %v431_v18  ;;  %389 = vst.msk [vmem:[#allocation2 + $0x20] sm:$0xff] %vm22_vm0, %v357_v8  ;;  %v323_v22 = vpop.f32.mrf.mxu2  ;;  %v343_v23 = vpop.f32.mrf.mxu3  ;;  %v1147_v5 = vld [vmem:[%s1276_s3 + $0x70] sm:$0xff]  }
  0xae   :  { %v601_v24 = vpack.c.bf16 %v569_v16, %v569_v16  ;;  %v554_v25 = vadd.f32 %v765_v11, %v458_v17  ;;  %397 = vst.msk [vmem:[#allocation2 + $0x60] sm:$0xff] %vm22_vm0, %v365_v12  ;;  %v285_v27 = vpop.f32.mrf.mxu0  ;;  %v305_v28 = vpop.f32.mrf.mxu1  ;;  %v373_v35 = vadd.f32 %v323_v22, %v75_v21  ;;  %v381_v40 = vadd.f32 %v343_v23, %v83_v26  ;;  %v69_v6 = vld [vmem:[#allocation2 + $0x70] sm:$0xff] }
  0xaf   :  { %v609_v29 = vpack.c.bf16 %v577_v19, %v577_v19  ;;  %v562_v30 = vadd.f32 %v781_v15, %v466_v20  ;;  %v358_v43 = vadd.f32 %v285_v27, %v60_v31  ;;  %v366_v47 = vadd.f32 %v305_v28, %v68_v36  ;;  %v77_v15 = vld [vmem:[#allocation2 + $0xb0] sm:$0xff] }
  0xb0   :  { %634 = vst.msk [vmem:[%s1277_s4 + $0x48] sm:$0xf] %vm615_vm1, %v601_v24  ;;  %v586_v33 = vpack.c.bf16 %v554_v25, %v554_v25  ;;  %v816_v13 = vunpack.c.l.bf16 %v1147_v5  ;;  %v85_v16 = vld [vmem:[#allocation2 + $0xf0] sm:$0xff]  ;;  %v769_v19 = vunpack.c.h.bf16 %v1110_v34  ;;  %v785_v22 = vunpack.c.h.bf16 %v1120_v39 }
  0xb1   :  { %642 = vst.msk [vmem:[%s1277_s4 + $0x68] sm:$0xf] %vm615_vm1, %v609_v29  ;;  %v594_v37 = vpack.c.bf16 %v562_v30, %v562_v30  ;;  %v801_v23 = vunpack.c.h.bf16 %v831_v0 }
  0xb2   :  { %619 = vst.msk [vmem:[%s1277_s4 + $0xc] sm:$0xf] %vm615_vm1, %v586_v33  ;;  %v439_v41 = vld [vmem:[#allocation2 + $0x98] sm:$0xff] }
  0xb3   :  { %627 = vst.msk [vmem:[%s1277_s4 + $0x2c] sm:$0xf] %vm615_vm1, %v594_v37  ;;  %v474_v44 = vadd.f32 %v982_v32, %v439_v41  ;;  %v447_v45 = vld [vmem:[#allocation2 + $0xd8] sm:$0xff] }
  0xb4   :  { %v482_v49 = vadd.f32 %v982_v32, %v447_v45  ;;  %v424_v50 = vld [vmem:[#allocation2 + $0x20] sm:$0xff]  ;;  %405 = vst.msk [vmem:[#allocation2 + $0xa0] sm:$0xff] %vm22_vm0, %v373_v35 }
  0xb5   :  { %v570_v52 = vadd.f32 %v797_v38, %v474_v44  ;;  %v459_v53 = vadd.f32 %v982_v32, %v424_v50  ;;  %v432_v54 = vld [vmem:[#allocation2 + $0x60] sm:$0xff]  ;;  %413 = vst.msk [vmem:[#allocation2 + $0xe0] sm:$0xff] %vm22_vm0, %v381_v40  ;;  %v325_v55 = vpop.f32.mrf.mxu2  ;;  %v345_v56 = vpop.f32.mrf.mxu3  ;;  %v62_v38 = vld [vmem:[#allocation2 + $0x38] sm:$0xff] }
  0xb6   :  { %v578_v57 = vadd.f32 %v813_v42, %v482_v49  ;;  %v467_v58 = vadd.f32 %v982_v32, %v432_v54  ;;  %390 = vst.msk [vmem:[#allocation2 + $0x28] sm:$0xff] %vm22_vm0, %v358_v43  ;;  %v374_v59 = vadd.f32 %v325_v55, %v76_v48  ;;  %v288_v61 = vpop.f32.mrf.mxu0  ;;  %v308_v2 = vpop.f32.mrf.mxu1  ;;  %v382_v8 = vadd.f32 %v345_v56, %v84_v60  ;;  %v1181_v42 = vld [vmem:[%s1276_s3 + $0x18] sm:$0xff]  }
  0xb7   :  { %v602_v62 = vpack.c.bf16 %v570_v52, %v570_v52  ;;  %v555_v63 = vadd.f32 %v768_v46, %v459_v53  ;;  %398 = vst.msk [vmem:[#allocation2 + $0x68] sm:$0xff] %vm22_vm0, %v366_v47  ;;  %v359_v11 = vadd.f32 %v288_v61, %v61_v1  ;;  %v367_v14 = vadd.f32 %v308_v2, %v69_v6  ;;  %v70_v43 = vld [vmem:[#allocation2 + $0x78] sm:$0xff] }
  0xb8   :  { %v610_v3 = vpack.c.bf16 %v578_v57, %v578_v57  ;;  %v563_v4 = vadd.f32 %v784_v51, %v467_v58  ;;  %406 = vst.msk [vmem:[#allocation2 + $0xa8] sm:$0xff] %vm22_vm0, %v374_v59  ;;  %v1191_v47 = vld [vmem:[%s1276_s3 + $0x38] sm:$0xff]   ;;  %v817_v49 = vunpack.c.h.bf16 %v1147_v5  ;;  %v772_v56 = vunpack.c.l.bf16 %v1181_v42 }
  0xb9   :  { %635 = vst.msk [vmem:[%s1277_s4 + $0x4c] sm:$0xf] %vm615_vm1, %v602_v62  ;;  %v587_v7 = vpack.c.bf16 %v555_v63, %v555_v63  ;;  %v1201_v50 = vld [vmem:[%s1276_s3 + $0x58] sm:$0xff]   ;;  %v788_v61 = vunpack.c.l.bf16 %v1191_v47 }
  0xba   :  { %643 = vst.msk [vmem:[%s1277_s4 + $0x6c] sm:$0xf] %vm615_vm1, %v610_v3  ;;  %v595_v9 = vpack.c.bf16 %v563_v4, %v563_v4  ;;  %v78_v52 = vld [vmem:[#allocation2 + $0xb8] sm:$0xff]  ;;  %v804_v2 = vunpack.c.l.bf16 %v1201_v50 }
  0xbb   :  { %620 = vst.msk [vmem:[%s1277_s4 + $0x10] sm:$0xf] %vm615_vm1, %v587_v7  ;;  %v440_v12 = vld [vmem:[#allocation2 + $0xa0] sm:$0xff]  ;;  %v86_v53 = vld [vmem:[#allocation2 + $0xf8] sm:$0xff] }
  0xbc   :  { %628 = vst.msk [vmem:[%s1277_s4 + $0x30] sm:$0xf] %vm615_vm1, %v595_v9  ;;  %v475_v17 = vadd.f32 %v982_v32, %v440_v12  ;;  %v448_v18 = vld [vmem:[#allocation2 + $0xe0] sm:$0xff]  ;;  %v836_v57 = vld [vmem:[%s1276_s3 + $0x78] sm:$0xff]  }
  0xbd   :  { %v483_v20 = vadd.f32 %v982_v32, %v448_v18  ;;  %v425_v21 = vld [vmem:[#allocation2 + $0x28] sm:$0xff]  ;;  %414 = vst.msk [vmem:[#allocation2 + $0xe8] sm:$0xff] %vm22_vm0, %v382_v8  ;;  %v328_v24 = vpop.f32.mrf.mxu2  ;;  %v348_v25 = vpop.f32.mrf.mxu3  ;;  %v820_v8 = vunpack.c.l.bf16 %v836_v57 }
  0xbe   :  { %v571_v26 = vadd.f32 %v800_v10, %v475_v17  ;;  %v460_v27 = vadd.f32 %v982_v32, %v425_v21  ;;  %v433_v28 = vld [vmem:[#allocation2 + $0x68] sm:$0xff]  ;;  %391 = vst.msk [vmem:[#allocation2 + $0x30] sm:$0xff] %vm22_vm0, %v359_v11  ;;  %v375_v29 = vadd.f32 %v328_v24, %v77_v15  ;;  %v383_v30 = vadd.f32 %v348_v25, %v85_v16  ;;  %v290_v39 = vpop.f32.mrf.mxu0  ;;  %v310_v44 = vpop.f32.mrf.mxu1 }
  0xbf   :  { %v579_v31 = vadd.f32 %v816_v13, %v483_v20  ;;  %v468_v33 = vadd.f32 %v982_v32, %v433_v28  ;;  %v441_v34 = vld [vmem:[#allocation2 + $0xa8] sm:$0xff]  ;;  %399 = vst.msk [vmem:[#allocation2 + $0x70] sm:$0xff] %vm22_vm0, %v367_v14  ;;  %v360_v51 = vadd.f32 %v290_v39, %v62_v38  ;;  %v368_v58 = vadd.f32 %v310_v44, %v70_v43 }
  0xc0   :  { %v603_v35 = vpack.c.bf16 %v571_v26, %v571_v26  ;;  %v556_v36 = vadd.f32 %v769_v19, %v460_v27  ;;  %v476_v37 = vadd.f32 %v982_v32, %v441_v34  ;;  %407 = vst.msk [vmem:[#allocation2 + $0xb0] sm:$0xff] %vm22_vm0, %v375_v29  ;;  %v773_v21 = vunpack.c.h.bf16 %v1181_v42 }
  0xc1   :  { %v611_v40 = vpack.c.bf16 %v579_v31, %v579_v31  ;;  %v564_v41 = vadd.f32 %v785_v22, %v468_v33  ;;  %415 = vst.msk [vmem:[#allocation2 + $0xf0] sm:$0xff] %vm22_vm0, %v383_v30  ;;  %v805_v26 = vunpack.c.h.bf16 %v1201_v50  ;;  %v821_v29 = vunpack.c.h.bf16 %v836_v57 }
  0xc2   :  { %636 = vst.msk [vmem:[%s1277_s4 + $0x50] sm:$0xf] %vm615_vm1, %v603_v35  ;;  %v588_v45 = vpack.c.bf16 %v556_v36, %v556_v36  ;;  %v572_v46 = vadd.f32 %v801_v23, %v476_v37  ;;  %v789_v23 = vunpack.c.h.bf16 %v1191_v47 }
  0xc3   :  { %644 = vst.msk [vmem:[%s1277_s4 + $0x70] sm:$0xf] %vm615_vm1, %v611_v40  ;;  %v596_v48 = vpack.c.bf16 %v564_v41, %v564_v41 }
  0xc4   :  { %621 = vst.msk [vmem:[%s1277_s4 + $0x14] sm:$0xf] %vm615_vm1, %v588_v45  ;;  %v604_v54 = vpack.c.bf16 %v572_v46, %v572_v46  ;;  %v449_v55 = vld [vmem:[#allocation2 + $0xe8] sm:$0xff] }
  0xc5   :  { %629 = vst.msk [vmem:[%s1277_s4 + $0x34] sm:$0xf] %vm615_vm1, %v596_v48  ;;  %v484_v59 = vadd.f32 %v982_v32, %v449_v55  ;;  %v426_v60 = vld [vmem:[#allocation2 + $0x30] sm:$0xff]  ;;  %v330_v62 = vpop.f32.mrf.mxu2  ;;  %v350_v63 = vpop.f32.mrf.mxu3 }
  0xc6   :  { %637 = vst.msk [vmem:[%s1277_s4 + $0x54] sm:$0xf] %vm615_vm1, %v604_v54  ;;  %v461_v0 = vadd.f32 %v982_v32, %v426_v60  ;;  %v434_v1 = vld [vmem:[#allocation2 + $0x70] sm:$0xff]  ;;  %v376_v3 = vadd.f32 %v330_v62, %v78_v52  ;;  %v384_v4 = vadd.f32 %v350_v63, %v86_v53 }
  0xc7   :  { %v580_v5 = vadd.f32 %v817_v49, %v484_v59  ;;  %v469_v6 = vadd.f32 %v982_v32, %v434_v1  ;;  %v442_v7 = vld [vmem:[#allocation2 + $0xb0] sm:$0xff]  ;;  %392 = vst.msk [vmem:[#allocation2 + $0x38] sm:$0xff] %vm22_vm0, %v360_v51 }
  0xc8   :  { %v557_v9 = vadd.f32 %v772_v56, %v461_v0  ;;  %v477_v10 = vadd.f32 %v982_v32, %v442_v7  ;;  %v450_v11 = vld [vmem:[#allocation2 + $0xf0] sm:$0xff]  ;;  %400 = vst.msk [vmem:[#allocation2 + $0x78] sm:$0xff] %vm22_vm0, %v368_v58 }
  0xc9   :  { %v612_v12 = vpack.c.bf16 %v580_v5, %v580_v5  ;;  %v565_v13 = vadd.f32 %v788_v61, %v469_v6  ;;  %v485_v14 = vadd.f32 %v982_v32, %v450_v11  ;;  %408 = vst.msk [vmem:[#allocation2 + $0xb8] sm:$0xff] %vm22_vm0, %v376_v3 }
  0xca   :  { %v589_v15 = vpack.c.bf16 %v557_v9, %v557_v9  ;;  %v573_v16 = vadd.f32 %v804_v2, %v477_v10  ;;  %416 = vst.msk [vmem:[#allocation2 + $0xf8] sm:$0xff] %vm22_vm0, %v384_v4 }
  0xcb   :  { %645 = vst.msk [vmem:[%s1277_s4 + $0x74] sm:$0xf] %vm615_vm1, %v612_v12  ;;  %v597_v17 = vpack.c.bf16 %v565_v13, %v565_v13  ;;  %v581_v18 = vadd.f32 %v820_v8, %v485_v14 }
  0xcc   :  { %622 = vst.msk [vmem:[%s1277_s4 + $0x18] sm:$0xf] %vm615_vm1, %v589_v15  ;;  %v605_v19 = vpack.c.bf16 %v573_v16, %v573_v16 }
  0xcd   :  { %630 = vst.msk [vmem:[%s1277_s4 + $0x38] sm:$0xf] %vm615_vm1, %v597_v17  ;;  %v613_v20 = vpack.c.bf16 %v581_v18, %v581_v18 }
  0xce   :  { %638 = vst.msk [vmem:[%s1277_s4 + $0x58] sm:$0xf] %vm615_vm1, %v605_v19  ;;  %v427_v22 = vld [vmem:[#allocation2 + $0x38] sm:$0xff] }
  0xcf   :  { %646 = vst.msk [vmem:[%s1277_s4 + $0x78] sm:$0xf] %vm615_vm1, %v613_v20  ;;  %v462_v24 = vadd.f32 %v982_v32, %v427_v22  ;;  %v435_v25 = vld [vmem:[#allocation2 + $0x78] sm:$0xff] }
  0xd0   :  { %v470_v27 = vadd.f32 %v982_v32, %v435_v25  ;;  %v443_v28 = vld [vmem:[#allocation2 + $0xb8] sm:$0xff] }
  0xd1   :  { %v558_v30 = vadd.f32 %v773_v21, %v462_v24  ;;  %v478_v31 = vadd.f32 %v982_v32, %v443_v28  ;;  %v451_v33 = vld [vmem:[#allocation2 + $0xf8] sm:$0xff] }
  0xd2   :  { %v566_v34 = vadd.f32 %v789_v23, %v470_v27  ;;  %v486_v35 = vadd.f32 %v982_v32, %v451_v33 }
  0xd3   :  { %v590_v36 = vpack.c.bf16 %v558_v30, %v558_v30  ;;  %v574_v37 = vadd.f32 %v805_v26, %v478_v31 }
  0xd4   :  { %v598_v38 = vpack.c.bf16 %v566_v34, %v566_v34  ;;  %v582_v39 = vadd.f32 %v821_v29, %v486_v35 }
  0xd5   :  { %623 = vst.msk [vmem:[%s1277_s4 + $0x1c] sm:$0xf] %vm615_vm1, %v590_v36  ;;  %v606_v40 = vpack.c.bf16 %v574_v37, %v574_v37 }
  0xd6   :  { %631 = vst.msk [vmem:[%s1277_s4 + $0x3c] sm:$0xf] %vm615_vm1, %v598_v38  ;;  %v614_v41 = vpack.c.bf16 %v582_v39, %v582_v39 }
  0xd7   :  { %639 = vst.msk [vmem:[%s1277_s4 + $0x5c] sm:$0xf] %vm615_vm1, %v606_v40 }
  0xd8   :  { %647 = vst.msk [vmem:[%s1277_s4 + $0x7c] sm:$0xf] %vm615_vm1, %v614_v41 }

// kernel: vit_forward.13
= control target key start
LH: loop header
LB: loop body
LE: loop exit
PB: predicated region body
PF: predicated region fallthrough
CT: control target
= control target key end

     0   :  { %vm89_vm0 = vcmask 261120   ;;  %vm903_vm6 = vcmask 257024   ;;  %s2817_s0 = inlined_call_operand.vmem [shape: bf16[256,32], index: 0, kind: input, shape index: {}]   ;;  %s2818_s1 = inlined_call_operand.vmem [shape: bf16[1,32], index: 1, kind: input, shape index: {}]   ;;  %s2819_s2 = inlined_call_operand.vmem [shape: bf16[1,32], index: 2, kind: input, shape index: {}]   ;;  %s2820_s3 = inlined_call_operand.vmem [shape: bf16[32,96], index: 3, kind: input, shape index: {}]   ;;  %s2821_s4 = inlined_call_operand.vmem [shape: bf16[1,96], index: 4, kind: input, shape index: {}]   ;;  %s2822_s5 = inlined_call_operand.vmem [shape: bf16[256,96], index: 5, kind: output, shape index: {}]  }
   0x1   :  { %v1566_v0 = vld [vmem:[%s2817_s0 + $0x60] sm:$0xff]   ;;  %v1610_v16 = vld [vmem:[%s2817_s0 + $0x48] sm:$0xff]   ;;  %v1666_v38 = vld [vmem:[%s2817_s0 + $0x50] sm:$0xff]  }
   0x2   :  { %v1571_v1 = vld [vmem:[%s2817_s0 + $0x40] sm:$0xff]   ;;  %v1430_v3 = vunpack.c.l.bf16 %v1566_v0  ;;  %v1431_v9 = vunpack.c.h.bf16 %v1566_v0  ;;  %v1418_v19 = vunpack.c.l.bf16 %v1610_v16  ;;  %v1627_v23 = vld [vmem:[%s2817_s0 + $0x68] sm:$0xff]   ;;  %v1419_v25 = vunpack.c.h.bf16 %v1610_v16  ;;  %v1683_v45 = vld [vmem:[%s2817_s0 + $0x70] sm:$0xff]  }
   0x3   :  { %v1576_v2 = vld [vmem:[%s2817_s0] sm:$0xff]   ;;  %v1414_v4 = vunpack.c.l.bf16 %v1571_v1  ;;  %v1415_v10 = vunpack.c.h.bf16 %v1571_v1  ;;  %v1434_v24 = vunpack.c.l.bf16 %v1627_v23  ;;  %v1435_v26 = vunpack.c.h.bf16 %v1627_v23  ;;  %v1644_v30 = vld [vmem:[%s2817_s0 + $0x8] sm:$0xff]   ;;  %v1688_v46 = vld [vmem:[%s2817_s0 + $0x10] sm:$0xff]  }
   0x4   :  { %v1382_v5 = vunpack.c.l.bf16 %v1576_v2  ;;  %v162_v6 = vsel %vm89_vm0, %v1430_v3, 0.0  ;;  %v1383_v11 = vunpack.c.h.bf16 %v1576_v2  ;;  %v165_v12 = vsel %vm89_vm0, %v1431_v9, 0.0  ;;  %v1605_v15 = vld [vmem:[%s2817_s0 + $0x20] sm:$0xff]   ;;  %v1649_v31 = vld [vmem:[%s2817_s0 + $0x28] sm:$0xff]   ;;  %v1705_v53 = vld [vmem:[%s2817_s0 + $0x30] sm:$0xff]  }
   0x5   :  { %v138_v7 = vsel %vm89_vm0, %v1414_v4, 0.0  ;;  %163 = vadd.xlane.f32.xlu1 %v162_v6  ;;  %v141_v13 = vsel %vm89_vm0, %v1415_v10, 0.0  ;;  %v1399_v17 = vunpack.c.h.bf16 %v1605_v15  ;;  %v1398_v18 = vunpack.c.l.bf16 %v1605_v15  ;;  %v1722_v60 = vld [vmem:[%s2817_s0 + $0x58] sm:$0xff]  }
   0x6   :  { %v90_v8 = vsel %vm89_vm0, %v1382_v5, 0.0  ;;  %139 = vadd.xlane.f32.xlu0 %v138_v7  ;;  %v93_v14 = vsel %vm89_vm0, %v1383_v11, 0.0  ;;  %v144_v22 = vsel %vm89_vm0, %v1418_v19, 0.0  ;;  %v168_v27 = vsel %vm89_vm0, %v1434_v24, 0.0  ;;  %v1727_v61 = vld [vmem:[%s2817_s0 + $0x78] sm:$0xff]  }
   0x7   :  { %91 = vadd.xlane.f32.xlu2 %v90_v8  ;;  %v117_v20 = vsel %vm89_vm0, %v1399_v17, 0.0  ;;  %v114_v21 = vsel %vm89_vm0, %v1398_v18, 0.0  ;;  %v147_v28 = vsel %vm89_vm0, %v1419_v25, 0.0  ;;  %v171_v29 = vsel %vm89_vm0, %v1435_v26, 0.0 }
   0x8   :  { %v1387_v32 = vunpack.c.h.bf16 %v1644_v30  ;;  %v1386_v33 = vunpack.c.l.bf16 %v1644_v30  ;;  %v1402_v34 = vunpack.c.l.bf16 %v1649_v31  ;;  %v1422_v39 = vunpack.c.l.bf16 %v1666_v38 }
   0x9   :  { %v1403_v40 = vunpack.c.h.bf16 %v1649_v31  ;;  %v1423_v41 = vunpack.c.h.bf16 %v1666_v38  ;;  %v1439_v47 = vunpack.c.h.bf16 %v1683_v45  ;;  %v1438_v48 = vunpack.c.l.bf16 %v1683_v45 }
   0xa   :  { %v99_v35 = vsel %vm89_vm0, %v1387_v32, 0.0  ;;  %v96_v36 = vsel %vm89_vm0, %v1386_v33, 0.0  ;;  %v120_v37 = vsel %vm89_vm0, %v1402_v34, 0.0  ;;  %v150_v42 = vsel %vm89_vm0, %v1422_v39, 0.0 }
   0xb   :  { %v123_v43 = vsel %vm89_vm0, %v1403_v40, 0.0  ;;  %v153_v44 = vsel %vm89_vm0, %v1423_v41, 0.0  ;;  %v1390_v49 = vunpack.c.l.bf16 %v1688_v46  ;;  %v177_v50 = vsel %vm89_vm0, %v1439_v47, 0.0 }
   0xc   :  { %v174_v51 = vsel %vm89_vm0, %v1438_v48, 0.0  ;;  %v1406_v54 = vunpack.c.l.bf16 %v1705_v53  ;;  %v1391_v55 = vunpack.c.h.bf16 %v1688_v46  ;;  %v1407_v56 = vunpack.c.h.bf16 %v1705_v53 }
   0xd   :  { %166 = vadd.xlane.f32.xlu1 %v165_v12  ;;  %v102_v52 = vsel %vm89_vm0, %v1390_v49, 0.0  ;;  %v1426_v62 = vunpack.c.l.bf16 %v1722_v60  ;;  %v1442_v63 = vunpack.c.l.bf16 %v1727_v61  ;;  %v1427_v6 = vunpack.c.h.bf16 %v1722_v60 }
   0xe   :  { %142 = vadd.xlane.f32.xlu0 %v141_v13  ;;  %v126_v57 = vsel %vm89_vm0, %v1406_v54, 0.0  ;;  %v105_v58 = vsel %vm89_vm0, %v1391_v55, 0.0  ;;  %v129_v59 = vsel %vm89_vm0, %v1407_v56, 0.0  ;;  %v1744_v13 = vld [vmem:[%s2817_s0 + $0x18] sm:$0xff]  }
   0xf   :  { %94 = vadd.xlane.f32.xlu2 %v93_v14  ;;  %v156_v7 = vsel %vm89_vm0, %v1426_v62, 0.0  ;;  %v180_v8 = vsel %vm89_vm0, %v1442_v63, 0.0  ;;  %v159_v12 = vsel %vm89_vm0, %v1427_v6, 0.0  ;;  %v1749_v14 = vld [vmem:[%s2817_s0 + $0x38] sm:$0xff]  }
  0x15   :  { %118 = vadd.xlane.f32.xlu1 %v117_v20  ;;  %v1443_v20 = vunpack.c.h.bf16 %v1727_v61 }
  0x16   :  { %115 = vadd.xlane.f32.xlu0 %v114_v21  ;;  %v1394_v21 = vunpack.c.l.bf16 %v1744_v13 }
  0x17   :  { %145 = vadd.xlane.f32.xlu2 %v144_v22  ;;  %v1410_v22 = vunpack.c.l.bf16 %v1749_v14 }
  0x1d   :  { %169 = vadd.xlane.f32.xlu1 %v168_v27  ;;  %v183_v27 = vsel %vm89_vm0, %v1443_v20, 0.0 }
  0x1e   :  { %148 = vadd.xlane.f32.xlu0 %v147_v28  ;;  %v108_v28 = vsel %vm89_vm0, %v1394_v21, 0.0 }
  0x1f   :  { %172 = vadd.xlane.f32.xlu2 %v171_v29  ;;  %v132_v29 = vsel %vm89_vm0, %v1410_v22, 0.0 }
  0x25   :  { %100 = vadd.xlane.f32.xlu1 %v99_v35  ;;  %v1395_v35 = vunpack.c.h.bf16 %v1744_v13 }
  0x26   :  { %97 = vadd.xlane.f32.xlu0 %v96_v36  ;;  %v1411_v36 = vunpack.c.h.bf16 %v1749_v14 }
  0x27   :  { %121 = vadd.xlane.f32.xlu2 %v120_v37  ;;  %v111_v37 = vsel %vm89_vm0, %v1395_v35, 0.0 }
  0x2d   :  { %151 = vadd.xlane.f32.xlu1 %v150_v42  ;;  %v135_v42 = vsel %vm89_vm0, %v1411_v36, 0.0 }
  0x2e   :  { %124 = vadd.xlane.f32.xlu0 %v123_v43  ;;  %v1532_v43 = vmov 32.0  }
  0x2f   :  { %154 = vadd.xlane.f32.xlu2 %v153_v44  ;;  %1466 = vrcp.f32 %v1532_v43 }
  0x35   :  { %178 = vadd.xlane.f32.xlu1 %v177_v50  ;;  %v1467_v44 = vpop.eup %1466 }
  0x36   :  { %175 = vadd.xlane.f32.xlu0 %v174_v51  ;;  %v187_v50 = vmul.f32 32.0, %v1467_v44  ;;  %vm191_vm1 = vweird.f32 %v1467_v44 }
  0x37   :  { %103 = vadd.xlane.f32.xlu2 %v102_v52 }
  0x38   :  { %v188_v51 = vsub.f32 1.0, %v187_v50 }
  0x3a   :  { %v189_v52 = vmul.f32 %v1467_v44, %v188_v51 }
  0x3d   :  { %127 = vadd.xlane.f32.xlu1 %v126_v57  ;;  %v190_v57 = vadd.f32 %v1467_v44, %v189_v52 }
  0x3e   :  { %106 = vadd.xlane.f32.xlu0 %v105_v58 }
  0x3f   :  { %130 = vadd.xlane.f32.xlu2 %v129_v59  ;;  %v1771_v58 = vsel %vm191_vm1, %v1467_v44, %v190_v57 }
  0x45   :  { %157 = vadd.xlane.f32.xlu1 %v156_v7 }
  0x46   :  { %181 = vadd.xlane.f32.xlu0 %v180_v8 }
  0x47   :  { %160 = vadd.xlane.f32.xlu2 %v159_v12 }
  0x4d   :  { %184 = vadd.xlane.f32.xlu1 %v183_v27 }
  0x4e   :  { %109 = vadd.xlane.f32.xlu0 %v108_v28 }
  0x4f   :  { %133 = vadd.xlane.f32.xlu2 %v132_v29 }
  0x55   :  { %112 = vadd.xlane.f32.xlu1 %v111_v37 }
  0x56   :  { %136 = vadd.xlane.f32.xlu0 %v135_v42 }
  0x78   :  { %v164_v59 = vpop.xlane.xlu1 %163 }
  0x79   :  { %v140_v7 = vpop.xlane.xlu0 %139  ;;  %v217_v8 = vmul.f32 %v1771_v58, %v164_v59 }
  0x7a   :  { %v209_v12 = vmul.f32 %v1771_v58, %v140_v7  ;;  %v92_v27 = vpop.xlane.xlu2 %91 }
  0x7b   :  { %v1777_v28 = vsub.f32 %v1430_v3, %v217_v8  ;;  %v193_v37 = vmul.f32 %v1771_v58, %v92_v27 }
  0x7c   :  { %v1781_v29 = vsub.f32 %v1414_v4, %v209_v12 }
  0x7d   :  { %v281_v43 = vmul.f32 %v1777_v28, %v1777_v28  ;;  %v1792_v3 = vsub.f32 %v1382_v5, %v193_v37 }
  0x7e   :  { %v273_v42 = vmul.f32 %v1781_v29, %v1781_v29 }
  0x7f   :  { %v361_v50 = vsel %vm89_vm0, %v281_v43, 0.0  ;;  %v257_v12 = vmul.f32 %v1792_v3, %v1792_v3 }
  0x80   :  { %v337_v44 = vsel %vm89_vm0, %v273_v42, 0.0  ;;  %v167_v51 = vpop.xlane.xlu1 %166  ;;  %362 = vadd.xlane.f32.xlu2 %v361_v50 }
  0x81   :  { %v143_v52 = vpop.xlane.xlu0 %142  ;;  %338 = vadd.xlane.f32.xlu0 %v337_v44  ;;  %v218_v4 = vmul.f32 %v1771_v58, %v167_v51  ;;  %v289_v43 = vsel %vm89_vm0, %v257_v12, 0.0 }
  0x82   :  { %v210_v57 = vmul.f32 %v1771_v58, %v143_v52  ;;  %v95_v59 = vpop.xlane.xlu2 %94 }
  0x83   :  { %v1798_v7 = vsub.f32 %v1431_v9, %v218_v4  ;;  %v194_v5 = vmul.f32 %v1771_v58, %v95_v59 }
  0x84   :  { %v1802_v8 = vsub.f32 %v1415_v10, %v210_v57 }
  0x85   :  { %v282_v37 = vmul.f32 %v1798_v7, %v1798_v7  ;;  %v1813_v0 = vsub.f32 %v1383_v11, %v194_v5 }
  0x86   :  { %v274_v27 = vmul.f32 %v1802_v8, %v1802_v8 }
  0x87   :  { %v364_v1 = vsel %vm89_vm0, %v282_v37, 0.0  ;;  %v258_v4 = vmul.f32 %v1813_v0, %v1813_v0 }
  0x88   :  { %v340_v9 = vsel %vm89_vm0, %v274_v27, 0.0  ;;  %v119_v10 = vpop.xlane.xlu1 %118  ;;  %290 = vadd.xlane.f32.xlu2 %v289_v43 }
  0x89   :  { %v116_v42 = vpop.xlane.xlu0 %115  ;;  %341 = vadd.xlane.f32.xlu1 %v340_v9  ;;  %365 = vadd.xlane.f32.xlu0 %v364_v1  ;;  %v202_v44 = vmul.f32 %v1771_v58, %v119_v10 }
  0x8a   :  { %v201_v50 = vmul.f32 %v1771_v58, %v116_v42  ;;  %v146_v51 = vpop.xlane.xlu2 %145 }
  0x8b   :  { %v1822_v2 = vsub.f32 %v1399_v17, %v202_v44  ;;  %v211_v52 = vmul.f32 %v1771_v58, %v146_v51 }
  0x8c   :  { %v1826_v11 = vsub.f32 %v1398_v18, %v201_v50  ;;  %v292_v18 = vsel %vm89_vm0, %v258_v4, 0.0 }
  0x8d   :  { %v266_v59 = vmul.f32 %v1822_v2, %v1822_v2  ;;  %v1837_v5 = vsub.f32 %v1418_v19, %v211_v52 }
  0x8e   :  { %v265_v57 = vmul.f32 %v1826_v11, %v1826_v11 }
  0x8f   :  { %v316_v15 = vsel %vm89_vm0, %v266_v59, 0.0  ;;  %v275_v43 = vmul.f32 %v1837_v5, %v1837_v5 }
  0x90   :  { %v313_v17 = vsel %vm89_vm0, %v265_v57, 0.0  ;;  %v170_v12 = vpop.xlane.xlu1 %169  ;;  %317 = vadd.xlane.f32.xlu2 %v316_v15 }
  0x91   :  { %v149_v27 = vpop.xlane.xlu0 %148  ;;  %314 = vadd.xlane.f32.xlu1 %v313_v17  ;;  %293 = vadd.xlane.f32.xlu0 %v292_v18  ;;  %v219_v37 = vmul.f32 %v1771_v58, %v170_v12 }
  0x92   :  { %v212_v9 = vmul.f32 %v1771_v58, %v149_v27  ;;  %v173_v1 = vpop.xlane.xlu2 %172 }
  0x93   :  { %v1846_v19 = vsub.f32 %v1434_v24, %v219_v37  ;;  %v220_v42 = vmul.f32 %v1771_v58, %v173_v1 }
  0x94   :  { %v1850_v10 = vsub.f32 %v1419_v25, %v212_v9  ;;  %v343_v25 = vsel %vm89_vm0, %v275_v43, 0.0 }
  0x95   :  { %v283_v50 = vmul.f32 %v1846_v19, %v1846_v19  ;;  %v1861_v51 = vsub.f32 %v1435_v26, %v220_v42 }
  0x96   :  { %v276_v44 = vmul.f32 %v1850_v10, %v1850_v10 }
  0x97   :  { %v367_v16 = vsel %vm89_vm0, %v283_v50, 0.0  ;;  %v284_v18 = vmul.f32 %v1861_v51, %v1861_v51 }
  0x98   :  { %v346_v24 = vsel %vm89_vm0, %v276_v44, 0.0  ;;  %v101_v52 = vpop.xlane.xlu1 %100 }
  0x99   :  { %v98_v4 = vpop.xlane.xlu0 %97  ;;  %368 = vadd.xlane.f32.xlu0 %v367_v16  ;;  %344 = vadd.xlane.f32.xlu1 %v343_v25  ;;  %v196_v57 = vmul.f32 %v1771_v58, %v101_v52 }
  0x9a   :  { %v195_v59 = vmul.f32 %v1771_v58, %v98_v4  ;;  %347 = vadd.xlane.f32.xlu2 %v346_v24  ;;  %v122_v17 = vpop.xlane.xlu2 %121 }
  0x9b   :  { %v1870_v23 = vsub.f32 %v1387_v32, %v196_v57  ;;  %v203_v15 = vmul.f32 %v1771_v58, %v122_v17 }
  0x9c   :  { %v1874_v26 = vsub.f32 %v1386_v33, %v195_v59  ;;  %v370_v33 = vsel %vm89_vm0, %v284_v18, 0.0 }
  0x9d   :  { %v260_v27 = vmul.f32 %v1870_v23, %v1870_v23  ;;  %v1885_v37 = vsub.f32 %v1402_v34, %v203_v15 }
  0x9e   :  { %v259_v12 = vmul.f32 %v1874_v26, %v1874_v26 }
  0x9f   :  { %v298_v30 = vsel %vm89_vm0, %v260_v27, 0.0  ;;  %v267_v16 = vmul.f32 %v1885_v37, %v1885_v37 }
  0xa0   :  { %v295_v32 = vsel %vm89_vm0, %v259_v12, 0.0  ;;  %v152_v9 = vpop.xlane.xlu1 %151 }
  0xa1   :  { %v125_v1 = vpop.xlane.xlu0 %124  ;;  %299 = vadd.xlane.f32.xlu0 %v298_v30  ;;  %371 = vadd.xlane.f32.xlu1 %v370_v33  ;;  %v213_v42 = vmul.f32 %v1771_v58, %v152_v9 }
  0xa2   :  { %v204_v43 = vmul.f32 %v1771_v58, %v125_v1  ;;  %296 = vadd.xlane.f32.xlu2 %v295_v32  ;;  %v155_v44 = vpop.xlane.xlu2 %154 }
  0xa3   :  { %v1894_v34 = vsub.f32 %v1422_v39, %v213_v42  ;;  %v214_v24 = vmul.f32 %v1771_v58, %v155_v44 }
  0xa4   :  { %v1898_v50 = vsub.f32 %v1403_v40, %v204_v43  ;;  %v319_v40 = vsel %vm89_vm0, %v267_v16, 0.0 }
  0xa5   :  { %v277_v52 = vmul.f32 %v1894_v34, %v1894_v34  ;;  %v1909_v4 = vsub.f32 %v1423_v41, %v214_v24 }
  0xa6   :  { %v268_v25 = vmul.f32 %v1898_v50, %v1898_v50 }
  0xa7   :  { %v349_v31 = vsel %vm89_vm0, %v277_v52, 0.0  ;;  %v278_v27 = vmul.f32 %v1909_v4, %v1909_v4 }
  0xa8   :  { %v322_v39 = vsel %vm89_vm0, %v268_v25, 0.0  ;;  %v179_v57 = vpop.xlane.xlu1 %178 }
  0xa9   :  { %v176_v59 = vpop.xlane.xlu0 %175  ;;  %350 = vadd.xlane.f32.xlu0 %v349_v31  ;;  %320 = vadd.xlane.f32.xlu1 %v319_v40  ;;  %v222_v17 = vmul.f32 %v1771_v58, %v179_v57 }
  0xaa   :  { %v221_v15 = vmul.f32 %v1771_v58, %v176_v59  ;;  %323 = vadd.xlane.f32.xlu2 %v322_v39  ;;  %v104_v18 = vpop.xlane.xlu2 %103 }
  0xab   :  { %v1918_v38 = vsub.f32 %v1439_v47, %v222_v17  ;;  %v197_v12 = vmul.f32 %v1771_v58, %v104_v18 }
  0xac   :  { %v1922_v41 = vsub.f32 %v1438_v48, %v221_v15  ;;  %v352_v48 = vsel %vm89_vm0, %v278_v27, 0.0 }
  0xad   :  { %v286_v30 = vmul.f32 %v1918_v38, %v1918_v38  ;;  %v1933_v33 = vsub.f32 %v1390_v49, %v197_v12 }
  0xae   :  { %v285_v32 = vmul.f32 %v1922_v41, %v1922_v41 }
  0xaf   :  { %v376_v45 = vsel %vm89_vm0, %v286_v30, 0.0  ;;  %v261_v25 = vmul.f32 %v1933_v33, %v1933_v33 }
  0xb0   :  { %v373_v47 = vsel %vm89_vm0, %v285_v32, 0.0  ;;  %v128_v9 = vpop.xlane.xlu1 %127 }
  0xb1   :  { %v107_v1 = vpop.xlane.xlu0 %106  ;;  %377 = vadd.xlane.f32.xlu0 %v376_v45  ;;  %353 = vadd.xlane.f32.xlu1 %v352_v48  ;;  %v205_v42 = vmul.f32 %v1771_v58, %v128_v9 }
  0xb2   :  { %v198_v43 = vmul.f32 %v1771_v58, %v107_v1  ;;  %374 = vadd.xlane.f32.xlu2 %v373_v47  ;;  %v131_v44 = vpop.xlane.xlu2 %130 }
  0xb3   :  { %v1942_v49 = vsub.f32 %v1406_v54, %v205_v42  ;;  %v206_v16 = vmul.f32 %v1771_v58, %v131_v44 }
  0xb4   :  { %v1946_v24 = vsub.f32 %v1391_v55, %v198_v43  ;;  %v301_v55 = vsel %vm89_vm0, %v261_v25, 0.0 }
  0xb5   :  { %v269_v39 = vmul.f32 %v1942_v49, %v1942_v49  ;;  %v1957_v31 = vsub.f32 %v1407_v56, %v206_v16 }
  0xb6   :  { %v262_v52 = vmul.f32 %v1946_v24, %v1946_v24 }
  0xb7   :  { %v325_v46 = vsel %vm89_vm0, %v269_v39, 0.0  ;;  %v270_v18 = vmul.f32 %v1957_v31, %v1957_v31 }
  0xb8   :  { %v304_v54 = vsel %vm89_vm0, %v262_v52, 0.0  ;;  %v158_v40 = vpop.xlane.xlu1 %157 }
  0xb9   :  { %v182_v57 = vpop.xlane.xlu0 %181  ;;  %326 = vadd.xlane.f32.xlu0 %v325_v46  ;;  %302 = vadd.xlane.f32.xlu1 %v301_v55  ;;  %v215_v59 = vmul.f32 %v1771_v58, %v158_v40  ;;  %v328_v47 = vsel %vm89_vm0, %v270_v18, 0.0 }
  0xba   :  { %305 = vadd.xlane.f32.xlu2 %v304_v54  ;;  %v161_v17 = vpop.xlane.xlu2 %160  ;;  %v223_v56 = vmul.f32 %v1771_v58, %v182_v57 }
  0xbb   :  { %v216_v15 = vmul.f32 %v1771_v58, %v161_v17  ;;  %v1966_v53 = vsub.f32 %v1426_v62, %v215_v59 }
  0xbc   :  { %v1981_v30 = vsub.f32 %v1442_v63, %v223_v56 }
  0xbd   :  { %v1973_v12 = vsub.f32 %v1427_v6, %v216_v15  ;;  %v279_v27 = vmul.f32 %v1966_v53, %v1966_v53 }
  0xbe   :  { %v287_v44 = vmul.f32 %v1981_v30, %v1981_v30 }
  0xbf   :  { %v280_v32 = vmul.f32 %v1973_v12, %v1973_v12  ;;  %v355_v62 = vsel %vm89_vm0, %v279_v27, 0.0 }
  0xc0   :  { %v185_v45 = vpop.xlane.xlu1 %184 }
  0xc1   :  { %v110_v48 = vpop.xlane.xlu0 %109  ;;  %329 = vadd.xlane.f32.xlu1 %v328_v47  ;;  %v358_v60 = vsel %vm89_vm0, %v280_v32, 0.0  ;;  %v224_v6 = vmul.f32 %v1771_v58, %v185_v45  ;;  %v801_v45 = vld [vmem:[%s2818_s1] sm:$0x1] }
  0xc2   :  { %v199_v9 = vmul.f32 %v1771_v58, %v110_v48  ;;  %356 = vadd.xlane.f32.xlu2 %v355_v62  ;;  %359 = vadd.xlane.f32.xlu0 %v358_v60  ;;  %v134_v1 = vpop.xlane.xlu2 %133 }
  0xc3   :  { %v207_v42 = vmul.f32 %v1771_v58, %v134_v1  ;;  %v1991_v63 = vsub.f32 %v1443_v20, %v224_v6  ;;  %v379_v20 = vsel %vm89_vm0, %v287_v44, 0.0 }
  0xc4   :  { %v1995_v43 = vsub.f32 %v1394_v21, %v199_v9  ;;  %v836_v9 = vld [vmem:[%s2819_s2] sm:$0x1] }
  0xc5   :  { %v288_v16 = vmul.f32 %v1991_v63, %v1991_v63  ;;  %v2005_v52 = vsub.f32 %v1410_v22, %v207_v42 }
  0xc6   :  { %v263_v25 = vmul.f32 %v1995_v43, %v1995_v43 }
  0xc7   :  { %v382_v61 = vsel %vm89_vm0, %v288_v16, 0.0  ;;  %v271_v40 = vmul.f32 %v2005_v52, %v2005_v52 }
  0xc8   :  { %v307_v21 = vsel %vm89_vm0, %v263_v25, 0.0  ;;  %v113_v39 = vpop.xlane.xlu1 %112 }
  0xc9   :  { %v137_v54 = vpop.xlane.xlu0 %136  ;;  %380 = vadd.xlane.f32.xlu1 %v379_v20  ;;  %v200_v46 = vmul.f32 %v1771_v58, %v113_v39  ;;  %v331_v15 = vsel %vm89_vm0, %v271_v40, 0.0  ;;  %v837_v39 = vunpack.c.l.bf16 %v836_v9 }
  0xca   :  { %v208_v55 = vmul.f32 %v1771_v58, %v137_v54  ;;  %383 = vadd.xlane.f32.xlu2 %v382_v61  ;;  %308 = vadd.xlane.f32.xlu0 %v307_v21  ;;  %v802_v61 = vunpack.c.l.bf16 %v801_v45 }
  0xcb   :  { %v2016_v22 = vsub.f32 %v1395_v35, %v200_v46 }
  0xcc   :  { %v2020_v57 = vsub.f32 %v1411_v36, %v208_v55  ;;  %v2049_v40 = vperm.slane %v802_v61, 0 }
  0xcd   :  { %v264_v59 = vmul.f32 %v2016_v22, %v2016_v22 }
  0xce   :  { %v272_v17 = vmul.f32 %v2020_v57, %v2020_v57 }
  0xcf   :  { %v310_v56 = vsel %vm89_vm0, %v264_v59, 0.0 }
  0xd0   :  { %v334_v18 = vsel %vm89_vm0, %v272_v17, 0.0 }
  0xd1   :  { %311 = vadd.xlane.f32.xlu1 %v310_v56  ;;  %v2051_v56 = vperm.slane %v837_v39, 0 }
  0xd2   :  { %335 = vadd.xlane.f32.xlu0 %v334_v18  ;;  %332 = vadd.xlane.f32.xlu2 %v331_v15 }
  0xf3   :  { %v363_v35 = vpop.xlane.xlu2 %362 }
  0xf4   :  { %v339_v13 = vpop.xlane.xlu0 %338  ;;  %v409_v36 = vmul.f32 %v363_v35, %v1771_v58 }
  0xf5   :  { %v401_v14 = vmul.f32 %v339_v13, %v1771_v58 }
  0xf6   :  { %v441_v32 = vadd.f32 1e-06, %v409_v36 }
  0xf7   :  { %v433_v27 = vadd.f32 1e-06, %v401_v14 }
  0xf8   :  { %vm695_vm4 = vweird.f32 %v441_v32 }
  0xf9   :  { %1468 = vrsqrt.f32 %v433_v27  ;;  %vm615_vm2 = vweird.f32 %v433_v27 }
  0xfa   :  { %1470 = vrsqrt.f32 %v441_v32 }
  0xfb   :  { %v291_v6 = vpop.xlane.xlu2 %290 }
  0xfc   :  { %v342_v62 = vpop.xlane.xlu1 %341  ;;  %v366_v47 = vpop.xlane.xlu0 %365  ;;  %v385_v1 = vmul.f32 %v291_v6, %v1771_v58 }
  0xfd   :  { %v402_v48 = vmul.f32 %v342_v62, %v1771_v58  ;;  %v410_v60 = vmul.f32 %v366_v47, %v1771_v58 }
  0xfe   :  { %v2044_v21 = vadd.f32 1e-06, %v385_v1 }
  0xff   :  { %v1469_v42 = vpop.eup %1468  ;;  %v2040_v44 = vadd.f32 1e-06, %v402_v48  ;;  %v2042_v16 = vadd.f32 1e-06, %v410_v60 }
 0x100   :  { %v1471_v25 = vpop.eup %1470  ;;  %v610_v20 = vmul.f32 %v1469_v42, %v433_v27  ;;  %vm616_vm3 = vweird.f32 %v1469_v42  ;;  %vm455_vm11 = vweird.f32 %v2044_v21 }
 0x101   :  { %v690_v54 = vmul.f32 %v1471_v25, %v441_v32  ;;  %1472 = vrsqrt.f32 %v2040_v44  ;;  %vm696_vm5 = vweird.f32 %v1471_v25  ;;  %vm625_vm7 = vweird.f32 %v2040_v44  ;;  %vm617_vm8 = vmor %vm615_vm2, %vm616_vm3 }
 0x102   :  { %v611_v46 = vmul.f32 %v1469_v42, %v610_v20  ;;  %1474 = vrsqrt.f32 %v2042_v16  ;;  %vm697_vm9 = vmor %vm695_vm4, %vm696_vm5  ;;  %vm705_vm10 = vweird.f32 %v2042_v16 }
 0x103   :  { %v691_v55 = vmul.f32 %v1471_v25, %v690_v54  ;;  %1476 = vrsqrt.f32 %v2044_v21  ;;  %v318_v14 = vpop.xlane.xlu2 %317 }
 0x104   :  { %v612_v59 = vmul.f32 0.5, %v611_v46  ;;  %v315_v17 = vpop.xlane.xlu1 %314  ;;  %v294_v15 = vpop.xlane.xlu0 %293  ;;  %v394_v62 = vmul.f32 %v318_v14, %v1771_v58 }
 0x105   :  { %v692_v18 = vmul.f32 0.5, %v691_v55  ;;  %v393_v13 = vmul.f32 %v315_v17, %v1771_v58  ;;  %v386_v35 = vmul.f32 %v294_v15, %v1771_v58 }
 0x106   :  { %v613_v36 = vsub.f32 1.5, %v612_v59  ;;  %v2073_v54 = vadd.f32 1e-06, %v394_v62 }
 0x107   :  { %v2056_v47 = vpop.eup %1472  ;;  %v693_v45 = vsub.f32 1.5, %v692_v18  ;;  %v2058_v48 = vadd.f32 1e-06, %v393_v13  ;;  %v2065_v1 = vadd.f32 1e-06, %v386_v35 }
 0x108   :  { %v2060_v60 = vpop.eup %1474  ;;  %v614_v6 = vmul.f32 %v1469_v42, %v613_v36  ;;  %v620_v9 = vmul.f32 %v2056_v47, %v2040_v44  ;;  %vm626_vm12 = vweird.f32 %v2056_v47 }
 0x109   :  { %v2067_v61 = vpop.eup %1476  ;;  %v694_v20 = vmul.f32 %v1471_v25, %v693_v45  ;;  %v700_v39 = vmul.f32 %v2060_v60, %v2042_v16  ;;  %1478 = vrsqrt.f32 %v2058_v48  ;;  %vm706_vm13 = vweird.f32 %v2060_v60  ;;  %vm2109_vm1 = vmor %vm625_vm7, %vm626_vm12 }
 0x10a   :  { %v618_v46 = vsel %vm617_vm8, %v1469_v42, %v614_v6  ;;  %v621_v55 = vmul.f32 %v2056_v47, %v620_v9  ;;  %v450_v27 = vmul.f32 %v2067_v61, %v2044_v21  ;;  %1480 = vrsqrt.f32 %v2065_v1  ;;  %vm2126_vm2 = vmor %vm705_vm10, %vm706_vm13 }
 0x10b   :  { %v785_v59 = vmul.f32 %v618_v46, %v1781_v29  ;;  %v698_v17 = vsel %vm697_vm9, %v1471_v25, %v694_v20  ;;  %v701_v15 = vmul.f32 %v2060_v60, %v700_v39  ;;  %1482 = vrsqrt.f32 %v2073_v54  ;;  %v1379_v20 = vld [vmem:[%s2820_s3 + $0x8] sm:$0xff] }
 0x10c   :  { %v793_v18 = vmul.f32 %v698_v17, %v1777_v28  ;;  %v622_v42 = vmul.f32 0.5, %v621_v55  ;;  %v451_v32 = vmul.f32 %v2067_v61, %v450_v27  ;;  %v369_v13 = vpop.xlane.xlu0 %368  ;;  %v345_v28 = vpop.xlane.xlu1 %344  ;;  %vm456_vm14 = vweird.f32 %v2067_v61  ;;  %1460 = vmatpush.bf16.msra.mxu2 %v1379_v20  ;;  %1461 = vmatpush.bf16.msra.mxu3 %v1379_v20 }
 0x10d   :  { %v820_v35 = vmul.f32 %v2049_v40, %v785_v59  ;;  %v702_v14 = vmul.f32 0.5, %v701_v15  ;;  %v411_v9 = vmul.f32 %v369_v13, %v1771_v58  ;;  %vm535_vm15 = vweird.f32 %v2058_v48  ;;  %1122 = vmatpush.bf16.msra.mxu0 %v1379_v20  ;;  %vm457_vm3 = vmor %vm455_vm11, %vm456_vm14  ;;  %1459 = vmatpush.bf16.msra.mxu1 %v1379_v20 }
 0x10e   :  { %v828_v29 = vmul.f32 %v2049_v40, %v793_v18  ;;  %v623_v25 = vsub.f32 1.5, %v622_v42  ;;  %v452_v36 = vmul.f32 0.5, %v451_v32  ;;  %v403_v42 = vmul.f32 %v345_v28, %v1771_v58 }
 0x10f   :  { %v2092_v62 = vpop.eup %1478  ;;  %v855_v45 = vadd.f32 %v2051_v56, %v820_v35  ;;  %v703_v6 = vsub.f32 1.5, %v702_v14  ;;  %v2114_v18 = vadd.f32 1e-06, %v411_v9  ;;  %vm465_vm5 = vweird.f32 %v2065_v1 }
 0x110   :  { %v863_v39 = vadd.f32 %v2051_v56, %v828_v29  ;;  %v624_v46 = vmul.f32 %v2056_v47, %v623_v25  ;;  %v453_v55 = vsub.f32 1.5, %v452_v36  ;;  %v530_v27 = vmul.f32 %v2092_v62, %v2058_v48  ;;  %v2117_v32 = vpop.eup %1480  ;;  %v348_v25 = vpop.xlane.xlu2 %347 }
 0x111   :  { %v887_v59 = vpack.c.bf16 %v855_v45, %v855_v45  ;;  %v704_v15 = vmul.f32 %v2060_v60, %v703_v6  ;;  %v2132_v36 = vpop.eup %1482  ;;  %vm536_vm4 = vweird.f32 %v2092_v62  ;;  %v460_v28 = vmul.f32 %v2117_v32, %v2065_v1 }
 0x112   :  { %v895_v13 = vpack.c.bf16 %v863_v39, %v863_v39  ;;  %v628_v35 = vsel %vm2109_vm1, %v2056_v47, %v624_v46  ;;  %v454_v14 = vmul.f32 %v2067_v61, %v453_v55  ;;  %v531_v29 = vmul.f32 %v2092_v62, %v530_v27  ;;  %vm537_vm9 = vmor %vm535_vm15, %vm536_vm4 }
 0x113   :  { %920 = vst.msk [vmem:[#allocation2 + $0x40] sm:$0xf] %vm903_vm6, %v887_v59  ;;  %v786_v47 = vmul.f32 %v628_v35, %v1802_v8  ;;  %v708_v16 = vsel %vm2126_vm2, %v2060_v60, %v704_v15  ;;  %v1378_v8 = vld [vmem:[%s2820_s3] sm:$0xff]  ;;  %v540_v6 = vmul.f32 %v2132_v36, %v2073_v54  ;;  %v461_v55 = vmul.f32 %v2117_v32, %v460_v28 }
 0x114   :  { %928 = vst.msk [vmem:[#allocation2 + $0x60] sm:$0xf] %vm903_vm6, %v895_v13  ;;  %v794_v60 = vmul.f32 %v708_v16, %v1798_v7  ;;  %v458_v45 = vsel %vm457_vm3, %v2067_v61, %v454_v14  ;;  %v532_v21 = vmul.f32 0.5, %v531_v29  ;;  %v300_v9 = vpop.xlane.xlu0 %299  ;;  %vm466_vm7 = vweird.f32 %v2117_v32  ;;  %1463 = vmatpush.bf16.msra.mxu2 %v1378_v8  ;;  %1464 = vmatpush.bf16.msra.mxu3 %v1378_v8  ;;  %v372_v16 = vpop.xlane.xlu1 %371 }
 0x115   :  { %v821_v39 = vmul.f32 %v2049_v40, %v786_v47  ;;  %v769_v46 = vmul.f32 %v458_v45, %v1792_v3  ;;  %v541_v61 = vmul.f32 %v2132_v36, %v540_v6  ;;  %1484 = vrsqrt.f32 %v2114_v18  ;;  %1123 = vmatpush.bf16.msra.mxu0 %v1378_v8  ;;  %1462 = vmatpush.bf16.msra.mxu1 %v1378_v8  ;;  %vm467_vm11 = vmor %vm465_vm5, %vm466_vm7 }
 0x116   :  { %v829_v20 = vmul.f32 %v2049_v40, %v794_v60  ;;  %v533_v7 = vsub.f32 1.5, %v532_v21  ;;  %v462_v17 = vmul.f32 0.5, %v461_v55  ;;  %vm546_vm8 = vweird.f32 %v2132_v36 }
 0x117   :  { %v856_v27 = vadd.f32 %v2051_v56, %v821_v39  ;;  %v804_v59 = vmul.f32 %v2049_v40, %v769_v46  ;;  %v542_v13 = vmul.f32 0.5, %v541_v61  ;;  %v2167_v35 = vadd.f32 1e-06, %v403_v42 }
 0x118   :  { %v864_v3 = vadd.f32 %v2051_v56, %v829_v20  ;;  %v534_v15 = vmul.f32 %v2092_v62, %v533_v7  ;;  %v463_v29 = vsub.f32 1.5, %v462_v17  ;;  %v404_v47 = vmul.f32 %v348_v25, %v1771_v58  ;;  %v297_v39 = vpop.xlane.xlu2 %296 }
 0x119   :  { %v888_v44 = vpack.c.bf16 %v856_v27, %v856_v27  ;;  %v839_v14 = vadd.f32 %v2051_v56, %v804_v59  ;;  %v543_v60 = vsub.f32 1.5, %v542_v13  ;;  %1486 = vrsqrt.f32 %v2167_v35 }
 0x11a   :  { %v896_v28 = vpack.c.bf16 %v864_v3, %v864_v3  ;;  %v538_v8 = vsel %vm537_vm9, %v2092_v62, %v534_v15  ;;  %v464_v21 = vmul.f32 %v2117_v32, %v463_v29  ;;  %vm545_vm10 = vweird.f32 %v2073_v54 }
 0x11b   :  { %921 = vst.msk [vmem:[#allocation2 + $0x44] sm:$0xf] %vm903_vm6, %v888_v44  ;;  %v871_v42 = vpack.c.bf16 %v839_v14, %v839_v14  ;;  %v777_v45 = vmul.f32 %v538_v8, %v1826_v11  ;;  %v2181_v48 = vpop.eup %1484  ;;  %v544_v62 = vmul.f32 %v2132_v36, %v543_v60  ;;  %v2189_v25 = vadd.f32 1e-06, %v404_v47  ;;  %vm547_vm12 = vmor %vm545_vm10, %vm546_vm8 }
 0x11c   :  { %929 = vst.msk [vmem:[#allocation2 + $0x64] sm:$0xf] %vm903_vm6, %v896_v28  ;;  %v388_v6 = vmul.f32 %v300_v9, %v1771_v58  ;;  %v412_v11 = vmul.f32 %v372_v16, %v1771_v58  ;;  %v468_v46 = vsel %vm467_vm11, %v2117_v32, %v464_v21  ;;  %v710_v1 = vmul.f32 %v2181_v48, %v2114_v18  ;;  %v351_v55 = vpop.xlane.xlu0 %350  ;;  %v321_v8 = vpop.xlane.xlu1 %320 }
 0x11d   :  { %904 = vst.msk [vmem:[#allocation2] sm:$0xf] %vm903_vm6, %v871_v42  ;;  %v812_v54 = vmul.f32 %v2049_v40, %v777_v45  ;;  %v770_v20 = vmul.f32 %v468_v46, %v1813_v0  ;;  %v548_v9 = vsel %vm547_vm12, %v2132_v36, %v544_v62  ;;  %1488 = vrsqrt.f32 %v2189_v25 }
 0x11e   :  { %v778_v61 = vmul.f32 %v548_v9, %v1822_v2  ;;  %v711_v27 = vmul.f32 %v2181_v48, %v710_v1  ;;  %v2206_v32 = vadd.f32 1e-06, %v388_v6  ;;  %v2211_v3 = vadd.f32 1e-06, %v412_v11 }
 0x11f   :  { %v847_v7 = vadd.f32 %v2051_v56, %v812_v54  ;;  %v2208_v59 = vpop.eup %1486  ;;  %v805_v17 = vmul.f32 %v2049_v40, %v770_v20  ;;  %v387_v0 = vmul.f32 %v297_v39, %v1771_v58  ;;  %v405_v36 = vmul.f32 %v351_v55, %v1771_v58 }
 0x120   :  { %v813_v13 = vmul.f32 %v2049_v40, %v778_v61  ;;  %v712_v44 = vmul.f32 0.5, %v711_v27  ;;  %v630_v2 = vmul.f32 %v2208_v59, %v2167_v35  ;;  %vm716_vm13 = vweird.f32 %v2181_v48 }
 0x121   :  { %v879_v15 = vpack.c.bf16 %v847_v7, %v847_v7  ;;  %v840_v14 = vadd.f32 %v2051_v56, %v805_v17  ;;  %1490 = vrsqrt.f32 %v2206_v32  ;;  %vm715_vm14 = vweird.f32 %v2114_v18  ;;  %v324_v18 = vpop.xlane.xlu2 %323 }
 0x122   :  { %v1370_v29 = vld [vmem:[#allocation2 + $0x40] sm:$0xff]  ;;  %v848_v47 = vadd.f32 %v2051_v56, %v813_v13  ;;  %v713_v16 = vsub.f32 1.5, %v712_v44  ;;  %v631_v28 = vmul.f32 %v2208_v59, %v630_v2  ;;  %1492 = vrsqrt.f32 %v2211_v3  ;;  %vm717_vm15 = vmor %vm715_vm14, %vm716_vm13 }
 0x123   :  { %912 = vst.msk [vmem:[#allocation2 + $0x20] sm:$0xf] %vm903_vm6, %v879_v15  ;;  %v1374_v60 = vld [vmem:[#allocation2 + $0x60] sm:$0xff]  ;;  %v2225_v42 = vpop.eup %1488  ;;  %v872_v45 = vpack.c.bf16 %v840_v14, %v840_v14  ;;  %v2228_v21 = vadd.f32 1e-06, %v387_v0  ;;  %1354 = vmatmul.msk.bf16.vlgmr.msra.gmra.mxu2 %vm89_vm0, %v1370_v29  ;;  %vm635_vm1 = vweird.f32 %v2167_v35  ;;  %vm636_vm2 = vweird.f32 %v2208_v59 }
 0x124   :  { %v2230_v62 = vadd.f32 1e-06, %v405_v36  ;;  %v880_v6 = vpack.c.bf16 %v848_v47, %v848_v47  ;;  %v714_v11 = vmul.f32 %v2181_v48, %v713_v16  ;;  %v632_v39 = vmul.f32 0.5, %v631_v28  ;;  %1358 = vmatmul.msk.bf16.vlgmr.msra.gmra.mxu3 %vm89_vm0, %v1374_v60  ;;  %v378_v20 = vpop.xlane.xlu0 %377  ;;  %vm637_vm7 = vmor %vm635_vm1, %vm636_vm2 }
 0x125   :  { %v640_v54 = vmul.f32 %v2225_v42, %v2189_v25  ;;  %905 = vst.msk [vmem:[#allocation2 + $0x4] sm:$0xf] %vm903_vm6, %v872_v45  ;;  %1494 = vrsqrt.f32 %v2228_v21  ;;  %vm645_vm3 = vweird.f32 %v2189_v25  ;;  %vm646_vm4 = vweird.f32 %v2225_v42 }
 0x126   :  { %913 = vst.msk [vmem:[#allocation2 + $0x24] sm:$0xf] %vm903_vm6, %v880_v6  ;;  %v718_v46 = vsel %vm717_vm15, %v2181_v48, %v714_v11  ;;  %v633_v1 = vsub.f32 1.5, %v632_v39  ;;  %1496 = vrsqrt.f32 %v2230_v62  ;;  %v395_v61 = vmul.f32 %v321_v8, %v1771_v58  ;;  %v354_v11 = vpop.xlane.xlu1 %353  ;;  %vm647_vm11 = vmor %vm645_vm3, %vm646_vm4 }
 0x127   :  { %v641_v55 = vmul.f32 %v2225_v42, %v640_v54  ;;  %v2247_v9 = vpop.eup %1490  ;;  %v795_v7 = vmul.f32 %v718_v46, %v1846_v19  ;;  %vm485_vm5 = vweird.f32 %v2206_v32  ;;  %v396_v36 = vmul.f32 %v324_v18, %v1771_v58 }
 0x128   :  { %v2253_v27 = vpop.eup %1492  ;;  %v634_v48 = vmul.f32 %v2208_v59, %v633_v1  ;;  %v480_v0 = vmul.f32 %v2247_v9, %v2206_v32  ;;  %vm725_vm8 = vweird.f32 %v2211_v3  ;;  %v2268_v13 = vadd.f32 1e-06, %v395_v61 }
 0x129   :  { %v642_v17 = vmul.f32 0.5, %v641_v55  ;;  %v830_v19 = vmul.f32 %v2049_v40, %v795_v7  ;;  %v720_v15 = vmul.f32 %v2253_v27, %v2211_v3  ;;  %v2271_v44 = vmul.f32 %v378_v20, %v1771_v58 }
 0x12a   :  { %v638_v2 = vsel %vm637_vm7, %v2208_v59, %v634_v48  ;;  %v481_v29 = vmul.f32 %v2247_v9, %v480_v0  ;;  %vm486_vm9 = vweird.f32 %v2247_v9  ;;  %1498 = vrsqrt.f32 %v2268_v13 }
 0x12b   :  { %v643_v14 = vsub.f32 1.5, %v642_v17  ;;  %v2276_v47 = vpop.eup %1494  ;;  %v865_v35 = vadd.f32 %v2051_v56, %v830_v19  ;;  %v787_v16 = vmul.f32 %v638_v2, %v1837_v5  ;;  %v721_v28 = vmul.f32 %v2253_v27, %v720_v15  ;;  %vm487_vm15 = vmor %vm485_vm5, %vm486_vm9 }
 0x12c   :  { %v2282_v8 = vpop.eup %1496  ;;  %v482_v59 = vmul.f32 0.5, %v481_v29  ;;  %v470_v45 = vmul.f32 %v2276_v47, %v2228_v21  ;;  %vm475_vm10 = vweird.f32 %v2228_v21  ;;  %v2288_v6 = vadd.f32 1e-06, %v396_v36  ;;  %v1362_v39 = vld [vmem:[#allocation2] sm:$0xff]  ;;  %v375_v36 = vpop.xlane.xlu2 %374 }
 0x12d   :  { %v644_v60 = vmul.f32 %v2225_v42, %v643_v14  ;;  %v897_v54 = vpack.c.bf16 %v865_v35, %v865_v35  ;;  %v822_v5 = vmul.f32 %v2049_v40, %v787_v16  ;;  %v722_v18 = vmul.f32 0.5, %v721_v28  ;;  %v1366_v1 = vld [vmem:[#allocation2 + $0x20] sm:$0xff]  ;;  %1346 = vmatmul.msk.bf16.vlgmr.msra.gmra.mxu0 %vm89_vm0, %v1362_v39 }
 0x12e   :  { %v650_v46 = vmul.f32 %v2282_v8, %v2230_v62  ;;  %vm655_vm12 = vweird.f32 %v2230_v62  ;;  %v483_v20 = vsub.f32 1.5, %v482_v59  ;;  %vm726_vm13 = vweird.f32 %v2253_v27  ;;  %1350 = vmatmul.msk.bf16.vlgmr.msra.gmra.mxu1 %vm89_vm0, %v1366_v1  ;;  %v327_v1 = vpop.xlane.xlu0 %326 }
 0x12f   :  { %v648_v55 = vsel %vm647_vm11, %v2225_v42, %v644_v60  ;;  %v471_v7 = vmul.f32 %v2276_v47, %v470_v45  ;;  %930 = vst.msk [vmem:[#allocation2 + $0x68] sm:$0xf] %vm903_vm6, %v897_v54  ;;  %v857_v25 = vadd.f32 %v2051_v56, %v822_v5  ;;  %v723_v48 = vsub.f32 1.5, %v722_v18  ;;  %vm727_vm1 = vmor %vm725_vm8, %vm726_vm13 }
 0x130   :  { %v788_v61 = vmul.f32 %v648_v55, %v1850_v10  ;;  %v651_v17 = vmul.f32 %v2282_v8, %v650_v46  ;;  %v484_v42 = vmul.f32 %v2247_v9, %v483_v20  ;;  %vm476_vm14 = vweird.f32 %v2276_v47  ;;  %v2310_v19 = vpop.eup %1498  ;;  %v303_v55 = vpop.xlane.xlu1 %302 }
 0x131   :  { %v472_v0 = vmul.f32 0.5, %v471_v7  ;;  %1500 = vrsqrt.f32 %v2288_v6  ;;  %v889_v15 = vpack.c.bf16 %v857_v25, %v857_v25  ;;  %v724_v10 = vmul.f32 %v2253_v27, %v723_v48  ;;  %vm477_vm4 = vmor %vm475_vm10, %vm476_vm14 }
 0x132   :  { %v823_v2 = vmul.f32 %v2049_v40, %v788_v61  ;;  %v652_v14 = vmul.f32 0.5, %v651_v17  ;;  %v488_v29 = vsel %vm487_vm15, %v2247_v9, %v484_v42  ;;  %vm656_vm2 = vweird.f32 %v2282_v8 }
 0x133   :  { %v473_v35 = vsub.f32 1.5, %v472_v0  ;;  %v550_v16 = vmul.f32 %v2310_v19, %v2268_v13  ;;  %922 = vst.msk [vmem:[#allocation2 + $0x48] sm:$0xf] %vm903_vm6, %v889_v15  ;;  %v772_v28 = vmul.f32 %v488_v29, %v1870_v23  ;;  %v728_v60 = vsel %vm727_vm1, %v2253_v27, %v724_v10  ;;  %vm657_vm5 = vmor %vm655_vm12, %vm656_vm2 }
 0x134   :  { %v858_v32 = vadd.f32 %v2051_v56, %v823_v2  ;;  %v653_v9 = vsub.f32 1.5, %v652_v14  ;;  %v796_v59 = vmul.f32 %v728_v60, %v1861_v51  ;;  %vm555_vm3 = vweird.f32 %v2268_v13  ;;  %v306_v0 = vpop.xlane.xlu2 %305 }
 0x135   :  { %v474_v3 = vmul.f32 %v2276_v47, %v473_v35  ;;  %v551_v45 = vmul.f32 %v2310_v19, %v550_v16  ;;  %v807_v54 = vmul.f32 %v2049_v40, %v772_v28  ;;  %v2341_v27 = vadd.f32 1e-06, %v2271_v44 }
 0x136   :  { %v890_v39 = vpack.c.bf16 %v858_v32, %v858_v32  ;;  %v654_v23 = vmul.f32 %v2282_v8, %v653_v9  ;;  %v831_v5 = vmul.f32 %v2049_v40, %v796_v59  ;;  %v406_v21 = vmul.f32 %v354_v11, %v1771_v58 }
 0x137   :  { %v2343_v51 = vpop.eup %1500  ;;  %v478_v18 = vsel %vm477_vm4, %v2276_v47, %v474_v3  ;;  %v552_v46 = vmul.f32 0.5, %v551_v45  ;;  %v842_v44 = vadd.f32 %v2051_v56, %v807_v54  ;;  %vm556_vm7 = vweird.f32 %v2310_v19 }
 0x138   :  { %923 = vst.msk [vmem:[#allocation2 + $0x4c] sm:$0xf] %vm903_vm6, %v890_v39  ;;  %v771_v20 = vmul.f32 %v478_v18, %v1874_v26  ;;  %v658_v7 = vsel %vm657_vm5, %v2282_v8, %v654_v23  ;;  %v560_v47 = vmul.f32 %v2343_v51, %v2288_v6  ;;  %v866_v25 = vadd.f32 %v2051_v56, %v831_v5  ;;  %vm557_vm9 = vmor %vm555_vm3, %vm556_vm7  ;;  %v330_v54 = vpop.xlane.xlu1 %329  ;;  %v360_v23 = vpop.xlane.xlu0 %359 }
 0x139   :  { %v789_v62 = vmul.f32 %v658_v7, %v1894_v34  ;;  %v553_v61 = vsub.f32 1.5, %v552_v46  ;;  %v874_v11 = vpack.c.bf16 %v842_v44, %v842_v44  ;;  %1502 = vrsqrt.f32 %v2341_v27 }
 0x13a   :  { %v806_v48 = vmul.f32 %v2049_v40, %v771_v20  ;;  %v561_v17 = vmul.f32 %v2343_v51, %v560_v47  ;;  %v898_v26 = vpack.c.bf16 %v866_v25, %v866_v25  ;;  %vm566_vm8 = vweird.f32 %v2343_v51 }
 0x13b   :  { %v824_v8 = vmul.f32 %v2049_v40, %v789_v62  ;;  %v554_v42 = vmul.f32 %v2310_v19, %v553_v61  ;;  %907 = vst.msk [vmem:[#allocation2 + $0xc] sm:$0xf] %vm903_vm6, %v874_v11  ;;  %v2371_v2 = vadd.f32 1e-06, %v406_v21  ;;  %v413_v10 = vmul.f32 %v375_v36, %v1771_v58 }
 0x13c   :  { %v841_v34 = vadd.f32 %v2051_v56, %v806_v48  ;;  %v562_v15 = vmul.f32 0.5, %v561_v17  ;;  %931 = vst.msk [vmem:[#allocation2 + $0x6c] sm:$0xf] %vm903_vm6, %v898_v26  ;;  %v397_v35 = vmul.f32 %v327_v1, %v1771_v58  ;;  %v389_v16 = vmul.f32 %v303_v55, %v1771_v58  ;;  %v357_v62 = vpop.xlane.xlu2 %356 }
 0x13d   :  { %v859_v14 = vadd.f32 %v2051_v56, %v824_v8  ;;  %v558_v29 = vsel %vm557_vm9, %v2310_v19, %v554_v42  ;;  %1504 = vrsqrt.f32 %v2371_v2  ;;  %vm565_vm10 = vweird.f32 %v2288_v6 }
 0x13e   :  { %v873_v32 = vpack.c.bf16 %v841_v34, %v841_v34  ;;  %v779_v28 = vmul.f32 %v558_v29, %v1885_v37  ;;  %v563_v13 = vsub.f32 1.5, %v562_v15  ;;  %v2382_v36 = vadd.f32 1e-06, %v413_v10  ;;  %vm567_vm11 = vmor %vm565_vm10, %vm566_vm8 }
 0x13f   :  { %v891_v60 = vpack.c.bf16 %v859_v14, %v859_v14  ;;  %v2384_v9 = vadd.f32 1e-06, %v397_v35  ;;  %v1371_v59 = vld [vmem:[#allocation2 + $0x48] sm:$0xff]  ;;  %v2386_v3 = vpop.eup %1502  ;;  %v2391_v37 = vadd.f32 1e-06, %v389_v16  ;;  %v390_v39 = vmul.f32 %v306_v0, %v1771_v58 }
 0x140   :  { %906 = vst.msk [vmem:[#allocation2 + $0x8] sm:$0xf] %vm903_vm6, %v873_v32  ;;  %v814_v19 = vmul.f32 %v2049_v40, %v779_v28  ;;  %v564_v45 = vmul.f32 %v2343_v51, %v563_v13  ;;  %v740_v6 = vmul.f32 %v2386_v3, %v2341_v27  ;;  %1506 = vrsqrt.f32 %v2382_v36  ;;  %1355 = vmatmul.msk.bf16.gmra.mxu2 %vm89_vm0, %v1371_v59 }
 0x141   :  { %924 = vst.msk [vmem:[#allocation2 + $0x50] sm:$0xf] %vm903_vm6, %v891_v60  ;;  %1508 = vrsqrt.f32 %v2384_v9  ;;  %v2409_v44 = vadd.f32 1e-06, %v390_v39  ;;  %v398_v20 = vmul.f32 %v330_v54, %v1771_v58  ;;  %v408_v7 = vmul.f32 %v360_v23, %v1771_v58 }
 0x142   :  { %v849_v5 = vadd.f32 %v2051_v56, %v814_v19  ;;  %v568_v18 = vsel %vm567_vm11, %v2343_v51, %v564_v45  ;;  %v741_v21 = vmul.f32 %v2386_v3, %v740_v6  ;;  %1510 = vrsqrt.f32 %v2391_v37 }
 0x143   :  { %v780_v46 = vmul.f32 %v568_v18, %v1898_v50  ;;  %v2407_v1 = vpop.eup %1504  ;;  %v1375_v47 = vld [vmem:[#allocation2 + $0x68] sm:$0xff]  ;;  %vm745_vm12 = vweird.f32 %v2341_v27  ;;  %vm746_vm13 = vweird.f32 %v2386_v3  ;;  %vm665_vm14 = vweird.f32 %v2371_v2 }
 0x144   :  { %v881_v55 = vpack.c.bf16 %v849_v5, %v849_v5  ;;  %v742_v25 = vmul.f32 0.5, %v741_v21  ;;  %v660_v50 = vmul.f32 %v2407_v1, %v2371_v2  ;;  %1512 = vrsqrt.f32 %v2409_v44  ;;  %1359 = vmatmul.msk.bf16.gmra.mxu3 %vm89_vm0, %v1375_v47  ;;  %vm747_vm3 = vmor %vm745_vm12, %vm746_vm13 }
 0x145   :  { %v815_v51 = vmul.f32 %v2049_v40, %v780_v46  ;;  %v2421_v61 = vadd.f32 1e-06, %v398_v20  ;;  %v2428_v8 = vadd.f32 1e-06, %v408_v7  ;;  %vm666_vm15 = vweird.f32 %v2407_v1 }
 0x146   :  { %914 = vst.msk [vmem:[#allocation2 + $0x28] sm:$0xf] %vm903_vm6, %v881_v55  ;;  %v2424_v11 = vpop.eup %1506  ;;  %v743_v17 = vsub.f32 1.5, %v742_v25  ;;  %v661_v26 = vmul.f32 %v2407_v1, %v660_v50  ;;  %vm735_vm1 = vweird.f32 %v2382_v36  ;;  %v407_v15 = vmul.f32 %v357_v62, %v1771_v58  ;;  %vm667_vm11 = vmor %vm665_vm14, %vm666_vm15  ;;  %v381_v50 = vpop.xlane.xlu1 %380 }
 0x147   :  { %v850_v48 = vadd.f32 %v2051_v56, %v815_v51  ;;  %v1363_v42 = vld [vmem:[#allocation2 + $0x8] sm:$0xff]  ;;  %v2430_v0 = vpop.eup %1508  ;;  %v730_v34 = vmul.f32 %v2424_v11, %v2382_v36  ;;  %1514 = vrsqrt.f32 %v2421_v61  ;;  %vm575_vm2 = vweird.f32 %v2384_v9  ;;  %v309_v62 = vpop.xlane.xlu0 %308 }
 0x148   :  { %v2438_v10 = vpop.eup %1510  ;;  %v744_v29 = vmul.f32 %v2386_v3, %v743_v17  ;;  %v662_v35 = vmul.f32 0.5, %v661_v26  ;;  %v570_v16 = vmul.f32 %v2430_v0, %v2384_v9  ;;  %1347 = vmatmul.msk.bf16.gmra.mxu0 %vm89_vm0, %v1363_v42  ;;  %vm736_vm4 = vweird.f32 %v2424_v11 }
 0x149   :  { %v882_v14 = vpack.c.bf16 %v850_v48, %v850_v48  ;;  %v731_v32 = vmul.f32 %v2424_v11, %v730_v34  ;;  %vm576_vm5 = vweird.f32 %v2430_v0  ;;  %v490_v28 = vmul.f32 %v2438_v10, %v2391_v37  ;;  %vm737_vm12 = vmor %vm735_vm1, %vm736_vm4 }
 0x14a   :  { %vm495_vm7 = vweird.f32 %v2391_v37  ;;  %v748_v13 = vsel %vm747_vm3, %v2386_v3, %v744_v29  ;;  %v663_v60 = vsub.f32 1.5, %v662_v35  ;;  %v571_v59 = vmul.f32 %v2430_v0, %v570_v16  ;;  %v2459_v27 = vpop.eup %1512  ;;  %vm577_vm14 = vmor %vm575_vm2, %vm576_vm5 }
 0x14b   :  { %915 = vst.msk [vmem:[#allocation2 + $0x2c] sm:$0xf] %vm903_vm6, %v882_v14  ;;  %1516 = vrsqrt.f32 %v2428_v8  ;;  %v798_v19 = vmul.f32 %v748_v13, %v1918_v38  ;;  %v732_v45 = vmul.f32 0.5, %v731_v32  ;;  %v491_v39 = vmul.f32 %v2438_v10, %v490_v28 }
 0x14c   :  { %vm496_vm8 = vweird.f32 %v2438_v10  ;;  %v664_v6 = vmul.f32 %v2407_v1, %v663_v60  ;;  %v572_v54 = vmul.f32 0.5, %v571_v59  ;;  %v500_v3 = vmul.f32 %v2459_v27, %v2409_v44 }
 0x14d   :  { %vm505_vm9 = vweird.f32 %v2409_v44  ;;  %vm506_vm10 = vweird.f32 %v2459_v27  ;;  %v2469_v23 = vpop.eup %1514  ;;  %v833_v5 = vmul.f32 %v2049_v40, %v798_v19  ;;  %v733_v38 = vsub.f32 1.5, %v732_v45  ;;  %vm497_vm15 = vmor %vm495_vm7, %vm496_vm8 }
 0x14e   :  { %v492_v18 = vmul.f32 0.5, %v491_v39  ;;  %v2476_v46 = vadd.f32 1e-06, %v407_v15  ;;  %v668_v21 = vsel %vm667_vm11, %v2407_v1, %v664_v6  ;;  %v573_v55 = vsub.f32 1.5, %v572_v54  ;;  %v384_v15 = vpop.xlane.xlu2 %383  ;;  %vm507_vm1 = vmor %vm505_vm9, %vm506_vm10 }
 0x14f   :  { %v501_v20 = vmul.f32 %v2459_v27, %v500_v3  ;;  %v580_v7 = vmul.f32 %v2469_v23, %v2421_v61  ;;  %v868_v47 = vadd.f32 %v2051_v56, %v833_v5  ;;  %v790_v51 = vmul.f32 %v668_v21, %v1909_v4 }
 0x150   :  { %v734_v25 = vmul.f32 %v2424_v11, %v733_v38  ;;  %v493_v2 = vsub.f32 1.5, %v492_v18  ;;  %v574_v1 = vmul.f32 %v2430_v0, %v573_v55  ;;  %vm586_vm13 = vweird.f32 %v2469_v23  ;;  %v336_v55 = vpop.xlane.xlu0 %335 }
 0x151   :  { %v2485_v48 = vpop.eup %1516  ;;  %v502_v17 = vmul.f32 0.5, %v501_v20  ;;  %v581_v26 = vmul.f32 %v2469_v23, %v580_v7  ;;  %v900_v4 = vpack.c.bf16 %v868_v47, %v868_v47  ;;  %v825_v42 = vmul.f32 %v2049_v40, %v790_v51 }
 0x152   :  { %v738_v34 = vsel %vm737_vm12, %v2424_v11, %v734_v25  ;;  %v494_v36 = vmul.f32 %v2438_v10, %v493_v2  ;;  %v1367_v14 = vld [vmem:[#allocation2 + $0x28] sm:$0xff]  ;;  %v578_v35 = vsel %vm577_vm14, %v2430_v0, %v574_v1  ;;  %vm585_vm2 = vweird.f32 %v2421_v61 }
 0x153   :  { %v797_v29 = vmul.f32 %v738_v34, %v1922_v41  ;;  %v503_v16 = vsub.f32 1.5, %v502_v17  ;;  %v582_v11 = vmul.f32 0.5, %v581_v26  ;;  %933 = vst.msk [vmem:[#allocation2 + $0x74] sm:$0xf] %vm903_vm6, %v900_v4  ;;  %v860_v9 = vadd.f32 %v2051_v56, %v825_v42  ;;  %1351 = vmatmul.msk.bf16.gmra.mxu1 %vm89_vm0, %v1367_v14  ;;  %vm587_vm3 = vmor %vm585_vm2, %vm586_vm13 }
 0x154   :  { %v781_v32 = vmul.f32 %v578_v35, %v1942_v49  ;;  %v498_v28 = vsel %vm497_vm15, %v2438_v10, %v494_v36  ;;  %v680_v41 = vmul.f32 %v2485_v48, %v2428_v8  ;;  %1518 = vrsqrt.f32 %v2476_v46 }
 0x155   :  { %v832_v0 = vmul.f32 %v2049_v40, %v797_v29  ;;  %v773_v13 = vmul.f32 %v498_v28, %v1933_v33  ;;  %v504_v37 = vmul.f32 %v2459_v27, %v503_v16  ;;  %v583_v60 = vsub.f32 1.5, %v582_v11 }
 0x156   :  { %v892_v59 = vpack.c.bf16 %v860_v9, %v860_v9  ;;  %v816_v19 = vmul.f32 %v2049_v40, %v781_v32  ;;  %v681_v49 = vmul.f32 %v2485_v48, %v680_v41  ;;  %vm686_vm4 = vweird.f32 %v2485_v48  ;;  %v333_v2 = vpop.xlane.xlu2 %332 }
 0x157   :  { %v867_v10 = vadd.f32 %v2051_v56, %v832_v0  ;;  %v808_v33 = vmul.f32 %v2049_v40, %v773_v13  ;;  %v508_v45 = vsel %vm507_vm1, %v2459_v27, %v504_v37  ;;  %v584_v39 = vmul.f32 %v2469_v23, %v583_v60 }
 0x158   :  { %925 = vst.msk [vmem:[#allocation2 + $0x54] sm:$0xf] %vm903_vm6, %v892_v59  ;;  %v851_v6 = vadd.f32 %v2051_v56, %v816_v19  ;;  %v774_v54 = vmul.f32 %v508_v45, %v1946_v24  ;;  %v682_v44 = vmul.f32 0.5, %v681_v49  ;;  %v312_v24 = vpop.xlane.xlu1 %311  ;;  %v415_v7 = vmul.f32 %v381_v50, %v1771_v58 }
 0x159   :  { %v899_v61 = vpack.c.bf16 %v867_v10, %v867_v10  ;;  %v843_v3 = vadd.f32 %v2051_v56, %v808_v33  ;;  %v588_v5 = vsel %vm587_vm3, %v2469_v23, %v584_v39  ;;  %v391_v47 = vmul.f32 %v309_v62, %v1771_v58 }
 0x15a   :  { %v883_v27 = vpack.c.bf16 %v851_v6, %v851_v6  ;;  %v809_v38 = vmul.f32 %v2049_v40, %v774_v54  ;;  %v782_v18 = vmul.f32 %v588_v5, %v1957_v31  ;;  %v683_v21 = vsub.f32 1.5, %v682_v44  ;;  %v1519_v26 = vpop.eup %1518 }
 0x15b   :  { %932 = vst.msk [vmem:[#allocation2 + $0x70] sm:$0xf] %vm903_vm6, %v899_v61  ;;  %v875_v20 = vpack.c.bf16 %v843_v3, %v843_v3  ;;  %v416_v51 = vmul.f32 %v384_v15, %v1771_v58  ;;  %vm685_vm5 = vweird.f32 %v2428_v8  ;;  %v2551_v50 = vadd.f32 1e-06, %v415_v7 }
 0x15c   :  { %916 = vst.msk [vmem:[#allocation2 + $0x30] sm:$0xf] %vm903_vm6, %v883_v27  ;;  %v844_v23 = vadd.f32 %v2051_v56, %v809_v38  ;;  %v817_v25 = vmul.f32 %v2049_v40, %v782_v18  ;;  %v684_v31 = vmul.f32 %v2485_v48, %v683_v21  ;;  %vm687_vm7 = vmor %vm685_vm5, %vm686_vm4  ;;  %v2553_v62 = vadd.f32 1e-06, %v391_v47 }
 0x15d   :  { %908 = vst.msk [vmem:[#allocation2 + $0x10] sm:$0xf] %vm903_vm6, %v875_v20  ;;  %v392_v1 = vmul.f32 %v312_v24, %v1771_v58  ;;  %v400_v17 = vmul.f32 %v336_v55, %v1771_v58  ;;  %v2559_v34 = vadd.f32 1e-06, %v416_v51  ;;  %v670_v15 = vmul.f32 %v1519_v26, %v2476_v46 }
 0x15e   :  { %v876_v4 = vpack.c.bf16 %v844_v23, %v844_v23  ;;  %v852_v42 = vadd.f32 %v2051_v56, %v817_v25  ;;  %v688_v8 = vsel %vm687_vm7, %v2485_v48, %v684_v31  ;;  %1520 = vrsqrt.f32 %v2551_v50 }
 0x15f   :  { %v792_v36 = vmul.f32 %v688_v8, %v1973_v12  ;;  %v399_v14 = vmul.f32 %v333_v2, %v1771_v58  ;;  %v1372_v29 = vld [vmem:[#allocation2 + $0x50] sm:$0xff]  ;;  %1522 = vrsqrt.f32 %v2553_v62  ;;  %v671_v11 = vmul.f32 %v1519_v26, %v670_v15 }
 0x160   :  { %909 = vst.msk [vmem:[#allocation2 + $0x14] sm:$0xf] %vm903_vm6, %v876_v4  ;;  %v884_v35 = vpack.c.bf16 %v852_v42, %v852_v42  ;;  %1524 = vrsqrt.f32 %v2559_v34  ;;  %1356 = vmatmul.msk.bf16.gmra.mxu2 %vm89_vm0, %v1372_v29  ;;  %v2571_v12 = vadd.f32 1e-06, %v392_v1  ;;  %v2573_v48 = vadd.f32 1e-06, %v400_v17 }
 0x161   :  { %v827_v16 = vmul.f32 %v2049_v40, %v792_v36  ;;  %v672_v9 = vmul.f32 0.5, %v671_v11  ;;  %v2576_v32 = vadd.f32 1e-06, %v399_v14  ;;  %vm676_vm8 = vweird.f32 %v1519_v26 }
 0x162   :  { %917 = vst.msk [vmem:[#allocation2 + $0x34] sm:$0xf] %vm903_vm6, %v884_v35  ;;  %v1376_v28 = vld [vmem:[#allocation2 + $0x70] sm:$0xff]  ;;  %1526 = vrsqrt.f32 %v2571_v12  ;;  %vm675_vm9 = vweird.f32 %v2476_v46  ;;  %vm755_vm11 = vweird.f32 %v2551_v50  ;;  %vm515_vm12 = vweird.f32 %v2553_v62 }
 0x163   :  { %v862_v58 = vadd.f32 %v2051_v56, %v827_v16  ;;  %v673_v13 = vsub.f32 1.5, %v672_v9  ;;  %1528 = vrsqrt.f32 %v2573_v48  ;;  %1360 = vmatmul.msk.bf16.gmra.mxu3 %vm89_vm0, %v1376_v28  ;;  %vm677_vm10 = vmor %vm675_vm9, %vm676_vm8  ;;  %vm765_vm13 = vweird.f32 %v2559_v34 }
 0x164   :  { %v1521_v41 = vpop.eup %1520  ;;  %1530 = vrsqrt.f32 %v2576_v32  ;;  %vm525_vm2 = vweird.f32 %v2571_v12 }
 0x165   :  { %v894_v0 = vpack.c.bf16 %v862_v58, %v862_v58  ;;  %v1523_v37 = vpop.eup %1522  ;;  %v750_v60 = vmul.f32 %v1521_v41, %v2551_v50  ;;  %v674_v19 = vmul.f32 %v1519_v26, %v673_v13  ;;  %vm756_vm14 = vweird.f32 %v1521_v41 }
 0x166   :  { %v2583_v59 = vpop.eup %1524  ;;  %v510_v49 = vmul.f32 %v1523_v37, %v2553_v62  ;;  %vm516_vm15 = vweird.f32 %v1523_v37  ;;  %vm757_vm4 = vmor %vm755_vm11, %vm756_vm14  ;;  %vm605_vm11 = vweird.f32 %v2573_v48 }
 0x167   :  { %927 = vst.msk [vmem:[#allocation2 + $0x5c] sm:$0xf] %vm903_vm6, %v894_v0  ;;  %v1364_v10 = vld [vmem:[#allocation2 + $0x10] sm:$0xff]  ;;  %v751_v33 = vmul.f32 %v1521_v41, %v750_v60  ;;  %v760_v45 = vmul.f32 %v2583_v59, %v2559_v34  ;;  %v678_v39 = vsel %vm677_vm10, %v1519_v26, %v674_v19  ;;  %vm766_vm1 = vweird.f32 %v2583_v59  ;;  %vm517_vm7 = vmor %vm515_vm12, %vm516_vm15 }
 0x168   :  { %v511_v6 = vmul.f32 %v1523_v37, %v510_v49  ;;  %1348 = vmatmul.msk.bf16.gmra.mxu0 %vm89_vm0, %v1364_v10  ;;  %v1527_v46 = vpop.eup %1526  ;;  %v791_v44 = vmul.f32 %v678_v39, %v1966_v53  ;;  %vm767_vm8 = vmor %vm765_vm13, %vm766_vm1  ;;  %vm595_vm12 = vweird.f32 %v2576_v32 }
 0x169   :  { %v1368_v54 = vld [vmem:[#allocation2 + $0x30] sm:$0xff]  ;;  %v752_v61 = vmul.f32 0.5, %v751_v33  ;;  %v761_v3 = vmul.f32 %v2583_v59, %v760_v45  ;;  %v1529_v5 = vpop.eup %1528  ;;  %v520_v38 = vmul.f32 %v1527_v46, %v2571_v12  ;;  %vm526_vm3 = vweird.f32 %v1527_v46 }
 0x16a   :  { %v512_v27 = vmul.f32 0.5, %v511_v6  ;;  %1352 = vmatmul.msk.bf16.gmra.mxu1 %vm89_vm0, %v1368_v54  ;;  %v1531_v18 = vpop.eup %1530  ;;  %v826_v21 = vmul.f32 %v2049_v40, %v791_v44  ;;  %v600_v55 = vmul.f32 %v1529_v5, %v2573_v48  ;;  %vm606_vm5 = vweird.f32 %v1529_v5  ;;  %vm527_vm10 = vmor %vm525_vm2, %vm526_vm3 }
 0x16b   :  { %v753_v24 = vsub.f32 1.5, %v752_v61  ;;  %v762_v53 = vmul.f32 0.5, %v761_v3  ;;  %v521_v7 = vmul.f32 %v1527_v46, %v520_v38  ;;  %v590_v47 = vmul.f32 %v1531_v18, %v2576_v32  ;;  %vm607_vm13 = vmor %vm605_vm11, %vm606_vm5 }
 0x16c   :  { %v513_v20 = vsub.f32 1.5, %v512_v27  ;;  %v861_v51 = vadd.f32 %v2051_v56, %v826_v21  ;;  %v601_v31 = vmul.f32 %v1529_v5, %v600_v55  ;;  %vm596_vm9 = vweird.f32 %v1531_v18 }
 0x16d   :  { %v754_v23 = vmul.f32 %v1521_v41, %v753_v24  ;;  %v763_v25 = vsub.f32 1.5, %v762_v53  ;;  %v522_v1 = vmul.f32 0.5, %v521_v7  ;;  %v591_v17 = vmul.f32 %v1531_v18, %v590_v47  ;;  %vm597_vm14 = vmor %vm595_vm12, %vm596_vm9 }
 0x16e   :  { %v514_v2 = vmul.f32 %v1523_v37, %v513_v20  ;;  %v893_v26 = vpack.c.bf16 %v861_v51, %v861_v51  ;;  %v602_v8 = vmul.f32 0.5, %v601_v31 }
 0x16f   :  { %v758_v4 = vsel %vm757_vm4, %v1521_v41, %v754_v23  ;;  %v764_v42 = vmul.f32 %v2583_v59, %v763_v25  ;;  %v523_v50 = vsub.f32 1.5, %v522_v1  ;;  %v592_v14 = vmul.f32 0.5, %v591_v17 }
 0x170   :  { %v799_v36 = vmul.f32 %v758_v4, %v1981_v30  ;;  %v518_v15 = vsel %vm517_vm7, %v1523_v37, %v514_v2  ;;  %926 = vst.msk [vmem:[#allocation2 + $0x58] sm:$0xf] %vm903_vm6, %v893_v26  ;;  %v603_v35 = vsub.f32 1.5, %v602_v8 }
 0x171   :  { %v775_v29 = vmul.f32 %v518_v15, %v1995_v43  ;;  %v768_v62 = vsel %vm767_vm8, %v2583_v59, %v764_v42  ;;  %v524_v11 = vmul.f32 %v1527_v46, %v523_v50  ;;  %v593_v58 = vsub.f32 1.5, %v592_v14 }
 0x172   :  { %v834_v16 = vmul.f32 %v2049_v40, %v799_v36  ;;  %v800_v30 = vmul.f32 %v768_v62, %v1991_v63  ;;  %v604_v34 = vmul.f32 %v1529_v5, %v603_v35 }
 0x173   :  { %v810_v9 = vmul.f32 %v2049_v40, %v775_v29  ;;  %v528_v41 = vsel %vm527_vm10, %v1527_v46, %v524_v11  ;;  %v594_v63 = vmul.f32 %v1531_v18, %v593_v58 }
 0x174   :  { %v869_v43 = vadd.f32 %v2051_v56, %v834_v16  ;;  %v835_v28 = vmul.f32 %v2049_v40, %v800_v30  ;;  %v776_v13 = vmul.f32 %v528_v41, %v2016_v22  ;;  %v608_v37 = vsel %vm607_vm13, %v1529_v5, %v604_v34 }
 0x175   :  { %v845_v0 = vadd.f32 %v2051_v56, %v810_v9  ;;  %v784_v32 = vmul.f32 %v608_v37, %v2020_v57  ;;  %v598_v60 = vsel %vm597_vm14, %v1531_v18, %v594_v63 }
 0x176   :  { %v901_v12 = vpack.c.bf16 %v869_v43, %v869_v43  ;;  %v870_v48 = vadd.f32 %v2051_v56, %v835_v28  ;;  %v811_v19 = vmul.f32 %v2049_v40, %v776_v13  ;;  %v783_v49 = vmul.f32 %v598_v60, %v2005_v52 }
 0x177   :  { %v877_v59 = vpack.c.bf16 %v845_v0, %v845_v0  ;;  %v819_v33 = vmul.f32 %v2049_v40, %v784_v32  ;;  %v1373_v22 = vld [vmem:[#allocation2 + $0x58] sm:$0xff] }
 0x178   :  { %934 = vst.msk [vmem:[#allocation2 + $0x78] sm:$0xf] %vm903_vm6, %v901_v12  ;;  %v902_v10 = vpack.c.bf16 %v870_v48, %v870_v48  ;;  %v846_v45 = vadd.f32 %v2051_v56, %v811_v19  ;;  %v818_v39 = vmul.f32 %v2049_v40, %v783_v49  ;;  %1357 = vmatmul.msk.bf16.gmra.mxu2 %vm89_vm0, %v1373_v22 }
 0x179   :  { %910 = vst.msk [vmem:[#allocation2 + $0x18] sm:$0xf] %vm903_vm6, %v877_v59  ;;  %v854_v57 = vadd.f32 %v2051_v56, %v819_v33 }
 0x17a   :  { %935 = vst.msk [vmem:[#allocation2 + $0x7c] sm:$0xf] %vm903_vm6, %v902_v10  ;;  %v878_v6 = vpack.c.bf16 %v846_v45, %v846_v45  ;;  %v853_v52 = vadd.f32 %v2051_v56, %v818_v39  ;;  %v972_v56 = vld [vmem:[%s2821_s4] sm:$0x1] }
 0x17b   :  { %v886_v54 = vpack.c.bf16 %v854_v57, %v854_v57  ;;  %v973_v3 = vunpack.c.l.bf16 %v972_v56 }
 0x17c   :  { %911 = vst.msk [vmem:[#allocation2 + $0x1c] sm:$0xf] %vm903_vm6, %v878_v6  ;;  %v885_v46 = vpack.c.bf16 %v853_v52, %v853_v52 }
 0x17d   :  { %919 = vst.msk [vmem:[#allocation2 + $0x3c] sm:$0xf] %vm903_vm6, %v886_v54  ;;  %v2655_v5 = vperm.slane %v973_v3, 0 }
 0x17e   :  { %918 = vst.msk [vmem:[#allocation2 + $0x38] sm:$0xf] %vm903_vm6, %v885_v46  ;;  %vm1237_vm6 = vcmask 781312  }
 0x181   :  { %v1377_v44 = vld [vmem:[#allocation2 + $0x78] sm:$0xff] }
 0x182   :  { %1361 = vmatmul.msk.bf16.gmra.mxu3 %vm89_vm0, %v1377_v44 }
 0x183   :  { %v1365_v40 = vld [vmem:[#allocation2 + $0x18] sm:$0xff] }
 0x184   :  { %1349 = vmatmul.msk.bf16.gmra.mxu0 %vm89_vm0, %v1365_v40 }
 0x185   :  { %v1369_v61 = vld [vmem:[#allocation2 + $0x38] sm:$0xff] }
 0x186   :  { %1353 = vmatmul.msk.bf16.gmra.mxu1 %vm89_vm0, %v1369_v61 }
 0x1a6   :  { %v1165_v27 = vpop.f32.mrf.mxu2 }
 0x1a7   :  { %v1166_v38 = vadd.f32 %v1165_v27, %v2655_v5  ;;  %v1185_v18 = vpop.f32.mrf.mxu3 }
 0x1a8   :  { %v1186_v21 = vadd.f32 %v1185_v18, %v2655_v5 }
 0x1a9   :  { %v1221_v24 = vpack.c.bf16 %v1166_v38, %v1166_v38 }
 0x1aa   :  { %v1229_v53 = vpack.c.bf16 %v1186_v21, %v1186_v21  ;;  %v1125_v55 = vpop.f32.mrf.mxu0 }
 0x1ab   :  { %1254 = vst.msk [vmem:[%s2822_s5 + $0x40] sm:$0xf] %vm1237_vm6, %v1221_v24  ;;  %v1126_v20 = vadd.f32 %v1125_v55, %v2655_v5  ;;  %v1145_v7 = vpop.f32.mrf.mxu1 }
 0x1ac   :  { %1262 = vst.msk [vmem:[%s2822_s5 + $0x60] sm:$0xf] %vm1237_vm6, %v1229_v53  ;;  %v1146_v47 = vadd.f32 %v1145_v7, %v2655_v5 }
 0x1ad   :  { %v1205_v51 = vpack.c.bf16 %v1126_v20, %v1126_v20 }
 0x1ae   :  { %v1167_v23 = vpop.f32.mrf.mxu2  ;;  %v1213_v25 = vpack.c.bf16 %v1146_v47, %v1146_v47 }
 0x1af   :  { %v1168_v31 = vadd.f32 %v1167_v23, %v2655_v5  ;;  %v1187_v2 = vpop.f32.mrf.mxu3  ;;  %1238 = vst.msk [vmem:[%s2822_s5] sm:$0xf] %vm1237_vm6, %v1205_v51 }
 0x1b0   :  { %v1188_v1 = vadd.f32 %v1187_v2, %v2655_v5  ;;  %1246 = vst.msk [vmem:[%s2822_s5 + $0x20] sm:$0xf] %vm1237_vm6, %v1213_v25 }
 0x1b1   :  { %v1222_v17 = vpack.c.bf16 %v1168_v31, %v1168_v31 }
 0x1b2   :  { %v1230_v26 = vpack.c.bf16 %v1188_v1, %v1188_v1  ;;  %v1127_v4 = vpop.f32.mrf.mxu0 }
 0x1b3   :  { %1255 = vst.msk [vmem:[%s2822_s5 + $0x44] sm:$0xf] %vm1237_vm6, %v1222_v17  ;;  %v1128_v42 = vadd.f32 %v1127_v4, %v2655_v5  ;;  %v1147_v8 = vpop.f32.mrf.mxu1 }
 0x1b4   :  { %1263 = vst.msk [vmem:[%s2822_s5 + $0x64] sm:$0xf] %vm1237_vm6, %v1230_v26  ;;  %v1148_v36 = vadd.f32 %v1147_v8, %v2655_v5 }
 0x1b5   :  { %v1206_v15 = vpack.c.bf16 %v1128_v42, %v1128_v42 }
 0x1b6   :  { %v1214_v50 = vpack.c.bf16 %v1148_v36, %v1148_v36 }
 0x1b7   :  { %1239 = vst.msk [vmem:[%s2822_s5 + $0x4] sm:$0xf] %vm1237_vm6, %v1206_v15 }
 0x1b8   :  { %1247 = vst.msk [vmem:[%s2822_s5 + $0x24] sm:$0xf] %vm1237_vm6, %v1214_v50 }
 0x1c3   :  { %v1170_v14 = vpop.f32.mrf.mxu2 }
 0x1c4   :  { %v1171_v29 = vadd.f32 %v1170_v14, %v2655_v5 }
 0x1c5   :  { %v1130_v62 = vpop.f32.mrf.mxu0 }
 0x1c6   :  { %v1223_v35 = vpack.c.bf16 %v1171_v29, %v1171_v29  ;;  %v1131_v16 = vadd.f32 %v1130_v62, %v2655_v5 }
 0x1c7   :  { %v1190_v11 = vpop.f32.mrf.mxu3 }
 0x1c8   :  { %1256 = vst.msk [vmem:[%s2822_s5 + $0x48] sm:$0xf] %vm1237_vm6, %v1223_v35  ;;  %v1207_v30 = vpack.c.bf16 %v1131_v16, %v1131_v16  ;;  %v1191_v58 = vadd.f32 %v1190_v11, %v2655_v5 }
 0x1ca   :  { %1240 = vst.msk [vmem:[%s2822_s5 + $0x8] sm:$0xf] %vm1237_vm6, %v1207_v30  ;;  %v1231_v34 = vpack.c.bf16 %v1191_v58, %v1191_v58 }
 0x1cb   :  { %v1172_v9 = vpop.f32.mrf.mxu2 }
 0x1cc   :  { %v1173_v43 = vadd.f32 %v1172_v9, %v2655_v5  ;;  %1264 = vst.msk [vmem:[%s2822_s5 + $0x68] sm:$0xf] %vm1237_vm6, %v1231_v34 }
 0x1cd   :  { %v1132_v28 = vpop.f32.mrf.mxu0 }
 0x1ce   :  { %v1224_v41 = vpack.c.bf16 %v1173_v43, %v1173_v43  ;;  %v1133_v63 = vadd.f32 %v1132_v28, %v2655_v5 }
 0x1cf   :  { %v1192_v13 = vpop.f32.mrf.mxu3 }
 0x1d0   :  { %1257 = vst.msk [vmem:[%s2822_s5 + $0x4c] sm:$0xf] %vm1237_vm6, %v1224_v41  ;;  %v1208_v0 = vpack.c.bf16 %v1133_v63, %v1133_v63  ;;  %v1150_v37 = vpop.f32.mrf.mxu1  ;;  %v1193_v12 = vadd.f32 %v1192_v13, %v2655_v5 }
 0x1d1   :  { %v1151_v48 = vadd.f32 %v1150_v37, %v2655_v5 }
 0x1d2   :  { %1241 = vst.msk [vmem:[%s2822_s5 + $0xc] sm:$0xf] %vm1237_vm6, %v1208_v0  ;;  %v1232_v32 = vpack.c.bf16 %v1193_v12, %v1193_v12 }
 0x1d3   :  { %v1215_v60 = vpack.c.bf16 %v1151_v48, %v1151_v48 }
 0x1d4   :  { %1265 = vst.msk [vmem:[%s2822_s5 + $0x6c] sm:$0xf] %vm1237_vm6, %v1232_v32 }
 0x1d5   :  { %1248 = vst.msk [vmem:[%s2822_s5 + $0x28] sm:$0xf] %vm1237_vm6, %v1215_v60 }
 0x1d8   :  { %v1152_v59 = vpop.f32.mrf.mxu1 }
 0x1d9   :  { %v1153_v19 = vadd.f32 %v1152_v59, %v2655_v5 }
 0x1db   :  { %v1216_v49 = vpack.c.bf16 %v1153_v19, %v1153_v19 }
 0x1dd   :  { %1249 = vst.msk [vmem:[%s2822_s5 + $0x2c] sm:$0xf] %vm1237_vm6, %v1216_v49 }
 0x1e3   :  { %v1175_v10 = vpop.f32.mrf.mxu2 }
 0x1e4   :  { %v1176_v33 = vadd.f32 %v1175_v10, %v2655_v5 }
 0x1e5   :  { %v1135_v22 = vpop.f32.mrf.mxu0 }
 0x1e6   :  { %v1225_v45 = vpack.c.bf16 %v1176_v33, %v1176_v33  ;;  %v1136_v39 = vadd.f32 %v1135_v22, %v2655_v5  ;;  %v1195_v57 = vpop.f32.mrf.mxu3 }
 0x1e7   :  { %v1155_v6 = vpop.f32.mrf.mxu1  ;;  %v1196_v52 = vadd.f32 %v1195_v57, %v2655_v5 }
 0x1e8   :  { %1258 = vst.msk [vmem:[%s2822_s5 + $0x50] sm:$0xf] %vm1237_vm6, %v1225_v45  ;;  %v1209_v54 = vpack.c.bf16 %v1136_v39, %v1136_v39  ;;  %v1156_v46 = vadd.f32 %v1155_v6, %v2655_v5 }
 0x1e9   :  { %v1233_v44 = vpack.c.bf16 %v1196_v52, %v1196_v52 }
 0x1ea   :  { %1242 = vst.msk [vmem:[%s2822_s5 + $0x10] sm:$0xf] %vm1237_vm6, %v1209_v54  ;;  %v1217_v40 = vpack.c.bf16 %v1156_v46, %v1156_v46 }
 0x1eb   :  { %v1177_v61 = vpop.f32.mrf.mxu2  ;;  %1266 = vst.msk [vmem:[%s2822_s5 + $0x70] sm:$0xf] %vm1237_vm6, %v1233_v44 }
 0x1ec   :  { %v1178_v56 = vadd.f32 %v1177_v61, %v2655_v5  ;;  %1250 = vst.msk [vmem:[%s2822_s5 + $0x30] sm:$0xf] %vm1237_vm6, %v1217_v40 }
 0x1ed   :  { %v1137_v3 = vpop.f32.mrf.mxu0 }
 0x1ee   :  { %v1226_v27 = vpack.c.bf16 %v1178_v56, %v1178_v56  ;;  %v1138_v38 = vadd.f32 %v1137_v3, %v2655_v5  ;;  %v1197_v18 = vpop.f32.mrf.mxu3 }
 0x1ef   :  { %v1157_v21 = vpop.f32.mrf.mxu1  ;;  %v1198_v24 = vadd.f32 %v1197_v18, %v2655_v5 }
 0x1f0   :  { %1259 = vst.msk [vmem:[%s2822_s5 + $0x54] sm:$0xf] %vm1237_vm6, %v1226_v27  ;;  %v1210_v53 = vpack.c.bf16 %v1138_v38, %v1138_v38  ;;  %v1158_v55 = vadd.f32 %v1157_v21, %v2655_v5 }
 0x1f1   :  { %v1234_v20 = vpack.c.bf16 %v1198_v24, %v1198_v24 }
 0x1f2   :  { %1243 = vst.msk [vmem:[%s2822_s5 + $0x14] sm:$0xf] %vm1237_vm6, %v1210_v53  ;;  %v1218_v7 = vpack.c.bf16 %v1158_v55, %v1158_v55 }
 0x1f3   :  { %1267 = vst.msk [vmem:[%s2822_s5 + $0x74] sm:$0xf] %vm1237_vm6, %v1234_v20 }
 0x1f4   :  { %1251 = vst.msk [vmem:[%s2822_s5 + $0x34] sm:$0xf] %vm1237_vm6, %v1218_v7 }
 0x1fb   :  { %v1180_v47 = vpop.f32.mrf.mxu2 }
 0x1fc   :  { %v1181_v51 = vadd.f32 %v1180_v47, %v2655_v5 }
 0x1fe   :  { %v1227_v23 = vpack.c.bf16 %v1181_v51, %v1181_v51 }
 0x200   :  { %1260 = vst.msk [vmem:[%s2822_s5 + $0x58] sm:$0xf] %vm1237_vm6, %v1227_v23 }
 0x201   :  { %v1140_v25 = vpop.f32.mrf.mxu0 }
 0x202   :  { %v1141_v31 = vadd.f32 %v1140_v25, %v2655_v5 }
 0x203   :  { %v1182_v2 = vpop.f32.mrf.mxu2  ;;  %v1160_v1 = vpop.f32.mrf.mxu1 }
 0x204   :  { %v1183_v17 = vadd.f32 %v1182_v2, %v2655_v5  ;;  %v1211_v4 = vpack.c.bf16 %v1141_v31, %v1141_v31  ;;  %v1161_v42 = vadd.f32 %v1160_v1, %v2655_v5 }
 0x205   :  { %v1200_v26 = vpop.f32.mrf.mxu3 }
 0x206   :  { %v1201_v8 = vadd.f32 %v1200_v26, %v2655_v5  ;;  %v1228_v36 = vpack.c.bf16 %v1183_v17, %v1183_v17  ;;  %1244 = vst.msk [vmem:[%s2822_s5 + $0x18] sm:$0xf] %vm1237_vm6, %v1211_v4  ;;  %v1219_v15 = vpack.c.bf16 %v1161_v42, %v1161_v42 }
 0x208   :  { %v1235_v50 = vpack.c.bf16 %v1201_v8, %v1201_v8  ;;  %1261 = vst.msk [vmem:[%s2822_s5 + $0x5c] sm:$0xf] %vm1237_vm6, %v1228_v36 }
 0x209   :  { %v1142_v14 = vpop.f32.mrf.mxu0  ;;  %1252 = vst.msk [vmem:[%s2822_s5 + $0x38] sm:$0xf] %vm1237_vm6, %v1219_v15 }
 0x20a   :  { %1268 = vst.msk [vmem:[%s2822_s5 + $0x78] sm:$0xf] %vm1237_vm6, %v1235_v50  ;;  %v1143_v29 = vadd.f32 %v1142_v14, %v2655_v5 }
 0x20b   :  { %v1162_v62 = vpop.f32.mrf.mxu1 }
 0x20c   :  { %v1212_v16 = vpack.c.bf16 %v1143_v29, %v1143_v29  ;;  %v1163_v30 = vadd.f32 %v1162_v62, %v2655_v5 }
 0x20d   :  { %v1202_v35 = vpop.f32.mrf.mxu3 }
 0x20e   :  { %v1203_v11 = vadd.f32 %v1202_v35, %v2655_v5  ;;  %1245 = vst.msk [vmem:[%s2822_s5 + $0x1c] sm:$0xf] %vm1237_vm6, %v1212_v16  ;;  %v1220_v58 = vpack.c.bf16 %v1163_v30, %v1163_v30 }
 0x210   :  { %v1236_v9 = vpack.c.bf16 %v1203_v11, %v1203_v11  ;;  %1253 = vst.msk [vmem:[%s2822_s5 + $0x3c] sm:$0xf] %vm1237_vm6, %v1220_v58 }
 0x212   :  { %1269 = vst.msk [vmem:[%s2822_s5 + $0x7c] sm:$0xf] %vm1237_vm6, %v1236_v9 }

// kernel: vit_forward.14
= control target key start
LH: loop header
LB: loop body
LE: loop exit
PB: predicated region body
PF: predicated region fallthrough
CT: control target
= control target key end

     0   :  { %s2800_s6 = smov 0   ;;  %s4117_s0 = inlined_call_operand.vmem [shape: bf16[2,128,96], index: 0, kind: input, shape index: {}]   ;;  %s4118_s1 = inlined_call_operand.vmem [shape: bf16[2,128,32], index: 1, kind: output, shape index: {}]  }
   0x1 LB: > { %s2252_s7 = sadd.s32 4294967295, %s2774_s6   ;;  %p2256_p0 = scmp.ge.s32.totalorder %s2774_s6, 1  ;;  %s2774_s6 = sphi %s2800_s6, %s11_s6  }
   0x2   : > { %p87_p1 = scmp.lt.s32.totalorder %s2774_s6, 3 }
   0x4   : > { %p88_p2 = pnand %p2256_p0, %p87_p1 }
   0x6   : > { %91 = sbr.rel (%p88_p2) target bundleno = 1826 (0x722), region = 24 }
   0xb   : > { %p107_p3 = scmp.lt.s32.totalorder %s2252_s7, 1  ;;  %s2776_s12 = smov 96   ;;  %vm191_vm0 = vcmask 64512   ;;  %vm563_vm2 = vcmask 60416   ;;  %vm1102_vm3 = vcmask 126016   ;;  %vm1641_vm4 = vcmask 191616  }
   0xc   : > { %s2777_s13 = smov 88   ;;  %s2778_s14 = smov 64   ;;  %vm2180_vm5 = vcmask 257216  }
   0xd   : > { %s4122_s7 = smov (!%p107_p3, %s2252_s7), 1  ;;  %s2779_s15 = smov 120  }
   0xe   : > { %s2423_s8 = sshll.u32 %s4122_s7, 6  ;;  %s2780_s16 = smov 80  }
   0xf   : > { %s2816_s11 = scalar_lea.vmem %s4117_s0, %s2423_s8  ;;  %s2781_s17 = smov 72  }
  0x10   : > { %v2819_v0 = vld [vmem:[%s2816_s11 + $0x38] sm:$0xff]  ;;  %v2822_v1 = vld [vmem:[%s2816_s11 + $0x28] sm:$0xff]  ;;  %v2827_v2 = vld [vmem:[%s2816_s11 + $0x30] sm:$0xff]  ;;  %s2782_s18 = smov 112   ;;  %s2783_s19 = smov 104  }
  0x11   : > { %189 = vrot.lane.b32.xlu0 %v2819_v0, %s2776_s12  ;;  %185 = vrot.lane.b32.xlu1 %v2822_v1, %s2776_s12  ;;  %v2830_v3 = vld [vmem:[%s2816_s11 + $0x20] sm:$0xff]  ;;  %v2835_v4 = vld [vmem:[%s2816_s11 + $0x18] sm:$0xff]  ;;  %s2784_s20 = smov 56   ;;  %s3366_s23 = scalar_lea.vmem %s4118_s1, %s2423_s8 }
  0x12   : > { %181 = vrot.lane.b32.xlu2 %v2835_v4, %s2776_s12  ;;  %v2839_v5 = vld [vmem:[%s2816_s11 + $0x8] sm:$0xff]  ;;  %v2842_v6 = vld [vmem:[%s2816_s11] sm:$0xff]  ;;  %v2847_v7 = vld [vmem:[%s2816_s11 + $0x10] sm:$0xff]  ;;  %s2785_s24 = smov 48   ;;  %s2786_s25 = smov 40  }
  0x13   : > { %v2851_v8 = vld [vmem:[%s2816_s11 + $0x38] sm:$0xff]  ;;  %v2854_v9 = vld [vmem:[%s2816_s11 + $0x30] sm:$0xff]  ;;  %v2857_v10 = vld [vmem:[%s2816_s11 + $0x28] sm:$0xff]  ;;  %s2787_s26 = smov 8   ;;  %s2788_s27 = smov 16  }
  0x14   : > { %v2863_v11 = vld [vmem:[%s2816_s11 + $0x18] sm:$0xff]  ;;  %v2866_v12 = vld [vmem:[%s2816_s11 + $0x20] sm:$0xff]  ;;  %v2435_v13 = vld [vmem:[%s2816_s11 + $0x10] sm:$0xff]  ;;  %s2789_s28 = smov 24  }
  0x15   : > { %v2878_v14 = vld [vmem:[%s2816_s11 + $0x8] sm:$0xff]  ;;  %v2881_v15 = vld [vmem:[%s2816_s11] sm:$0xff]  ;;  %v2902_v33 = vld [vmem:[%s2816_s11 + $0x18] sm:$0xff] }
  0x16   : > { %v2909_v37 = vld [vmem:[%s2816_s11 + $0x10] sm:$0xff]  ;;  %v2916_v42 = vld [vmem:[%s2816_s11 + $0x38] sm:$0xff]  ;;  %v2938_v54 = vld [vmem:[%s2816_s11 + $0x28] sm:$0xff] }
  0x17   : > { %v2919_v43 = vld [vmem:[%s2816_s11 + $0x30] sm:$0xff]  ;;  %v2442_v55 = vld [vmem:[%s2816_s11 + $0x8] sm:$0xff]  ;;  %v2445_v58 = vld [vmem:[%s2816_s11 + $0x20] sm:$0xff] }
  0x18   : > { %v2455_v44 = vld [vmem:[%s2816_s11 + $0x30] sm:$0xff]  ;;  %v2441_v59 = vld [vmem:[%s2816_s11] sm:$0xff]  ;;  %v2956_v63 = vld [vmem:[%s2816_s11 + $0x38] sm:$0xff] }
  0x19   : > { %187 = vrot.lane.b32.xlu0 %v2827_v2, %s2776_s12  ;;  %183 = vrot.lane.b32.xlu1 %v2830_v3, %s2776_s12  ;;  %v2953_v62 = vld [vmem:[%s2816_s11 + $0x20] sm:$0xff] }
  0x1a   : > { %179 = vrot.lane.b32.xlu2 %v2847_v7, %s2776_s12 }
  0x21   : > { %177 = vrot.lane.b32.xlu0 %v2839_v5, %s2776_s12  ;;  %175 = vrot.lane.b32.xlu1 %v2842_v6, %s2776_s12 }
  0x22   : > { %662 = vrot.lane.b32.xlu2 %v2857_v10, %s2777_s13 }
  0x29   : > { %666 = vrot.lane.b32.xlu0 %v2851_v8, %s2777_s13  ;;  %664 = vrot.lane.b32.xlu1 %v2854_v9, %s2777_s13 }
  0x2a   : > { %656 = vrot.lane.b32.xlu2 %v2435_v13, %s2777_s13 }
  0x31   : > { %658 = vrot.lane.b32.xlu1 %v2863_v11, %s2777_s13  ;;  %660 = vrot.lane.b32.xlu0 %v2866_v12, %s2777_s13 }
  0x32   : > { %484 = vrot.lane.b32.xlu2 %v2822_v1, %s2778_s14 }
  0x39   : > { %488 = vrot.lane.b32.xlu1 %v2819_v0, %s2778_s14  ;;  %476 = vrot.lane.b32.xlu0 %v2839_v5, %s2778_s14 }
  0x3a   : > { %482 = vrot.lane.b32.xlu2 %v2830_v3, %s2778_s14 }
  0x41   : > { %486 = vrot.lane.b32.xlu1 %v2827_v2, %s2778_s14  ;;  %640 = vrot.lane.b32.xlu0 %v2435_v13, %s2779_s15 }
  0x42   : > { %652 = vrot.lane.b32.xlu2 %v2881_v15, %s2777_s13 }
  0x49   : > { %654 = vrot.lane.b32.xlu1 %v2878_v14, %s2777_s13  ;;  %1205 = vrot.lane.b32.xlu0 %v2916_v42, %s2780_s16 }
  0x4a   : > { %478 = vrot.lane.b32.xlu2 %v2847_v7, %s2778_s14 }
  0x51   : > { %480 = vrot.lane.b32.xlu1 %v2835_v4, %s2778_s14  ;;  %648 = vrot.lane.b32.xlu0 %v2854_v9, %s2779_s15 }
  0x52   : > { %636 = vrot.lane.b32.xlu2 %v2881_v15, %s2779_s15 }
  0x59   : > { %638 = vrot.lane.b32.xlu1 %v2878_v14, %s2779_s15  ;;  %1738 = vrot.lane.b32.xlu0 %v2953_v62, %s2781_s17 }
  0x5a   : > { %474 = vrot.lane.b32.xlu2 %v2842_v6, %s2778_s14 }
  0x61   : > { %644 = vrot.lane.b32.xlu1 %v2866_v12, %s2779_s15  ;;  %1177 = vrot.lane.b32.xlu0 %v2442_v55, %s2782_s18 }
  0x62   : > { %642 = vrot.lane.b32.xlu2 %v2863_v11, %s2779_s15 }
  0x69   : > { %1197 = vrot.lane.b32.xlu1 %v2902_v33, %s2780_s16  ;;  %1179 = vrot.lane.b32.xlu0 %v2909_v37, %s2782_s18 }
  0x6a   : > { %1203 = vrot.lane.b32.xlu2 %v2919_v43, %s2780_s16 }
  0x6c   : > { %v182_v16 = vpop.permute.xlu2 %181 }
  0x6d   : > { %v226_v36 = vsel %vm191_vm0, %v182_v16, 0  ;;  %v2967_v16 = vld [vmem:[%s2816_s11 + $0x18] sm:$0xff] }
  0x71   : > { %1195 = vrot.lane.b32.xlu1 %v2909_v37, %s2780_s16 }
  0x72   : > { %646 = vrot.lane.b32.xlu2 %v2857_v10, %s2779_s15 }
  0x74   : > { %v180_v20 = vpop.permute.xlu2 %179 }
  0x75   : > { %v223_v41 = vsel %vm191_vm0, %v180_v20, 0  ;;  %v2449_v20 = vld [vmem:[%s2816_s11] sm:$0xff] }
  0x79   : > { %1742 = vrot.lane.b32.xlu1 %v2455_v44, %s2781_s17 }
  0x7a   : > { %1201 = vrot.lane.b32.xlu2 %v2938_v54, %s2780_s16 }
  0x7c   : > { %v663_v24 = vpop.permute.xlu2 %662 }
  0x7d   : > { %v708_v39 = vsel %vm191_vm0, %v663_v24, 0 }
  0x81   : > { %650 = vrot.lane.b32.xlu1 %v2851_v8, %s2779_s15 }
  0x82   : > { %1199 = vrot.lane.b32.xlu2 %v2445_v58, %s2780_s16 }
  0x83   : > { %v190_v17 = vpop.permute.xlu0 %189  ;;  %v186_v18 = vpop.permute.xlu1 %185 }
  0x84   : > { %v238_v19 = vsel %vm191_vm0, %v190_v17, 0  ;;  %v232_v27 = vsel %vm191_vm0, %v186_v18, 0  ;;  %v657_v32 = vpop.permute.xlu2 %656  ;;  %v2970_v17 = vld [vmem:[%s2816_s11 + $0x28] sm:$0xff] }
  0x85   : > { %240 = vmatpush.bf16.xpose.msra.mxu0 %v238_v19  ;;  %v699_v57 = vsel %vm191_vm0, %v657_v32, 0  ;;  %v2451_v19 = vld [vmem:[%s2816_s11 + $0x10] sm:$0xff] }
  0x86   : > { %1718 = vrot.lane.b32.xlu0 %v2451_v19, %s2783_s19 }
  0x89   : > { %1193 = vrot.lane.b32.xlu1 %v2442_v55, %s2780_s16 }
  0x8a   : > { %1744 = vrot.lane.b32.xlu2 %v2956_v63, %s2781_s17 }
  0x8b   : > { %v188_v21 = vpop.permute.xlu0 %187  ;;  %v184_v22 = vpop.permute.xlu1 %183 }
  0x8c   : > { %v235_v23 = vsel %vm191_vm0, %v188_v21, 0  ;;  %v229_v30 = vsel %vm191_vm0, %v184_v22, 0  ;;  %v485_v38 = vpop.permute.xlu2 %484 }
  0x8d   : > { %241 = vmatpush.bf16.xpose.msra.mxu0 %v235_v23 }
  0x91   : > { %1191 = vrot.lane.b32.xlu1 %v2441_v59, %s2780_s16 }
  0x92   : > { %1740 = vrot.lane.b32.xlu2 %v2970_v17, %s2781_s17 }
  0x93   : > { %v178_v25 = vpop.permute.xlu0 %177  ;;  %v176_v26 = vpop.permute.xlu1 %175 }
  0x94   : > { %v483_v46 = vpop.permute.xlu2 %482  ;;  %v220_v49 = vsel %vm191_vm0, %v178_v25, 0  ;;  %v217_v52 = vsel %vm191_vm0, %v176_v26, 0 }
  0x95   : > { %242 = vmatpush.bf16.xpose.msra.mxu0 %v232_v27 }
  0x99   : > { %1175 = vrot.lane.b32.xlu1 %v2441_v59, %s2782_s18 }
  0x9a   : > { %1734 = vrot.lane.b32.xlu2 %v2451_v19, %s2781_s17 }
  0x9b   : > { %v667_v28 = vpop.permute.xlu0 %666  ;;  %v665_v29 = vpop.permute.xlu1 %664 }
  0x9c   : > { %v714_v31 = vsel %vm191_vm0, %v667_v28, 0  ;;  %v711_v34 = vsel %vm191_vm0, %v665_v29, 0  ;;  %v653_v51 = vpop.permute.xlu2 %652 }
  0x9d   : > { %243 = vmatpush.bf16.xpose.msra.mxu0 %v229_v30  ;;  %716 = vmatpush.bf16.xpose.msra.mxu2 %v714_v31  ;;  %v693_v13 = vsel %vm191_vm0, %v653_v51, 0 }
  0xa1   : > { %1736 = vrot.lane.b32.xlu1 %v2967_v16, %s2781_s17 }
  0xa2   : > { %1730 = vrot.lane.b32.xlu2 %v2449_v20, %s2781_s17 }
  0xa3   : > { %v659_v35 = vpop.permute.xlu1 %658  ;;  %v661_v45 = vpop.permute.xlu0 %660 }
  0xa4   : > { %v705_v47 = vsel %vm191_vm0, %v661_v45, 0  ;;  %v702_v53 = vsel %vm191_vm0, %v659_v35, 0  ;;  %v479_v60 = vpop.permute.xlu2 %478  ;;  %v117_v35 = vlaneseq }
  0xa5   : > { %244 = vmatpush.bf16.xpose.msra.mxu0 %v226_v36  ;;  %717 = vmatpush.bf16.xpose.msra.mxu2 %v711_v34 }
  0xaa   : > { %1183 = vrot.lane.b32.xlu2 %v2445_v58, %s2782_s18 }
  0xab   : > { %v489_v40 = vpop.permute.xlu1 %488 }
  0xac   : > { %498 = vmatpush.bf16.msra.mxu1 %v489_v40  ;;  %v637_v18 = vpop.permute.xlu2 %636 }
  0xad   : > { %245 = vmatpush.bf16.xpose.msra.mxu0 %v223_v41  ;;  %718 = vmatpush.bf16.xpose.msra.mxu2 %v708_v39 }
  0xb2   : > { %963 = vrot.lane.b32.xlu2 %v2851_v8, %s2784_s20 }
  0xb3   : > { %v487_v48 = vpop.permute.xlu1 %486 }
  0xb4   : > { %499 = vmatpush.bf16.msra.mxu1 %v487_v48 }
  0xb5   : > { %246 = vmatpush.bf16.xpose.msra.mxu0 %v220_v49  ;;  %719 = vmatpush.bf16.xpose.msra.mxu2 %v705_v47 }
  0xb8   : > { %500 = vmatpush.bf16.msra.mxu1 %v485_v38 }
  0xbb   : > { %v655_v50 = vpop.permute.xlu1 %654 }
  0xbc   : > { %501 = vmatpush.bf16.msra.mxu1 %v483_v46  ;;  %v696_v61 = vsel %vm191_vm0, %v655_v50, 0 }
  0xbd   : > { %247 = vmatpush.bf16.xpose.msra.mxu0 %v217_v52  ;;  %720 = vmatpush.bf16.xpose.msra.mxu2 %v702_v53 }
  0xc3   : > { %v481_v56 = vpop.permute.xlu1 %480 }
  0xc4   : > { %2293 = vmatmul.msk.bf16.vlgmr.msra.gmra.mxu0 %vm191_vm0, %v2842_v6  ;;  %502 = vmatpush.bf16.msra.mxu1 %v481_v56  ;;  %v477_v6 = vpop.permute.xlu0 %476 }
  0xc5   : > { %721 = vmatpush.bf16.xpose.msra.mxu2 %v699_v57 }
  0xc8   : > { %503 = vmatpush.bf16.msra.mxu1 %v479_v60 }
  0xcb   : > { %v639_v21 = vpop.permute.xlu1 %638 }
  0xcc   : > { %504 = vmatpush.bf16.msra.mxu1 %v477_v6  ;;  %v641_v22 = vpop.permute.xlu0 %640 }
  0xcd   : > { %722 = vmatpush.bf16.xpose.msra.mxu2 %v696_v61 }
  0xd4   : > { %2294 = vmatmul.msk.bf16.gmra.mxu0 %vm191_vm0, %v2839_v5  ;;  %v2450_v5 = vld [vmem:[%s2816_s11 + $0x8] sm:$0xff]  ;;  %v1206_v28 = vpop.permute.xlu0 %1205 }
  0xd5   : > { %723 = vmatpush.bf16.xpose.msra.mxu2 %v693_v13  ;;  %1732 = vrot.lane.b32.xlu1 %v2450_v5, %s2781_s17  ;;  %v1253_v30 = vsel %vm191_vm0, %v1206_v28, 0 }
  0xdc   : > { %2333 = vmatmul.msk.bf16.vlgmr.msra.gmra.mxu2 %vm191_vm0, %v637_v18  ;;  %v649_v36 = vpop.permute.xlu0 %648 }
  0xdd   : > { %1714 = vrot.lane.b32.xlu1 %v2449_v20, %s2783_s19 }
  0xe4   : > { %2295 = vmatmul.msk.bf16.gmra.mxu0 %vm191_vm0, %v2847_v7  ;;  %v475_v7 = vpop.permute.xlu2 %474  ;;  %v1739_v45 = vpop.permute.xlu0 %1738 }
  0xe5   : > { %505 = vmatpush.bf16.msra.mxu1 %v475_v7  ;;  %1181 = vrot.lane.b32.xlu1 %v2902_v33, %s2782_s18  ;;  %v3046_v49 = vsel %vm191_vm0, %v1739_v45, 0 }
  0xe9   : > { %1255 = vmatpush.bf16.xpose.msrb.mxu1 %v1253_v30 }
  0xec   : > { %2334 = vmatmul.msk.bf16.gmra.mxu2 %vm191_vm0, %v639_v21  ;;  %v643_v23 = vpop.permute.xlu2 %642 }
  0xed   : > { %1716 = vrot.lane.b32.xlu1 %v2450_v5, %s2783_s19 }
  0xf4   : > { %2296 = vmatmul.msk.bf16.gmra.mxu0 %vm191_vm0, %v2835_v4  ;;  %v1204_v24 = vpop.permute.xlu2 %1203  ;;  %v645_v4 = vpop.permute.xlu1 %644 }
  0xfc   : > { %2335 = vmatmul.msk.bf16.gmra.mxu2 %vm191_vm0, %v641_v22  ;;  %v647_v25 = vpop.permute.xlu2 %646  ;;  %v3005_v26 = vpop.permute.xlu1 %1197 }
 0x104   : > { %2297 = vmatmul.msk.bf16.gmra.mxu0 %vm191_vm0, %v2830_v3  ;;  %v1202_v8 = vpop.permute.xlu2 %1201  ;;  %v3007_v27 = vpop.permute.xlu1 %1195 }
 0x105   : > { %v1247_v38 = vsel %vm191_vm0, %v1202_v8, 0 }
 0x10c   : > { %2336 = vmatmul.msk.bf16.gmra.mxu2 %vm191_vm0, %v643_v23  ;;  %v1200_v29 = vpop.permute.xlu2 %1199  ;;  %v1743_v3 = vpop.permute.xlu1 %1742 }
 0x10d   : > { %v3024_v34 = vsel %vm191_vm0, %v1743_v3, 0  ;;  %v1244_v46 = vsel %vm191_vm0, %v1200_v29, 0 }
 0x114   : > { %2298 = vmatmul.msk.bf16.gmra.mxu0 %vm191_vm0, %v2822_v1  ;;  %v1745_v31 = vpop.permute.xlu2 %1744  ;;  %v651_v32 = vpop.permute.xlu1 %650  ;;  %v1250_v1 = vsel %vm191_vm0, %v1204_v24, 0 }
 0x115   : > { %v3016_v33 = vsel %vm191_vm0, %v1745_v31, 0  ;;  %1256 = vmatpush.bf16.xpose.msrb.mxu1 %v1250_v1 }
 0x116   : > { %1794 = vmatpush.bf16.xpose.msrb.mxu0 %v3016_v33 }
 0x11c   : > { %2337 = vmatmul.msk.bf16.gmra.mxu2 %vm191_vm0, %v645_v4  ;;  %v1741_v37 = vpop.permute.xlu2 %1740 }
 0x11d   : > { %1257 = vmatpush.bf16.xpose.msrb.mxu1 %v1247_v38  ;;  %v3029_v39 = vsel %vm191_vm0, %v1741_v37, 0 }
 0x11e   : > { %1795 = vmatpush.bf16.xpose.msrb.mxu0 %v3024_v34 }
 0x124   : > { %2299 = vmatmul.msk.bf16.gmra.mxu0 %vm191_vm0, %v2827_v2  ;;  %v3021_v2 = vpop.permute.xlu1 %1193  ;;  %v1735_v58 = vpop.permute.xlu2 %1734 }
 0x125   : > { %1258 = vmatpush.bf16.xpose.msrb.mxu1 %v1244_v46  ;;  %v3065_v60 = vsel %vm191_vm0, %v1735_v58, 0  ;;  %v1238_v46 = vsel %vm191_vm0, %v3007_v27, 0 }
 0x126   : > { %1796 = vmatpush.bf16.xpose.msrb.mxu0 %v3029_v39 }
 0x12c   : > { %2338 = vmatmul.msk.bf16.gmra.mxu2 %vm191_vm0, %v647_v25  ;;  %v3031_v40 = vpop.permute.xlu1 %1191  ;;  %v1731_v21 = vpop.permute.xlu2 %1730 }
 0x12d   : > { %v3079_v22 = vsel %vm191_vm0, %v1731_v21, 0 }
 0x12e   : > { %1797 = vmatpush.bf16.xpose.msrb.mxu0 %v3046_v49 }
 0x134   : > { %2300 = vmatmul.msk.bf16.gmra.mxu0 %vm191_vm0, %v2819_v0  ;;  %v3034_v0 = vand.u32 127, %v117_v35  ;;  %v3043_v48 = vpop.permute.xlu1 %1175  ;;  %v3092_v29 = vpop.permute.xlu2 %1183 }
 0x135   : > { %4119 = vst [vmem:[#allocation2_spill] sm:$0xff] %v3092_v29 }
 0x136   : > { %vm305_vm1 = vcmp.lt.s32.totalorder %v3034_v0, 18 }
 0x13c   : > { %2339 = vmatmul.msk.bf16.gmra.mxu2 %vm191_vm0, %v649_v36  ;;  %v1737_v53 = vpop.permute.xlu1 %1736  ;;  %v964_v35 = vpop.permute.xlu2 %963  ;;  %v1241_v36 = vsel %vm191_vm0, %v3005_v26, 0 }
 0x13d   : > { %v3057_v55 = vsel %vm191_vm0, %v1737_v53, 0  ;;  %973 = vmatpush.bf16.msra.mxu3 %v964_v35  ;;  %1259 = vmatpush.bf16.xpose.msrb.mxu1 %v1241_v36 }
 0x13e   : > { %1798 = vmatpush.bf16.xpose.msrb.mxu0 %v3057_v55 }
 0x141   : > { %v249_v41 = vpop.f32.mrf.mxu0 }
 0x142   : > { %v289_v44 = vmul.f32 0.35355338, %v249_v41 }
 0x144   : > { %v3041_v47 = vsel %vm305_vm1, %v289_v44, -1e+30 }
 0x145   : > { %322 = vmax.xlane.f32.xlu2 %v3041_v47  ;;  %1260 = vmatpush.bf16.xpose.msrb.mxu1 %v1238_v46 }
 0x146   : > { %1799 = vmatpush.bf16.xpose.msrb.mxu0 %v3065_v60 }
 0x147   : > { %v1733_v6 = vpop.permute.xlu1 %1732 }
 0x148   : > { %v3070_v13 = vsel %vm191_vm0, %v1733_v6, 0 }
 0x149   : > { %v251_v50 = vpop.f32.mrf.mxu0 }
 0x14a   : > { %v290_v51 = vmul.f32 0.35355338, %v251_v50 }
 0x14c   : > { %v3052_v52 = vsel %vm305_vm1, %v290_v51, -1e+30  ;;  %2340 = vmatmul.msk.bf16.gmra.mxu2 %vm191_vm0, %v651_v32 }
 0x14d   : > { %324 = vmax.xlane.f32.xlu0 %v3052_v52 }
 0x14e   : > { %1800 = vmatpush.bf16.xpose.msrb.mxu0 %v3070_v13 }
 0x151   : > { %v254_v56 = vpop.f32.mrf.mxu0 }
 0x152   : > { %v291_v57 = vmul.f32 0.35355338, %v254_v56 }
 0x154   : > { %v3062_v59 = vsel %vm305_vm1, %v291_v57, -1e+30 }
 0x155   : > { %326 = vmax.xlane.f32.xlu1 %v3062_v59 }
 0x156   : > { %1801 = vmatpush.bf16.xpose.msrb.mxu0 %v3079_v22 }
 0x159   : > { %v256_v61 = vpop.f32.mrf.mxu0 }
 0x15a   : > { %v292_v7 = vmul.f32 0.35355338, %v256_v61 }
 0x15c   : > { %v3084_v4 = vsel %vm305_vm1, %v292_v7, -1e+30 }
 0x15f   : > { %v725_v18 = vpop.f32.mrf.mxu2 }
 0x160   : > { %v765_v19 = vmul.f32 0.35355338, %v725_v18 }
 0x161   : > { %v259_v5 = vpop.f32.mrf.mxu0 }
 0x162   : > { %v3075_v20 = vsel %vm305_vm1, %v765_v19, -1e+30  ;;  %v293_v45 = vmul.f32 0.35355338, %v259_v5 }
 0x163   : > { %797 = vmax.xlane.f32.xlu2 %v3075_v20 }
 0x164   : > { %v3115_v26 = vsel %vm305_vm1, %v293_v45, -1e+30  ;;  %v1232_v45 = vsel %vm191_vm0, %v3031_v40, 0 }
 0x167   : > { %v727_v23 = vpop.f32.mrf.mxu2 }
 0x168   : > { %v766_v24 = vmul.f32 0.35355338, %v727_v23  ;;  %v1715_v23 = vpop.permute.xlu1 %1714 }
 0x169   : > { %v261_v25 = vpop.f32.mrf.mxu0  ;;  %2413 = vmatmul.msk.bf16.vlgmr.msrb.gmra.mxu0 %vm191_vm0, %v1715_v23 }
 0x16a   : > { %v3088_v8 = vsel %vm305_vm1, %v766_v24, -1e+30  ;;  %v294_v28 = vmul.f32 0.35355338, %v261_v25 }
 0x16b   : > { %328 = vmax.xlane.f32.xlu2 %v3084_v4  ;;  %799 = vmax.xlane.f32.xlu0 %v3088_v8 }
 0x16c   : > { %v3096_v31 = vsel %vm305_vm1, %v294_v28, -1e+30 }
 0x16f   : > { %v730_v3 = vpop.f32.mrf.mxu2 }
 0x170   : > { %v767_v30 = vmul.f32 0.35355338, %v730_v3 }
 0x171   : > { %v264_v32 = vpop.f32.mrf.mxu0 }
 0x172   : > { %v3100_v1 = vsel %vm305_vm1, %v767_v30, -1e+30  ;;  %v295_v57 = vmul.f32 0.35355338, %v264_v32  ;;  %v1235_v32 = vsel %vm191_vm0, %v3021_v2, 0 }
 0x173   : > { %332 = vmax.xlane.f32.xlu0 %v3096_v31  ;;  %801 = vmax.xlane.f32.xlu1 %v3100_v1 }
 0x174   : > { %v3129_v18 = vsel %vm305_vm1, %v295_v57, -1e+30  ;;  %1261 = vmatpush.bf16.xpose.msrb.mxu1 %v1235_v32 }
 0x177   : > { %v732_v37 = vpop.f32.mrf.mxu2 }
 0x178   : > { %v768_v38 = vmul.f32 0.35355338, %v732_v37  ;;  %v3156_v37 = vpop.permute.xlu1 %1181 }
 0x179   : > { %v266_v41 = vpop.f32.mrf.mxu0 }
 0x17a   : > { %v3108_v44 = vsel %vm305_vm1, %v768_v38, -1e+30  ;;  %v296_v58 = vmul.f32 0.35355338, %v266_v41  ;;  %v3163_v41 = vpop.permute.xlu0 %1177 }
 0x17b   : > { %803 = vmax.xlane.f32.xlu2 %v3108_v44 }
 0x17c   : > { %v3125_v6 = vsel %vm305_vm1, %v296_v58, -1e+30  ;;  %1262 = vmatpush.bf16.xpose.msrb.mxu1 %v1232_v45 }
 0x17f   : > { %v735_v50 = vpop.f32.mrf.mxu2 }
 0x180   : > { %v769_v51 = vmul.f32 0.35355338, %v735_v50  ;;  %v1717_v2 = vpop.permute.xlu1 %1716 }
 0x181   : > { %v269_v53 = vpop.f32.mrf.mxu0  ;;  %2414 = vmatmul.msk.bf16.gmra.mxu0 %vm191_vm0, %v1717_v2 }
 0x182   : > { %v3119_v56 = vsel %vm305_vm1, %v769_v51, -1e+30  ;;  %v297_v7 = vmul.f32 0.35355338, %v269_v53  ;;  %v3173_v53 = vpop.permute.xlu0 %1179 }
 0x183   : > { %330 = vmax.xlane.f32.xlu2 %v3115_v26  ;;  %805 = vmax.xlane.f32.xlu1 %v3119_v56 }
 0x184   : > { %v3145_v28 = vsel %vm305_vm1, %v297_v7, -1e+30 }
 0x187   : > { %v737_v61 = vpop.f32.mrf.mxu2 }
 0x188   : > { %v770_v27 = vmul.f32 0.35355338, %v737_v61 }
 0x189   : > { %v271_v19 = vpop.f32.mrf.mxu0 }
 0x18a   : > { %v3133_v5 = vsel %vm305_vm1, %v770_v27, -1e+30  ;;  %v298_v21 = vmul.f32 0.35355338, %v271_v19  ;;  %v1719_v19 = vpop.permute.xlu0 %1718 }
 0x18b   : > { %336 = vmax.xlane.f32.xlu2 %v3125_v6  ;;  %334 = vmax.xlane.f32.xlu1 %v3129_v18 }
 0x18c   : > { %807 = vmax.xlane.f32.xlu0 %v3133_v5  ;;  %v3141_v24 = vsel %vm305_vm1, %v298_v21, -1e+30 }
 0x191   : > { %v274_v25 = vpop.f32.mrf.mxu0  ;;  %2415 = vmatmul.msk.bf16.gmra.mxu0 %vm191_vm0, %v1719_v19 }
 0x192   : > { %v299_v3 = vmul.f32 0.35355338, %v274_v25 }
 0x193   : > { %340 = vmax.xlane.f32.xlu1 %v3141_v24 }
 0x194   : > { %338 = vmax.xlane.f32.xlu0 %v3145_v28  ;;  %v3151_v30 = vsel %vm305_vm1, %v299_v3, -1e+30 }
 0x195   : > { %342 = vmax.xlane.f32.xlu2 %v3151_v30 }
 0x199   : > { %v276_v35 = vpop.f32.mrf.mxu0 }
 0x19a   : > { %v300_v36 = vmul.f32 0.35355338, %v276_v35 }
 0x19c   : > { %v3160_v38 = vsel %vm305_vm1, %v300_v36, -1e+30 }
 0x19d   : > { %344 = vmax.xlane.f32.xlu2 %v3160_v38 }
 0x1a1   : > { %v279_v46 = vpop.f32.mrf.mxu0 }
 0x1a2   : > { %v301_v50 = vmul.f32 0.35355338, %v279_v46 }
 0x1a4   : > { %v3170_v51 = vsel %vm305_vm1, %v301_v50, -1e+30 }
 0x1a5   : > { %346 = vmax.xlane.f32.xlu0 %v3170_v51 }
 0x1a9   : > { %v281_v57 = vpop.f32.mrf.mxu0 }
 0x1aa   : > { %v302_v58 = vmul.f32 0.35355338, %v281_v57 }
 0x1ac   : > { %v3177_v61 = vsel %vm305_vm1, %v302_v58, -1e+30 }
 0x1ad   : > { %348 = vmax.xlane.f32.xlu2 %v3177_v61 }
 0x1b1   : > { %v284_v40 = vpop.f32.mrf.mxu0 }
 0x1b2   : > { %v303_v27 = vmul.f32 0.35355338, %v284_v40 }
 0x1b4   : > { %v3183_v21 = vsel %vm305_vm1, %v303_v27, -1e+30 }
 0x1b5   : > { %350 = vmax.xlane.f32.xlu1 %v3183_v21 }
 0x1b8   : > { %v323_v7 = vpop.xlane.xlu2 %322 }
 0x1b9   : > { %v354_v23 = vsub.f32 %v3041_v47, %v323_v7  ;;  %v286_v25 = vpop.f32.mrf.mxu0 }
 0x1ba   : > { %v304_v3 = vmul.f32 0.35355338, %v286_v25 }
 0x1bb   : > { %v370_v32 = vmul.f32 1.442695, %v354_v23 }
 0x1bc   : > { %v3189_v35 = vsel %vm305_vm1, %v304_v3, -1e+30 }
 0x1bd   : > { %2495 = vpow2.f32 %v370_v32  ;;  %352 = vmax.xlane.f32.xlu1 %v3189_v35 }
 0x1c0   : > { %v325_v36 = vpop.xlane.xlu0 %324 }
 0x1c1   : > { %v355_v45 = vsub.f32 %v3052_v52, %v325_v36 }
 0x1c3   : > { %v3193_v46 = vpop.eup %2495  ;;  %v372_v50 = vmul.f32 1.442695, %v355_v45 }
 0x1c5   : > { %2497 = vpow2.f32 %v372_v50  ;;  %402 = vadd.xlane.f32.xlu1 %v3193_v46 }
 0x1c8   : > { %v327_v47 = vpop.xlane.xlu1 %326 }
 0x1c9   : > { %v356_v2 = vsub.f32 %v3062_v59, %v327_v47 }
 0x1cb   : > { %v3197_v57 = vpop.eup %2497  ;;  %v374_v58 = vmul.f32 1.442695, %v356_v2 }
 0x1cc   : > { %404 = vadd.xlane.f32.xlu0 %v3197_v57 }
 0x1cd   : > { %2499 = vpow2.f32 %v374_v58 }
 0x1d3   : > { %v3200_v40 = vpop.eup %2499 }
 0x1d4   : > { %406 = vadd.xlane.f32.xlu2 %v3200_v40 }
 0x1d6   : > { %v3203_v52 = vpop.xlane.xlu2 %797 }
 0x1de   : > { %v329_v27 = vpop.xlane.xlu2 %328  ;;  %v3213_v25 = vpop.xlane.xlu0 %799 }
 0x1df   : > { %v357_v19 = vsub.f32 %v3084_v4, %v329_v27 }
 0x1e1   : > { %v376_v7 = vmul.f32 1.442695, %v357_v19 }
 0x1e3   : > { %2501 = vpow2.f32 %v376_v7 }
 0x1e6   : > { %v333_v36 = vpop.xlane.xlu0 %332  ;;  %v3224_v2 = vpop.xlane.xlu1 %801 }
 0x1e9   : > { %v3206_v23 = vpop.eup %2501 }
 0x1ea   : > { %408 = vadd.xlane.f32.xlu0 %v3206_v23 }
 0x1ec   : > { %1720 = vrot.lane.b32.xlu2 %v2967_v16, %s2783_s19 }
 0x1ee   : > { %v3211_v59 = vpop.xlane.xlu2 %803 }
 0x1f4   : > { %961 = vrot.lane.b32.xlu2 %v2854_v9, %s2784_s20 }
 0x1f6   : > { %v331_v3 = vpop.xlane.xlu2 %330  ;;  %v3232_v19 = vpop.xlane.xlu1 %805 }
 0x1f7   : > { %v358_v32 = vsub.f32 %v3115_v26, %v331_v3  ;;  %v359_v3 = vsub.f32 %v3096_v31, %v333_v36 }
 0x1f9   : > { %v378_v4 = vmul.f32 1.442695, %v358_v32 }
 0x1fb   : > { %2503 = vpow2.f32 %v378_v4 }
 0x1fc   : > { %959 = vrot.lane.b32.xlu2 %v2857_v10, %s2784_s20 }
 0x1fe   : > { %v337_v45 = vpop.xlane.xlu2 %336  ;;  %v335_v32 = vpop.xlane.xlu1 %334 }
 0x1ff   : > { %v361_v50 = vsub.f32 %v3125_v6, %v337_v45  ;;  %v3226_v9 = vpop.xlane.xlu0 %807 }
 0x201   : > { %v3221_v16 = vpop.eup %2503  ;;  %v384_v47 = vmul.f32 1.442695, %v361_v50  ;;  %v380_v50 = vmul.f32 1.442695, %v359_v3 }
 0x202   : > { %410 = vadd.xlane.f32.xlu1 %v3221_v16 }
 0x203   : > { %2505 = vpow2.f32 %v384_v47 }
 0x207   : > { %v339_v6 = vpop.xlane.xlu0 %338 }
 0x208   : > { %v343_v26 = vpop.xlane.xlu2 %342  ;;  %v362_v31 = vsub.f32 %v3145_v28, %v339_v6 }
 0x209   : > { %v3228_v58 = vpop.eup %2505  ;;  %v364_v27 = vsub.f32 %v3151_v30, %v343_v26  ;;  %v360_v30 = vsub.f32 %v3129_v18, %v335_v32  ;;  %v341_v26 = vpop.xlane.xlu1 %340 }
 0x20a   : > { %416 = vadd.xlane.f32.xlu0 %v3228_v58  ;;  %v386_v36 = vmul.f32 1.442695, %v362_v31 }
 0x20b   : > { %v390_v10 = vmul.f32 1.442695, %v364_v27  ;;  %v382_v27 = vmul.f32 1.442695, %v360_v30 }
 0x20d   : > { %2507 = vpow2.f32 %v390_v10 }
 0x210   : > { %v345_v30 = vpop.xlane.xlu2 %344 }
 0x213   : > { %v3234_v7 = vpop.eup %2507 }
 0x214   : > { %422 = vadd.xlane.f32.xlu0 %v3234_v7 }
 0x218   : > { %v347_v4 = vpop.xlane.xlu0 %346 }
 0x219   : > { %v366_v45 = vsub.f32 %v3170_v51, %v347_v4 }
 0x21b   : > { %v394_v47 = vmul.f32 1.442695, %v366_v45  ;;  %1185 = vrot.lane.b32.xlu1 %v2938_v54, %s2782_s18 }
 0x21d   : > { %2509 = vpow2.f32 %v394_v47  ;;  %v363_v47 = vsub.f32 %v3141_v24, %v341_v26  ;;  %v365_v24 = vsub.f32 %v3160_v38, %v345_v30 }
 0x21e   : > { %2511 = vpow2.f32 %v380_v50 }
 0x21f   : > { %2513 = vpow2.f32 %v382_v27  ;;  %v388_v28 = vmul.f32 1.442695, %v363_v47 }
 0x220   : > { %2515 = vpow2.f32 %v386_v36  ;;  %v349_v30 = vpop.xlane.xlu2 %348 }
 0x223   : > { %v3242_v10 = vpop.eup %2509 }
 0x224   : > { %v3244_v29 = vpop.eup %2511  ;;  %426 = vadd.xlane.f32.xlu0 %v3242_v10 }
 0x225   : > { %412 = vadd.xlane.f32.xlu2 %v3244_v29  ;;  %v3249_v54 = vpop.eup %2513 }
 0x226   : > { %v3254_v50 = vpop.eup %2515 }
 0x228   : > { %v351_v51 = vpop.xlane.xlu1 %350 }
 0x229   : > { %v368_v18 = vsub.f32 %v3183_v21, %v351_v51  ;;  %v829_v21 = vsub.f32 %v3075_v20, %v3203_v52 }
 0x22b   : > { %v398_v4 = vmul.f32 1.442695, %v368_v18  ;;  %v845_v36 = vmul.f32 1.442695, %v829_v21  ;;  %v392_v18 = vmul.f32 1.442695, %v365_v24 }
 0x22d   : > { %414 = vadd.xlane.f32.xlu2 %v3249_v54 }
 0x230   : > { %v353_v3 = vpop.xlane.xlu1 %352 }
 0x231   : > { %v369_v32 = vsub.f32 %v3189_v35, %v353_v3  ;;  %v740_v35 = vpop.f32.mrf.mxu2 }
 0x232   : > { %v771_v51 = vmul.f32 0.35355338, %v740_v35  ;;  %v832_v35 = vsub.f32 %v3108_v44, %v3211_v59 }
 0x233   : > { %v400_v45 = vmul.f32 1.442695, %v369_v32 }
 0x235   : > { %2517 = vpow2.f32 %v400_v45  ;;  %418 = vadd.xlane.f32.xlu2 %v3254_v50 }
 0x236   : > { %2519 = vpow2.f32 %v398_v4  ;;  %v3271_v4 = vsel %vm305_vm1, %v771_v51, -1e+30 }
 0x237   : > { %2521 = vpow2.f32 %v388_v28 }
 0x238   : > { %v403_v27 = vpop.xlane.xlu1 %402 }
 0x239   : > { %2523 = vrcp.f32 %v403_v27 }
 0x23b   : > { %v3258_v6 = vpop.eup %2517 }
 0x23c   : > { %v3260_v31 = vpop.eup %2519  ;;  %432 = vadd.xlane.f32.xlu0 %v3258_v6 }
 0x23d   : > { %430 = vadd.xlane.f32.xlu2 %v3260_v31  ;;  %v3267_v3 = vpop.eup %2521 }
 0x23f   : > { %v405_v26 = vpop.xlane.xlu0 %404  ;;  %v2524_v32 = vpop.eup %2523 }
 0x240   : > { %2525 = vrcp.f32 %v405_v26  ;;  %v450_v38 = vmul.f32 %v2524_v32, %v3193_v46 }
 0x241   : > { %2527 = vpow2.f32 %v845_v36 }
 0x242   : > { %2529 = vpow2.f32 %v392_v18 }
 0x245   : > { %420 = vadd.xlane.f32.xlu1 %v3267_v3  ;;  %809 = vmax.xlane.f32.xlu2 %v3271_v4 }
 0x246   : > { %v2526_v20 = vpop.eup %2525 }
 0x247   : > { %v451_v52 = vmul.f32 %v2526_v20, %v3197_v57  ;;  %v3277_v47 = vpop.eup %2527  ;;  %v407_v46 = vpop.xlane.xlu2 %406 }
 0x248   : > { %v3279_v28 = vpop.eup %2529  ;;  %2531 = vrcp.f32 %v407_v46 }
 0x249   : > { %v466_v45 = vpack.c.bf16 %v451_v52, %v450_v38 }
 0x24b   : > { %506 = vmatmul.bf16.vlgmr.msra.gmra.mxu1 %v466_v45 }
 0x24c   : > { %2457 = vmatpush.bf16.xpose.msra.mxu1 %v3016_v33 }
 0x24d   : > { %424 = vadd.xlane.f32.xlu1 %v3279_v28  ;;  %877 = vadd.xlane.f32.xlu2 %v3277_v47 }
 0x24e   : > { %v2532_v27 = vpop.eup %2531 }
 0x24f   : > { %v1721_v33 = vpop.permute.xlu2 %1720 }
 0x250   : > { %955 = vrot.lane.b32.xlu0 %v2863_v11, %s2784_s20  ;;  %2416 = vmatmul.msk.bf16.gmra.mxu0 %vm191_vm0, %v1721_v33  ;;  %v452_v11 = vmul.f32 %v2532_v27, %v3200_v40 }
 0x254   : > { %2458 = vmatpush.bf16.xpose.msra.mxu1 %v3024_v34 }
 0x258   : > { %1187 = vrot.lane.b32.xlu0 %v2919_v43, %s2782_s18 }
 0x25c   : > { %2459 = vmatpush.bf16.xpose.msra.mxu1 %v3029_v39  ;;  %v962_v39 = vpop.permute.xlu2 %961 }
 0x25d   : > { %v409_v57 = vpop.xlane.xlu0 %408  ;;  %974 = vmatpush.bf16.msra.mxu3 %v962_v39 }
 0x25e   : > { %2533 = vrcp.f32 %v409_v57 }
 0x260   : > { %1722 = vrot.lane.b32.xlu0 %v2953_v62, %s2783_s19  ;;  %v742_v62 = vpop.f32.mrf.mxu2 }
 0x261   : > { %v772_v44 = vmul.f32 0.35355338, %v742_v62 }
 0x263   : > { %v3329_v36 = vsel %vm305_vm1, %v772_v44, -1e+30 }
 0x264   : > { %v2534_v21 = vpop.eup %2533  ;;  %2460 = vmatpush.bf16.xpose.msra.mxu1 %v3046_v49  ;;  %v960_v24 = vpop.permute.xlu2 %959 }
 0x265   : > { %951 = vrot.lane.b32.xlu2 %v2878_v14, %s2784_s20  ;;  %v453_v43 = vmul.f32 %v2534_v21, %v3206_v23  ;;  %975 = vmatpush.bf16.msra.mxu3 %v960_v24  ;;  %v830_v14 = vsub.f32 %v3088_v8, %v3213_v25  ;;  %v851_v8 = vmul.f32 1.442695, %v832_v35 }
 0x266   : > { %957 = vrot.lane.b32.xlu1 %v2866_v12, %s2784_s20  ;;  %v367_v12 = vsub.f32 %v3177_v61, %v349_v30 }
 0x267   : > { %v467_v34 = vpack.c.bf16 %v453_v43, %v452_v11  ;;  %v847_v40 = vmul.f32 1.442695, %v830_v14 }
 0x268   : > { %v745_v49 = vpop.f32.mrf.mxu2 }
 0x269   : > { %511 = vmatmul.bf16.gmra.mxu1 %v467_v34  ;;  %2535 = vpow2.f32 %v847_v40  ;;  %v2751_v34 = vld [vmem:[%s2816_s11 + $0x10] sm:$0xff]  ;;  %v831_v40 = vsub.f32 %v3100_v1, %v3224_v2 }
 0x26b   : > { %v849_v35 = vmul.f32 1.442695, %v831_v40 }
 0x26c   : > { %2461 = vmatpush.bf16.xpose.msra.mxu1 %v3057_v55  ;;  %v396_v55 = vmul.f32 1.442695, %v367_v12 }
 0x26e   : > { %2537 = vpow2.f32 %v396_v55 }
 0x26f   : > { %v3311_v26 = vpop.eup %2535  ;;  %2539 = vpow2.f32 %v851_v8 }
 0x270   : > { %v3306_v23 = vpop.f32.mrf.mxu2 }
 0x274   : > { %2462 = vmatpush.bf16.xpose.msra.mxu1 %v3065_v60  ;;  %v773_v60 = vmul.f32 0.35355338, %v745_v49 }
 0x275   : > { %v411_v59 = vpop.xlane.xlu1 %410 }
 0x276   : > { %v3318_v61 = vsel %vm305_vm1, %v773_v60, -1e+30  ;;  %2541 = vrcp.f32 %v411_v59  ;;  %v834_v59 = vsub.f32 %v3133_v5, %v3226_v9 }
 0x27c   : > { %2463 = vmatpush.bf16.xpose.msra.mxu1 %v3070_v13  ;;  %v3314_v13 = vpop.f32.mrf.mxu2 }
 0x27d   : > { %v417_v46 = vpop.xlane.xlu0 %416 }
 0x284   : > { %2464 = vmatpush.bf16.xpose.msra.mxu1 %v3079_v22  ;;  %v3321_v22 = vpop.eup %2537  ;;  %v752_v51 = vpop.f32.mrf.mxu2 }
 0x285   : > { %v3324_v25 = vpop.eup %2539  ;;  %v776_v32 = vmul.f32 0.35355338, %v752_v51 }
 0x286   : > { %v2542_v20 = vpop.eup %2541 }
 0x287   : > { %v3334_v38 = vsel %vm305_vm1, %v776_v32, -1e+30  ;;  %v454_v45 = vmul.f32 %v2542_v20, %v3221_v16  ;;  %v423_v27 = vpop.xlane.xlu0 %422 }
 0x28a   : > { %879 = vadd.xlane.f32.xlu0 %v3311_v26 }
 0x28c   : > { %v755_v51 = vpop.f32.mrf.mxu2 }
 0x28d   : > { %v3344_v43 = vpop.permute.xlu1 %1185 }
 0x28e   : > { %813 = vmax.xlane.f32.xlu2 %v3318_v61 }
 0x290   : > { %428 = vadd.xlane.f32.xlu1 %v3321_v22 }
 0x296   : > { %883 = vadd.xlane.f32.xlu2 %v3324_v25 }
 0x298   : > { %v413_v18 = vpop.xlane.xlu2 %412  ;;  %811 = vmax.xlane.f32.xlu1 %v3329_v36 }
 0x299   : > { %2543 = vrcp.f32 %v413_v18 }
 0x29e   : > { %819 = vmax.xlane.f32.xlu2 %v3334_v38  ;;  %1189 = vrot.lane.b32.xlu0 %v2916_v42, %s2782_s18 }
 0x29f   : > { %v2544_v52 = vpop.eup %2543 }
 0x2a0   : > { %v455_v30 = vmul.f32 %v2544_v52, %v3244_v29  ;;  %v415_v57 = vpop.xlane.xlu2 %414  ;;  %v3349_v29 = vpop.xlane.xlu0 %426 }
 0x2a1   : > { %2545 = vrcp.f32 %v415_v57  ;;  %v757_v57 = vpop.f32.mrf.mxu2 }
 0x2a2   : > { %v468_v33 = vpack.c.bf16 %v455_v30, %v454_v45  ;;  %2547 = vrcp.f32 %v417_v46  ;;  %v777_v30 = vmul.f32 0.35355338, %v755_v51 }
 0x2a4   : > { %516 = vmatmul.bf16.gmra.mxu1 %v468_v33  ;;  %v3386_v5 = vsel %vm305_vm1, %v777_v30, -1e+30  ;;  %v778_v33 = vmul.f32 0.35355338, %v757_v57  ;;  %v833_v30 = vsub.f32 %v3119_v56, %v3232_v19 }
 0x2a6   : > { %1724 = vrot.lane.b32.xlu0 %v2970_v17, %s2783_s19 }
 0x2a7   : > { %v2546_v21 = vpop.eup %2545 }
 0x2a8   : > { %v2548_v11 = vpop.eup %2547  ;;  %v456_v42 = vmul.f32 %v2546_v21, %v3249_v54  ;;  %v419_v62 = vpop.xlane.xlu2 %418 }
 0x2a9   : > { %v457_v16 = vmul.f32 %v2548_v11, %v3228_v58  ;;  %2549 = vrcp.f32 %v419_v62  ;;  %v774_v11 = vmul.f32 0.35355338, %v3306_v23 }
 0x2ab   : > { %v469_v39 = vpack.c.bf16 %v457_v16, %v456_v42  ;;  %v3396_v42 = vsel %vm305_vm1, %v778_v33, -1e+30  ;;  %v775_v16 = vmul.f32 0.35355338, %v3314_v13 }
 0x2ad   : > { %v3412_v62 = vsel %vm305_vm1, %v775_v16, -1e+30 }
 0x2af   : > { %v3355_v54 = vpop.xlane.xlu0 %432  ;;  %v2550_v58 = vpop.eup %2549 }
 0x2b0   : > { %v458_v49 = vmul.f32 %v2550_v58, %v3254_v50  ;;  %v3372_v2 = vpop.xlane.xlu2 %430 }
 0x2b1   : > { %953 = vrot.lane.b32.xlu1 %v2751_v34, %s2784_s20 }
 0x2b4   : > { %521 = vmatmul.bf16.gmra.mxu1 %v469_v39 }
 0x2b6   : > { %1728 = vrot.lane.b32.xlu2 %v2956_v63, %s2783_s19 }
 0x2b8   : > { %v421_v17 = vpop.xlane.xlu1 %420  ;;  %v810_v46 = vpop.xlane.xlu2 %809 }
 0x2b9   : > { %2551 = vrcp.f32 %v421_v17  ;;  %949 = vrot.lane.b32.xlu1 %v2881_v15, %s2784_s20 }
 0x2bf   : > { %v2552_v24 = vpop.eup %2551 }
 0x2c0   : > { %v459_v14 = vmul.f32 %v2552_v24, %v3267_v3  ;;  %v425_v12 = vpop.xlane.xlu1 %424  ;;  %v878_v13 = vpop.xlane.xlu2 %877 }
 0x2c1   : > { %2553 = vrcp.f32 %v425_v12 }
 0x2c2   : > { %v470_v63 = vpack.c.bf16 %v459_v14, %v458_v49  ;;  %v956_v55 = vpop.permute.xlu0 %955  ;;  %2555 = vrcp.f32 %v423_v27  ;;  %v3419_v49 = vld [vmem:[%s2816_s11 + $0x30] sm:$0xff] }
 0x2c3   : > { %2557 = vpow2.f32 %v849_v35 }
 0x2c4   : > { %526 = vmatmul.bf16.gmra.mxu1 %v470_v63 }
 0x2c7   : > { %v2554_v1 = vpop.eup %2553 }
 0x2c8   : > { %v507_v15 = vpop.f32.mrf.mxu1  ;;  %v2556_v60 = vpop.eup %2555  ;;  %v461_v8 = vmul.f32 %v2554_v1, %v3279_v28  ;;  %v855_v28 = vmul.f32 1.442695, %v834_v59 }
 0x2c9   : > { %v547_v50 = vpack.c.bf16 %v507_v15, %v507_v15  ;;  %v3375_v44 = vpop.eup %2557  ;;  %v460_v32 = vmul.f32 %v2556_v60, %v3234_v7  ;;  %v835_v7 = vsub.f32 %v3271_v4, %v810_v46  ;;  %v3401_v4 = vsel %vm305_vm1, %v774_v11, -1e+30  ;;  %v952_v63 = vpop.permute.xlu2 %951 }
 0x2ca   : > { %v3368_v3 = vpop.permute.xlu0 %1187  ;;  %2559 = vpow2.f32 %v855_v28  ;;  %v853_v28 = vmul.f32 1.442695, %v833_v30 }
 0x2cb   : > { %564 = vst.msk [vmem:[%s3366_s23] sm:$0xf] %vm563_vm2, %v547_v50  ;;  %v471_v52 = vpack.c.bf16 %v461_v8, %v460_v32  ;;  %v857_v27 = vmul.f32 1.442695, %v835_v7 }
 0x2cd   : > { %2561 = vpow2.f32 %v857_v27 }
 0x2ce   : > { %2563 = vrcp.f32 %v3349_v29 }
 0x2d0   : > { %881 = vadd.xlane.f32.xlu0 %v3375_v44  ;;  %v509_v18 = vpop.f32.mrf.mxu1  ;;  %v3390_v21 = vpop.eup %2559 }
 0x2d1   : > { %v548_v20 = vpack.c.bf16 %v509_v18, %v509_v18 }
 0x2d2   : > { %v1723_v45 = vpop.permute.xlu0 %1722 }
 0x2d3   : > { %565 = vst.msk [vmem:[%s3366_s23 + $0x4] sm:$0xf] %vm563_vm2, %v548_v20  ;;  %2417 = vmatmul.msk.bf16.gmra.mxu0 %vm191_vm0, %v1723_v45  ;;  %v3405_v34 = vpop.eup %2561 }
 0x2d4   : > { %531 = vmatmul.bf16.gmra.mxu1 %v471_v52  ;;  %v2564_v14 = vpop.eup %2563 }
 0x2d5   : > { %v462_v35 = vmul.f32 %v2564_v14, %v3242_v10 }
 0x2d8   : > { %821 = vmax.xlane.f32.xlu0 %v3386_v5  ;;  %v958_v9 = vpop.permute.xlu1 %957 }
 0x2d9   : > { %976 = vmatpush.bf16.msra.mxu3 %v958_v9 }
 0x2dd   : > { %977 = vmatpush.bf16.msra.mxu3 %v956_v55 }
 0x2df   : > { %887 = vadd.xlane.f32.xlu2 %v3390_v21 }
 0x2e0   : > { %823 = vmax.xlane.f32.xlu0 %v3396_v42 }
 0x2e3   : > { %815 = vmax.xlane.f32.xlu1 %v3401_v4 }
 0x2e6   : > { %v512_v23 = vpop.f32.mrf.mxu1 }
 0x2e7   : > { %v549_v39 = vpack.c.bf16 %v512_v23, %v512_v23 }
 0x2e8   : > { %889 = vadd.xlane.f32.xlu0 %v3405_v34 }
 0x2e9   : > { %566 = vst.msk [vmem:[%s3366_s23 + $0x8] sm:$0xf] %vm563_vm2, %v549_v39 }
 0x2eb   : > { %817 = vmax.xlane.f32.xlu1 %v3412_v62 }
 0x2ee   : > { %v514_v17 = vpop.f32.mrf.mxu1 }
 0x2ef   : > { %v550_v58 = vpack.c.bf16 %v514_v17, %v514_v17 }
 0x2f1   : > { %567 = vst.msk [vmem:[%s3366_s23 + $0xc] sm:$0xf] %vm563_vm2, %v550_v58 }
 0x2fd   : > { %v880_v40 = vpop.xlane.xlu0 %879 }
 0x301   : > { %v814_v51 = vpop.xlane.xlu2 %813 }
 0x302   : > { %v837_v10 = vsub.f32 %v3318_v61, %v814_v51 }
 0x303   : > { %v429_v24 = vpop.xlane.xlu1 %428 }
 0x304   : > { %2565 = vrcp.f32 %v429_v24  ;;  %1726 = vrot.lane.b32.xlu1 %v3419_v49, %s2783_s19  ;;  %v861_v20 = vmul.f32 1.442695, %v837_v10 }
 0x305   : > { %2567 = vrcp.f32 %v3355_v54 }
 0x306   : > { %2569 = vrcp.f32 %v3372_v2 }
 0x30a   : > { %v2566_v12 = vpop.eup %2565 }
 0x30b   : > { %v812_v55 = vpop.xlane.xlu1 %811  ;;  %v463_v15 = vmul.f32 %v2566_v12, %v3321_v22  ;;  %v2568_v8 = vpop.eup %2567 }
 0x30c   : > { %v836_v50 = vsub.f32 %v3329_v36, %v812_v55  ;;  %v2570_v59 = vpop.eup %2569  ;;  %v760_v36 = vpop.f32.mrf.mxu2  ;;  %v465_v32 = vmul.f32 %v2568_v8, %v3258_v6 }
 0x30d   : > { %v472_v29 = vpack.c.bf16 %v463_v15, %v462_v35  ;;  %v464_v54 = vmul.f32 %v2570_v59, %v3260_v31  ;;  %v779_v2 = vmul.f32 0.35355338, %v760_v36  ;;  %v884_v6 = vpop.xlane.xlu2 %883 }
 0x30e   : > { %v859_v1 = vmul.f32 1.442695, %v836_v50 }
 0x30f   : > { %536 = vmatmul.bf16.gmra.mxu1 %v472_v29  ;;  %v473_v52 = vpack.c.bf16 %v465_v32, %v464_v54  ;;  %v3439_v45 = vsel %vm305_vm1, %v779_v2, -1e+30 }
 0x310   : > { %2571 = vpow2.f32 %v859_v1  ;;  %v3428_v60 = vpop.permute.xlu0 %1189 }
 0x311   : > { %2573 = vrcp.f32 %v880_v40 }
 0x312   : > { %2575 = vpow2.f32 %v861_v20 }
 0x313   : > { %2577 = vrcp.f32 %v878_v13 }
 0x314   : > { %2579 = vpow2.f32 %v853_v28  ;;  %v762_v17 = vpop.f32.mrf.mxu2 }
 0x315   : > { %v820_v16 = vpop.xlane.xlu2 %819 }
 0x316   : > { %v3430_v18 = vpop.eup %2571  ;;  %v840_v58 = vsub.f32 %v3334_v38, %v820_v16 }
 0x317   : > { %891 = vadd.xlane.f32.xlu0 %v3430_v18  ;;  %v2574_v9 = vpop.eup %2573 }
 0x318   : > { %v1725_v22 = vpop.permute.xlu0 %1724  ;;  %v3446_v7 = vpop.eup %2575  ;;  %v926_v57 = vmul.f32 %v2574_v9, %v3311_v26  ;;  %v780_v26 = vmul.f32 0.35355338, %v762_v17  ;;  %v867_v24 = vmul.f32 1.442695, %v840_v58 }
 0x319   : > { %2418 = vmatmul.msk.bf16.gmra.mxu0 %vm191_vm0, %v1725_v22  ;;  %v2578_v56 = vpop.eup %2577  ;;  %v1803_v22 = vpop.f32.mrf.mxu0 }
 0x31a   : > { %v925_v11 = vmul.f32 %v2578_v56, %v3277_v47  ;;  %v3453_v23 = vpop.eup %2579  ;;  %v3463_v14 = vsel %vm305_vm1, %v780_v26, -1e+30  ;;  %2581 = vpow2.f32 %v867_v24 }
 0x31b   : > { %2583 = vrcp.f32 %v884_v6 }
 0x31c   : > { %v941_v39 = vpack.c.bf16 %v926_v57, %v925_v11  ;;  %v2753_v57 = vld [vmem:[%s2816_s11 + $0x38] sm:$0xff] }
 0x31d   : > { %v1729_v26 = vpop.permute.xlu2 %1728 }
 0x31f   : > { %541 = vmatmul.bf16.gmra.mxu1 %v473_v52  ;;  %825 = vmax.xlane.f32.xlu0 %v3439_v45 }
 0x320   : > { %v3468_v12 = vpop.eup %2581 }
 0x321   : > { %v517_v31 = vpop.f32.mrf.mxu1  ;;  %v2584_v35 = vpop.eup %2583 }
 0x322   : > { %v551_v61 = vpack.c.bf16 %v517_v31, %v517_v31  ;;  %v928_v59 = vmul.f32 %v2584_v35, %v3324_v25  ;;  %v1805_v52 = vpop.f32.mrf.mxu0 }
 0x323   : > { %v954_v46 = vpop.permute.xlu1 %953  ;;  %v1844_v31 = vmul.f32 0.35355338, %v1805_v52 }
 0x324   : > { %568 = vst.msk [vmem:[%s3366_s23 + $0x10] sm:$0xf] %vm563_vm2, %v551_v61  ;;  %978 = vmatpush.bf16.msra.mxu3 %v954_v46 }
 0x325   : > { %v3495_v28 = vsel %vm305_vm1, %v1844_v31, -1e+30 }
 0x327   : > { %893 = vadd.xlane.f32.xlu0 %v3446_v7 }
 0x328   : > { %979 = vmatpush.bf16.msra.mxu3 %v952_v63 }
 0x329   : > { %v519_v19 = vpop.f32.mrf.mxu1 }
 0x32a   : > { %v552_v33 = vpack.c.bf16 %v519_v19, %v519_v19  ;;  %v1843_v19 = vmul.f32 0.35355338, %v1803_v22 }
 0x32b   : > { %v950_v27 = vpop.permute.xlu1 %949 }
 0x32c   : > { %569 = vst.msk [vmem:[%s3366_s23 + $0x14] sm:$0xf] %vm563_vm2, %v552_v33  ;;  %980 = vmatpush.bf16.msra.mxu3 %v950_v27  ;;  %v2754_v27 = vld [vmem:[%s2816_s11 + $0x28] sm:$0xff] }
 0x32e   : > { %885 = vadd.xlane.f32.xlu1 %v3453_v23 }
 0x32f   : > { %981 = vmatmul.bf16.vlgmr.msra.gmra.mxu3 %v941_v39  ;;  %2373 = vmatmul.msk.bf16.vlgmr.msrb.gmra.mxu1 %vm191_vm0, %v3043_v48 }
 0x331   : > { %v522_v13 = vpop.f32.mrf.mxu1 }
 0x332   : > { %v553_v47 = vpack.c.bf16 %v522_v13, %v522_v13 }
 0x334   : > { %570 = vst.msk [vmem:[%s3366_s23 + $0x18] sm:$0xf] %vm563_vm2, %v553_v47 }
 0x336   : > { %827 = vmax.xlane.f32.xlu1 %v3463_v14 }
 0x339   : > { %v524_v40 = vpop.f32.mrf.mxu1 }
 0x33a   : > { %v554_v38 = vpack.c.bf16 %v524_v40, %v524_v40 }
 0x33c   : > { %571 = vst.msk [vmem:[%s3366_s23 + $0x1c] sm:$0xf] %vm563_vm2, %v554_v38  ;;  %v3527_v38 = vpop.f32.mrf.mxu0 }
 0x33e   : > { %899 = vadd.xlane.f32.xlu1 %v3468_v12 }
 0x33f   : > { %2374 = vmatmul.msk.bf16.gmra.mxu1 %vm191_vm0, %v3163_v41 }
 0x341   : > { %v527_v48 = vpop.f32.mrf.mxu1 }
 0x342   : > { %v555_v63 = vpack.c.bf16 %v527_v48, %v527_v48 }
 0x343   : > { %v882_v55 = vpop.xlane.xlu0 %881 }
 0x344   : > { %572 = vst.msk [vmem:[%s3366_s23 + $0x20] sm:$0xf] %vm563_vm2, %v555_v63  ;;  %2585 = vrcp.f32 %v882_v55 }
 0x349   : > { %v529_v15 = vpop.f32.mrf.mxu1 }
 0x34a   : > { %v2586_v50 = vpop.eup %2585  ;;  %v556_v29 = vpack.c.bf16 %v529_v15, %v529_v15 }
 0x34b   : > { %v822_v1 = vpop.xlane.xlu0 %821  ;;  %v927_v8 = vmul.f32 %v2586_v50, %v3375_v44 }
 0x34c   : > { %573 = vst.msk [vmem:[%s3366_s23 + $0x24] sm:$0xf] %vm563_vm2, %v556_v29  ;;  %v841_v41 = vsub.f32 %v3386_v5, %v822_v1 }
 0x34d   : > { %v942_v51 = vpack.c.bf16 %v928_v59, %v927_v8 }
 0x34e   : > { %v869_v10 = vmul.f32 1.442695, %v841_v41 }
 0x34f   : > { %986 = vmatmul.bf16.gmra.mxu3 %v942_v51  ;;  %2375 = vmatmul.msk.bf16.gmra.mxu1 %vm191_vm0, %v3173_v53 }
 0x350   : > { %2587 = vpow2.f32 %v869_v10 }
 0x351   : > { %v532_v36 = vpop.f32.mrf.mxu1 }
 0x352   : > { %v557_v54 = vpack.c.bf16 %v532_v36, %v532_v36  ;;  %v888_v63 = vpop.xlane.xlu2 %887 }
 0x353   : > { %v824_v32 = vpop.xlane.xlu0 %823 }
 0x354   : > { %574 = vst.msk [vmem:[%s3366_s23 + $0x28] sm:$0xf] %vm563_vm2, %v557_v54  ;;  %v842_v25 = vsub.f32 %v3396_v42, %v824_v32 }
 0x356   : > { %v3485_v44 = vpop.eup %2587  ;;  %v871_v2 = vmul.f32 1.442695, %v842_v25  ;;  %v816_v5 = vpop.xlane.xlu1 %815 }
 0x357   : > { %v838_v20 = vsub.f32 %v3401_v4, %v816_v5  ;;  %901 = vadd.xlane.f32.xlu1 %v3485_v44  ;;  %v2756_v5 = vld [vmem:[%s2816_s11 + $0x10] sm:$0xff] }
 0x358   : > { %2589 = vpow2.f32 %v871_v2 }
 0x359   : > { %v863_v53 = vmul.f32 1.442695, %v838_v20  ;;  %v534_v30 = vpop.f32.mrf.mxu1 }
 0x35a   : > { %v558_v6 = vpack.c.bf16 %v534_v30, %v534_v30 }
 0x35b   : > { %2591 = vpow2.f32 %v863_v53  ;;  %v890_v11 = vpop.xlane.xlu0 %889  ;;  %v2757_v53 = vld [vmem:[%s2816_s11 + $0x8] sm:$0xff] }
 0x35c   : > { %575 = vst.msk [vmem:[%s3366_s23 + $0x2c] sm:$0xf] %vm563_vm2, %v558_v6  ;;  %v2758_v6 = vld [vmem:[%s2816_s11 + $0x20] sm:$0xff] }
 0x35e   : > { %v3491_v61 = vpop.eup %2589  ;;  %v818_v42 = vpop.xlane.xlu1 %817 }
 0x35f   : > { %v839_v4 = vsub.f32 %v3412_v62, %v818_v42  ;;  %1877 = vmax.xlane.f32.xlu1 %v3495_v28  ;;  %2376 = vmatmul.msk.bf16.gmra.mxu1 %vm191_vm0, %v3156_v37  ;;  %v4120_v62 = vld [vmem:[#allocation2_spill] sm:$0xff]  ;;  %v3512_v37 = vsel %vm305_vm1, %v1843_v19, -1e+30 }
 0x360   : > { %903 = vadd.xlane.f32.xlu0 %v3491_v61 }
 0x361   : > { %v3502_v46 = vpop.eup %2591  ;;  %v865_v9 = vmul.f32 1.442695, %v839_v4  ;;  %v2759_v4 = vld [vmem:[%s2816_s11 + $0x18] sm:$0xff] }
 0x362   : > { %895 = vadd.xlane.f32.xlu2 %v3502_v46 }
 0x363   : > { %2593 = vpow2.f32 %v865_v9 }
 0x369   : > { %v3505_v56 = vpop.eup %2593 }
 0x36a   : > { %897 = vadd.xlane.f32.xlu2 %v3505_v56 }
 0x36f   : > { %2377 = vmatmul.msk.bf16.gmra.mxu1 %vm191_vm0, %v4120_v62 }
 0x372   : > { %1875 = vmax.xlane.f32.xlu2 %v3512_v37 }
 0x374   : > { %1502 = vrot.lane.b32.xlu0 %v2753_v57, %s2785_s24 }
 0x376   : > { %v1727_v33 = vpop.permute.xlu1 %1726 }
 0x377   : > { %2419 = vmatmul.msk.bf16.gmra.mxu0 %vm191_vm0, %v1727_v33 }
 0x37c   : > { %1498 = vrot.lane.b32.xlu0 %v2754_v27, %s2785_s24 }
 0x37f   : > { %2378 = vmatmul.msk.bf16.gmra.mxu1 %vm191_vm0, %v3344_v43 }
 0x38a   : > { %v892_v16 = vpop.xlane.xlu0 %891 }
 0x38c   : > { %v537_v39 = vpop.f32.mrf.mxu1 }
 0x38d   : > { %v559_v17 = vpack.c.bf16 %v537_v39, %v537_v39 }
 0x38f   : > { %576 = vst.msk [vmem:[%s3366_s23 + $0x30] sm:$0xf] %vm563_vm2, %v559_v17  ;;  %2379 = vmatmul.msk.bf16.gmra.mxu1 %vm191_vm0, %v3368_v3  ;;  %v1810_v3 = vpop.f32.mrf.mxu0 }
 0x392   : > { %v826_v58 = vpop.xlane.xlu0 %825 }
 0x393   : > { %v843_v13 = vsub.f32 %v3439_v45, %v826_v58  ;;  %v1846_v45 = vmul.f32 0.35355338, %v1810_v3 }
 0x394   : > { %v539_v47 = vpop.f32.mrf.mxu1 }
 0x395   : > { %v873_v24 = vmul.f32 1.442695, %v843_v13  ;;  %v560_v40 = vpack.c.bf16 %v539_v47, %v539_v47  ;;  %v3540_v29 = vsel %vm305_vm1, %v1846_v45, -1e+30 }
 0x397   : > { %2595 = vpow2.f32 %v873_v24  ;;  %577 = vst.msk [vmem:[%s3366_s23 + $0x34] sm:$0xf] %vm563_vm2, %v560_v40 }
 0x398   : > { %2597 = vrcp.f32 %v888_v63 }
 0x39a   : > { %v894_v42 = vpop.xlane.xlu0 %893 }
 0x39c   : > { %v542_v43 = vpop.f32.mrf.mxu1 }
 0x39d   : > { %v3531_v48 = vpop.eup %2595  ;;  %v561_v55 = vpack.c.bf16 %v542_v43, %v542_v43 }
 0x39e   : > { %905 = vadd.xlane.f32.xlu2 %v3531_v48  ;;  %v2598_v1 = vpop.eup %2597 }
 0x39f   : > { %578 = vst.msk [vmem:[%s3366_s23 + $0x38] sm:$0xf] %vm563_vm2, %v561_v55  ;;  %2380 = vmatmul.msk.bf16.gmra.mxu1 %vm191_vm0, %v3428_v60  ;;  %v930_v41 = vmul.f32 %v2598_v1, %v3390_v21 }
 0x3a1   : > { %v886_v35 = vpop.xlane.xlu1 %885 }
 0x3a2   : > { %2599 = vrcp.f32 %v886_v35 }
 0x3a3   : > { %2601 = vrcp.f32 %v892_v16 }
 0x3a4   : > { %v544_v15 = vpop.f32.mrf.mxu1 }
 0x3a5   : > { %v562_v50 = vpack.c.bf16 %v544_v15, %v544_v15 }
 0x3a6   : > { %1881 = vmax.xlane.f32.xlu0 %v3540_v29 }
 0x3a7   : > { %579 = vst.msk [vmem:[%s3366_s23 + $0x3c] sm:$0xf] %vm563_vm2, %v562_v50 }
 0x3a8   : > { %v2600_v8 = vpop.eup %2599 }
 0x3a9   : > { %v828_v59 = vpop.xlane.xlu1 %827  ;;  %v929_v60 = vmul.f32 %v2600_v8, %v3453_v23  ;;  %v2602_v54 = vpop.eup %2601 }
 0x3aa   : > { %v844_v51 = vsub.f32 %v3463_v14, %v828_v59  ;;  %v2755_v14 = vld [vmem:[%s2816_s11 + $0x30] sm:$0xff]  ;;  %v932_v25 = vmul.f32 %v2602_v54, %v3430_v18  ;;  %v3592_v8 = vpop.f32.mrf.mxu0 }
 0x3ab   : > { %v943_v10 = vpack.c.bf16 %v930_v41, %v929_v60 }
 0x3ac   : > { %v875_v22 = vmul.f32 1.442695, %v844_v51  ;;  %v3548_v36 = vpop.f32.mrf.mxu1 }
 0x3ad   : > { %991 = vmatmul.bf16.gmra.mxu3 %v943_v10  ;;  %v1304_v54 = vmul.f32 0.35355338, %v3548_v36 }
 0x3ae   : > { %2603 = vpow2.f32 %v875_v22 }
 0x3af   : > { %2420 = vmatmul.msk.bf16.vlgmr.msra.gmra.mxu1 %vm191_vm0, %v1729_v26  ;;  %2605 = vrcp.f32 %v890_v11  ;;  %v3619_v36 = vsel %vm305_vm1, %v1304_v54, -1e+30 }
 0x3b0   : > { %2607 = vrcp.f32 %v894_v42  ;;  %v2761_v42 = vld [vmem:[%s2816_s11 + $0x28] sm:$0xff] }
 0x3b1   : > { %v900_v17 = vpop.xlane.xlu1 %899 }
 0x3b4   : > { %v3551_v32 = vpop.eup %2603  ;;  %v1266_v23 = vpop.f32.mrf.mxu1 }
 0x3b5   : > { %907 = vadd.xlane.f32.xlu1 %v3551_v32  ;;  %v2606_v21 = vpop.eup %2605  ;;  %v1305_v11 = vmul.f32 0.35355338, %v1266_v23 }
 0x3b6   : > { %1500 = vrot.lane.b32.xlu2 %v2755_v14, %s2785_s24  ;;  %v931_v2 = vmul.f32 %v2606_v21, %v3405_v34  ;;  %v2608_v9 = vpop.eup %2607  ;;  %v1815_v14 = vpop.f32.mrf.mxu0 }
 0x3b7   : > { %v933_v57 = vmul.f32 %v2608_v9, %v3446_v7  ;;  %v3572_v26 = vsel %vm305_vm1, %v1305_v11, -1e+30 }
 0x3b8   : > { %v944_v20 = vpack.c.bf16 %v932_v25, %v931_v2 }
 0x3ba   : > { %1492 = vrot.lane.b32.xlu0 %v2756_v5, %s2785_s24  ;;  %v1848_v5 = vmul.f32 0.35355338, %v1815_v14 }
 0x3bc   : > { %v1269_v52 = vpop.f32.mrf.mxu1 }
 0x3bd   : > { %996 = vmatmul.bf16.gmra.mxu3 %v944_v20  ;;  %v1306_v47 = vmul.f32 0.35355338, %v1269_v52 }
 0x3be   : > { %1490 = vrot.lane.b32.xlu2 %v2757_v53, %s2785_s24 }
 0x3bf   : > { %v3582_v63 = vsel %vm305_vm1, %v1306_v47, -1e+30 }
 0x3c4   : > { %v1271_v30 = vpop.f32.mrf.mxu1 }
 0x3c5   : > { %v1307_v58 = vmul.f32 0.35355338, %v1271_v30 }
 0x3c7   : > { %v3577_v7 = vsel %vm305_vm1, %v1307_v58, -1e+30 }
 0x3ca   : > { %v902_v1 = vpop.xlane.xlu1 %901 }
 0x3cc   : > { %v1274_v31 = vpop.f32.mrf.mxu1 }
 0x3cd   : > { %v1308_v43 = vmul.f32 0.35355338, %v1274_v31 }
 0x3ce   : > { %1496 = vrot.lane.b32.xlu1 %v2758_v6, %s2785_s24  ;;  %v2760_v6 = vld [vmem:[%s2816_s11 + $0x38] sm:$0xff] }
 0x3cf   : > { %v3589_v35 = vsel %vm305_vm1, %v1308_v43, -1e+30  ;;  %v1818_v43 = vpop.f32.mrf.mxu0 }
 0x3d2   : > { %v3647_v9 = vpop.xlane.xlu1 %1877 }
 0x3d3   : > { %v904_v27 = vpop.xlane.xlu0 %903 }
 0x3d4   : > { %v3564_v18 = vpop.f32.mrf.mxu1 }
 0x3d5   : > { %v896_v34 = vpop.xlane.xlu2 %895  ;;  %v1309_v30 = vmul.f32 0.35355338, %v3564_v18  ;;  %v2762_v18 = vld [vmem:[%s2816_s11 + $0x20] sm:$0xff] }
 0x3d6   : > { %2609 = vrcp.f32 %v896_v34  ;;  %1494 = vrot.lane.b32.xlu1 %v2759_v4, %s2785_s24 }
 0x3dc   : > { %v2610_v19 = vpop.eup %2609  ;;  %v1279_v62 = vpop.f32.mrf.mxu1 }
 0x3dd   : > { %v934_v33 = vmul.f32 %v2610_v19, %v3502_v46  ;;  %v898_v16 = vpop.xlane.xlu2 %897  ;;  %v1310_v15 = vmul.f32 0.35355338, %v1279_v62  ;;  %v2763_v62 = vld [vmem:[%s2816_s11] sm:$0xff] }
 0x3de   : > { %2611 = vrcp.f32 %v898_v16 }
 0x3df   : > { %v945_v39 = vpack.c.bf16 %v934_v33, %v933_v57  ;;  %2613 = vrcp.f32 %v900_v17 }
 0x3e0   : > { %2615 = vrcp.f32 %v904_v27 }
 0x3e1   : > { %1001 = vmatmul.bf16.gmra.mxu3 %v945_v39  ;;  %2617 = vrcp.f32 %v902_v1 }
 0x3e4   : > { %1338 = vmax.xlane.f32.xlu0 %v3572_v26  ;;  %v1281_v13 = vpop.f32.mrf.mxu1  ;;  %v2612_v24 = vpop.eup %2611 }
 0x3e5   : > { %v2614_v40 = vpop.eup %2613  ;;  %v935_v55 = vmul.f32 %v2612_v24, %v3505_v56  ;;  %v1311_v59 = vmul.f32 0.35355338, %v1281_v13  ;;  %v3596_v56 = vsel %vm305_vm1, %v1310_v15, -1e+30  ;;  %v3633_v53 = vpop.xlane.xlu2 %1875 }
 0x3e6   : > { %v1503_v46 = vpop.permute.xlu0 %1502  ;;  %v936_v45 = vmul.f32 %v2614_v40, %v3468_v12  ;;  %v2616_v51 = vpop.eup %2615 }
 0x3e7   : > { %1342 = vmax.xlane.f32.xlu2 %v3577_v7  ;;  %1512 = vmatpush.bf16.msrb.mxu3 %v1503_v46  ;;  %v3601_v12 = vsel %vm305_vm1, %v1311_v59, -1e+30  ;;  %v2618_v10 = vpop.eup %2617  ;;  %v938_v21 = vmul.f32 %v2616_v51, %v3491_v61  ;;  %v1845_v61 = vmul.f32 0.35355338, %v3527_v38  ;;  %v3638_v38 = vsel %vm305_vm1, %v1309_v30, -1e+30 }
 0x3e8   : > { %v946_v50 = vpack.c.bf16 %v936_v45, %v935_v55  ;;  %v937_v25 = vmul.f32 %v2618_v10, %v3485_v44  ;;  %v3625_v44 = vsel %vm305_vm1, %v1848_v5, -1e+30  ;;  %v1847_v46 = vmul.f32 0.35355338, %v3592_v8 }
 0x3e9   : > { %v3630_v52 = vsel %vm305_vm1, %v1845_v61, -1e+30  ;;  %v1908_v30 = vsub.f32 %v3495_v28, %v3647_v9 }
 0x3ea   : > { %v947_v20 = vpack.c.bf16 %v938_v21, %v937_v25  ;;  %v3658_v24 = vsel %vm305_vm1, %v1847_v46, -1e+30 }
 0x3ec   : > { %1340 = vmax.xlane.f32.xlu0 %v3582_v63  ;;  %v1284_v3 = vpop.f32.mrf.mxu1 }
 0x3ed   : > { %v1312_v60 = vmul.f32 0.35355338, %v1284_v3 }
 0x3ee   : > { %v1499_v4 = vpop.permute.xlu0 %1498 }
 0x3ef   : > { %1344 = vmax.xlane.f32.xlu2 %v3589_v35  ;;  %v3607_v23 = vsel %vm305_vm1, %v1312_v60, -1e+30 }
 0x3f1   : > { %1006 = vmatmul.bf16.gmra.mxu3 %v946_v50  ;;  %v1820_v50 = vpop.f32.mrf.mxu0 }
 0x3f4   : > { %1348 = vmax.xlane.f32.xlu0 %v3596_v56  ;;  %v1286_v41 = vpop.f32.mrf.mxu1 }
 0x3f5   : > { %v1313_v22 = vmul.f32 0.35355338, %v1286_v41 }
 0x3f7   : > { %1350 = vmax.xlane.f32.xlu2 %v3601_v12  ;;  %v3614_v2 = vsel %vm305_vm1, %v1313_v22, -1e+30 }
 0x3fc   : > { %1352 = vmax.xlane.f32.xlu0 %v3607_v23  ;;  %v1289_v3 = vpop.f32.mrf.mxu1 }
 0x3fd   : > { %v1314_v45 = vmul.f32 0.35355338, %v1289_v3 }
 0x3ff   : > { %1354 = vmax.xlane.f32.xlu2 %v3614_v2  ;;  %v3667_v15 = vsel %vm305_vm1, %v1314_v45, -1e+30 }
 0x400   : > { %1336 = vmax.xlane.f32.xlu1 %v3619_v36 }
 0x401   : > { %1011 = vmatmul.bf16.gmra.mxu3 %v947_v20 }
 0x404   : > { %1885 = vmax.xlane.f32.xlu0 %v3625_v44 }
 0x408   : > { %1879 = vmax.xlane.f32.xlu1 %v3630_v52 }
 0x410   : > { %1346 = vmax.xlane.f32.xlu1 %v3638_v38 }
 0x411   : > { %v906_v31 = vpop.xlane.xlu2 %905 }
 0x412   : > { %2619 = vrcp.f32 %v906_v31 }
 0x417   : > { %2041 = vrot.lane.b32.xlu2 %v2760_v6, %s2786_s25 }
 0x418   : > { %2037 = vrot.lane.b32.xlu0 %v2761_v42, %s2786_s25  ;;  %v2620_v57 = vpop.eup %2619  ;;  %v1291_v42 = vpop.f32.mrf.mxu1 }
 0x419   : > { %v1501_v34 = vpop.permute.xlu2 %1500  ;;  %v939_v27 = vmul.f32 %v2620_v57, %v3531_v48  ;;  %v3653_v17 = vpop.xlane.xlu0 %1881 }
 0x41a   : > { %1513 = vmatpush.bf16.msrb.mxu3 %v1501_v34 }
 0x41e   : > { %1514 = vmatpush.bf16.msrb.mxu3 %v1499_v4  ;;  %v1315_v4 = vmul.f32 0.35355338, %v1291_v42 }
 0x41f   : > { %2035 = vrot.lane.b32.xlu2 %v2762_v18, %s2786_s25  ;;  %v1849_v18 = vmul.f32 0.35355338, %v1818_v43 }
 0x420   : > { %v3704_v28 = vsel %vm305_vm1, %v1315_v4, -1e+30 }
 0x421   : > { %v1491_v47 = vpop.permute.xlu2 %1490 }
 0x428   : > { %v908_v19 = vpop.xlane.xlu1 %907 }
 0x429   : > { %2621 = vrcp.f32 %v908_v19  ;;  %1488 = vrot.lane.b32.xlu1 %v2763_v62, %s2785_s24  ;;  %v3711_v62 = vsel %vm305_vm1, %v1849_v18, -1e+30 }
 0x42c   : > { %v1493_v13 = vpop.permute.xlu0 %1492 }
 0x42f   : > { %v2622_v33 = vpop.eup %2621 }
 0x430   : > { %v940_v11 = vmul.f32 %v2622_v33, %v3551_v32 }
 0x432   : > { %v948_v16 = vpack.c.bf16 %v940_v11, %v939_v27 }
 0x434   : > { %1016 = vmatmul.bf16.gmra.mxu3 %v948_v16 }
 0x440   : > { %v1497_v39 = vpop.permute.xlu1 %1496 }
 0x441   : > { %1515 = vmatpush.bf16.msrb.mxu3 %v1497_v39  ;;  %v2764_v39 = vld [vmem:[%s2816_s11 + $0x18] sm:$0xff] }
 0x448   : > { %v1495_v58 = vpop.permute.xlu1 %1494 }
 0x449   : > { %1516 = vmatpush.bf16.msrb.mxu3 %v1495_v58  ;;  %v2767_v58 = vld [vmem:[%s2816_s11 + $0x10] sm:$0xff] }
 0x44d   : > { %1517 = vmatpush.bf16.msrb.mxu3 %v1493_v13  ;;  %v1294_v13 = vpop.f32.mrf.mxu1 }
 0x451   : > { %1518 = vmatpush.bf16.msrb.mxu3 %v1491_v47 }
 0x453   : > { %1883 = vmax.xlane.f32.xlu1 %v3658_v24 }
 0x455   : > { %v1296_v47 = vpop.f32.mrf.mxu1 }
 0x457   : > { %v1339_v48 = vpop.xlane.xlu0 %1338 }
 0x458   : > { %v1369_v32 = vsub.f32 %v3572_v26, %v1339_v48  ;;  %v1850_v26 = vmul.f32 0.35355338, %v1820_v50 }
 0x45a   : > { %v1386_v40 = vmul.f32 1.442695, %v1369_v32  ;;  %v1343_v1 = vpop.xlane.xlu2 %1342  ;;  %v3674_v8 = vsel %vm305_vm1, %v1850_v26, -1e+30 }
 0x45b   : > { %v1371_v14 = vsub.f32 %v3577_v7, %v1343_v1  ;;  %v1925_v7 = vmul.f32 1.442695, %v1908_v30 }
 0x45c   : > { %2623 = vpow2.f32 %v1386_v40  ;;  %v1823_v40 = vpop.f32.mrf.mxu0 }
 0x45d   : > { %v1390_v25 = vmul.f32 1.442695, %v1371_v14  ;;  %v1851_v43 = vmul.f32 0.35355338, %v1823_v40  ;;  %v1299_v45 = vpop.f32.mrf.mxu1 }
 0x45f   : > { %v1341_v41 = vpop.xlane.xlu0 %1340  ;;  %v3737_v26 = vsel %vm305_vm1, %v1851_v43, -1e+30 }
 0x460   : > { %v1370_v10 = vsub.f32 %v3582_v63, %v1341_v41 }
 0x462   : > { %v3662_v55 = vpop.eup %2623  ;;  %v1388_v54 = vmul.f32 1.442695, %v1370_v10 }
 0x463   : > { %1418 = vadd.xlane.f32.xlu2 %v3662_v55 }
 0x465   : > { %v1301_v10 = vpop.f32.mrf.mxu1 }
 0x467   : > { %v1349_v46 = vpop.xlane.xlu0 %1348 }
 0x46b   : > { %1356 = vmax.xlane.f32.xlu2 %v3667_v15 }
 0x46c   : > { %2039 = vrot.lane.b32.xlu1 %v3419_v49, %s2786_s25  ;;  %v1345_v49 = vpop.xlane.xlu2 %1344 }
 0x46f   : > { %v1353_v48 = vpop.xlane.xlu0 %1352 }
 0x473   : > { %1889 = vmax.xlane.f32.xlu2 %v3674_v8  ;;  %v1337_v59 = vpop.xlane.xlu1 %1336 }
 0x474   : > { %v1368_v60 = vsub.f32 %v3619_v36, %v1337_v59  ;;  %v3688_v61 = vpop.xlane.xlu2 %1350  ;;  %v1316_v59 = vmul.f32 0.35355338, %v1294_v13 }
 0x476   : > { %v1384_v51 = vmul.f32 1.442695, %v1368_v60  ;;  %v1374_v60 = vsub.f32 %v3596_v56, %v1349_v46  ;;  %v1375_v56 = vsub.f32 %v3601_v12, %v3688_v61 }
 0x477   : > { %v1886_v1 = vpop.xlane.xlu0 %1885 }
 0x478   : > { %2625 = vpow2.f32 %v1384_v51  ;;  %v1396_v14 = vmul.f32 1.442695, %v1374_v60  ;;  %v1912_v61 = vsub.f32 %v3625_v44, %v1886_v1 }
 0x479   : > { %2627 = vpow2.f32 %v1388_v54  ;;  %v1825_v54 = vpop.f32.mrf.mxu0 }
 0x47a   : > { %2629 = vpow2.f32 %v1390_v25  ;;  %v1933_v4 = vmul.f32 1.442695, %v1912_v61 }
 0x47b   : > { %v3679_v22 = vpop.xlane.xlu1 %1879 }
 0x47c   : > { %v3700_v34 = vpop.xlane.xlu2 %1354  ;;  %v1909_v32 = vsub.f32 %v3630_v52, %v3679_v22  ;;  %v1317_v52 = vmul.f32 0.35355338, %v1296_v47  ;;  %v3746_v22 = vsel %vm305_vm1, %v1316_v59, -1e+30 }
 0x47e   : > { %v3681_v21 = vpop.eup %2625  ;;  %v1927_v3 = vmul.f32 1.442695, %v1909_v32 }
 0x47f   : > { %1416 = vadd.xlane.f32.xlu0 %v3681_v21  ;;  %v3686_v20 = vpop.eup %2627 }
 0x480   : > { %v3693_v31 = vpop.eup %2629 }
 0x481   : > { %v1828_v18 = vpop.f32.mrf.mxu0 }
 0x482   : > { %v1853_v13 = vmul.f32 0.35355338, %v1828_v18 }
 0x483   : > { %v1347_v5 = vpop.xlane.xlu1 %1346 }
 0x484   : > { %v1373_v36 = vsub.f32 %v3638_v38, %v1347_v5  ;;  %v1372_v38 = vsub.f32 %v3589_v35, %v1345_v49  ;;  %v1907_v35 = vsub.f32 %v3512_v37, %v3633_v53  ;;  %v2042_v57 = vpop.permute.xlu2 %2041  ;;  %v2765_v37 = vld [vmem:[%s2816_s11 + $0x8] sm:$0xff]  ;;  %v2766_v53 = vld [vmem:[%s2816_s11] sm:$0xff]  ;;  %v1376_v49 = vsub.f32 %v3607_v23, %v1353_v48  ;;  %v1838_v48 = vpop.f32.mrf.mxu1 }
 0x485   : > { %2051 = vmatpush.bf16.msrb.mxu2 %v2042_v57  ;;  %v1319_v5 = vmul.f32 0.35355338, %v1301_v10  ;;  %v1910_v23 = vsub.f32 %v3540_v29, %v3653_v17  ;;  %v3798_v59 = vsel %vm305_vm1, %v1853_v13, -1e+30 }
 0x486   : > { %v1394_v63 = vmul.f32 1.442695, %v1373_v36  ;;  %v1392_v19 = vmul.f32 1.442695, %v1372_v38  ;;  %v1923_v27 = vmul.f32 1.442695, %v1907_v35 }
 0x487   : > { %1420 = vadd.xlane.f32.xlu0 %v3686_v20  ;;  %v1852_v36 = vmul.f32 0.35355338, %v1825_v54  ;;  %v1400_v30 = vmul.f32 1.442695, %v1376_v49  ;;  %v3761_v12 = vsel %vm305_vm1, %v1319_v5, -1e+30 }
 0x488   : > { %2631 = vpow2.f32 %v1394_v63  ;;  %v3754_v63 = vsel %vm305_vm1, %v1317_v52, -1e+30  ;;  %v1929_v29 = vmul.f32 1.442695, %v1910_v23 }
 0x489   : > { %2633 = vpow2.f32 %v1925_v7  ;;  %v1398_v7 = vmul.f32 1.442695, %v1375_v56  ;;  %v3767_v38 = vsel %vm305_vm1, %v1852_v36, -1e+30 }
 0x48a   : > { %2635 = vpow2.f32 %v1392_v19  ;;  %v2038_v25 = vpop.permute.xlu0 %2037 }
 0x48b   : > { %2637 = vpow2.f32 %v1923_v27  ;;  %v1318_v27 = vmul.f32 0.35355338, %v1299_v45 }
 0x48c   : > { %2639 = vpow2.f32 %v1927_v3  ;;  %v2036_v42 = vpop.permute.xlu2 %2035  ;;  %v1857_v3 = vmul.f32 0.35355338, %v1838_v48 }
 0x48d   : > { %2641 = vpow2.f32 %v1396_v14  ;;  %v3789_v46 = vsel %vm305_vm1, %v1318_v27, -1e+30 }
 0x48e   : > { %v3695_v6 = vpop.eup %2631  ;;  %2643 = vpow2.f32 %v1400_v30 }
 0x48f   : > { %1422 = vadd.xlane.f32.xlu0 %v3693_v31  ;;  %1426 = vadd.xlane.f32.xlu2 %v3695_v6  ;;  %v3706_v9 = vpop.eup %2633  ;;  %2645 = vpow2.f32 %v1398_v7 }
 0x490   : > { %v3717_v11 = vpop.eup %2635  ;;  %2647 = vpow2.f32 %v1929_v29 }
 0x491   : > { %v3720_v16 = vpop.eup %2637  ;;  %2649 = vpow2.f32 %v1933_v4 }
 0x492   : > { %v3741_v51 = vpop.eup %2639 }
 0x493   : > { %v3770_v17 = vpop.eup %2641 }
 0x494   : > { %v3773_v44 = vpop.eup %2643 }
 0x495   : > { %v3775_v35 = vpop.eup %2645 }
 0x496   : > { %1358 = vmax.xlane.f32.xlu1 %v3704_v28 }
 0x497   : > { %1887 = vmax.xlane.f32.xlu0 %v3711_v62  ;;  %1957 = vadd.xlane.f32.xlu2 %v3706_v9 }
 0x49b   : > { %v1489_v33 = vpop.permute.xlu1 %1488 }
 0x49c   : > { %1519 = vmatpush.bf16.msrb.mxu3 %v1489_v33  ;;  %v3779_v33 = vpop.eup %2647 }
 0x49f   : > { %1424 = vadd.xlane.f32.xlu0 %v3717_v11 }
 0x4a0   : > { %2465 = vmatpush.bf16.msra.mxu3 %v2042_v57 }
 0x4a7   : > { %1955 = vadd.xlane.f32.xlu0 %v3720_v16 }
 0x4af   : > { %2033 = vrot.lane.b32.xlu1 %v2764_v39, %s2786_s25  ;;  %2029 = vrot.lane.b32.xlu2 %v2765_v37, %s2786_s25  ;;  %v3782_v39 = vpop.eup %2649  ;;  %v1377_v37 = vsub.f32 %v3614_v2, %v3700_v34 }
 0x4b1   : > { %v1402_v32 = vmul.f32 1.442695, %v1377_v37 }
 0x4b7   : > { %2027 = vrot.lane.b32.xlu1 %v2766_v53, %s2786_s25 }
 0x4bb   : > { %2031 = vrot.lane.b32.xlu0 %v2767_v58, %s2786_s25  ;;  %v1830_v58 = vpop.f32.mrf.mxu0 }
 0x4bc   : > { %v1854_v45 = vmul.f32 0.35355338, %v1830_v58 }
 0x4c3   : > { %v1833_v52 = vpop.f32.mrf.mxu0 }
 0x4c4   : > { %v1855_v14 = vmul.f32 0.35355338, %v1833_v52 }
 0x4c6   : > { %v3733_v50 = vpop.xlane.xlu1 %1883  ;;  %v3823_v4 = vsel %vm305_vm1, %v1855_v14, -1e+30 }
 0x4c7   : > { %v1911_v40 = vsub.f32 %v3658_v24, %v3733_v50  ;;  %v3803_v24 = vsel %vm305_vm1, %v1857_v3, -1e+30 }
 0x4d6   : > { %v1419_v19 = vpop.xlane.xlu2 %1418 }
 0x4d7   : > { %2651 = vrcp.f32 %v1419_v19  ;;  %v1840_v19 = vpop.f32.mrf.mxu1 }
 0x4d8   : > { %1891 = vmax.xlane.f32.xlu2 %v3737_v26 }
 0x4dd   : > { %v2652_v53 = vpop.eup %2651 }
 0x4de   : > { %v2040_v41 = vpop.permute.xlu1 %2039  ;;  %v1465_v34 = vmul.f32 %v2652_v53, %v3662_v55  ;;  %v1357_v1 = vpop.xlane.xlu2 %1356  ;;  %v3808_v55 = vsel %vm305_vm1, %v1854_v45, -1e+30 }
 0x4df   : > { %2052 = vmatpush.bf16.msrb.mxu2 %v2040_v41  ;;  %2466 = vmatpush.bf16.msra.mxu3 %v2040_v41  ;;  %v1931_v41 = vmul.f32 1.442695, %v1911_v40  ;;  %v1378_v36 = vsub.f32 %v3667_v15, %v1357_v1  ;;  %v3852_v45 = vpop.f32.mrf.mxu3 }
 0x4e0   : > { %1959 = vadd.xlane.f32.xlu2 %v3741_v51 }
 0x4e1   : > { %1360 = vmax.xlane.f32.xlu1 %v3746_v22 }
 0x4e3   : > { %2053 = vmatpush.bf16.msrb.mxu2 %v2038_v25  ;;  %2467 = vmatpush.bf16.msra.mxu3 %v2038_v25  ;;  %v1835_v25 = vpop.f32.mrf.mxu0 }
 0x4e4   : > { %v1856_v61 = vmul.f32 0.35355338, %v1835_v25 }
 0x4e5   : > { %1362 = vmax.xlane.f32.xlu0 %v3754_v63 }
 0x4e6   : > { %v1890_v10 = vpop.xlane.xlu2 %1889 }
 0x4e7   : > { %2054 = vmatpush.bf16.msrb.mxu2 %v2036_v42  ;;  %2468 = vmatpush.bf16.msra.mxu3 %v2036_v42 }
 0x4e8   : > { %1366 = vmax.xlane.f32.xlu2 %v3761_v12 }
 0x4e9   : > { %1893 = vmax.xlane.f32.xlu1 %v3767_v38 }
 0x4ed   : > { %1428 = vadd.xlane.f32.xlu0 %v3770_v17 }
 0x4f0   : > { %1432 = vadd.xlane.f32.xlu2 %v3773_v44 }
 0x4f1   : > { %1430 = vadd.xlane.f32.xlu1 %v3775_v35 }
 0x4f2   : > { %v1417_v57 = vpop.xlane.xlu0 %1416 }
 0x4f3   : > { %2653 = vrcp.f32 %v1417_v57  ;;  %v1404_v57 = vmul.f32 1.442695, %v1378_v36 }
 0x4f4   : > { %2655 = vpow2.f32 %v1402_v32 }
 0x4f5   : > { %1961 = vadd.xlane.f32.xlu0 %v3779_v33 }
 0x4f8   : > { %1965 = vadd.xlane.f32.xlu2 %v3782_v39 }
 0x4f9   : > { %v2654_v47 = vpop.eup %2653  ;;  %1364 = vmax.xlane.f32.xlu1 %v3789_v46 }
 0x4fa   : > { %v1421_v43 = vpop.xlane.xlu0 %1420  ;;  %v1464_v2 = vmul.f32 %v2654_v47, %v3681_v21  ;;  %v3811_v50 = vpop.eup %2655 }
 0x4fb   : > { %2657 = vrcp.f32 %v1421_v43 }
 0x4fc   : > { %v1480_v60 = vpack.c.bf16 %v1465_v34, %v1464_v2  ;;  %2659 = vpow2.f32 %v1931_v41 }
 0x4fd   : > { %1895 = vmax.xlane.f32.xlu0 %v3798_v59 }
 0x4fe   : > { %1520 = vmatmul.bf16.vlgmr.msrb.gmra.mxu3 %v1480_v60  ;;  %v3854_v60 = vpop.f32.mrf.mxu3 }
 0x500   : > { %1903 = vmax.xlane.f32.xlu2 %v3803_v24 }
 0x501   : > { %1897 = vmax.xlane.f32.xlu1 %v3808_v55  ;;  %v2658_v54 = vpop.eup %2657 }
 0x502   : > { %v1423_v21 = vpop.xlane.xlu0 %1422  ;;  %v3814_v49 = vpop.eup %2659  ;;  %v1466_v7 = vmul.f32 %v2658_v54, %v3686_v20  ;;  %v3829_v20 = vsel %vm305_vm1, %v1856_v61, -1e+30 }
 0x503   : > { %2661 = vrcp.f32 %v1423_v21  ;;  %v1427_v27 = vpop.xlane.xlu2 %1426 }
 0x505   : > { %1434 = vadd.xlane.f32.xlu0 %v3811_v50 }
 0x509   : > { %v2662_v56 = vpop.eup %2661  ;;  %1963 = vadd.xlane.f32.xlu1 %v3814_v49  ;;  %v1359_v5 = vpop.xlane.xlu1 %1358 }
 0x50a   : > { %v1379_v30 = vsub.f32 %v3704_v28, %v1359_v5  ;;  %v1888_v23 = vpop.xlane.xlu0 %1887  ;;  %v1467_v42 = vmul.f32 %v2662_v56, %v3693_v31  ;;  %v1858_v28 = vmul.f32 0.35355338, %v1840_v19  ;;  %v1914_v31 = vsub.f32 %v3674_v8, %v1890_v10  ;;  %v3858_v56 = vpop.f32.mrf.mxu3 }
 0x50b   : > { %v1913_v15 = vsub.f32 %v3711_v62, %v1888_v23  ;;  %v1958_v1 = vpop.xlane.xlu2 %1957 }
 0x50c   : > { %v1406_v29 = vmul.f32 1.442695, %v1379_v30  ;;  %v1481_v18 = vpack.c.bf16 %v1467_v42, %v1466_v7  ;;  %v3837_v62 = vsel %vm305_vm1, %v1858_v28, -1e+30  ;;  %v1937_v13 = vmul.f32 1.442695, %v1914_v31 }
 0x50d   : > { %1899 = vmax.xlane.f32.xlu0 %v3823_v4  ;;  %v1935_v37 = vmul.f32 1.442695, %v1913_v15 }
 0x50e   : > { %2663 = vpow2.f32 %v1406_v29  ;;  %1525 = vmatmul.bf16.gmra.mxu3 %v1481_v18 }
 0x50f   : > { %2665 = vrcp.f32 %v1427_v27 }
 0x510   : > { %2667 = vpow2.f32 %v1404_v57 }
 0x511   : > { %1901 = vmax.xlane.f32.xlu1 %v3829_v20 }
 0x512   : > { %v1425_v53 = vpop.xlane.xlu0 %1424  ;;  %v3860_v25 = vpop.f32.mrf.mxu3 }
 0x513   : > { %2669 = vrcp.f32 %v1425_v53  ;;  %v2030_v41 = vpop.permute.xlu2 %2029 }
 0x514   : > { %v3833_v58 = vpop.eup %2663  ;;  %2671 = vpow2.f32 %v1935_v37 }
 0x515   : > { %1905 = vmax.xlane.f32.xlu0 %v3837_v62  ;;  %1438 = vadd.xlane.f32.xlu2 %v3833_v58  ;;  %v2666_v47 = vpop.eup %2665  ;;  %2673 = vpow2.f32 %v1937_v13 }
 0x516   : > { %v3841_v48 = vpop.eup %2667  ;;  %v1469_v40 = vmul.f32 %v2666_v47, %v3695_v6 }
 0x519   : > { %v2670_v32 = vpop.eup %2669  ;;  %1436 = vadd.xlane.f32.xlu1 %v3841_v48 }
 0x51a   : > { %v1468_v8 = vmul.f32 %v2670_v32, %v3717_v11  ;;  %v3846_v0 = vpop.eup %2671  ;;  %v1956_v3 = vpop.xlane.xlu0 %1955 }
 0x51b   : > { %v3849_v2 = vpop.eup %2673  ;;  %2675 = vrcp.f32 %v1956_v3  ;;  %v3862_v5 = vpop.f32.mrf.mxu3 }
 0x51c   : > { %v1482_v43 = vpack.c.bf16 %v1469_v40, %v1468_v8  ;;  %2677 = vrcp.f32 %v1958_v1 }
 0x51d   : > { %1967 = vadd.xlane.f32.xlu0 %v3846_v0 }
 0x51e   : > { %1530 = vmatmul.bf16.gmra.mxu3 %v1482_v43 }
 0x521   : > { %1969 = vadd.xlane.f32.xlu1 %v3849_v2  ;;  %v2034_v34 = vpop.permute.xlu1 %2033  ;;  %v2676_v11 = vpop.eup %2675 }
 0x522   : > { %2055 = vmatpush.bf16.msrb.mxu2 %v2034_v34  ;;  %2469 = vmatpush.bf16.msra.mxu3 %v2034_v34  ;;  %v2678_v52 = vpop.eup %2677  ;;  %v2003_v21 = vmul.f32 %v2676_v11, %v3720_v16 }
 0x523   : > { %v2004_v54 = vmul.f32 %v2678_v52, %v3706_v9  ;;  %v3865_v42 = vpop.f32.mrf.mxu3 }
 0x525   : > { %v2019_v14 = vpack.c.bf16 %v2004_v54, %v2003_v21 }
 0x529   : > { %v2028_v10 = vpop.permute.xlu1 %2027 }
 0x52d   : > { %v2032_v6 = vpop.permute.xlu0 %2031 }
 0x52e   : > { %2056 = vmatpush.bf16.msrb.mxu2 %v2032_v6  ;;  %2470 = vmatpush.bf16.msra.mxu3 %v2032_v6 }
 0x532   : > { %2057 = vmatpush.bf16.msrb.mxu2 %v2030_v41  ;;  %2471 = vmatpush.bf16.msra.mxu3 %v2030_v41 }
 0x536   : > { %2058 = vmatpush.bf16.msrb.mxu2 %v2028_v10  ;;  %2472 = vmatpush.bf16.msra.mxu3 %v2028_v10 }
 0x539   : > { %2059 = vmatmul.bf16.vlgmr.msrb.gmra.mxu2 %v2019_v14 }
 0x54b   : > { %v1892_v36 = vpop.xlane.xlu2 %1891 }
 0x54c   : > { %v1915_v30 = vsub.f32 %v3737_v26, %v1892_v36 }
 0x54e   : > { %v1939_v23 = vmul.f32 1.442695, %v1915_v30 }
 0x550   : > { %2679 = vpow2.f32 %v1939_v23 }
 0x553   : > { %v1960_v7 = vpop.xlane.xlu2 %1959 }
 0x554   : > { %v1361_v16 = vpop.xlane.xlu1 %1360 }
 0x555   : > { %v1380_v9 = vsub.f32 %v3746_v22, %v1361_v16  ;;  %v3876_v22 = vpop.f32.mrf.mxu3 }
 0x556   : > { %v3868_v61 = vpop.eup %2679 }
 0x557   : > { %v1408_v29 = vmul.f32 1.442695, %v1380_v9  ;;  %1971 = vadd.xlane.f32.xlu1 %v3868_v61 }
 0x558   : > { %v1363_v18 = vpop.xlane.xlu0 %1362 }
 0x559   : > { %2681 = vpow2.f32 %v1408_v29  ;;  %v1381_v19 = vsub.f32 %v3754_v63, %v1363_v18 }
 0x55b   : > { %v1410_v57 = vmul.f32 1.442695, %v1381_v19  ;;  %v1367_v27 = vpop.xlane.xlu2 %1366 }
 0x55c   : > { %v1383_v26 = vsub.f32 %v3761_v12, %v1367_v27  ;;  %v1894_v15 = vpop.xlane.xlu1 %1893 }
 0x55d   : > { %2683 = vpow2.f32 %v1410_v57  ;;  %v1916_v28 = vsub.f32 %v3767_v38, %v1894_v15  ;;  %v3888_v43 = vpop.f32.mrf.mxu3 }
 0x55e   : > { %v1414_v31 = vmul.f32 1.442695, %v1383_v26 }
 0x55f   : > { %v3874_v37 = vpop.eup %2681  ;;  %v1941_v53 = vmul.f32 1.442695, %v1916_v28 }
 0x560   : > { %2685 = vpow2.f32 %v1414_v31  ;;  %v1429_v13 = vpop.xlane.xlu0 %1428  ;;  %1440 = vadd.xlane.f32.xlu2 %v3874_v37 }
 0x561   : > { %2687 = vpow2.f32 %v1941_v53 }
 0x562   : > { %2689 = vrcp.f32 %v1429_v13 }
 0x563   : > { %v3879_v63 = vpop.eup %2683  ;;  %v1433_v47 = vpop.xlane.xlu2 %1432 }
 0x564   : > { %1442 = vadd.xlane.f32.xlu0 %v3879_v63  ;;  %v1431_v12 = vpop.xlane.xlu1 %1430 }
 0x565   : > { %2691 = vrcp.f32 %v1431_v12  ;;  %v3895_v23 = vpop.f32.mrf.mxu3 }
 0x566   : > { %v3882_v38 = vpop.eup %2685  ;;  %2693 = vrcp.f32 %v1960_v7 }
 0x567   : > { %v3884_v32 = vpop.eup %2687  ;;  %1446 = vadd.xlane.f32.xlu1 %v3882_v38 }
 0x568   : > { %v1962_v8 = vpop.xlane.xlu0 %1961  ;;  %1973 = vadd.xlane.f32.xlu2 %v3884_v32  ;;  %v2690_v40 = vpop.eup %2689 }
 0x569   : > { %2695 = vrcp.f32 %v1962_v8  ;;  %v1470_v6 = vmul.f32 %v2690_v40, %v3770_v17 }
 0x56b   : > { %v2692_v34 = vpop.eup %2691  ;;  %v1966_v3 = vpop.xlane.xlu2 %1965 }
 0x56c   : > { %v1365_v1 = vpop.xlane.xlu1 %1364  ;;  %v1471_v11 = vmul.f32 %v2692_v34, %v3775_v35  ;;  %v2694_v41 = vpop.eup %2693 }
 0x56d   : > { %v1382_v52 = vsub.f32 %v3789_v46, %v1365_v1  ;;  %v2005_v36 = vmul.f32 %v2694_v41, %v3741_v51  ;;  %v3905_v19 = vpop.f32.mrf.mxu3 }
 0x56e   : > { %v1483_v21 = vpack.c.bf16 %v1471_v11, %v1470_v6 }
 0x56f   : > { %v2696_v10 = vpop.eup %2695  ;;  %v1412_v54 = vmul.f32 1.442695, %v1382_v52 }
 0x570   : > { %v1896_v14 = vpop.xlane.xlu0 %1895  ;;  %1535 = vmatmul.bf16.gmra.mxu3 %v1483_v21  ;;  %v2006_v30 = vmul.f32 %v2696_v10, %v3779_v33 }
 0x571   : > { %2697 = vpow2.f32 %v1412_v54  ;;  %v1917_v7 = vsub.f32 %v3798_v59, %v1896_v14 }
 0x572   : > { %v2020_v17 = vpack.c.bf16 %v2006_v30, %v2005_v36 }
 0x573   : > { %v1943_v16 = vmul.f32 1.442695, %v1917_v7  ;;  %v1904_v9 = vpop.xlane.xlu2 %1903 }
 0x574   : > { %2064 = vmatmul.bf16.gmra.mxu2 %v2020_v17  ;;  %v1898_v35 = vpop.xlane.xlu1 %1897  ;;  %v1921_v33 = vsub.f32 %v3803_v24, %v1904_v9  ;;  %v1023_v9 = vpack.c.bf16 %v3854_v60, %v3854_v60  ;;  %v1027_v60 = vpack.c.bf16 %v3865_v42, %v3865_v42 }
 0x575   : > { %2699 = vpow2.f32 %v1943_v16  ;;  %v1918_v46 = vsub.f32 %v3808_v55, %v1898_v35  ;;  %v3916_v1 = vpop.f32.mrf.mxu3 }
 0x576   : > { %2701 = vrcp.f32 %v1433_v47  ;;  %v1951_v57 = vmul.f32 1.442695, %v1921_v33 }
 0x577   : > { %v3899_v29 = vpop.eup %2697  ;;  %v1945_v18 = vmul.f32 1.442695, %v1918_v46 }
 0x578   : > { %v1435_v51 = vpop.xlane.xlu0 %1434  ;;  %1444 = vadd.xlane.f32.xlu0 %v3899_v29 }
 0x579   : > { %2703 = vpow2.f32 %v1945_v18 }
 0x57a   : > { %2705 = vrcp.f32 %v1435_v51 }
 0x57b   : > { %v3903_v59 = vpop.eup %2699  ;;  %2707 = vrcp.f32 %v1966_v3 }
 0x57c   : > { %1975 = vadd.xlane.f32.xlu2 %v3903_v59  ;;  %v1964_v55 = vpop.xlane.xlu1 %1963  ;;  %v2702_v27 = vpop.eup %2701 }
 0x57d   : > { %2709 = vrcp.f32 %v1964_v55  ;;  %v1472_v53 = vmul.f32 %v2702_v27, %v3773_v44  ;;  %v1009_v10 = vpop.f32.mrf.mxu3  ;;  %v1028_v27 = vpack.c.bf16 %v3876_v22, %v3876_v22  ;;  %v1032_v22 = vpack.c.bf16 %v3916_v1, %v3916_v1 }
 0x57e   : > { %2711 = vpow2.f32 %v1951_v57  ;;  %v1022_v57 = vpack.c.bf16 %v3852_v45, %v3852_v45  ;;  %v1030_v45 = vpack.c.bf16 %v3895_v23, %v3895_v23 }
 0x57f   : > { %v3908_v26 = vpop.eup %2703 }
 0x580   : > { %v2706_v15 = vpop.eup %2705  ;;  %v1900_v28 = vpop.xlane.xlu0 %1899  ;;  %1977 = vadd.xlane.f32.xlu0 %v3908_v26 }
 0x581   : > { %v2708_v24 = vpop.eup %2707  ;;  %v1919_v31 = vsub.f32 %v3823_v4, %v1900_v28  ;;  %v1473_v13 = vmul.f32 %v2706_v15, %v3811_v50  ;;  %v1033_v15 = vpack.c.bf16 %v1009_v10, %v1009_v10 }
 0x582   : > { %v2008_v3 = vmul.f32 %v2708_v24, %v3782_v39 }
 0x583   : > { %v2710_v47 = vpop.eup %2709  ;;  %v1947_v12 = vmul.f32 1.442695, %v1919_v31  ;;  %v1484_v8 = vpack.c.bf16 %v1473_v13, %v1472_v53 }
 0x584   : > { %v1902_v40 = vpop.xlane.xlu1 %1901  ;;  %v2007_v34 = vmul.f32 %v2710_v47, %v3814_v49  ;;  %v3919_v4 = vpop.eup %2711 }
 0x585   : > { %2713 = vpow2.f32 %v1947_v12  ;;  %1540 = vmatmul.bf16.gmra.mxu3 %v1484_v8  ;;  %v1920_v6 = vsub.f32 %v3829_v20, %v1902_v40  ;;  %v1012_v46 = vpop.f32.mrf.mxu3 }
 0x586   : > { %v2021_v11 = vpack.c.bf16 %v2008_v3, %v2007_v34  ;;  %v1034_v24 = vpack.c.bf16 %v1012_v46, %v1012_v46 }
 0x587   : > { %v1949_v44 = vmul.f32 1.442695, %v1920_v6 }
 0x588   : > { %v1906_v41 = vpop.xlane.xlu0 %1905  ;;  %1983 = vadd.xlane.f32.xlu0 %v3919_v4  ;;  %2069 = vmatmul.bf16.gmra.mxu2 %v2021_v11  ;;  %v1439_v49 = vpop.xlane.xlu2 %1438 }
 0x589   : > { %2715 = vpow2.f32 %v1949_v44  ;;  %v1922_v50 = vsub.f32 %v3837_v62, %v1906_v41 }
 0x58a   : > { %2717 = vrcp.f32 %v1439_v49 }
 0x58b   : > { %v3923_v52 = vpop.eup %2713  ;;  %v1953_v39 = vmul.f32 1.442695, %v1922_v50 }
 0x58c   : > { %1979 = vadd.xlane.f32.xlu1 %v3923_v52  ;;  %v1437_v21 = vpop.xlane.xlu1 %1436 }
 0x58d   : > { %2719 = vpow2.f32 %v1953_v39 }
 0x58e   : > { %2721 = vrcp.f32 %v1437_v21 }
 0x58f   : > { %v3926_v20 = vpop.eup %2715 }
 0x590   : > { %v1968_v54 = vpop.xlane.xlu0 %1967  ;;  %1981 = vadd.xlane.f32.xlu2 %v3926_v20  ;;  %v2718_v14 = vpop.eup %2717 }
 0x591   : > { %2723 = vrcp.f32 %v1968_v54  ;;  %v1475_v17 = vmul.f32 %v2718_v14, %v3833_v58  ;;  %v1025_v58 = vpack.c.bf16 %v3860_v25, %v3860_v25  ;;  %v1026_v25 = vpack.c.bf16 %v3862_v5, %v3862_v5 }
 0x592   : > { %v1031_v5 = vpack.c.bf16 %v3905_v19, %v3905_v19 }
 0x593   : > { %v3929_v36 = vpop.eup %2719 }
 0x594   : > { %v2722_v62 = vpop.eup %2721  ;;  %1985 = vadd.xlane.f32.xlu1 %v3929_v36  ;;  %v1970_v30 = vpop.xlane.xlu1 %1969 }
 0x595   : > { %2725 = vrcp.f32 %v1970_v30  ;;  %v1474_v7 = vmul.f32 %v2722_v62, %v3841_v48  ;;  %v1014_v48 = vpop.f32.mrf.mxu3 }
 0x597   : > { %v1485_v16 = vpack.c.bf16 %v1475_v17, %v1474_v7  ;;  %v2724_v35 = vpop.eup %2723 }
 0x598   : > { %v2009_v51 = vmul.f32 %v2724_v35, %v3846_v0  ;;  %v1024_v0 = vpack.c.bf16 %v3858_v56, %v3858_v56  ;;  %v1029_v56 = vpack.c.bf16 %v3888_v43, %v3888_v43  ;;  %v1035_v43 = vpack.c.bf16 %v1014_v48, %v1014_v48 }
 0x599   : > { %1545 = vmatmul.bf16.gmra.mxu3 %v1485_v16 }
 0x59b   : > { %v2726_v18 = vpop.eup %2725 }
 0x59c   : > { %1056 = vrot.lane.b32.xlu0 %v1023_v9, %s2787_s26  ;;  %v2010_v33 = vmul.f32 %v2726_v18, %v3849_v2 }
 0x59d   : > { %v1017_v2 = vpop.f32.mrf.mxu3 }
 0x59e   : > { %v2022_v55 = vpack.c.bf16 %v2010_v33, %v2009_v51  ;;  %v1036_v28 = vpack.c.bf16 %v1017_v2, %v1017_v2 }
 0x5a0   : > { %2074 = vmatmul.bf16.gmra.mxu2 %v2022_v55 }
 0x5a4   : > { %1060 = vrot.lane.b32.xlu0 %v1025_v58, %s2787_s26 }
 0x5a5   : > { %v1019_v42 = vpop.f32.mrf.mxu3 }
 0x5a6   : > { %v1037_v13 = vpack.c.bf16 %v1019_v42, %v1019_v42 }
 0x5a8   : > { %1054 = vrot.lane.b32.xlu2 %v1022_v57, %s2787_s26 }
 0x5ac   : > { %1064 = vrot.lane.b32.xlu0 %v1027_v60, %s2787_s26 }
 0x5ad   : > { %1058 = vrot.lane.b32.xlu1 %v1024_v0, %s2787_s26  ;;  %v1521_v23 = vpop.f32.mrf.mxu3 }
 0x5ae   : > { %v1561_v47 = vpack.c.bf16 %v1521_v23, %v1521_v23 }
 0x5b0   : > { %1062 = vrot.lane.b32.xlu2 %v1026_v25, %s2787_s26 }
 0x5b4   : > { %1070 = vrot.lane.b32.xlu0 %v1030_v45, %s2787_s26 }
 0x5b5   : > { %1066 = vrot.lane.b32.xlu1 %v1028_v27, %s2787_s26  ;;  %v1523_v53 = vpop.f32.mrf.mxu3 }
 0x5b6   : > { %v1562_v19 = vpack.c.bf16 %v1523_v53, %v1523_v53 }
 0x5b8   : > { %1068 = vrot.lane.b32.xlu2 %v1029_v56, %s2787_s26 }
 0x5bc   : > { %1076 = vrot.lane.b32.xlu0 %v1033_v15, %s2787_s26  ;;  %v2060_v31 = vpop.f32.mrf.mxu2 }
 0x5bd   : > { %1072 = vrot.lane.b32.xlu1 %v1031_v5, %s2787_s26  ;;  %v2100_v8 = vpack.c.bf16 %v2060_v31, %v2060_v31  ;;  %v1526_v6 = vpop.f32.mrf.mxu3 }
 0x5be   : > { %v1563_v11 = vpack.c.bf16 %v1526_v6, %v1526_v6 }
 0x5c0   : > { %1074 = vrot.lane.b32.xlu2 %v1032_v22, %s2787_s26 }
 0x5c4   : > { %1082 = vrot.lane.b32.xlu0 %v1036_v28, %s2787_s26  ;;  %v2062_v12 = vpop.f32.mrf.mxu2 }
 0x5c5   : > { %1078 = vrot.lane.b32.xlu1 %v1034_v24, %s2787_s26  ;;  %v2101_v40 = vpack.c.bf16 %v2062_v12, %v2062_v12  ;;  %v1528_v55 = vpop.f32.mrf.mxu3 }
 0x5c8   : > { %1080 = vrot.lane.b32.xlu2 %v1035_v43, %s2787_s26 }
 0x5ca   : > { %v1972_v3 = vpop.xlane.xlu1 %1971 }
 0x5cc   : > { %1595 = vrot.lane.b32.xlu0 %v1562_v19, %s2788_s27 }
 0x5cd   : > { %1084 = vrot.lane.b32.xlu1 %v1037_v13, %s2787_s26  ;;  %v1531_v25 = vpop.f32.mrf.mxu3 }
 0x5ce   : > { %v1565_v42 = vpack.c.bf16 %v1531_v25, %v1531_v25 }
 0x5d0   : > { %1593 = vrot.lane.b32.xlu2 %v1561_v47, %s2788_s27 }
 0x5d3   : > { %v1441_v34 = vpop.xlane.xlu2 %1440 }
 0x5d4   : > { %2132 = vrot.lane.b32.xlu0 %v2100_v8, %s2789_s28  ;;  %2727 = vrcp.f32 %v1441_v34 }
 0x5d5   : > { %2134 = vrot.lane.b32.xlu1 %v2101_v40, %s2789_s28 }
 0x5d7   : > { %v1443_v1 = vpop.xlane.xlu0 %1442 }
 0x5d8   : > { %2729 = vrcp.f32 %v1443_v1 }
 0x5d9   : > { %2731 = vrcp.f32 %v1972_v3 }
 0x5da   : > { %v2728_v41 = vpop.eup %2727  ;;  %v1447_v7 = vpop.xlane.xlu1 %1446 }
 0x5db   : > { %v1974_v44 = vpop.xlane.xlu2 %1973  ;;  %v1476_v49 = vmul.f32 %v2728_v41, %v3874_v37 }
 0x5dc   : > { %2733 = vrcp.f32 %v1974_v44 }
 0x5dd   : > { %1597 = vrot.lane.b32.xlu1 %v1563_v11, %s2788_s27  ;;  %2735 = vrcp.f32 %v1447_v7 }
 0x5de   : > { %v2730_v50 = vpop.eup %2729 }
 0x5df   : > { %v1477_v39 = vmul.f32 %v2730_v50, %v3879_v63  ;;  %v2732_v21 = vpop.eup %2731 }
 0x5e0   : > { %v2011_v14 = vmul.f32 %v2732_v21, %v3868_v61 }
 0x5e1   : > { %v1486_v10 = vpack.c.bf16 %v1477_v39, %v1476_v49  ;;  %v1533_v39 = vpop.f32.mrf.mxu3 }
 0x5e2   : > { %v2734_v54 = vpop.eup %2733 }
 0x5e3   : > { %1550 = vmatmul.bf16.gmra.mxu3 %v1486_v10  ;;  %v2012_v62 = vmul.f32 %v2734_v54, %v3884_v32  ;;  %v2736_v35 = vpop.eup %2735  ;;  %v1566_v10 = vpack.c.bf16 %v1533_v39, %v1533_v39 }
 0x5e4   : > { %v1479_v9 = vmul.f32 %v2736_v35, %v3882_v38 }
 0x5e5   : > { %v2023_v30 = vpack.c.bf16 %v2012_v62, %v2011_v14 }
 0x5e7   : > { %2079 = vmatmul.bf16.gmra.mxu2 %v2023_v30 }
 0x5eb   : > { %v1445_v17 = vpop.xlane.xlu0 %1444 }
 0x5ec   : > { %2737 = vrcp.f32 %v1445_v17 }
 0x5ef   : > { %v1976_v16 = vpop.xlane.xlu2 %1975 }
 0x5f0   : > { %2739 = vrcp.f32 %v1976_v16 }
 0x5f2   : > { %v2738_v46 = vpop.eup %2737 }
 0x5f3   : > { %v1978_v37 = vpop.xlane.xlu0 %1977  ;;  %v1478_v63 = vmul.f32 %v2738_v46, %v3899_v29  ;;  %v1536_v7 = vpop.f32.mrf.mxu3 }
 0x5f4   : > { %2741 = vrcp.f32 %v1978_v37 }
 0x5f5   : > { %v1487_v18 = vpack.c.bf16 %v1479_v9, %v1478_v63 }
 0x5f6   : > { %v2740_v32 = vpop.eup %2739 }
 0x5f7   : > { %1555 = vmatmul.bf16.gmra.mxu3 %v1487_v18  ;;  %v2065_v61 = vpop.f32.mrf.mxu2  ;;  %v2013_v58 = vmul.f32 %v2740_v32, %v3903_v59 }
 0x5f8   : > { %v2102_v51 = vpack.c.bf16 %v2065_v61, %v2065_v61 }
 0x5fa   : > { %v2742_v33 = vpop.eup %2741  ;;  %2136 = vrot.lane.b32.xlu2 %v2102_v51, %s2789_s28 }
 0x5fb   : > { %v2014_v48 = vmul.f32 %v2742_v33, %v3908_v26  ;;  %v1984_v38 = vpop.xlane.xlu0 %1983  ;;  %v1538_v35 = vpop.f32.mrf.mxu3 }
 0x5fd   : > { %v2024_v57 = vpack.c.bf16 %v2014_v48, %v2013_v58 }
 0x5ff   : > { %v2067_v60 = vpop.f32.mrf.mxu2  ;;  %2084 = vmatmul.bf16.gmra.mxu2 %v2024_v57  ;;  %v1980_v29 = vpop.xlane.xlu1 %1979 }
 0x600   : > { %v2103_v0 = vpack.c.bf16 %v2067_v60, %v2067_v60  ;;  %2743 = vrcp.f32 %v1980_v29  ;;  %v1568_v60 = vpack.c.bf16 %v1538_v35, %v1538_v35 }
 0x602   : > { %2138 = vrot.lane.b32.xlu0 %v2103_v0, %s2789_s28 }
 0x603   : > { %v1982_v2 = vpop.xlane.xlu2 %1981 }
 0x604   : > { %2745 = vrcp.f32 %v1982_v2 }
 0x605   : > { %2747 = vrcp.f32 %v1984_v38 }
 0x606   : > { %v2744_v27 = vpop.eup %2743 }
 0x607   : > { %v1986_v45 = vpop.xlane.xlu1 %1985  ;;  %v2015_v15 = vmul.f32 %v2744_v27, %v3923_v52 }
 0x608   : > { %2749 = vrcp.f32 %v1986_v45  ;;  %v1541_v63 = vpop.f32.mrf.mxu3 }
 0x60a   : > { %v2746_v59 = vpop.eup %2745  ;;  %1601 = vrot.lane.b32.xlu0 %v1565_v42, %s2788_s27  ;;  %v1569_v42 = vpack.c.bf16 %v1541_v63, %v1541_v63 }
 0x60b   : > { %v2070_v26 = vpop.f32.mrf.mxu2  ;;  %v1055_v56 = vpop.permute.xlu2 %1054  ;;  %v2016_v5 = vmul.f32 %v2746_v59, %v3926_v20 }
 0x60c   : > { %v2748_v23 = vpop.eup %2747  ;;  %v2104_v22 = vpack.c.bf16 %v2070_v26, %v2070_v26  ;;  %1103 = vst.msk [vmem:[%s3366_s23] sm:$0xf] %vm1102_vm3, %v1055_v56 }
 0x60d   : > { %v2025_v28 = vpack.c.bf16 %v2016_v5, %v2015_v15  ;;  %v2017_v31 = vmul.f32 %v2748_v23, %v3919_v4  ;;  %v1567_v15 = vpack.c.bf16 %v1536_v7, %v1536_v7 }
 0x60e   : > { %v2750_v24 = vpop.eup %2749  ;;  %v1057_v43 = vpop.permute.xlu0 %1056  ;;  %2140 = vrot.lane.b32.xlu1 %v2104_v22, %s2789_s28 }
 0x60f   : > { %v2018_v53 = vmul.f32 %v2750_v24, %v3929_v36  ;;  %1104 = vst.msk [vmem:[%s3366_s23 + $0x4] sm:$0xf] %vm1102_vm3, %v1057_v43  ;;  %2089 = vmatmul.bf16.gmra.mxu2 %v2025_v28  ;;  %v1564_v36 = vpack.c.bf16 %v1528_v55, %v1528_v55 }
 0x610   : > { %v1543_v9 = vpop.f32.mrf.mxu3 }
 0x611   : > { %v2026_v52 = vpack.c.bf16 %v2018_v53, %v2017_v31  ;;  %v1570_v28 = vpack.c.bf16 %v1543_v9, %v1543_v9 }
 0x613   : > { %v2072_v20 = vpop.f32.mrf.mxu2  ;;  %v1063_v19 = vpop.permute.xlu2 %1062  ;;  %2094 = vmatmul.bf16.vlgmr.msra.gmra.mxu3 %v2026_v52 }
 0x614   : > { %v2105_v13 = vpack.c.bf16 %v2072_v20, %v2072_v20  ;;  %1107 = vst.msk [vmem:[%s3366_s23 + $0x10] sm:$0xf] %vm1102_vm3, %v1063_v19 }
 0x616   : > { %v1061_v47 = vpop.permute.xlu0 %1060  ;;  %2142 = vrot.lane.b32.xlu2 %v2105_v13, %s2789_s28 }
 0x617   : > { %1106 = vst.msk [vmem:[%s3366_s23 + $0xc] sm:$0xf] %vm1102_vm3, %v1061_v47 }
 0x61b   : > { %v1069_v4 = vpop.permute.xlu2 %1068 }
 0x61c   : > { %1110 = vst.msk [vmem:[%s3366_s23 + $0x1c] sm:$0xf] %vm1102_vm3, %v1069_v4  ;;  %v1546_v18 = vpop.f32.mrf.mxu3 }
 0x61d   : > { %v1571_v43 = vpack.c.bf16 %v1546_v18, %v1546_v18 }
 0x61e   : > { %v1065_v12 = vpop.permute.xlu0 %1064  ;;  %1599 = vrot.lane.b32.xlu2 %v1564_v36, %s2788_s27 }
 0x61f   : > { %1108 = vst.msk [vmem:[%s3366_s23 + $0x14] sm:$0xf] %vm1102_vm3, %v1065_v12  ;;  %v1059_v8 = vpop.permute.xlu1 %1058 }
 0x620   : > { %1105 = vst.msk [vmem:[%s3366_s23 + $0x8] sm:$0xf] %vm1102_vm3, %v1059_v8 }
 0x623   : > { %v1075_v40 = vpop.permute.xlu2 %1074  ;;  %v2075_v34 = vpop.f32.mrf.mxu2 }
 0x624   : > { %1113 = vst.msk [vmem:[%s3366_s23 + $0x28] sm:$0xf] %vm1102_vm3, %v1075_v40  ;;  %v2106_v3 = vpack.c.bf16 %v2075_v34, %v2075_v34  ;;  %v1548_v55 = vpop.f32.mrf.mxu3 }
 0x625   : > { %v1572_v5 = vpack.c.bf16 %v1548_v55, %v1548_v55 }
 0x626   : > { %v1071_v1 = vpop.permute.xlu0 %1070  ;;  %2144 = vrot.lane.b32.xlu0 %v2106_v3, %s2789_s28 }
 0x627   : > { %1111 = vst.msk [vmem:[%s3366_s23 + $0x20] sm:$0xf] %vm1102_vm3, %v1071_v1  ;;  %v1067_v6 = vpop.permute.xlu1 %1066 }
 0x628   : > { %1109 = vst.msk [vmem:[%s3366_s23 + $0x18] sm:$0xf] %vm1102_vm3, %v1067_v6 }
 0x62b   : > { %v1081_v11 = vpop.permute.xlu2 %1080  ;;  %v2077_v44 = vpop.f32.mrf.mxu2 }
 0x62c   : > { %1116 = vst.msk [vmem:[%s3366_s23 + $0x34] sm:$0xf] %vm1102_vm3, %v1081_v11  ;;  %v2107_v41 = vpack.c.bf16 %v2077_v44, %v2077_v44 }
 0x62e   : > { %v1077_v50 = vpop.permute.xlu0 %1076  ;;  %2146 = vrot.lane.b32.xlu1 %v2107_v41, %s2789_s28 }
 0x62f   : > { %1114 = vst.msk [vmem:[%s3366_s23 + $0x2c] sm:$0xf] %vm1102_vm3, %v1077_v50  ;;  %v1073_v49 = vpop.permute.xlu1 %1072 }
 0x630   : > { %1112 = vst.msk [vmem:[%s3366_s23 + $0x24] sm:$0xf] %vm1102_vm3, %v1073_v49 }
 0x633   : > { %v1594_v21 = vpop.permute.xlu2 %1593 }
 0x634   : > { %1642 = vst.msk [vmem:[%s3366_s23] sm:$0xf] %vm1641_vm4, %v1594_v21 }
 0x636   : > { %v1083_v54 = vpop.permute.xlu0 %1082  ;;  %1603 = vrot.lane.b32.xlu1 %v1566_v10, %s2788_s27 }
 0x637   : > { %1117 = vst.msk [vmem:[%s3366_s23 + $0x38] sm:$0xf] %vm1102_vm3, %v1083_v54  ;;  %v1079_v14 = vpop.permute.xlu1 %1078 }
 0x638   : > { %1115 = vst.msk [vmem:[%s3366_s23 + $0x30] sm:$0xf] %vm1102_vm3, %v1079_v14 }
 0x63e   : > { %v1596_v62 = vpop.permute.xlu0 %1595 }
 0x63f   : > { %1643 = vst.msk [vmem:[%s3366_s23 + $0x4] sm:$0xf] %vm1641_vm4, %v1596_v62  ;;  %v1085_v30 = vpop.permute.xlu1 %1084 }
 0x640   : > { %1118 = vst.msk [vmem:[%s3366_s23 + $0x3c] sm:$0xf] %vm1102_vm3, %v1085_v30 }
 0x646   : > { %v2133_v17 = vpop.permute.xlu0 %2132 }
 0x647   : > { %2181 = vst.msk [vmem:[%s3366_s23] sm:$0xf] %vm2180_vm5, %v2133_v17  ;;  %v2135_v16 = vpop.permute.xlu1 %2134 }
 0x648   : > { %2182 = vst.msk [vmem:[%s3366_s23 + $0x4] sm:$0xf] %vm2180_vm5, %v2135_v16 }
 0x64f   : > { %v1598_v46 = vpop.permute.xlu1 %1597 }
 0x650   : > { %1644 = vst.msk [vmem:[%s3366_s23 + $0x8] sm:$0xf] %vm1641_vm4, %v1598_v46 }
 0x654   : > { %v2137_v37 = vpop.permute.xlu2 %2136 }
 0x655   : > { %2183 = vst.msk [vmem:[%s3366_s23 + $0x8] sm:$0xf] %vm2180_vm5, %v2137_v37 }
 0x666   : > { %v1551_v29 = vpop.f32.mrf.mxu3 }
 0x667   : > { %v1573_v20 = vpack.c.bf16 %v1551_v29, %v1551_v29 }
 0x66a   : > { %v2080_v61 = vpop.f32.mrf.mxu2 }
 0x66b   : > { %v2108_v32 = vpack.c.bf16 %v2080_v61, %v2080_v61 }
 0x66d   : > { %2148 = vrot.lane.b32.xlu2 %v2108_v32, %s2789_s28 }
 0x66e   : > { %v1553_v45 = vpop.f32.mrf.mxu3 }
 0x66f   : > { %v1574_v13 = vpack.c.bf16 %v1553_v45, %v1553_v45 }
 0x670   : > { %v2143_v51 = vpop.permute.xlu2 %2142 }
 0x672   : > { %v2082_v33 = vpop.f32.mrf.mxu2 }
 0x673   : > { %v2109_v58 = vpack.c.bf16 %v2082_v33, %v2082_v33 }
 0x674   : > { %v2139_v48 = vpop.permute.xlu0 %2138 }
 0x675   : > { %2150 = vrot.lane.b32.xlu0 %v2109_v58, %s2789_s28 }
 0x678   : > { %v1600_v57 = vpop.permute.xlu2 %1599 }
 0x679   : > { %1645 = vst.msk [vmem:[%s3366_s23 + $0xc] sm:$0xf] %vm1641_vm4, %v1600_v57 }
 0x67a   : > { %2184 = vst.msk [vmem:[%s3366_s23 + $0xc] sm:$0xf] %vm2180_vm5, %v2139_v48  ;;  %v1556_v26 = vpop.f32.mrf.mxu3 }
 0x67b   : > { %v1575_v24 = vpack.c.bf16 %v1556_v26, %v1556_v26 }
 0x67c   : > { %v1602_v0 = vpop.permute.xlu0 %1601 }
 0x67d   : > { %1646 = vst.msk [vmem:[%s3366_s23 + $0x10] sm:$0xf] %vm1641_vm4, %v1602_v0  ;;  %1607 = vrot.lane.b32.xlu0 %v1568_v60, %s2788_s27 }
 0x680   : > { %v2141_v38 = vpop.permute.xlu1 %2140 }
 0x681   : > { %2185 = vst.msk [vmem:[%s3366_s23 + $0x10] sm:$0xf] %vm2180_vm5, %v2141_v38 }
 0x682   : > { %v2085_v2 = vpop.f32.mrf.mxu2  ;;  %v1558_v22 = vpop.f32.mrf.mxu3 }
 0x683   : > { %v2110_v25 = vpack.c.bf16 %v2085_v2, %v2085_v2  ;;  %v1576_v36 = vpack.c.bf16 %v1558_v22, %v1558_v22 }
 0x685   : > { %2152 = vrot.lane.b32.xlu1 %v2110_v25, %s2789_s28 }
 0x68a   : > { %v2087_v27 = vpop.f32.mrf.mxu2 }
 0x68b   : > { %v2111_v59 = vpack.c.bf16 %v2087_v27, %v2087_v27 }
 0x68d   : > { %1609 = vrot.lane.b32.xlu1 %v1569_v42, %s2788_s27  ;;  %2154 = vrot.lane.b32.xlu2 %v2111_v59, %s2789_s28 }
 0x692   : > { %v2090_v56 = vpop.f32.mrf.mxu2 }
 0x693   : > { %v2112_v23 = vpack.c.bf16 %v2090_v56, %v2090_v56 }
 0x695   : > { %1615 = vrot.lane.b32.xlu1 %v1572_v5, %s2788_s27  ;;  %1605 = vrot.lane.b32.xlu2 %v1567_v15, %s2788_s27 }
 0x696   : > { %2156 = vrot.lane.b32.xlu0 %v2112_v23, %s2789_s28  ;;  %v2095_v31 = vpop.f32.mrf.mxu3 }
 0x697   : > { %v2114_v8 = vpack.c.bf16 %v2095_v31, %v2095_v31 }
 0x698   : > { %v2145_v40 = vpop.permute.xlu0 %2144 }
 0x69a   : > { %v2092_v53 = vpop.f32.mrf.mxu2 }
 0x69b   : > { %v2113_v19 = vpack.c.bf16 %v2092_v53, %v2092_v53 }
 0x69d   : > { %1611 = vrot.lane.b32.xlu2 %v1570_v28, %s2788_s27  ;;  %1621 = vrot.lane.b32.xlu1 %v1575_v24, %s2788_s27 }
 0x69e   : > { %1613 = vrot.lane.b32.xlu0 %v1571_v43, %s2788_s27  ;;  %v2097_v4 = vpop.f32.mrf.mxu3 }
 0x69f   : > { %v2115_v12 = vpack.c.bf16 %v2097_v4, %v2097_v4 }
 0x6a0   : > { %v2147_v52 = vpop.permute.xlu1 %2146 }
 0x6a5   : > { %1617 = vrot.lane.b32.xlu2 %v1573_v20, %s2788_s27  ;;  %2158 = vrot.lane.b32.xlu1 %v2113_v19, %s2789_s28 }
 0x6a6   : > { %1619 = vrot.lane.b32.xlu0 %v1574_v13, %s2788_s27 }
 0x6a8   : > { %v1604_v47 = vpop.permute.xlu1 %1603 }
 0x6a9   : > { %1647 = vst.msk [vmem:[%s3366_s23 + $0x14] sm:$0xf] %vm1641_vm4, %v1604_v47 }
 0x6aa   : > { %2186 = vst.msk [vmem:[%s3366_s23 + $0x14] sm:$0xf] %vm2180_vm5, %v2143_v51 }
 0x6ad   : > { %1623 = vrot.lane.b32.xlu2 %v1576_v36, %s2788_s27 }
 0x6ae   : > { %2162 = vrot.lane.b32.xlu0 %v2115_v12, %s2789_s28 }
 0x6b5   : > { %2160 = vrot.lane.b32.xlu2 %v2114_v8, %s2789_s28 }
 0x6c7   : > { %v2149_v34 = vpop.permute.xlu2 %2148 }
 0x6e7   : > { %v2151_v3 = vpop.permute.xlu0 %2150  ;;  %v2155_v1 = vpop.permute.xlu2 %2154 }
 0x6ef   : > { %v1608_v6 = vpop.permute.xlu0 %1607  ;;  %v1606_v11 = vpop.permute.xlu2 %1605 }
 0x6f0   : > { %1649 = vst.msk [vmem:[%s3366_s23 + $0x1c] sm:$0xf] %vm1641_vm4, %v1608_v6 }
 0x6f1   : > { %2188 = vst.msk [vmem:[%s3366_s23 + $0x1c] sm:$0xf] %vm2180_vm5, %v2147_v52 }
 0x6f2   : > { %1648 = vst.msk [vmem:[%s3366_s23 + $0x18] sm:$0xf] %vm1641_vm4, %v1606_v11 }
 0x6f3   : > { %2187 = vst.msk [vmem:[%s3366_s23 + $0x18] sm:$0xf] %vm2180_vm5, %v2145_v40 }
 0x6f7   : > { %v1612_v44 = vpop.permute.xlu2 %1611  ;;  %v2153_v41 = vpop.permute.xlu1 %2152 }
 0x6f8   : > { %1651 = vst.msk [vmem:[%s3366_s23 + $0x24] sm:$0xf] %vm1641_vm4, %v1612_v44 }
 0x6f9   : > { %2190 = vst.msk [vmem:[%s3366_s23 + $0x24] sm:$0xf] %vm2180_vm5, %v2151_v3 }
 0x6ff   : > { %v1618_v50 = vpop.permute.xlu2 %1617  ;;  %v1610_v49 = vpop.permute.xlu1 %1609 }
 0x700   : > { %1654 = vst.msk [vmem:[%s3366_s23 + $0x30] sm:$0xf] %vm1641_vm4, %v1618_v50 }
 0x701   : > { %1650 = vst.msk [vmem:[%s3366_s23 + $0x20] sm:$0xf] %vm1641_vm4, %v1610_v49 }
 0x702   : > { %2189 = vst.msk [vmem:[%s3366_s23 + $0x20] sm:$0xf] %vm2180_vm5, %v2149_v34 }
 0x707   : > { %v1624_v39 = vpop.permute.xlu2 %1623  ;;  %v1616_v21 = vpop.permute.xlu1 %1615 }
 0x708   : > { %1657 = vst.msk [vmem:[%s3366_s23 + $0x3c] sm:$0xf] %vm1641_vm4, %v1624_v39  ;;  %v2157_v10 = vpop.permute.xlu0 %2156 }
 0x709   : > { %2193 = vst.msk [vmem:[%s3366_s23 + $0x30] sm:$0xf] %vm2180_vm5, %v2157_v10 }
 0x70a   : > { %1653 = vst.msk [vmem:[%s3366_s23 + $0x2c] sm:$0xf] %vm1641_vm4, %v1616_v21 }
 0x70b   : > { %2192 = vst.msk [vmem:[%s3366_s23 + $0x2c] sm:$0xf] %vm2180_vm5, %v2155_v1 }
 0x70f   : > { %v1622_v54 = vpop.permute.xlu1 %1621  ;;  %v2161_v62 = vpop.permute.xlu2 %2160 }
 0x710   : > { %v1614_v14 = vpop.permute.xlu0 %1613  ;;  %1656 = vst.msk [vmem:[%s3366_s23 + $0x38] sm:$0xf] %vm1641_vm4, %v1622_v54 }
 0x711   : > { %1652 = vst.msk [vmem:[%s3366_s23 + $0x28] sm:$0xf] %vm1641_vm4, %v1614_v14 }
 0x712   : > { %2191 = vst.msk [vmem:[%s3366_s23 + $0x28] sm:$0xf] %vm2180_vm5, %v2153_v41 }
 0x713   : > { %2195 = vst.msk [vmem:[%s3366_s23 + $0x38] sm:$0xf] %vm2180_vm5, %v2161_v62 }
 0x717   : > { %v2159_v30 = vpop.permute.xlu1 %2158 }
 0x718   : > { %v1620_v7 = vpop.permute.xlu0 %1619 }
 0x719   : > { %1655 = vst.msk [vmem:[%s3366_s23 + $0x34] sm:$0xf] %vm1641_vm4, %v1620_v7 }
 0x71a   : > { %2194 = vst.msk [vmem:[%s3366_s23 + $0x34] sm:$0xf] %vm2180_vm5, %v2159_v30 }
 0x720   : > { %v2163_v17 = vpop.permute.xlu0 %2162 }
 0x721   : > { %2196 = vst.msk [vmem:[%s3366_s23 + $0x3c] sm:$0xf] %vm2180_vm5, %v2163_v17 }
 0x722 PF: > { %s11_s6 = sadd.s32 1, %s2774_s6  }
 0x723   : > { %p8_p4 = scmp.ge.s32.totalorder %s11_s6, 4  }
 0x725   :  { %10 = sbr.rel (!%p8_p4) target bundleno = 1 (0x1), region = 54 }

// kernel: vit_forward.16
= control target key start
LH: loop header
LB: loop body
LE: loop exit
PB: predicated region body
PF: predicated region fallthrough
CT: control target
= control target key end

     0   :  { %vm89_vm0 = vcmask 261120   ;;  %vm903_vm6 = vcmask 257024   ;;  %s3393_s0 = inlined_call_operand.vmem [shape: bf16[256,32], index: 0, kind: input, shape index: {}]   ;;  %s3394_s1 = inlined_call_operand.vmem [shape: bf16[1,32], index: 1, kind: input, shape index: {}]   ;;  %s3395_s2 = inlined_call_operand.vmem [shape: bf16[1,32], index: 2, kind: input, shape index: {}]   ;;  %s3396_s3 = inlined_call_operand.vmem [shape: bf16[32,64], index: 3, kind: input, shape index: {}]   ;;  %s3397_s4 = inlined_call_operand.vmem [shape: bf16[1,64], index: 4, kind: input, shape index: {}]   ;;  %s3398_s5 = inlined_call_operand.vmem [shape: bf16[256,64], index: 5, kind: output, shape index: {}]  }
   0x1   :  { %v1918_v0 = vld [vmem:[%s3393_s0 + $0x60] sm:$0xff]   ;;  %v1962_v16 = vld [vmem:[%s3393_s0 + $0x48] sm:$0xff]   ;;  %v2018_v38 = vld [vmem:[%s3393_s0 + $0x50] sm:$0xff]  }
   0x2   :  { %v1923_v1 = vld [vmem:[%s3393_s0 + $0x40] sm:$0xff]   ;;  %v1718_v3 = vunpack.c.l.bf16 %v1918_v0  ;;  %v1719_v9 = vunpack.c.h.bf16 %v1918_v0  ;;  %v1706_v19 = vunpack.c.l.bf16 %v1962_v16  ;;  %v1979_v23 = vld [vmem:[%s3393_s0 + $0x68] sm:$0xff]   ;;  %v1707_v25 = vunpack.c.h.bf16 %v1962_v16  ;;  %v2035_v45 = vld [vmem:[%s3393_s0 + $0x70] sm:$0xff]  }
   0x3   :  { %v1928_v2 = vld [vmem:[%s3393_s0] sm:$0xff]   ;;  %v1702_v4 = vunpack.c.l.bf16 %v1923_v1  ;;  %v1703_v10 = vunpack.c.h.bf16 %v1923_v1  ;;  %v1722_v24 = vunpack.c.l.bf16 %v1979_v23  ;;  %v1723_v26 = vunpack.c.h.bf16 %v1979_v23  ;;  %v1996_v30 = vld [vmem:[%s3393_s0 + $0x8] sm:$0xff]   ;;  %v2040_v46 = vld [vmem:[%s3393_s0 + $0x10] sm:$0xff]  }
   0x4   :  { %v1670_v5 = vunpack.c.l.bf16 %v1928_v2  ;;  %v162_v6 = vsel %vm89_vm0, %v1718_v3, 0.0  ;;  %v1671_v11 = vunpack.c.h.bf16 %v1928_v2  ;;  %v165_v12 = vsel %vm89_vm0, %v1719_v9, 0.0  ;;  %v1957_v15 = vld [vmem:[%s3393_s0 + $0x20] sm:$0xff]   ;;  %v2001_v31 = vld [vmem:[%s3393_s0 + $0x28] sm:$0xff]   ;;  %v2057_v53 = vld [vmem:[%s3393_s0 + $0x30] sm:$0xff]  }
   0x5   :  { %v138_v7 = vsel %vm89_vm0, %v1702_v4, 0.0  ;;  %163 = vadd.xlane.f32.xlu1 %v162_v6  ;;  %v141_v13 = vsel %vm89_vm0, %v1703_v10, 0.0  ;;  %v1687_v17 = vunpack.c.h.bf16 %v1957_v15  ;;  %v1686_v18 = vunpack.c.l.bf16 %v1957_v15  ;;  %v2074_v60 = vld [vmem:[%s3393_s0 + $0x58] sm:$0xff]  }
   0x6   :  { %v90_v8 = vsel %vm89_vm0, %v1670_v5, 0.0  ;;  %139 = vadd.xlane.f32.xlu0 %v138_v7  ;;  %v93_v14 = vsel %vm89_vm0, %v1671_v11, 0.0  ;;  %v144_v22 = vsel %vm89_vm0, %v1706_v19, 0.0  ;;  %v168_v27 = vsel %vm89_vm0, %v1722_v24, 0.0  ;;  %v2079_v61 = vld [vmem:[%s3393_s0 + $0x78] sm:$0xff]  }
   0x7   :  { %91 = vadd.xlane.f32.xlu2 %v90_v8  ;;  %v117_v20 = vsel %vm89_vm0, %v1687_v17, 0.0  ;;  %v114_v21 = vsel %vm89_vm0, %v1686_v18, 0.0  ;;  %v147_v28 = vsel %vm89_vm0, %v1707_v25, 0.0  ;;  %v171_v29 = vsel %vm89_vm0, %v1723_v26, 0.0 }
   0x8   :  { %v1675_v32 = vunpack.c.h.bf16 %v1996_v30  ;;  %v1674_v33 = vunpack.c.l.bf16 %v1996_v30  ;;  %v1690_v34 = vunpack.c.l.bf16 %v2001_v31  ;;  %v1710_v39 = vunpack.c.l.bf16 %v2018_v38 }
   0x9   :  { %v1691_v40 = vunpack.c.h.bf16 %v2001_v31  ;;  %v1711_v41 = vunpack.c.h.bf16 %v2018_v38  ;;  %v1727_v47 = vunpack.c.h.bf16 %v2035_v45  ;;  %v1726_v48 = vunpack.c.l.bf16 %v2035_v45 }
   0xa   :  { %v99_v35 = vsel %vm89_vm0, %v1675_v32, 0.0  ;;  %v96_v36 = vsel %vm89_vm0, %v1674_v33, 0.0  ;;  %v120_v37 = vsel %vm89_vm0, %v1690_v34, 0.0  ;;  %v150_v42 = vsel %vm89_vm0, %v1710_v39, 0.0 }
   0xb   :  { %v123_v43 = vsel %vm89_vm0, %v1691_v40, 0.0  ;;  %v153_v44 = vsel %vm89_vm0, %v1711_v41, 0.0  ;;  %v1678_v49 = vunpack.c.l.bf16 %v2040_v46  ;;  %v177_v50 = vsel %vm89_vm0, %v1727_v47, 0.0 }
   0xc   :  { %v174_v51 = vsel %vm89_vm0, %v1726_v48, 0.0  ;;  %v1694_v54 = vunpack.c.l.bf16 %v2057_v53  ;;  %v1679_v55 = vunpack.c.h.bf16 %v2040_v46  ;;  %v1695_v56 = vunpack.c.h.bf16 %v2057_v53 }
   0xd   :  { %166 = vadd.xlane.f32.xlu1 %v165_v12  ;;  %v102_v52 = vsel %vm89_vm0, %v1678_v49, 0.0  ;;  %v1714_v62 = vunpack.c.l.bf16 %v2074_v60  ;;  %v1730_v63 = vunpack.c.l.bf16 %v2079_v61  ;;  %v1715_v6 = vunpack.c.h.bf16 %v2074_v60 }
   0xe   :  { %142 = vadd.xlane.f32.xlu0 %v141_v13  ;;  %v126_v57 = vsel %vm89_vm0, %v1694_v54, 0.0  ;;  %v105_v58 = vsel %vm89_vm0, %v1679_v55, 0.0  ;;  %v129_v59 = vsel %vm89_vm0, %v1695_v56, 0.0  ;;  %v2096_v13 = vld [vmem:[%s3393_s0 + $0x18] sm:$0xff]  }
   0xf   :  { %94 = vadd.xlane.f32.xlu2 %v93_v14  ;;  %v156_v7 = vsel %vm89_vm0, %v1714_v62, 0.0  ;;  %v180_v8 = vsel %vm89_vm0, %v1730_v63, 0.0  ;;  %v159_v12 = vsel %vm89_vm0, %v1715_v6, 0.0  ;;  %v2101_v14 = vld [vmem:[%s3393_s0 + $0x38] sm:$0xff]  }
  0x15   :  { %118 = vadd.xlane.f32.xlu1 %v117_v20  ;;  %v1731_v20 = vunpack.c.h.bf16 %v2079_v61 }
  0x16   :  { %115 = vadd.xlane.f32.xlu0 %v114_v21  ;;  %v1682_v21 = vunpack.c.l.bf16 %v2096_v13 }
  0x17   :  { %145 = vadd.xlane.f32.xlu2 %v144_v22  ;;  %v1698_v22 = vunpack.c.l.bf16 %v2101_v14 }
  0x1d   :  { %169 = vadd.xlane.f32.xlu1 %v168_v27  ;;  %v183_v27 = vsel %vm89_vm0, %v1731_v20, 0.0 }
  0x1e   :  { %148 = vadd.xlane.f32.xlu0 %v147_v28  ;;  %v108_v28 = vsel %vm89_vm0, %v1682_v21, 0.0 }
  0x1f   :  { %172 = vadd.xlane.f32.xlu2 %v171_v29  ;;  %v132_v29 = vsel %vm89_vm0, %v1698_v22, 0.0 }
  0x25   :  { %100 = vadd.xlane.f32.xlu1 %v99_v35  ;;  %v1683_v35 = vunpack.c.h.bf16 %v2096_v13 }
  0x26   :  { %97 = vadd.xlane.f32.xlu0 %v96_v36  ;;  %v1699_v36 = vunpack.c.h.bf16 %v2101_v14 }
  0x27   :  { %121 = vadd.xlane.f32.xlu2 %v120_v37  ;;  %v111_v37 = vsel %vm89_vm0, %v1683_v35, 0.0 }
  0x2d   :  { %151 = vadd.xlane.f32.xlu1 %v150_v42  ;;  %v135_v42 = vsel %vm89_vm0, %v1699_v36, 0.0 }
  0x2e   :  { %124 = vadd.xlane.f32.xlu0 %v123_v43  ;;  %v1884_v43 = vmov 32.0  }
  0x2f   :  { %154 = vadd.xlane.f32.xlu2 %v153_v44  ;;  %1754 = vrcp.f32 %v1884_v43 }
  0x35   :  { %178 = vadd.xlane.f32.xlu1 %v177_v50  ;;  %v1755_v44 = vpop.eup %1754 }
  0x36   :  { %175 = vadd.xlane.f32.xlu0 %v174_v51  ;;  %v187_v50 = vmul.f32 32.0, %v1755_v44  ;;  %vm191_vm1 = vweird.f32 %v1755_v44 }
  0x37   :  { %103 = vadd.xlane.f32.xlu2 %v102_v52 }
  0x38   :  { %v188_v51 = vsub.f32 1.0, %v187_v50 }
  0x3a   :  { %v189_v52 = vmul.f32 %v1755_v44, %v188_v51 }
  0x3d   :  { %127 = vadd.xlane.f32.xlu1 %v126_v57  ;;  %v190_v57 = vadd.f32 %v1755_v44, %v189_v52 }
  0x3e   :  { %106 = vadd.xlane.f32.xlu0 %v105_v58 }
  0x3f   :  { %130 = vadd.xlane.f32.xlu2 %v129_v59  ;;  %v2123_v58 = vsel %vm191_vm1, %v1755_v44, %v190_v57 }
  0x45   :  { %157 = vadd.xlane.f32.xlu1 %v156_v7 }
  0x46   :  { %181 = vadd.xlane.f32.xlu0 %v180_v8 }
  0x47   :  { %160 = vadd.xlane.f32.xlu2 %v159_v12 }
  0x4d   :  { %184 = vadd.xlane.f32.xlu1 %v183_v27 }
  0x4e   :  { %109 = vadd.xlane.f32.xlu0 %v108_v28 }
  0x4f   :  { %133 = vadd.xlane.f32.xlu2 %v132_v29 }
  0x55   :  { %112 = vadd.xlane.f32.xlu1 %v111_v37 }
  0x56   :  { %136 = vadd.xlane.f32.xlu0 %v135_v42 }
  0x78   :  { %v164_v59 = vpop.xlane.xlu1 %163 }
  0x79   :  { %v140_v7 = vpop.xlane.xlu0 %139  ;;  %v217_v8 = vmul.f32 %v2123_v58, %v164_v59 }
  0x7a   :  { %v209_v12 = vmul.f32 %v2123_v58, %v140_v7  ;;  %v92_v27 = vpop.xlane.xlu2 %91 }
  0x7b   :  { %v2129_v28 = vsub.f32 %v1718_v3, %v217_v8  ;;  %v193_v37 = vmul.f32 %v2123_v58, %v92_v27 }
  0x7c   :  { %v2133_v29 = vsub.f32 %v1702_v4, %v209_v12 }
  0x7d   :  { %v281_v43 = vmul.f32 %v2129_v28, %v2129_v28  ;;  %v2144_v3 = vsub.f32 %v1670_v5, %v193_v37 }
  0x7e   :  { %v273_v42 = vmul.f32 %v2133_v29, %v2133_v29 }
  0x7f   :  { %v361_v50 = vsel %vm89_vm0, %v281_v43, 0.0  ;;  %v257_v12 = vmul.f32 %v2144_v3, %v2144_v3 }
  0x80   :  { %v337_v44 = vsel %vm89_vm0, %v273_v42, 0.0  ;;  %v167_v51 = vpop.xlane.xlu1 %166  ;;  %362 = vadd.xlane.f32.xlu2 %v361_v50 }
  0x81   :  { %v143_v52 = vpop.xlane.xlu0 %142  ;;  %338 = vadd.xlane.f32.xlu0 %v337_v44  ;;  %v218_v4 = vmul.f32 %v2123_v58, %v167_v51  ;;  %v289_v43 = vsel %vm89_vm0, %v257_v12, 0.0 }
  0x82   :  { %v210_v57 = vmul.f32 %v2123_v58, %v143_v52  ;;  %v95_v59 = vpop.xlane.xlu2 %94 }
  0x83   :  { %v2150_v7 = vsub.f32 %v1719_v9, %v218_v4  ;;  %v194_v5 = vmul.f32 %v2123_v58, %v95_v59 }
  0x84   :  { %v2154_v8 = vsub.f32 %v1703_v10, %v210_v57 }
  0x85   :  { %v282_v37 = vmul.f32 %v2150_v7, %v2150_v7  ;;  %v2165_v0 = vsub.f32 %v1671_v11, %v194_v5 }
  0x86   :  { %v274_v27 = vmul.f32 %v2154_v8, %v2154_v8 }
  0x87   :  { %v364_v1 = vsel %vm89_vm0, %v282_v37, 0.0  ;;  %v258_v4 = vmul.f32 %v2165_v0, %v2165_v0 }
  0x88   :  { %v340_v9 = vsel %vm89_vm0, %v274_v27, 0.0  ;;  %v119_v10 = vpop.xlane.xlu1 %118  ;;  %290 = vadd.xlane.f32.xlu2 %v289_v43 }
  0x89   :  { %v116_v42 = vpop.xlane.xlu0 %115  ;;  %341 = vadd.xlane.f32.xlu1 %v340_v9  ;;  %365 = vadd.xlane.f32.xlu0 %v364_v1  ;;  %v202_v44 = vmul.f32 %v2123_v58, %v119_v10 }
  0x8a   :  { %v201_v50 = vmul.f32 %v2123_v58, %v116_v42  ;;  %v146_v51 = vpop.xlane.xlu2 %145 }
  0x8b   :  { %v2174_v2 = vsub.f32 %v1687_v17, %v202_v44  ;;  %v211_v52 = vmul.f32 %v2123_v58, %v146_v51 }
  0x8c   :  { %v2178_v11 = vsub.f32 %v1686_v18, %v201_v50  ;;  %v292_v18 = vsel %vm89_vm0, %v258_v4, 0.0 }
  0x8d   :  { %v266_v59 = vmul.f32 %v2174_v2, %v2174_v2  ;;  %v2189_v5 = vsub.f32 %v1706_v19, %v211_v52 }
  0x8e   :  { %v265_v57 = vmul.f32 %v2178_v11, %v2178_v11 }
  0x8f   :  { %v316_v15 = vsel %vm89_vm0, %v266_v59, 0.0  ;;  %v275_v43 = vmul.f32 %v2189_v5, %v2189_v5 }
  0x90   :  { %v313_v17 = vsel %vm89_vm0, %v265_v57, 0.0  ;;  %v170_v12 = vpop.xlane.xlu1 %169  ;;  %317 = vadd.xlane.f32.xlu2 %v316_v15 }
  0x91   :  { %v149_v27 = vpop.xlane.xlu0 %148  ;;  %314 = vadd.xlane.f32.xlu1 %v313_v17  ;;  %293 = vadd.xlane.f32.xlu0 %v292_v18  ;;  %v219_v37 = vmul.f32 %v2123_v58, %v170_v12 }
  0x92   :  { %v212_v9 = vmul.f32 %v2123_v58, %v149_v27  ;;  %v173_v1 = vpop.xlane.xlu2 %172 }
  0x93   :  { %v2198_v19 = vsub.f32 %v1722_v24, %v219_v37  ;;  %v220_v42 = vmul.f32 %v2123_v58, %v173_v1 }
  0x94   :  { %v2202_v10 = vsub.f32 %v1707_v25, %v212_v9  ;;  %v343_v25 = vsel %vm89_vm0, %v275_v43, 0.0 }
  0x95   :  { %v283_v50 = vmul.f32 %v2198_v19, %v2198_v19  ;;  %v2213_v51 = vsub.f32 %v1723_v26, %v220_v42 }
  0x96   :  { %v276_v44 = vmul.f32 %v2202_v10, %v2202_v10 }
  0x97   :  { %v367_v16 = vsel %vm89_vm0, %v283_v50, 0.0  ;;  %v284_v18 = vmul.f32 %v2213_v51, %v2213_v51 }
  0x98   :  { %v346_v24 = vsel %vm89_vm0, %v276_v44, 0.0  ;;  %v101_v52 = vpop.xlane.xlu1 %100 }
  0x99   :  { %v98_v4 = vpop.xlane.xlu0 %97  ;;  %368 = vadd.xlane.f32.xlu0 %v367_v16  ;;  %344 = vadd.xlane.f32.xlu1 %v343_v25  ;;  %v196_v57 = vmul.f32 %v2123_v58, %v101_v52 }
  0x9a   :  { %v195_v59 = vmul.f32 %v2123_v58, %v98_v4  ;;  %347 = vadd.xlane.f32.xlu2 %v346_v24  ;;  %v122_v17 = vpop.xlane.xlu2 %121 }
  0x9b   :  { %v2222_v23 = vsub.f32 %v1675_v32, %v196_v57  ;;  %v203_v15 = vmul.f32 %v2123_v58, %v122_v17 }
  0x9c   :  { %v2226_v26 = vsub.f32 %v1674_v33, %v195_v59  ;;  %v370_v33 = vsel %vm89_vm0, %v284_v18, 0.0 }
  0x9d   :  { %v260_v27 = vmul.f32 %v2222_v23, %v2222_v23  ;;  %v2237_v37 = vsub.f32 %v1690_v34, %v203_v15 }
  0x9e   :  { %v259_v12 = vmul.f32 %v2226_v26, %v2226_v26 }
  0x9f   :  { %v298_v30 = vsel %vm89_vm0, %v260_v27, 0.0  ;;  %v267_v16 = vmul.f32 %v2237_v37, %v2237_v37 }
  0xa0   :  { %v295_v32 = vsel %vm89_vm0, %v259_v12, 0.0  ;;  %v152_v9 = vpop.xlane.xlu1 %151 }
  0xa1   :  { %v125_v1 = vpop.xlane.xlu0 %124  ;;  %299 = vadd.xlane.f32.xlu0 %v298_v30  ;;  %371 = vadd.xlane.f32.xlu1 %v370_v33  ;;  %v213_v42 = vmul.f32 %v2123_v58, %v152_v9 }
  0xa2   :  { %v204_v43 = vmul.f32 %v2123_v58, %v125_v1  ;;  %296 = vadd.xlane.f32.xlu2 %v295_v32  ;;  %v155_v44 = vpop.xlane.xlu2 %154 }
  0xa3   :  { %v2246_v34 = vsub.f32 %v1710_v39, %v213_v42  ;;  %v214_v24 = vmul.f32 %v2123_v58, %v155_v44 }
  0xa4   :  { %v2250_v50 = vsub.f32 %v1691_v40, %v204_v43  ;;  %v319_v40 = vsel %vm89_vm0, %v267_v16, 0.0 }
  0xa5   :  { %v277_v52 = vmul.f32 %v2246_v34, %v2246_v34  ;;  %v2261_v4 = vsub.f32 %v1711_v41, %v214_v24 }
  0xa6   :  { %v268_v25 = vmul.f32 %v2250_v50, %v2250_v50 }
  0xa7   :  { %v349_v31 = vsel %vm89_vm0, %v277_v52, 0.0  ;;  %v278_v27 = vmul.f32 %v2261_v4, %v2261_v4 }
  0xa8   :  { %v322_v39 = vsel %vm89_vm0, %v268_v25, 0.0  ;;  %v179_v57 = vpop.xlane.xlu1 %178 }
  0xa9   :  { %v176_v59 = vpop.xlane.xlu0 %175  ;;  %350 = vadd.xlane.f32.xlu0 %v349_v31  ;;  %320 = vadd.xlane.f32.xlu1 %v319_v40  ;;  %v222_v17 = vmul.f32 %v2123_v58, %v179_v57 }
  0xaa   :  { %v221_v15 = vmul.f32 %v2123_v58, %v176_v59  ;;  %323 = vadd.xlane.f32.xlu2 %v322_v39  ;;  %v104_v18 = vpop.xlane.xlu2 %103 }
  0xab   :  { %v2270_v38 = vsub.f32 %v1727_v47, %v222_v17  ;;  %v197_v12 = vmul.f32 %v2123_v58, %v104_v18 }
  0xac   :  { %v2274_v41 = vsub.f32 %v1726_v48, %v221_v15  ;;  %v352_v48 = vsel %vm89_vm0, %v278_v27, 0.0 }
  0xad   :  { %v286_v30 = vmul.f32 %v2270_v38, %v2270_v38  ;;  %v2285_v33 = vsub.f32 %v1678_v49, %v197_v12 }
  0xae   :  { %v285_v32 = vmul.f32 %v2274_v41, %v2274_v41 }
  0xaf   :  { %v376_v45 = vsel %vm89_vm0, %v286_v30, 0.0  ;;  %v261_v25 = vmul.f32 %v2285_v33, %v2285_v33 }
  0xb0   :  { %v373_v47 = vsel %vm89_vm0, %v285_v32, 0.0  ;;  %v128_v9 = vpop.xlane.xlu1 %127 }
  0xb1   :  { %v107_v1 = vpop.xlane.xlu0 %106  ;;  %377 = vadd.xlane.f32.xlu0 %v376_v45  ;;  %353 = vadd.xlane.f32.xlu1 %v352_v48  ;;  %v205_v42 = vmul.f32 %v2123_v58, %v128_v9 }
  0xb2   :  { %v198_v43 = vmul.f32 %v2123_v58, %v107_v1  ;;  %374 = vadd.xlane.f32.xlu2 %v373_v47  ;;  %v131_v44 = vpop.xlane.xlu2 %130 }
  0xb3   :  { %v2294_v49 = vsub.f32 %v1694_v54, %v205_v42  ;;  %v206_v16 = vmul.f32 %v2123_v58, %v131_v44 }
  0xb4   :  { %v2298_v24 = vsub.f32 %v1679_v55, %v198_v43  ;;  %v301_v55 = vsel %vm89_vm0, %v261_v25, 0.0 }
  0xb5   :  { %v269_v39 = vmul.f32 %v2294_v49, %v2294_v49  ;;  %v2309_v31 = vsub.f32 %v1695_v56, %v206_v16 }
  0xb6   :  { %v262_v52 = vmul.f32 %v2298_v24, %v2298_v24 }
  0xb7   :  { %v325_v46 = vsel %vm89_vm0, %v269_v39, 0.0  ;;  %v270_v18 = vmul.f32 %v2309_v31, %v2309_v31 }
  0xb8   :  { %v304_v54 = vsel %vm89_vm0, %v262_v52, 0.0  ;;  %v158_v40 = vpop.xlane.xlu1 %157 }
  0xb9   :  { %v182_v57 = vpop.xlane.xlu0 %181  ;;  %326 = vadd.xlane.f32.xlu0 %v325_v46  ;;  %302 = vadd.xlane.f32.xlu1 %v301_v55  ;;  %v215_v59 = vmul.f32 %v2123_v58, %v158_v40  ;;  %v328_v47 = vsel %vm89_vm0, %v270_v18, 0.0 }
  0xba   :  { %305 = vadd.xlane.f32.xlu2 %v304_v54  ;;  %v161_v17 = vpop.xlane.xlu2 %160  ;;  %v223_v56 = vmul.f32 %v2123_v58, %v182_v57 }
  0xbb   :  { %v216_v15 = vmul.f32 %v2123_v58, %v161_v17  ;;  %v2318_v53 = vsub.f32 %v1714_v62, %v215_v59 }
  0xbc   :  { %v2333_v30 = vsub.f32 %v1730_v63, %v223_v56 }
  0xbd   :  { %v2325_v12 = vsub.f32 %v1715_v6, %v216_v15  ;;  %v279_v27 = vmul.f32 %v2318_v53, %v2318_v53 }
  0xbe   :  { %v287_v44 = vmul.f32 %v2333_v30, %v2333_v30 }
  0xbf   :  { %v280_v32 = vmul.f32 %v2325_v12, %v2325_v12  ;;  %v355_v62 = vsel %vm89_vm0, %v279_v27, 0.0 }
  0xc0   :  { %v185_v45 = vpop.xlane.xlu1 %184 }
  0xc1   :  { %v110_v48 = vpop.xlane.xlu0 %109  ;;  %329 = vadd.xlane.f32.xlu1 %v328_v47  ;;  %v358_v60 = vsel %vm89_vm0, %v280_v32, 0.0  ;;  %v224_v6 = vmul.f32 %v2123_v58, %v185_v45  ;;  %v801_v45 = vld [vmem:[%s3394_s1] sm:$0x1] }
  0xc2   :  { %v199_v9 = vmul.f32 %v2123_v58, %v110_v48  ;;  %356 = vadd.xlane.f32.xlu2 %v355_v62  ;;  %359 = vadd.xlane.f32.xlu0 %v358_v60  ;;  %v134_v1 = vpop.xlane.xlu2 %133 }
  0xc3   :  { %v207_v42 = vmul.f32 %v2123_v58, %v134_v1  ;;  %v2343_v63 = vsub.f32 %v1731_v20, %v224_v6  ;;  %v379_v20 = vsel %vm89_vm0, %v287_v44, 0.0 }
  0xc4   :  { %v2347_v43 = vsub.f32 %v1682_v21, %v199_v9  ;;  %v836_v9 = vld [vmem:[%s3395_s2] sm:$0x1] }
  0xc5   :  { %v288_v16 = vmul.f32 %v2343_v63, %v2343_v63  ;;  %v2357_v52 = vsub.f32 %v1698_v22, %v207_v42 }
  0xc6   :  { %v263_v25 = vmul.f32 %v2347_v43, %v2347_v43 }
  0xc7   :  { %v382_v61 = vsel %vm89_vm0, %v288_v16, 0.0  ;;  %v271_v40 = vmul.f32 %v2357_v52, %v2357_v52 }
  0xc8   :  { %v307_v21 = vsel %vm89_vm0, %v263_v25, 0.0  ;;  %v113_v39 = vpop.xlane.xlu1 %112 }
  0xc9   :  { %v137_v54 = vpop.xlane.xlu0 %136  ;;  %380 = vadd.xlane.f32.xlu1 %v379_v20  ;;  %v200_v46 = vmul.f32 %v2123_v58, %v113_v39  ;;  %v331_v15 = vsel %vm89_vm0, %v271_v40, 0.0  ;;  %v837_v39 = vunpack.c.l.bf16 %v836_v9 }
  0xca   :  { %v208_v55 = vmul.f32 %v2123_v58, %v137_v54  ;;  %383 = vadd.xlane.f32.xlu2 %v382_v61  ;;  %308 = vadd.xlane.f32.xlu0 %v307_v21  ;;  %v802_v61 = vunpack.c.l.bf16 %v801_v45 }
  0xcb   :  { %v2368_v22 = vsub.f32 %v1683_v35, %v200_v46 }
  0xcc   :  { %v2372_v57 = vsub.f32 %v1699_v36, %v208_v55  ;;  %v2401_v40 = vperm.slane %v802_v61, 0 }
  0xcd   :  { %v264_v59 = vmul.f32 %v2368_v22, %v2368_v22 }
  0xce   :  { %v272_v17 = vmul.f32 %v2372_v57, %v2372_v57 }
  0xcf   :  { %v310_v56 = vsel %vm89_vm0, %v264_v59, 0.0 }
  0xd0   :  { %v334_v18 = vsel %vm89_vm0, %v272_v17, 0.0 }
  0xd1   :  { %311 = vadd.xlane.f32.xlu1 %v310_v56  ;;  %v2403_v56 = vperm.slane %v837_v39, 0 }
  0xd2   :  { %335 = vadd.xlane.f32.xlu0 %v334_v18  ;;  %332 = vadd.xlane.f32.xlu2 %v331_v15 }
  0xf3   :  { %v363_v35 = vpop.xlane.xlu2 %362 }
  0xf4   :  { %v339_v13 = vpop.xlane.xlu0 %338  ;;  %v409_v36 = vmul.f32 %v363_v35, %v2123_v58 }
  0xf5   :  { %v401_v14 = vmul.f32 %v339_v13, %v2123_v58 }
  0xf6   :  { %v441_v32 = vadd.f32 1e-06, %v409_v36 }
  0xf7   :  { %v433_v27 = vadd.f32 1e-06, %v401_v14 }
  0xf8   :  { %vm695_vm4 = vweird.f32 %v441_v32 }
  0xf9   :  { %1756 = vrsqrt.f32 %v433_v27  ;;  %vm615_vm2 = vweird.f32 %v433_v27 }
  0xfa   :  { %1758 = vrsqrt.f32 %v441_v32 }
  0xfb   :  { %v291_v6 = vpop.xlane.xlu2 %290 }
  0xfc   :  { %v342_v62 = vpop.xlane.xlu1 %341  ;;  %v366_v47 = vpop.xlane.xlu0 %365  ;;  %v385_v1 = vmul.f32 %v291_v6, %v2123_v58 }
  0xfd   :  { %v402_v48 = vmul.f32 %v342_v62, %v2123_v58  ;;  %v410_v60 = vmul.f32 %v366_v47, %v2123_v58 }
  0xfe   :  { %v2396_v21 = vadd.f32 1e-06, %v385_v1 }
  0xff   :  { %v1757_v42 = vpop.eup %1756  ;;  %v2392_v44 = vadd.f32 1e-06, %v402_v48  ;;  %v2394_v16 = vadd.f32 1e-06, %v410_v60 }
 0x100   :  { %v1759_v25 = vpop.eup %1758  ;;  %v610_v20 = vmul.f32 %v1757_v42, %v433_v27  ;;  %vm616_vm3 = vweird.f32 %v1757_v42  ;;  %vm455_vm11 = vweird.f32 %v2396_v21 }
 0x101   :  { %v690_v54 = vmul.f32 %v1759_v25, %v441_v32  ;;  %1760 = vrsqrt.f32 %v2392_v44  ;;  %vm696_vm5 = vweird.f32 %v1759_v25  ;;  %vm625_vm7 = vweird.f32 %v2392_v44  ;;  %vm617_vm8 = vmor %vm615_vm2, %vm616_vm3 }
 0x102   :  { %v611_v46 = vmul.f32 %v1757_v42, %v610_v20  ;;  %1762 = vrsqrt.f32 %v2394_v16  ;;  %vm697_vm9 = vmor %vm695_vm4, %vm696_vm5  ;;  %vm705_vm10 = vweird.f32 %v2394_v16 }
 0x103   :  { %v691_v55 = vmul.f32 %v1759_v25, %v690_v54  ;;  %1764 = vrsqrt.f32 %v2396_v21  ;;  %v318_v14 = vpop.xlane.xlu2 %317 }
 0x104   :  { %v612_v59 = vmul.f32 0.5, %v611_v46  ;;  %v315_v17 = vpop.xlane.xlu1 %314  ;;  %v294_v15 = vpop.xlane.xlu0 %293  ;;  %v394_v62 = vmul.f32 %v318_v14, %v2123_v58 }
 0x105   :  { %v692_v18 = vmul.f32 0.5, %v691_v55  ;;  %v393_v13 = vmul.f32 %v315_v17, %v2123_v58  ;;  %v386_v35 = vmul.f32 %v294_v15, %v2123_v58 }
 0x106   :  { %v613_v36 = vsub.f32 1.5, %v612_v59  ;;  %v2425_v54 = vadd.f32 1e-06, %v394_v62 }
 0x107   :  { %v2408_v47 = vpop.eup %1760  ;;  %v693_v45 = vsub.f32 1.5, %v692_v18  ;;  %v2410_v48 = vadd.f32 1e-06, %v393_v13  ;;  %v2417_v1 = vadd.f32 1e-06, %v386_v35 }
 0x108   :  { %v2412_v60 = vpop.eup %1762  ;;  %v614_v6 = vmul.f32 %v1757_v42, %v613_v36  ;;  %v620_v9 = vmul.f32 %v2408_v47, %v2392_v44  ;;  %vm626_vm12 = vweird.f32 %v2408_v47 }
 0x109   :  { %v2419_v61 = vpop.eup %1764  ;;  %v694_v20 = vmul.f32 %v1759_v25, %v693_v45  ;;  %v700_v39 = vmul.f32 %v2412_v60, %v2394_v16  ;;  %1766 = vrsqrt.f32 %v2410_v48  ;;  %vm706_vm13 = vweird.f32 %v2412_v60  ;;  %vm2461_vm1 = vmor %vm625_vm7, %vm626_vm12 }
 0x10a   :  { %v618_v46 = vsel %vm617_vm8, %v1757_v42, %v614_v6  ;;  %v621_v55 = vmul.f32 %v2408_v47, %v620_v9  ;;  %v450_v27 = vmul.f32 %v2419_v61, %v2396_v21  ;;  %1768 = vrsqrt.f32 %v2417_v1  ;;  %vm2478_vm2 = vmor %vm705_vm10, %vm706_vm13 }
 0x10b   :  { %v785_v59 = vmul.f32 %v618_v46, %v2133_v29  ;;  %v698_v17 = vsel %vm697_vm9, %v1759_v25, %v694_v20  ;;  %v701_v15 = vmul.f32 %v2412_v60, %v700_v39  ;;  %1770 = vrsqrt.f32 %v2425_v54  ;;  %v1667_v20 = vld [vmem:[%s3396_s3 + $0x8] sm:$0xff] }
 0x10c   :  { %v793_v18 = vmul.f32 %v698_v17, %v2129_v28  ;;  %v622_v42 = vmul.f32 0.5, %v621_v55  ;;  %v451_v32 = vmul.f32 %v2419_v61, %v450_v27  ;;  %v369_v13 = vpop.xlane.xlu0 %368  ;;  %v345_v28 = vpop.xlane.xlu1 %344  ;;  %vm456_vm14 = vweird.f32 %v2419_v61  ;;  %1748 = vmatpush.bf16.msra.mxu2 %v1667_v20  ;;  %1749 = vmatpush.bf16.msra.mxu3 %v1667_v20 }
 0x10d   :  { %v820_v35 = vmul.f32 %v2401_v40, %v785_v59  ;;  %v702_v14 = vmul.f32 0.5, %v701_v15  ;;  %v411_v9 = vmul.f32 %v369_v13, %v2123_v58  ;;  %vm535_vm15 = vweird.f32 %v2410_v48  ;;  %1122 = vmatpush.bf16.msra.mxu0 %v1667_v20  ;;  %vm457_vm3 = vmor %vm455_vm11, %vm456_vm14  ;;  %1747 = vmatpush.bf16.msra.mxu1 %v1667_v20 }
 0x10e   :  { %v828_v29 = vmul.f32 %v2401_v40, %v793_v18  ;;  %v623_v25 = vsub.f32 1.5, %v622_v42  ;;  %v452_v36 = vmul.f32 0.5, %v451_v32  ;;  %v403_v42 = vmul.f32 %v345_v28, %v2123_v58 }
 0x10f   :  { %v2444_v62 = vpop.eup %1766  ;;  %v855_v45 = vadd.f32 %v2403_v56, %v820_v35  ;;  %v703_v6 = vsub.f32 1.5, %v702_v14  ;;  %v2466_v18 = vadd.f32 1e-06, %v411_v9  ;;  %vm465_vm5 = vweird.f32 %v2417_v1 }
 0x110   :  { %v863_v39 = vadd.f32 %v2403_v56, %v828_v29  ;;  %v624_v46 = vmul.f32 %v2408_v47, %v623_v25  ;;  %v453_v55 = vsub.f32 1.5, %v452_v36  ;;  %v530_v27 = vmul.f32 %v2444_v62, %v2410_v48  ;;  %v2469_v32 = vpop.eup %1768  ;;  %v348_v25 = vpop.xlane.xlu2 %347 }
 0x111   :  { %v887_v59 = vpack.c.bf16 %v855_v45, %v855_v45  ;;  %v704_v15 = vmul.f32 %v2412_v60, %v703_v6  ;;  %v2484_v36 = vpop.eup %1770  ;;  %vm536_vm4 = vweird.f32 %v2444_v62  ;;  %v460_v28 = vmul.f32 %v2469_v32, %v2417_v1 }
 0x112   :  { %v895_v13 = vpack.c.bf16 %v863_v39, %v863_v39  ;;  %v628_v35 = vsel %vm2461_vm1, %v2408_v47, %v624_v46  ;;  %v454_v14 = vmul.f32 %v2419_v61, %v453_v55  ;;  %v531_v29 = vmul.f32 %v2444_v62, %v530_v27  ;;  %vm537_vm9 = vmor %vm535_vm15, %vm536_vm4 }
 0x113   :  { %920 = vst.msk [vmem:[#allocation2 + $0x40] sm:$0xf] %vm903_vm6, %v887_v59  ;;  %v786_v47 = vmul.f32 %v628_v35, %v2154_v8  ;;  %v708_v16 = vsel %vm2478_vm2, %v2412_v60, %v704_v15  ;;  %v1666_v8 = vld [vmem:[%s3396_s3] sm:$0xff]  ;;  %v540_v6 = vmul.f32 %v2484_v36, %v2425_v54  ;;  %v461_v55 = vmul.f32 %v2469_v32, %v460_v28 }
 0x114   :  { %928 = vst.msk [vmem:[#allocation2 + $0x60] sm:$0xf] %vm903_vm6, %v895_v13  ;;  %v794_v60 = vmul.f32 %v708_v16, %v2150_v7  ;;  %v458_v45 = vsel %vm457_vm3, %v2419_v61, %v454_v14  ;;  %v532_v21 = vmul.f32 0.5, %v531_v29  ;;  %v300_v9 = vpop.xlane.xlu0 %299  ;;  %vm466_vm7 = vweird.f32 %v2469_v32  ;;  %1751 = vmatpush.bf16.msra.mxu2 %v1666_v8  ;;  %1752 = vmatpush.bf16.msra.mxu3 %v1666_v8  ;;  %v372_v16 = vpop.xlane.xlu1 %371 }
 0x115   :  { %v821_v39 = vmul.f32 %v2401_v40, %v786_v47  ;;  %v769_v46 = vmul.f32 %v458_v45, %v2144_v3  ;;  %v541_v61 = vmul.f32 %v2484_v36, %v540_v6  ;;  %1772 = vrsqrt.f32 %v2466_v18  ;;  %1123 = vmatpush.bf16.msra.mxu0 %v1666_v8  ;;  %1750 = vmatpush.bf16.msra.mxu1 %v1666_v8  ;;  %vm467_vm11 = vmor %vm465_vm5, %vm466_vm7 }
 0x116   :  { %v829_v20 = vmul.f32 %v2401_v40, %v794_v60  ;;  %v533_v7 = vsub.f32 1.5, %v532_v21  ;;  %v462_v17 = vmul.f32 0.5, %v461_v55  ;;  %vm546_vm8 = vweird.f32 %v2484_v36 }
 0x117   :  { %v856_v27 = vadd.f32 %v2403_v56, %v821_v39  ;;  %v804_v59 = vmul.f32 %v2401_v40, %v769_v46  ;;  %v542_v13 = vmul.f32 0.5, %v541_v61  ;;  %v2519_v35 = vadd.f32 1e-06, %v403_v42 }
 0x118   :  { %v864_v3 = vadd.f32 %v2403_v56, %v829_v20  ;;  %v534_v15 = vmul.f32 %v2444_v62, %v533_v7  ;;  %v463_v29 = vsub.f32 1.5, %v462_v17  ;;  %v404_v47 = vmul.f32 %v348_v25, %v2123_v58  ;;  %v297_v39 = vpop.xlane.xlu2 %296 }
 0x119   :  { %v888_v44 = vpack.c.bf16 %v856_v27, %v856_v27  ;;  %v839_v14 = vadd.f32 %v2403_v56, %v804_v59  ;;  %v543_v60 = vsub.f32 1.5, %v542_v13  ;;  %1774 = vrsqrt.f32 %v2519_v35 }
 0x11a   :  { %v896_v28 = vpack.c.bf16 %v864_v3, %v864_v3  ;;  %v538_v8 = vsel %vm537_vm9, %v2444_v62, %v534_v15  ;;  %v464_v21 = vmul.f32 %v2469_v32, %v463_v29  ;;  %vm545_vm10 = vweird.f32 %v2425_v54 }
 0x11b   :  { %921 = vst.msk [vmem:[#allocation2 + $0x44] sm:$0xf] %vm903_vm6, %v888_v44  ;;  %v871_v42 = vpack.c.bf16 %v839_v14, %v839_v14  ;;  %v777_v45 = vmul.f32 %v538_v8, %v2178_v11  ;;  %v2533_v48 = vpop.eup %1772  ;;  %v544_v62 = vmul.f32 %v2484_v36, %v543_v60  ;;  %v2541_v25 = vadd.f32 1e-06, %v404_v47  ;;  %vm547_vm12 = vmor %vm545_vm10, %vm546_vm8 }
 0x11c   :  { %929 = vst.msk [vmem:[#allocation2 + $0x64] sm:$0xf] %vm903_vm6, %v896_v28  ;;  %v388_v6 = vmul.f32 %v300_v9, %v2123_v58  ;;  %v412_v11 = vmul.f32 %v372_v16, %v2123_v58  ;;  %v468_v46 = vsel %vm467_vm11, %v2469_v32, %v464_v21  ;;  %v710_v1 = vmul.f32 %v2533_v48, %v2466_v18  ;;  %v351_v55 = vpop.xlane.xlu0 %350  ;;  %v321_v8 = vpop.xlane.xlu1 %320 }
 0x11d   :  { %904 = vst.msk [vmem:[#allocation2] sm:$0xf] %vm903_vm6, %v871_v42  ;;  %v812_v54 = vmul.f32 %v2401_v40, %v777_v45  ;;  %v770_v20 = vmul.f32 %v468_v46, %v2165_v0  ;;  %v548_v9 = vsel %vm547_vm12, %v2484_v36, %v544_v62  ;;  %1776 = vrsqrt.f32 %v2541_v25 }
 0x11e   :  { %v778_v61 = vmul.f32 %v548_v9, %v2174_v2  ;;  %v711_v27 = vmul.f32 %v2533_v48, %v710_v1  ;;  %v2558_v32 = vadd.f32 1e-06, %v388_v6  ;;  %v2563_v3 = vadd.f32 1e-06, %v412_v11 }
 0x11f   :  { %v847_v7 = vadd.f32 %v2403_v56, %v812_v54  ;;  %v2560_v59 = vpop.eup %1774  ;;  %v805_v17 = vmul.f32 %v2401_v40, %v770_v20  ;;  %v387_v0 = vmul.f32 %v297_v39, %v2123_v58  ;;  %v405_v36 = vmul.f32 %v351_v55, %v2123_v58 }
 0x120   :  { %v813_v13 = vmul.f32 %v2401_v40, %v778_v61  ;;  %v712_v44 = vmul.f32 0.5, %v711_v27  ;;  %v630_v2 = vmul.f32 %v2560_v59, %v2519_v35  ;;  %vm716_vm13 = vweird.f32 %v2533_v48 }
 0x121   :  { %v879_v15 = vpack.c.bf16 %v847_v7, %v847_v7  ;;  %v840_v14 = vadd.f32 %v2403_v56, %v805_v17  ;;  %1778 = vrsqrt.f32 %v2558_v32  ;;  %vm715_vm14 = vweird.f32 %v2466_v18  ;;  %v324_v18 = vpop.xlane.xlu2 %323 }
 0x122   :  { %v1658_v29 = vld [vmem:[#allocation2 + $0x40] sm:$0xff]  ;;  %v848_v47 = vadd.f32 %v2403_v56, %v813_v13  ;;  %v713_v16 = vsub.f32 1.5, %v712_v44  ;;  %v631_v28 = vmul.f32 %v2560_v59, %v630_v2  ;;  %1780 = vrsqrt.f32 %v2563_v3  ;;  %vm717_vm15 = vmor %vm715_vm14, %vm716_vm13 }
 0x123   :  { %912 = vst.msk [vmem:[#allocation2 + $0x20] sm:$0xf] %vm903_vm6, %v879_v15  ;;  %v1662_v60 = vld [vmem:[#allocation2 + $0x60] sm:$0xff]  ;;  %v2577_v42 = vpop.eup %1776  ;;  %v872_v45 = vpack.c.bf16 %v840_v14, %v840_v14  ;;  %v2580_v21 = vadd.f32 1e-06, %v387_v0  ;;  %1642 = vmatmul.msk.bf16.vlgmr.msra.gmra.mxu2 %vm89_vm0, %v1658_v29  ;;  %vm635_vm1 = vweird.f32 %v2519_v35  ;;  %vm636_vm2 = vweird.f32 %v2560_v59 }
 0x124   :  { %v2582_v62 = vadd.f32 1e-06, %v405_v36  ;;  %v880_v6 = vpack.c.bf16 %v848_v47, %v848_v47  ;;  %v714_v11 = vmul.f32 %v2533_v48, %v713_v16  ;;  %v632_v39 = vmul.f32 0.5, %v631_v28  ;;  %1646 = vmatmul.msk.bf16.vlgmr.msra.gmra.mxu3 %vm89_vm0, %v1662_v60  ;;  %v378_v20 = vpop.xlane.xlu0 %377  ;;  %vm637_vm7 = vmor %vm635_vm1, %vm636_vm2 }
 0x125   :  { %v640_v54 = vmul.f32 %v2577_v42, %v2541_v25  ;;  %905 = vst.msk [vmem:[#allocation2 + $0x4] sm:$0xf] %vm903_vm6, %v872_v45  ;;  %1782 = vrsqrt.f32 %v2580_v21  ;;  %vm645_vm3 = vweird.f32 %v2541_v25  ;;  %vm646_vm4 = vweird.f32 %v2577_v42 }
 0x126   :  { %913 = vst.msk [vmem:[#allocation2 + $0x24] sm:$0xf] %vm903_vm6, %v880_v6  ;;  %v718_v46 = vsel %vm717_vm15, %v2533_v48, %v714_v11  ;;  %v633_v1 = vsub.f32 1.5, %v632_v39  ;;  %1784 = vrsqrt.f32 %v2582_v62  ;;  %v395_v61 = vmul.f32 %v321_v8, %v2123_v58  ;;  %v354_v11 = vpop.xlane.xlu1 %353  ;;  %vm647_vm11 = vmor %vm645_vm3, %vm646_vm4 }
 0x127   :  { %v641_v55 = vmul.f32 %v2577_v42, %v640_v54  ;;  %v2599_v9 = vpop.eup %1778  ;;  %v795_v7 = vmul.f32 %v718_v46, %v2198_v19  ;;  %vm485_vm5 = vweird.f32 %v2558_v32  ;;  %v396_v36 = vmul.f32 %v324_v18, %v2123_v58 }
 0x128   :  { %v2605_v27 = vpop.eup %1780  ;;  %v634_v48 = vmul.f32 %v2560_v59, %v633_v1  ;;  %v480_v0 = vmul.f32 %v2599_v9, %v2558_v32  ;;  %vm725_vm8 = vweird.f32 %v2563_v3  ;;  %v2620_v13 = vadd.f32 1e-06, %v395_v61 }
 0x129   :  { %v642_v17 = vmul.f32 0.5, %v641_v55  ;;  %v830_v19 = vmul.f32 %v2401_v40, %v795_v7  ;;  %v720_v15 = vmul.f32 %v2605_v27, %v2563_v3  ;;  %v2623_v44 = vmul.f32 %v378_v20, %v2123_v58 }
 0x12a   :  { %v638_v2 = vsel %vm637_vm7, %v2560_v59, %v634_v48  ;;  %v481_v29 = vmul.f32 %v2599_v9, %v480_v0  ;;  %vm486_vm9 = vweird.f32 %v2599_v9  ;;  %1786 = vrsqrt.f32 %v2620_v13 }
 0x12b   :  { %v643_v14 = vsub.f32 1.5, %v642_v17  ;;  %v2628_v47 = vpop.eup %1782  ;;  %v865_v35 = vadd.f32 %v2403_v56, %v830_v19  ;;  %v787_v16 = vmul.f32 %v638_v2, %v2189_v5  ;;  %v721_v28 = vmul.f32 %v2605_v27, %v720_v15  ;;  %vm487_vm15 = vmor %vm485_vm5, %vm486_vm9 }
 0x12c   :  { %v2634_v8 = vpop.eup %1784  ;;  %v482_v59 = vmul.f32 0.5, %v481_v29  ;;  %v470_v45 = vmul.f32 %v2628_v47, %v2580_v21  ;;  %vm475_vm10 = vweird.f32 %v2580_v21  ;;  %v2640_v6 = vadd.f32 1e-06, %v396_v36  ;;  %v1650_v39 = vld [vmem:[#allocation2] sm:$0xff]  ;;  %v375_v36 = vpop.xlane.xlu2 %374 }
 0x12d   :  { %v644_v60 = vmul.f32 %v2577_v42, %v643_v14  ;;  %v897_v54 = vpack.c.bf16 %v865_v35, %v865_v35  ;;  %v822_v5 = vmul.f32 %v2401_v40, %v787_v16  ;;  %v722_v18 = vmul.f32 0.5, %v721_v28  ;;  %v1654_v1 = vld [vmem:[#allocation2 + $0x20] sm:$0xff]  ;;  %1634 = vmatmul.msk.bf16.vlgmr.msra.gmra.mxu0 %vm89_vm0, %v1650_v39 }
 0x12e   :  { %v650_v46 = vmul.f32 %v2634_v8, %v2582_v62  ;;  %vm655_vm12 = vweird.f32 %v2582_v62  ;;  %v483_v20 = vsub.f32 1.5, %v482_v59  ;;  %vm726_vm13 = vweird.f32 %v2605_v27  ;;  %1638 = vmatmul.msk.bf16.vlgmr.msra.gmra.mxu1 %vm89_vm0, %v1654_v1  ;;  %v327_v1 = vpop.xlane.xlu0 %326 }
 0x12f   :  { %v648_v55 = vsel %vm647_vm11, %v2577_v42, %v644_v60  ;;  %v471_v7 = vmul.f32 %v2628_v47, %v470_v45  ;;  %930 = vst.msk [vmem:[#allocation2 + $0x68] sm:$0xf] %vm903_vm6, %v897_v54  ;;  %v857_v25 = vadd.f32 %v2403_v56, %v822_v5  ;;  %v723_v48 = vsub.f32 1.5, %v722_v18  ;;  %vm727_vm1 = vmor %vm725_vm8, %vm726_vm13 }
 0x130   :  { %v788_v61 = vmul.f32 %v648_v55, %v2202_v10  ;;  %v651_v17 = vmul.f32 %v2634_v8, %v650_v46  ;;  %v484_v42 = vmul.f32 %v2599_v9, %v483_v20  ;;  %vm476_vm14 = vweird.f32 %v2628_v47  ;;  %v2662_v19 = vpop.eup %1786  ;;  %v303_v55 = vpop.xlane.xlu1 %302 }
 0x131   :  { %v472_v0 = vmul.f32 0.5, %v471_v7  ;;  %1788 = vrsqrt.f32 %v2640_v6  ;;  %v889_v15 = vpack.c.bf16 %v857_v25, %v857_v25  ;;  %v724_v10 = vmul.f32 %v2605_v27, %v723_v48  ;;  %vm477_vm4 = vmor %vm475_vm10, %vm476_vm14 }
 0x132   :  { %v823_v2 = vmul.f32 %v2401_v40, %v788_v61  ;;  %v652_v14 = vmul.f32 0.5, %v651_v17  ;;  %v488_v29 = vsel %vm487_vm15, %v2599_v9, %v484_v42  ;;  %vm656_vm2 = vweird.f32 %v2634_v8 }
 0x133   :  { %v473_v35 = vsub.f32 1.5, %v472_v0  ;;  %v550_v16 = vmul.f32 %v2662_v19, %v2620_v13  ;;  %922 = vst.msk [vmem:[#allocation2 + $0x48] sm:$0xf] %vm903_vm6, %v889_v15  ;;  %v772_v28 = vmul.f32 %v488_v29, %v2222_v23  ;;  %v728_v60 = vsel %vm727_vm1, %v2605_v27, %v724_v10  ;;  %vm657_vm5 = vmor %vm655_vm12, %vm656_vm2 }
 0x134   :  { %v858_v32 = vadd.f32 %v2403_v56, %v823_v2  ;;  %v653_v9 = vsub.f32 1.5, %v652_v14  ;;  %v796_v59 = vmul.f32 %v728_v60, %v2213_v51  ;;  %vm555_vm3 = vweird.f32 %v2620_v13  ;;  %v306_v0 = vpop.xlane.xlu2 %305 }
 0x135   :  { %v474_v3 = vmul.f32 %v2628_v47, %v473_v35  ;;  %v551_v45 = vmul.f32 %v2662_v19, %v550_v16  ;;  %v807_v54 = vmul.f32 %v2401_v40, %v772_v28  ;;  %v2693_v27 = vadd.f32 1e-06, %v2623_v44 }
 0x136   :  { %v890_v39 = vpack.c.bf16 %v858_v32, %v858_v32  ;;  %v654_v23 = vmul.f32 %v2634_v8, %v653_v9  ;;  %v831_v5 = vmul.f32 %v2401_v40, %v796_v59  ;;  %v406_v21 = vmul.f32 %v354_v11, %v2123_v58 }
 0x137   :  { %v2695_v51 = vpop.eup %1788  ;;  %v478_v18 = vsel %vm477_vm4, %v2628_v47, %v474_v3  ;;  %v552_v46 = vmul.f32 0.5, %v551_v45  ;;  %v842_v44 = vadd.f32 %v2403_v56, %v807_v54  ;;  %vm556_vm7 = vweird.f32 %v2662_v19 }
 0x138   :  { %923 = vst.msk [vmem:[#allocation2 + $0x4c] sm:$0xf] %vm903_vm6, %v890_v39  ;;  %v771_v20 = vmul.f32 %v478_v18, %v2226_v26  ;;  %v658_v7 = vsel %vm657_vm5, %v2634_v8, %v654_v23  ;;  %v560_v47 = vmul.f32 %v2695_v51, %v2640_v6  ;;  %v866_v25 = vadd.f32 %v2403_v56, %v831_v5  ;;  %vm557_vm9 = vmor %vm555_vm3, %vm556_vm7  ;;  %v330_v54 = vpop.xlane.xlu1 %329  ;;  %v360_v23 = vpop.xlane.xlu0 %359 }
 0x139   :  { %v789_v62 = vmul.f32 %v658_v7, %v2246_v34  ;;  %v553_v61 = vsub.f32 1.5, %v552_v46  ;;  %v874_v11 = vpack.c.bf16 %v842_v44, %v842_v44  ;;  %1790 = vrsqrt.f32 %v2693_v27 }
 0x13a   :  { %v806_v48 = vmul.f32 %v2401_v40, %v771_v20  ;;  %v561_v17 = vmul.f32 %v2695_v51, %v560_v47  ;;  %v898_v26 = vpack.c.bf16 %v866_v25, %v866_v25  ;;  %vm566_vm8 = vweird.f32 %v2695_v51 }
 0x13b   :  { %v824_v8 = vmul.f32 %v2401_v40, %v789_v62  ;;  %v554_v42 = vmul.f32 %v2662_v19, %v553_v61  ;;  %907 = vst.msk [vmem:[#allocation2 + $0xc] sm:$0xf] %vm903_vm6, %v874_v11  ;;  %v2723_v2 = vadd.f32 1e-06, %v406_v21  ;;  %v413_v10 = vmul.f32 %v375_v36, %v2123_v58 }
 0x13c   :  { %v841_v34 = vadd.f32 %v2403_v56, %v806_v48  ;;  %v562_v15 = vmul.f32 0.5, %v561_v17  ;;  %931 = vst.msk [vmem:[#allocation2 + $0x6c] sm:$0xf] %vm903_vm6, %v898_v26  ;;  %v397_v35 = vmul.f32 %v327_v1, %v2123_v58  ;;  %v389_v16 = vmul.f32 %v303_v55, %v2123_v58  ;;  %v357_v62 = vpop.xlane.xlu2 %356 }
 0x13d   :  { %v859_v14 = vadd.f32 %v2403_v56, %v824_v8  ;;  %v558_v29 = vsel %vm557_vm9, %v2662_v19, %v554_v42  ;;  %1792 = vrsqrt.f32 %v2723_v2  ;;  %vm565_vm10 = vweird.f32 %v2640_v6 }
 0x13e   :  { %v873_v32 = vpack.c.bf16 %v841_v34, %v841_v34  ;;  %v779_v28 = vmul.f32 %v558_v29, %v2237_v37  ;;  %v563_v13 = vsub.f32 1.5, %v562_v15  ;;  %v2734_v36 = vadd.f32 1e-06, %v413_v10  ;;  %vm567_vm11 = vmor %vm565_vm10, %vm566_vm8 }
 0x13f   :  { %v891_v60 = vpack.c.bf16 %v859_v14, %v859_v14  ;;  %v2736_v9 = vadd.f32 1e-06, %v397_v35  ;;  %v1659_v59 = vld [vmem:[#allocation2 + $0x48] sm:$0xff]  ;;  %v2738_v3 = vpop.eup %1790  ;;  %v2743_v37 = vadd.f32 1e-06, %v389_v16  ;;  %v390_v39 = vmul.f32 %v306_v0, %v2123_v58 }
 0x140   :  { %906 = vst.msk [vmem:[#allocation2 + $0x8] sm:$0xf] %vm903_vm6, %v873_v32  ;;  %v814_v19 = vmul.f32 %v2401_v40, %v779_v28  ;;  %v564_v45 = vmul.f32 %v2695_v51, %v563_v13  ;;  %v740_v6 = vmul.f32 %v2738_v3, %v2693_v27  ;;  %1794 = vrsqrt.f32 %v2734_v36  ;;  %1643 = vmatmul.msk.bf16.gmra.mxu2 %vm89_vm0, %v1659_v59 }
 0x141   :  { %924 = vst.msk [vmem:[#allocation2 + $0x50] sm:$0xf] %vm903_vm6, %v891_v60  ;;  %1796 = vrsqrt.f32 %v2736_v9  ;;  %v2761_v44 = vadd.f32 1e-06, %v390_v39  ;;  %v398_v20 = vmul.f32 %v330_v54, %v2123_v58  ;;  %v408_v7 = vmul.f32 %v360_v23, %v2123_v58 }
 0x142   :  { %v849_v5 = vadd.f32 %v2403_v56, %v814_v19  ;;  %v568_v18 = vsel %vm567_vm11, %v2695_v51, %v564_v45  ;;  %v741_v21 = vmul.f32 %v2738_v3, %v740_v6  ;;  %1798 = vrsqrt.f32 %v2743_v37 }
 0x143   :  { %v780_v46 = vmul.f32 %v568_v18, %v2250_v50  ;;  %v2759_v1 = vpop.eup %1792  ;;  %v1663_v47 = vld [vmem:[#allocation2 + $0x68] sm:$0xff]  ;;  %vm745_vm12 = vweird.f32 %v2693_v27  ;;  %vm746_vm13 = vweird.f32 %v2738_v3  ;;  %vm665_vm14 = vweird.f32 %v2723_v2 }
 0x144   :  { %v881_v55 = vpack.c.bf16 %v849_v5, %v849_v5  ;;  %v742_v25 = vmul.f32 0.5, %v741_v21  ;;  %v660_v50 = vmul.f32 %v2759_v1, %v2723_v2  ;;  %1800 = vrsqrt.f32 %v2761_v44  ;;  %1647 = vmatmul.msk.bf16.gmra.mxu3 %vm89_vm0, %v1663_v47  ;;  %vm747_vm3 = vmor %vm745_vm12, %vm746_vm13 }
 0x145   :  { %v815_v51 = vmul.f32 %v2401_v40, %v780_v46  ;;  %v2773_v61 = vadd.f32 1e-06, %v398_v20  ;;  %v2780_v8 = vadd.f32 1e-06, %v408_v7  ;;  %vm666_vm15 = vweird.f32 %v2759_v1 }
 0x146   :  { %914 = vst.msk [vmem:[#allocation2 + $0x28] sm:$0xf] %vm903_vm6, %v881_v55  ;;  %v2776_v11 = vpop.eup %1794  ;;  %v743_v17 = vsub.f32 1.5, %v742_v25  ;;  %v661_v26 = vmul.f32 %v2759_v1, %v660_v50  ;;  %vm735_vm1 = vweird.f32 %v2734_v36  ;;  %v407_v15 = vmul.f32 %v357_v62, %v2123_v58  ;;  %vm667_vm11 = vmor %vm665_vm14, %vm666_vm15  ;;  %v381_v50 = vpop.xlane.xlu1 %380 }
 0x147   :  { %v850_v48 = vadd.f32 %v2403_v56, %v815_v51  ;;  %v1651_v42 = vld [vmem:[#allocation2 + $0x8] sm:$0xff]  ;;  %v2782_v0 = vpop.eup %1796  ;;  %v730_v34 = vmul.f32 %v2776_v11, %v2734_v36  ;;  %1802 = vrsqrt.f32 %v2773_v61  ;;  %vm575_vm2 = vweird.f32 %v2736_v9  ;;  %v309_v62 = vpop.xlane.xlu0 %308 }
 0x148   :  { %v2790_v10 = vpop.eup %1798  ;;  %v744_v29 = vmul.f32 %v2738_v3, %v743_v17  ;;  %v662_v35 = vmul.f32 0.5, %v661_v26  ;;  %v570_v16 = vmul.f32 %v2782_v0, %v2736_v9  ;;  %1635 = vmatmul.msk.bf16.gmra.mxu0 %vm89_vm0, %v1651_v42  ;;  %vm736_vm4 = vweird.f32 %v2776_v11 }
 0x149   :  { %v882_v14 = vpack.c.bf16 %v850_v48, %v850_v48  ;;  %v731_v32 = vmul.f32 %v2776_v11, %v730_v34  ;;  %vm576_vm5 = vweird.f32 %v2782_v0  ;;  %v490_v28 = vmul.f32 %v2790_v10, %v2743_v37  ;;  %vm737_vm12 = vmor %vm735_vm1, %vm736_vm4 }
 0x14a   :  { %vm495_vm7 = vweird.f32 %v2743_v37  ;;  %v748_v13 = vsel %vm747_vm3, %v2738_v3, %v744_v29  ;;  %v663_v60 = vsub.f32 1.5, %v662_v35  ;;  %v571_v59 = vmul.f32 %v2782_v0, %v570_v16  ;;  %v2811_v27 = vpop.eup %1800  ;;  %vm577_vm14 = vmor %vm575_vm2, %vm576_vm5 }
 0x14b   :  { %915 = vst.msk [vmem:[#allocation2 + $0x2c] sm:$0xf] %vm903_vm6, %v882_v14  ;;  %1804 = vrsqrt.f32 %v2780_v8  ;;  %v798_v19 = vmul.f32 %v748_v13, %v2270_v38  ;;  %v732_v45 = vmul.f32 0.5, %v731_v32  ;;  %v491_v39 = vmul.f32 %v2790_v10, %v490_v28 }
 0x14c   :  { %vm496_vm8 = vweird.f32 %v2790_v10  ;;  %v664_v6 = vmul.f32 %v2759_v1, %v663_v60  ;;  %v572_v54 = vmul.f32 0.5, %v571_v59  ;;  %v500_v3 = vmul.f32 %v2811_v27, %v2761_v44 }
 0x14d   :  { %vm505_vm9 = vweird.f32 %v2761_v44  ;;  %vm506_vm10 = vweird.f32 %v2811_v27  ;;  %v2821_v23 = vpop.eup %1802  ;;  %v833_v5 = vmul.f32 %v2401_v40, %v798_v19  ;;  %v733_v38 = vsub.f32 1.5, %v732_v45  ;;  %vm497_vm15 = vmor %vm495_vm7, %vm496_vm8 }
 0x14e   :  { %v492_v18 = vmul.f32 0.5, %v491_v39  ;;  %v2828_v46 = vadd.f32 1e-06, %v407_v15  ;;  %v668_v21 = vsel %vm667_vm11, %v2759_v1, %v664_v6  ;;  %v573_v55 = vsub.f32 1.5, %v572_v54  ;;  %v384_v15 = vpop.xlane.xlu2 %383  ;;  %vm507_vm1 = vmor %vm505_vm9, %vm506_vm10 }
 0x14f   :  { %v501_v20 = vmul.f32 %v2811_v27, %v500_v3  ;;  %v580_v7 = vmul.f32 %v2821_v23, %v2773_v61  ;;  %v868_v47 = vadd.f32 %v2403_v56, %v833_v5  ;;  %v790_v51 = vmul.f32 %v668_v21, %v2261_v4 }
 0x150   :  { %v734_v25 = vmul.f32 %v2776_v11, %v733_v38  ;;  %v493_v2 = vsub.f32 1.5, %v492_v18  ;;  %v574_v1 = vmul.f32 %v2782_v0, %v573_v55  ;;  %vm586_vm13 = vweird.f32 %v2821_v23  ;;  %v336_v55 = vpop.xlane.xlu0 %335 }
 0x151   :  { %v2837_v48 = vpop.eup %1804  ;;  %v502_v17 = vmul.f32 0.5, %v501_v20  ;;  %v581_v26 = vmul.f32 %v2821_v23, %v580_v7  ;;  %v900_v4 = vpack.c.bf16 %v868_v47, %v868_v47  ;;  %v825_v42 = vmul.f32 %v2401_v40, %v790_v51 }
 0x152   :  { %v738_v34 = vsel %vm737_vm12, %v2776_v11, %v734_v25  ;;  %v494_v36 = vmul.f32 %v2790_v10, %v493_v2  ;;  %v1655_v14 = vld [vmem:[#allocation2 + $0x28] sm:$0xff]  ;;  %v578_v35 = vsel %vm577_vm14, %v2782_v0, %v574_v1  ;;  %vm585_vm2 = vweird.f32 %v2773_v61 }
 0x153   :  { %v797_v29 = vmul.f32 %v738_v34, %v2274_v41  ;;  %v503_v16 = vsub.f32 1.5, %v502_v17  ;;  %v582_v11 = vmul.f32 0.5, %v581_v26  ;;  %933 = vst.msk [vmem:[#allocation2 + $0x74] sm:$0xf] %vm903_vm6, %v900_v4  ;;  %v860_v9 = vadd.f32 %v2403_v56, %v825_v42  ;;  %1639 = vmatmul.msk.bf16.gmra.mxu1 %vm89_vm0, %v1655_v14  ;;  %vm587_vm3 = vmor %vm585_vm2, %vm586_vm13 }
 0x154   :  { %v781_v32 = vmul.f32 %v578_v35, %v2294_v49  ;;  %v498_v28 = vsel %vm497_vm15, %v2790_v10, %v494_v36  ;;  %v680_v41 = vmul.f32 %v2837_v48, %v2780_v8  ;;  %1806 = vrsqrt.f32 %v2828_v46 }
 0x155   :  { %v832_v0 = vmul.f32 %v2401_v40, %v797_v29  ;;  %v773_v13 = vmul.f32 %v498_v28, %v2285_v33  ;;  %v504_v37 = vmul.f32 %v2811_v27, %v503_v16  ;;  %v583_v60 = vsub.f32 1.5, %v582_v11 }
 0x156   :  { %v892_v59 = vpack.c.bf16 %v860_v9, %v860_v9  ;;  %v816_v19 = vmul.f32 %v2401_v40, %v781_v32  ;;  %v681_v49 = vmul.f32 %v2837_v48, %v680_v41  ;;  %vm686_vm4 = vweird.f32 %v2837_v48  ;;  %v333_v2 = vpop.xlane.xlu2 %332 }
 0x157   :  { %v867_v10 = vadd.f32 %v2403_v56, %v832_v0  ;;  %v808_v33 = vmul.f32 %v2401_v40, %v773_v13  ;;  %v508_v45 = vsel %vm507_vm1, %v2811_v27, %v504_v37  ;;  %v584_v39 = vmul.f32 %v2821_v23, %v583_v60 }
 0x158   :  { %925 = vst.msk [vmem:[#allocation2 + $0x54] sm:$0xf] %vm903_vm6, %v892_v59  ;;  %v851_v6 = vadd.f32 %v2403_v56, %v816_v19  ;;  %v774_v54 = vmul.f32 %v508_v45, %v2298_v24  ;;  %v682_v44 = vmul.f32 0.5, %v681_v49  ;;  %v312_v24 = vpop.xlane.xlu1 %311  ;;  %v415_v7 = vmul.f32 %v381_v50, %v2123_v58 }
 0x159   :  { %v899_v61 = vpack.c.bf16 %v867_v10, %v867_v10  ;;  %v843_v3 = vadd.f32 %v2403_v56, %v808_v33  ;;  %v588_v5 = vsel %vm587_vm3, %v2821_v23, %v584_v39  ;;  %v391_v47 = vmul.f32 %v309_v62, %v2123_v58 }
 0x15a   :  { %v883_v27 = vpack.c.bf16 %v851_v6, %v851_v6  ;;  %v809_v38 = vmul.f32 %v2401_v40, %v774_v54  ;;  %v782_v18 = vmul.f32 %v588_v5, %v2309_v31  ;;  %v683_v21 = vsub.f32 1.5, %v682_v44  ;;  %v1807_v26 = vpop.eup %1806 }
 0x15b   :  { %932 = vst.msk [vmem:[#allocation2 + $0x70] sm:$0xf] %vm903_vm6, %v899_v61  ;;  %v875_v20 = vpack.c.bf16 %v843_v3, %v843_v3  ;;  %v416_v51 = vmul.f32 %v384_v15, %v2123_v58  ;;  %vm685_vm5 = vweird.f32 %v2780_v8  ;;  %v2903_v50 = vadd.f32 1e-06, %v415_v7 }
 0x15c   :  { %916 = vst.msk [vmem:[#allocation2 + $0x30] sm:$0xf] %vm903_vm6, %v883_v27  ;;  %v844_v23 = vadd.f32 %v2403_v56, %v809_v38  ;;  %v817_v25 = vmul.f32 %v2401_v40, %v782_v18  ;;  %v684_v31 = vmul.f32 %v2837_v48, %v683_v21  ;;  %vm687_vm7 = vmor %vm685_vm5, %vm686_vm4  ;;  %v2905_v62 = vadd.f32 1e-06, %v391_v47 }
 0x15d   :  { %908 = vst.msk [vmem:[#allocation2 + $0x10] sm:$0xf] %vm903_vm6, %v875_v20  ;;  %v392_v1 = vmul.f32 %v312_v24, %v2123_v58  ;;  %v400_v17 = vmul.f32 %v336_v55, %v2123_v58  ;;  %v2911_v34 = vadd.f32 1e-06, %v416_v51  ;;  %v670_v15 = vmul.f32 %v1807_v26, %v2828_v46 }
 0x15e   :  { %v876_v4 = vpack.c.bf16 %v844_v23, %v844_v23  ;;  %v852_v42 = vadd.f32 %v2403_v56, %v817_v25  ;;  %v688_v8 = vsel %vm687_vm7, %v2837_v48, %v684_v31  ;;  %1808 = vrsqrt.f32 %v2903_v50 }
 0x15f   :  { %v792_v36 = vmul.f32 %v688_v8, %v2325_v12  ;;  %v399_v14 = vmul.f32 %v333_v2, %v2123_v58  ;;  %v1660_v29 = vld [vmem:[#allocation2 + $0x50] sm:$0xff]  ;;  %1810 = vrsqrt.f32 %v2905_v62  ;;  %v671_v11 = vmul.f32 %v1807_v26, %v670_v15 }
 0x160   :  { %909 = vst.msk [vmem:[#allocation2 + $0x14] sm:$0xf] %vm903_vm6, %v876_v4  ;;  %v884_v35 = vpack.c.bf16 %v852_v42, %v852_v42  ;;  %1812 = vrsqrt.f32 %v2911_v34  ;;  %1644 = vmatmul.msk.bf16.gmra.mxu2 %vm89_vm0, %v1660_v29  ;;  %v2923_v12 = vadd.f32 1e-06, %v392_v1  ;;  %v2925_v48 = vadd.f32 1e-06, %v400_v17 }
 0x161   :  { %v827_v16 = vmul.f32 %v2401_v40, %v792_v36  ;;  %v672_v9 = vmul.f32 0.5, %v671_v11  ;;  %v2928_v32 = vadd.f32 1e-06, %v399_v14  ;;  %vm676_vm8 = vweird.f32 %v1807_v26 }
 0x162   :  { %917 = vst.msk [vmem:[#allocation2 + $0x34] sm:$0xf] %vm903_vm6, %v884_v35  ;;  %v1664_v28 = vld [vmem:[#allocation2 + $0x70] sm:$0xff]  ;;  %1814 = vrsqrt.f32 %v2923_v12  ;;  %vm675_vm9 = vweird.f32 %v2828_v46  ;;  %vm755_vm11 = vweird.f32 %v2903_v50  ;;  %vm515_vm12 = vweird.f32 %v2905_v62 }
 0x163   :  { %v862_v58 = vadd.f32 %v2403_v56, %v827_v16  ;;  %v673_v13 = vsub.f32 1.5, %v672_v9  ;;  %1816 = vrsqrt.f32 %v2925_v48  ;;  %1648 = vmatmul.msk.bf16.gmra.mxu3 %vm89_vm0, %v1664_v28  ;;  %vm677_vm10 = vmor %vm675_vm9, %vm676_vm8  ;;  %vm765_vm13 = vweird.f32 %v2911_v34 }
 0x164   :  { %v1809_v41 = vpop.eup %1808  ;;  %1818 = vrsqrt.f32 %v2928_v32  ;;  %vm525_vm2 = vweird.f32 %v2923_v12 }
 0x165   :  { %v894_v0 = vpack.c.bf16 %v862_v58, %v862_v58  ;;  %v1811_v37 = vpop.eup %1810  ;;  %v750_v60 = vmul.f32 %v1809_v41, %v2903_v50  ;;  %v674_v19 = vmul.f32 %v1807_v26, %v673_v13  ;;  %vm756_vm14 = vweird.f32 %v1809_v41 }
 0x166   :  { %v2935_v59 = vpop.eup %1812  ;;  %v510_v49 = vmul.f32 %v1811_v37, %v2905_v62  ;;  %vm516_vm15 = vweird.f32 %v1811_v37  ;;  %vm757_vm4 = vmor %vm755_vm11, %vm756_vm14  ;;  %vm605_vm11 = vweird.f32 %v2925_v48 }
 0x167   :  { %927 = vst.msk [vmem:[#allocation2 + $0x5c] sm:$0xf] %vm903_vm6, %v894_v0  ;;  %v1652_v10 = vld [vmem:[#allocation2 + $0x10] sm:$0xff]  ;;  %v751_v33 = vmul.f32 %v1809_v41, %v750_v60  ;;  %v760_v45 = vmul.f32 %v2935_v59, %v2911_v34  ;;  %v678_v39 = vsel %vm677_vm10, %v1807_v26, %v674_v19  ;;  %vm766_vm1 = vweird.f32 %v2935_v59  ;;  %vm517_vm7 = vmor %vm515_vm12, %vm516_vm15 }
 0x168   :  { %v511_v6 = vmul.f32 %v1811_v37, %v510_v49  ;;  %1636 = vmatmul.msk.bf16.gmra.mxu0 %vm89_vm0, %v1652_v10  ;;  %v1815_v46 = vpop.eup %1814  ;;  %v791_v44 = vmul.f32 %v678_v39, %v2318_v53  ;;  %vm767_vm8 = vmor %vm765_vm13, %vm766_vm1  ;;  %vm595_vm12 = vweird.f32 %v2928_v32 }
 0x169   :  { %v1656_v54 = vld [vmem:[#allocation2 + $0x30] sm:$0xff]  ;;  %v752_v61 = vmul.f32 0.5, %v751_v33  ;;  %v761_v3 = vmul.f32 %v2935_v59, %v760_v45  ;;  %v1817_v5 = vpop.eup %1816  ;;  %v520_v38 = vmul.f32 %v1815_v46, %v2923_v12  ;;  %vm526_vm3 = vweird.f32 %v1815_v46 }
 0x16a   :  { %v512_v27 = vmul.f32 0.5, %v511_v6  ;;  %1640 = vmatmul.msk.bf16.gmra.mxu1 %vm89_vm0, %v1656_v54  ;;  %v1819_v18 = vpop.eup %1818  ;;  %v826_v21 = vmul.f32 %v2401_v40, %v791_v44  ;;  %v600_v55 = vmul.f32 %v1817_v5, %v2925_v48  ;;  %vm606_vm5 = vweird.f32 %v1817_v5  ;;  %vm527_vm10 = vmor %vm525_vm2, %vm526_vm3 }
 0x16b   :  { %v753_v24 = vsub.f32 1.5, %v752_v61  ;;  %v762_v53 = vmul.f32 0.5, %v761_v3  ;;  %v521_v7 = vmul.f32 %v1815_v46, %v520_v38  ;;  %v590_v47 = vmul.f32 %v1819_v18, %v2928_v32  ;;  %vm607_vm13 = vmor %vm605_vm11, %vm606_vm5 }
 0x16c   :  { %v513_v20 = vsub.f32 1.5, %v512_v27  ;;  %v861_v51 = vadd.f32 %v2403_v56, %v826_v21  ;;  %v601_v31 = vmul.f32 %v1817_v5, %v600_v55  ;;  %vm596_vm9 = vweird.f32 %v1819_v18 }
 0x16d   :  { %v754_v23 = vmul.f32 %v1809_v41, %v753_v24  ;;  %v763_v25 = vsub.f32 1.5, %v762_v53  ;;  %v522_v1 = vmul.f32 0.5, %v521_v7  ;;  %v591_v17 = vmul.f32 %v1819_v18, %v590_v47  ;;  %vm597_vm14 = vmor %vm595_vm12, %vm596_vm9 }
 0x16e   :  { %v514_v2 = vmul.f32 %v1811_v37, %v513_v20  ;;  %v893_v26 = vpack.c.bf16 %v861_v51, %v861_v51  ;;  %v602_v8 = vmul.f32 0.5, %v601_v31 }
 0x16f   :  { %v758_v4 = vsel %vm757_vm4, %v1809_v41, %v754_v23  ;;  %v764_v42 = vmul.f32 %v2935_v59, %v763_v25  ;;  %v523_v50 = vsub.f32 1.5, %v522_v1  ;;  %v592_v14 = vmul.f32 0.5, %v591_v17 }
 0x170   :  { %v799_v36 = vmul.f32 %v758_v4, %v2333_v30  ;;  %v518_v15 = vsel %vm517_vm7, %v1811_v37, %v514_v2  ;;  %926 = vst.msk [vmem:[#allocation2 + $0x58] sm:$0xf] %vm903_vm6, %v893_v26  ;;  %v603_v35 = vsub.f32 1.5, %v602_v8 }
 0x171   :  { %v775_v29 = vmul.f32 %v518_v15, %v2347_v43  ;;  %v768_v62 = vsel %vm767_vm8, %v2935_v59, %v764_v42  ;;  %v524_v11 = vmul.f32 %v1815_v46, %v523_v50  ;;  %v593_v58 = vsub.f32 1.5, %v592_v14 }
 0x172   :  { %v834_v16 = vmul.f32 %v2401_v40, %v799_v36  ;;  %v800_v30 = vmul.f32 %v768_v62, %v2343_v63  ;;  %v604_v34 = vmul.f32 %v1817_v5, %v603_v35 }
 0x173   :  { %v810_v9 = vmul.f32 %v2401_v40, %v775_v29  ;;  %v528_v41 = vsel %vm527_vm10, %v1815_v46, %v524_v11  ;;  %v594_v63 = vmul.f32 %v1819_v18, %v593_v58 }
 0x174   :  { %v869_v43 = vadd.f32 %v2403_v56, %v834_v16  ;;  %v835_v28 = vmul.f32 %v2401_v40, %v800_v30  ;;  %v776_v13 = vmul.f32 %v528_v41, %v2368_v22  ;;  %v608_v37 = vsel %vm607_vm13, %v1817_v5, %v604_v34 }
 0x175   :  { %v845_v0 = vadd.f32 %v2403_v56, %v810_v9  ;;  %v784_v32 = vmul.f32 %v608_v37, %v2372_v57  ;;  %v598_v60 = vsel %vm597_vm14, %v1819_v18, %v594_v63 }
 0x176   :  { %v901_v12 = vpack.c.bf16 %v869_v43, %v869_v43  ;;  %v870_v48 = vadd.f32 %v2403_v56, %v835_v28  ;;  %v811_v19 = vmul.f32 %v2401_v40, %v776_v13  ;;  %v783_v49 = vmul.f32 %v598_v60, %v2357_v52 }
 0x177   :  { %v877_v59 = vpack.c.bf16 %v845_v0, %v845_v0  ;;  %v819_v33 = vmul.f32 %v2401_v40, %v784_v32  ;;  %v1661_v22 = vld [vmem:[#allocation2 + $0x58] sm:$0xff] }
 0x178   :  { %934 = vst.msk [vmem:[#allocation2 + $0x78] sm:$0xf] %vm903_vm6, %v901_v12  ;;  %v902_v10 = vpack.c.bf16 %v870_v48, %v870_v48  ;;  %v846_v45 = vadd.f32 %v2403_v56, %v811_v19  ;;  %v818_v39 = vmul.f32 %v2401_v40, %v783_v49  ;;  %1645 = vmatmul.msk.bf16.gmra.mxu2 %vm89_vm0, %v1661_v22 }
 0x179   :  { %910 = vst.msk [vmem:[#allocation2 + $0x18] sm:$0xf] %vm903_vm6, %v877_v59  ;;  %v854_v57 = vadd.f32 %v2403_v56, %v819_v33 }
 0x17a   :  { %935 = vst.msk [vmem:[#allocation2 + $0x7c] sm:$0xf] %vm903_vm6, %v902_v10  ;;  %v878_v6 = vpack.c.bf16 %v846_v45, %v846_v45  ;;  %v853_v52 = vadd.f32 %v2403_v56, %v818_v39  ;;  %v972_v56 = vld [vmem:[%s3397_s4] sm:$0x1] }
 0x17b   :  { %v886_v54 = vpack.c.bf16 %v854_v57, %v854_v57  ;;  %v973_v3 = vunpack.c.l.bf16 %v972_v56 }
 0x17c   :  { %911 = vst.msk [vmem:[#allocation2 + $0x1c] sm:$0xf] %vm903_vm6, %v878_v6  ;;  %v885_v46 = vpack.c.bf16 %v853_v52, %v853_v52 }
 0x17d   :  { %919 = vst.msk [vmem:[#allocation2 + $0x3c] sm:$0xf] %vm903_vm6, %v886_v54  ;;  %v3007_v5 = vperm.slane %v973_v3, 0 }
 0x17e   :  { %918 = vst.msk [vmem:[#allocation2 + $0x38] sm:$0xf] %vm903_vm6, %v885_v46 }
 0x181   :  { %v1665_v44 = vld [vmem:[#allocation2 + $0x78] sm:$0xff] }
 0x182   :  { %1649 = vmatmul.msk.bf16.gmra.mxu3 %vm89_vm0, %v1665_v44 }
 0x183   :  { %v1653_v40 = vld [vmem:[#allocation2 + $0x18] sm:$0xff] }
 0x184   :  { %1637 = vmatmul.msk.bf16.gmra.mxu0 %vm89_vm0, %v1653_v40 }
 0x185   :  { %v1657_v61 = vld [vmem:[#allocation2 + $0x38] sm:$0xff] }
 0x186   :  { %1641 = vmatmul.msk.bf16.gmra.mxu1 %vm89_vm0, %v1657_v61  ;;  %vm1525_vm0 = vcmask 519168  }
 0x1a6   :  { %v1165_v27 = vpop.f32.mrf.mxu2 }
 0x1a7   :  { %v3010_v38 = vadd.f32 %v1165_v27, %v3007_v5  ;;  %v1185_v18 = vpop.f32.mrf.mxu3 }
 0x1a8   :  { %v3013_v21 = vadd.f32 %v1185_v18, %v3007_v5 }
 0x1a9   :  { %v1221_v24 = vmul.f32 %v3010_v38, %v3010_v38 }
 0x1aa   :  { %v1229_v53 = vmul.f32 %v3013_v21, %v3013_v21  ;;  %v1125_v20 = vpop.f32.mrf.mxu0 }
 0x1ab   :  { %v1253_v55 = vmul.f32 %v1221_v24, %v3010_v38  ;;  %v3022_v47 = vadd.f32 %v1125_v20, %v3007_v5  ;;  %v1145_v51 = vpop.f32.mrf.mxu1 }
 0x1ac   :  { %v1261_v7 = vmul.f32 %v1229_v53, %v3013_v21  ;;  %v3025_v25 = vadd.f32 %v1145_v51, %v3007_v5 }
 0x1ad   :  { %v1285_v23 = vmul.f32 0.044715, %v1253_v55  ;;  %v1205_v2 = vmul.f32 %v3022_v47, %v3022_v47 }
 0x1ae   :  { %v1293_v31 = vmul.f32 0.044715, %v1261_v7  ;;  %v1167_v1 = vpop.f32.mrf.mxu2  ;;  %v1213_v26 = vmul.f32 %v3025_v25, %v3025_v25 }
 0x1af   :  { %v1317_v17 = vadd.f32 %v1285_v23, %v3010_v38  ;;  %v3033_v4 = vadd.f32 %v1167_v1, %v3007_v5  ;;  %v1187_v42 = vpop.f32.mrf.mxu3  ;;  %v1237_v36 = vmul.f32 %v1205_v2, %v3022_v47 }
 0x1b0   :  { %v1325_v8 = vadd.f32 %v1293_v31, %v3013_v21  ;;  %v3038_v15 = vadd.f32 %v1187_v42, %v3007_v5  ;;  %v1245_v14 = vmul.f32 %v1213_v26, %v3025_v25 }
 0x1b1   :  { %v1349_v50 = vmul.f32 0.7978846, %v1317_v17  ;;  %v1222_v29 = vmul.f32 %v3033_v4, %v3033_v4  ;;  %v1269_v35 = vmul.f32 0.044715, %v1237_v36 }
 0x1b2   :  { %v1357_v62 = vmul.f32 0.7978846, %v1325_v8  ;;  %v1230_v16 = vmul.f32 %v3038_v15, %v3038_v15  ;;  %v1277_v30 = vmul.f32 0.044715, %v1245_v14  ;;  %v1127_v58 = vpop.f32.mrf.mxu0 }
 0x1b3   :  { %1820 = vtanh.f32 %v1349_v50  ;;  %v1254_v11 = vmul.f32 %v1222_v29, %v3033_v4  ;;  %v1301_v9 = vadd.f32 %v1269_v35, %v3022_v47  ;;  %v3049_v43 = vadd.f32 %v1127_v58, %v3007_v5  ;;  %v1147_v28 = vpop.f32.mrf.mxu1 }
 0x1b4   :  { %1822 = vtanh.f32 %v1357_v62  ;;  %v1262_v34 = vmul.f32 %v1230_v16, %v3038_v15  ;;  %v1309_v41 = vadd.f32 %v1277_v30, %v3025_v25  ;;  %v3053_v0 = vadd.f32 %v1147_v28, %v3007_v5 }
 0x1b5   :  { %v1286_v63 = vmul.f32 0.044715, %v1254_v11  ;;  %v1333_v13 = vmul.f32 0.7978846, %v1301_v9  ;;  %v1206_v12 = vmul.f32 %v3049_v43, %v3049_v43 }
 0x1b6   :  { %v1294_v37 = vmul.f32 0.044715, %v1262_v34  ;;  %v1341_v48 = vmul.f32 0.7978846, %v1309_v41  ;;  %v1214_v60 = vmul.f32 %v3053_v0, %v3053_v0 }
 0x1b7   :  { %v1318_v32 = vadd.f32 %v1286_v63, %v3033_v4  ;;  %1824 = vtanh.f32 %v1333_v13  ;;  %v1238_v19 = vmul.f32 %v1206_v12, %v3049_v43 }
 0x1b8   :  { %v1326_v59 = vadd.f32 %v1294_v37, %v3038_v15  ;;  %1826 = vtanh.f32 %v1341_v48  ;;  %v1246_v33 = vmul.f32 %v1214_v60, %v3053_v0 }
 0x1b9   :  { %v1821_v49 = vpop.eup %1820  ;;  %v1350_v10 = vmul.f32 0.7978846, %v1318_v32  ;;  %v1270_v57 = vmul.f32 0.044715, %v1238_v19 }
 0x1ba   :  { %v1823_v22 = vpop.eup %1822  ;;  %v1413_v45 = vadd.f32 1.0, %v1821_v49  ;;  %v1358_v39 = vmul.f32 0.7978846, %v1326_v59  ;;  %v1278_v52 = vmul.f32 0.044715, %v1246_v33 }
 0x1bb   :  { %v1421_v6 = vadd.f32 1.0, %v1823_v22  ;;  %1828 = vtanh.f32 %v1350_v10  ;;  %v1302_v46 = vadd.f32 %v1270_v57, %v3049_v43 }
 0x1bc   :  { %v1445_v54 = vmul.f32 0.5, %v1413_v45  ;;  %1830 = vtanh.f32 %v1358_v39  ;;  %v1310_v40 = vadd.f32 %v1278_v52, %v3053_v0 }
 0x1bd   :  { %v1453_v44 = vmul.f32 0.5, %v1421_v6  ;;  %v1825_v61 = vpop.eup %1824  ;;  %v1334_v3 = vmul.f32 0.7978846, %v1302_v46 }
 0x1be   :  { %v1477_v56 = vmul.f32 %v1445_v54, %v3010_v38  ;;  %v1827_v27 = vpop.eup %1826  ;;  %v1397_v24 = vadd.f32 1.0, %v1825_v61  ;;  %v1342_v53 = vmul.f32 0.7978846, %v1310_v40 }
 0x1bf   :  { %v1485_v18 = vmul.f32 %v1453_v44, %v3013_v21  ;;  %v1405_v20 = vadd.f32 1.0, %v1827_v27  ;;  %1832 = vtanh.f32 %v1334_v3 }
 0x1c0   :  { %v1509_v55 = vpack.c.bf16 %v1477_v56, %v1477_v56  ;;  %v1429_v23 = vmul.f32 0.5, %v1397_v24  ;;  %1834 = vtanh.f32 %v1342_v53 }
 0x1c1   :  { %v1829_v7 = vpop.eup %1828  ;;  %v1517_v51 = vpack.c.bf16 %v1485_v18, %v1485_v18  ;;  %v1437_v38 = vmul.f32 0.5, %v1405_v20 }
 0x1c2   :  { %v1831_v31 = vpop.eup %1830  ;;  %1542 = vst.msk [vmem:[%s3398_s5 + $0x40] sm:$0xf] %vm1525_vm0, %v1509_v55  ;;  %v1414_v2 = vadd.f32 1.0, %v1829_v7  ;;  %v1461_v21 = vmul.f32 %v1429_v23, %v3022_v47 }
 0x1c3   :  { %1550 = vst.msk [vmem:[%s3398_s5 + $0x60] sm:$0xf] %vm1525_vm0, %v1517_v51  ;;  %v1422_v1 = vadd.f32 1.0, %v1831_v31  ;;  %v1170_v17 = vpop.f32.mrf.mxu2  ;;  %v1469_v26 = vmul.f32 %v1437_v38, %v3025_v25 }
 0x1c4   :  { %v1446_v42 = vmul.f32 0.5, %v1414_v2  ;;  %v3078_v8 = vadd.f32 %v1170_v17, %v3007_v5  ;;  %v1493_v36 = vpack.c.bf16 %v1461_v21, %v1461_v21 }
 0x1c5   :  { %v1454_v50 = vmul.f32 0.5, %v1422_v1  ;;  %v1130_v14 = vpop.f32.mrf.mxu0  ;;  %v1833_v29 = vpop.eup %1832  ;;  %v1501_v62 = vpack.c.bf16 %v1469_v26, %v1469_v26 }
 0x1c6   :  { %v1478_v35 = vmul.f32 %v1446_v42, %v3033_v4  ;;  %v1223_v16 = vmul.f32 %v3078_v8, %v3078_v8  ;;  %v3084_v47 = vadd.f32 %v1130_v14, %v3007_v5  ;;  %v1835_v30 = vpop.eup %1834  ;;  %1526 = vst.msk [vmem:[%s3398_s5] sm:$0xf] %vm1525_vm0, %v1493_v36  ;;  %v1398_v11 = vadd.f32 1.0, %v1833_v29 }
 0x1c7   :  { %v1486_v25 = vmul.f32 %v1454_v50, %v3038_v15  ;;  %1534 = vst.msk [vmem:[%s3398_s5 + $0x20] sm:$0xf] %vm1525_vm0, %v1501_v62  ;;  %v1406_v58 = vadd.f32 1.0, %v1835_v30  ;;  %v1190_v28 = vpop.f32.mrf.mxu3 }
 0x1c8   :  { %v1510_v4 = vpack.c.bf16 %v1478_v35, %v1478_v35  ;;  %v1255_v9 = vmul.f32 %v1223_v16, %v3078_v8  ;;  %v1207_v34 = vmul.f32 %v3084_v47, %v3084_v47  ;;  %v1430_v63 = vmul.f32 0.5, %v1398_v11 }
 0x1c9   :  { %v1518_v41 = vpack.c.bf16 %v1486_v25, %v1486_v25  ;;  %v3099_v13 = vadd.f32 %v1190_v28, %v3007_v5  ;;  %v1438_v15 = vmul.f32 0.5, %v1406_v58 }
 0x1ca   :  { %1543 = vst.msk [vmem:[%s3398_s5 + $0x44] sm:$0xf] %vm1525_vm0, %v1510_v4  ;;  %v1287_v37 = vmul.f32 0.044715, %v1255_v9  ;;  %v1239_v12 = vmul.f32 %v1207_v34, %v3084_v47  ;;  %v1462_v48 = vmul.f32 %v1430_v63, %v3049_v43 }
 0x1cb   :  { %1551 = vst.msk [vmem:[%s3398_s5 + $0x64] sm:$0xf] %vm1525_vm0, %v1518_v41  ;;  %v1172_v32 = vpop.f32.mrf.mxu2  ;;  %v1231_v60 = vmul.f32 %v3099_v13, %v3099_v13  ;;  %v1470_v59 = vmul.f32 %v1438_v15, %v3053_v0 }
 0x1cc   :  { %v1319_v19 = vadd.f32 %v1287_v37, %v3078_v8  ;;  %v1271_v49 = vmul.f32 0.044715, %v1239_v12  ;;  %v3116_v10 = vadd.f32 %v1172_v32, %v3007_v5  ;;  %v1494_v33 = vpack.c.bf16 %v1462_v48, %v1462_v48 }
 0x1cd   :  { %v1263_v22 = vmul.f32 %v1231_v60, %v3099_v13  ;;  %v1132_v45 = vpop.f32.mrf.mxu0  ;;  %v1502_v39 = vpack.c.bf16 %v1470_v59, %v1470_v59 }
 0x1ce   :  { %v1351_v57 = vmul.f32 0.7978846, %v1319_v19  ;;  %v1303_v43 = vadd.f32 %v1271_v49, %v3084_v47  ;;  %v1224_v6 = vmul.f32 %v3116_v10, %v3116_v10  ;;  %1527 = vst.msk [vmem:[%s3398_s5 + $0x4] sm:$0xf] %vm1525_vm0, %v1494_v33  ;;  %v3127_v52 = vadd.f32 %v1132_v45, %v3007_v5 }
 0x1cf   :  { %v1295_v0 = vmul.f32 0.044715, %v1263_v22  ;;  %1535 = vst.msk [vmem:[%s3398_s5 + $0x24] sm:$0xf] %vm1525_vm0, %v1502_v39  ;;  %v1192_v44 = vpop.f32.mrf.mxu3 }
 0x1d0   :  { %1836 = vtanh.f32 %v1351_v57  ;;  %v1335_v54 = vmul.f32 0.7978846, %v1303_v43  ;;  %v1256_v46 = vmul.f32 %v1224_v6, %v3116_v10  ;;  %v1208_v61 = vmul.f32 %v3127_v52, %v3127_v52  ;;  %v1150_v56 = vpop.f32.mrf.mxu1 }
 0x1d1   :  { %v1327_v40 = vadd.f32 %v1295_v0, %v3099_v13  ;;  %v3138_v3 = vadd.f32 %v1192_v44, %v3007_v5  ;;  %v3141_v18 = vadd.f32 %v1150_v56, %v3007_v5 }
 0x1d2   :  { %1838 = vtanh.f32 %v1335_v54  ;;  %v1288_v27 = vmul.f32 0.044715, %v1256_v46  ;;  %v1240_v53 = vmul.f32 %v1208_v61, %v3127_v52 }
 0x1d3   :  { %v1359_v24 = vmul.f32 0.7978846, %v1327_v40  ;;  %v1232_v55 = vmul.f32 %v3138_v3, %v3138_v3  ;;  %v1215_v7 = vmul.f32 %v3141_v18, %v3141_v18 }
 0x1d4   :  { %v1320_v20 = vadd.f32 %v1288_v27, %v3116_v10  ;;  %v1272_v51 = vmul.f32 0.044715, %v1240_v53 }
 0x1d5   :  { %1840 = vtanh.f32 %v1359_v24  ;;  %v1264_v23 = vmul.f32 %v1232_v55, %v3138_v3  ;;  %v1247_v2 = vmul.f32 %v1215_v7, %v3141_v18 }
 0x1d6   :  { %v1837_v31 = vpop.eup %1836  ;;  %v1352_v38 = vmul.f32 0.7978846, %v1320_v20  ;;  %v1304_v1 = vadd.f32 %v1272_v51, %v3127_v52 }
 0x1d7   :  { %v1415_v21 = vadd.f32 1.0, %v1837_v31  ;;  %v1296_v17 = vmul.f32 0.044715, %v1264_v23  ;;  %v1279_v42 = vmul.f32 0.044715, %v1247_v2 }
 0x1d8   :  { %v1839_v26 = vpop.eup %1838  ;;  %1842 = vtanh.f32 %v1352_v38  ;;  %v1336_v14 = vmul.f32 0.7978846, %v1304_v1  ;;  %v1152_v62 = vpop.f32.mrf.mxu1 }
 0x1d9   :  { %v1447_v36 = vmul.f32 0.5, %v1415_v21  ;;  %v1399_v50 = vadd.f32 1.0, %v1839_v26  ;;  %v1328_v29 = vadd.f32 %v1296_v17, %v3138_v3  ;;  %v1311_v35 = vadd.f32 %v1279_v42, %v3141_v18 }
 0x1da   :  { %v3155_v16 = vadd.f32 %v1152_v62, %v3007_v5  ;;  %1844 = vtanh.f32 %v1336_v14 }
 0x1db   :  { %v1841_v30 = vpop.eup %1840  ;;  %v1479_v25 = vmul.f32 %v1447_v36, %v3078_v8  ;;  %v1431_v11 = vmul.f32 0.5, %v1399_v50  ;;  %v1360_v4 = vmul.f32 0.7978846, %v1328_v29  ;;  %v1343_v9 = vmul.f32 0.7978846, %v1311_v35 }
 0x1dc   :  { %v1423_v58 = vadd.f32 1.0, %v1841_v30  ;;  %v1216_v34 = vmul.f32 %v3155_v16, %v3155_v16 }
 0x1dd   :  { %v1511_v28 = vpack.c.bf16 %v1479_v25, %v1479_v25  ;;  %v1463_v41 = vmul.f32 %v1431_v11, %v3084_v47  ;;  %1846 = vtanh.f32 %v1360_v4 }
 0x1de   :  { %v1843_v63 = vpop.eup %1842  ;;  %v1455_v15 = vmul.f32 0.5, %v1423_v58  ;;  %1848 = vtanh.f32 %v1343_v9  ;;  %v1248_v37 = vmul.f32 %v1216_v34, %v3155_v16 }
 0x1df   :  { %1544 = vst.msk [vmem:[%s3398_s5 + $0x48] sm:$0xf] %vm1525_vm0, %v1511_v28  ;;  %v1495_v8 = vpack.c.bf16 %v1463_v41, %v1463_v41  ;;  %v1416_v12 = vadd.f32 1.0, %v1843_v63 }
 0x1e0   :  { %v1487_v48 = vmul.f32 %v1455_v15, %v3099_v13  ;;  %v1280_v32 = vmul.f32 0.044715, %v1248_v37  ;;  %v1845_v60 = vpop.eup %1844 }
 0x1e1   :  { %1528 = vst.msk [vmem:[%s3398_s5 + $0x8] sm:$0xf] %vm1525_vm0, %v1495_v8  ;;  %v1448_v47 = vmul.f32 0.5, %v1416_v12  ;;  %v1400_v19 = vadd.f32 1.0, %v1845_v60 }
 0x1e2   :  { %v1519_v59 = vpack.c.bf16 %v1487_v48, %v1487_v48  ;;  %v1312_v49 = vadd.f32 %v1280_v32, %v3155_v16 }
 0x1e3   :  { %v1847_v33 = vpop.eup %1846  ;;  %v1480_v22 = vmul.f32 %v1448_v47, %v3116_v10  ;;  %v1175_v45 = vpop.f32.mrf.mxu2  ;;  %v1432_v13 = vmul.f32 0.5, %v1400_v19 }
 0x1e4   :  { %v1849_v39 = vpop.eup %1848  ;;  %1552 = vst.msk [vmem:[%s3398_s5 + $0x68] sm:$0xf] %vm1525_vm0, %v1519_v59  ;;  %v1424_v57 = vadd.f32 1.0, %v1847_v33  ;;  %v1344_v43 = vmul.f32 0.7978846, %v1312_v49  ;;  %v3178_v6 = vadd.f32 %v1175_v45, %v3007_v5 }
 0x1e5   :  { %v1512_v0 = vpack.c.bf16 %v1480_v22, %v1480_v22  ;;  %v1407_v54 = vadd.f32 1.0, %v1849_v39  ;;  %v1135_v46 = vpop.f32.mrf.mxu0  ;;  %v1464_v44 = vmul.f32 %v1432_v13, %v3127_v52 }
 0x1e6   :  { %v1456_v40 = vmul.f32 0.5, %v1424_v57  ;;  %1850 = vtanh.f32 %v1344_v43  ;;  %v1225_v10 = vmul.f32 %v3178_v6, %v3178_v6  ;;  %v1195_v56 = vpop.f32.mrf.mxu3  ;;  %v3188_v27 = vadd.f32 %v1135_v46, %v3007_v5 }
 0x1e7   :  { %1545 = vst.msk [vmem:[%s3398_s5 + $0x4c] sm:$0xf] %vm1525_vm0, %v1512_v0  ;;  %v1439_v61 = vmul.f32 0.5, %v1407_v54  ;;  %v1155_v24 = vpop.f32.mrf.mxu1  ;;  %v1496_v53 = vpack.c.bf16 %v1464_v44, %v1464_v44  ;;  %v3193_v20 = vadd.f32 %v1195_v56, %v3007_v5 }
 0x1e8   :  { %v1488_v55 = vmul.f32 %v1456_v40, %v3138_v3  ;;  %v1257_v52 = vmul.f32 %v1225_v10, %v3178_v6  ;;  %v1209_v51 = vmul.f32 %v3188_v27, %v3188_v27  ;;  %v3199_v23 = vadd.f32 %v1155_v24, %v3007_v5 }
 0x1e9   :  { %v1471_v7 = vmul.f32 %v1439_v61, %v3141_v18  ;;  %1529 = vst.msk [vmem:[%s3398_s5 + $0xc] sm:$0xf] %vm1525_vm0, %v1496_v53  ;;  %v1233_v38 = vmul.f32 %v3193_v20, %v3193_v20 }
 0x1ea   :  { %v1520_v31 = vpack.c.bf16 %v1488_v55, %v1488_v55  ;;  %v1289_v3 = vmul.f32 0.044715, %v1257_v52  ;;  %v1241_v21 = vmul.f32 %v1209_v51, %v3188_v27  ;;  %v1217_v1 = vmul.f32 %v3199_v23, %v3199_v23 }
 0x1eb   :  { %v1503_v2 = vpack.c.bf16 %v1471_v7, %v1471_v7  ;;  %v1177_v18 = vpop.f32.mrf.mxu2  ;;  %v1265_v42 = vmul.f32 %v1233_v38, %v3193_v20 }
 0x1ec   :  { %v1851_v17 = vpop.eup %1850  ;;  %1553 = vst.msk [vmem:[%s3398_s5 + $0x6c] sm:$0xf] %vm1525_vm0, %v1520_v31  ;;  %v1321_v26 = vadd.f32 %v1289_v3, %v3178_v6  ;;  %v3217_v36 = vadd.f32 %v1177_v18, %v3007_v5  ;;  %v1273_v14 = vmul.f32 0.044715, %v1241_v21  ;;  %v1249_v62 = vmul.f32 %v1217_v1, %v3199_v23 }
 0x1ed   :  { %1536 = vst.msk [vmem:[%s3398_s5 + $0x28] sm:$0xf] %vm1525_vm0, %v1503_v2  ;;  %v1408_v50 = vadd.f32 1.0, %v1851_v17  ;;  %v1137_v29 = vpop.f32.mrf.mxu0  ;;  %v1297_v30 = vmul.f32 0.044715, %v1265_v42 }
 0x1ee   :  { %v1353_v35 = vmul.f32 0.7978846, %v1321_v26  ;;  %v1226_v25 = vmul.f32 %v3217_v36, %v3217_v36  ;;  %v3227_v11 = vadd.f32 %v1137_v29, %v3007_v5  ;;  %v1305_v58 = vadd.f32 %v1273_v14, %v3188_v27  ;;  %v1197_v9 = vpop.f32.mrf.mxu3 }
 0x1ef   :  { %v1440_v4 = vmul.f32 0.5, %v1408_v50  ;;  %v1281_v34 = vmul.f32 0.044715, %v1249_v62  ;;  %v1157_v28 = vpop.f32.mrf.mxu1  ;;  %v1329_v41 = vadd.f32 %v1297_v30, %v3193_v20  ;;  %v3233_v15 = vadd.f32 %v1197_v9, %v3007_v5 }
 0x1f0   :  { %1852 = vtanh.f32 %v1353_v35  ;;  %v1258_v63 = vmul.f32 %v1226_v25, %v3217_v36  ;;  %v1337_v8 = vmul.f32 0.7978846, %v1305_v58  ;;  %v1210_v12 = vmul.f32 %v3227_v11, %v3227_v11 }
 0x1f1   :  { %v1472_v37 = vmul.f32 %v1440_v4, %v3155_v16  ;;  %v1313_v48 = vadd.f32 %v1281_v34, %v3199_v23  ;;  %v1361_v32 = vmul.f32 0.7978846, %v1329_v41  ;;  %v1234_v47 = vmul.f32 %v3233_v15, %v3233_v15 }
 0x1f2   :  { %v1290_v60 = vmul.f32 0.044715, %v1258_v63  ;;  %v3242_v59 = vadd.f32 %v1157_v28, %v3007_v5  ;;  %1854 = vtanh.f32 %v1337_v8  ;;  %v1242_v49 = vmul.f32 %v1210_v12, %v3227_v11 }
 0x1f3   :  { %v1504_v19 = vpack.c.bf16 %v1472_v37, %v1472_v37  ;;  %v1345_v33 = vmul.f32 0.7978846, %v1313_v48  ;;  %1856 = vtanh.f32 %v1361_v32  ;;  %v1266_v22 = vmul.f32 %v1234_v47, %v3233_v15 }
 0x1f4   :  { %v1322_v16 = vadd.f32 %v1290_v60, %v3217_v36  ;;  %v1218_v45 = vmul.f32 %v3242_v59, %v3242_v59  ;;  %v1274_v39 = vmul.f32 0.044715, %v1242_v49 }
 0x1f5   :  { %1537 = vst.msk [vmem:[%s3398_s5 + $0x2c] sm:$0xf] %vm1525_vm0, %v1504_v19  ;;  %1858 = vtanh.f32 %v1345_v33  ;;  %v1298_v43 = vmul.f32 0.044715, %v1266_v22 }
 0x1f6   :  { %v1853_v13 = vpop.eup %1852  ;;  %v1354_v57 = vmul.f32 0.7978846, %v1322_v16  ;;  %v1250_v0 = vmul.f32 %v1218_v45, %v3242_v59  ;;  %v1306_v46 = vadd.f32 %v1274_v39, %v3227_v11 }
 0x1f7   :  { %v1417_v54 = vadd.f32 1.0, %v1853_v13  ;;  %v1330_v44 = vadd.f32 %v1298_v43, %v3233_v15 }
 0x1f8   :  { %1860 = vtanh.f32 %v1354_v57  ;;  %v1282_v40 = vmul.f32 0.044715, %v1250_v0  ;;  %v1855_v10 = vpop.eup %1854  ;;  %v1338_v56 = vmul.f32 0.7978846, %v1306_v46 }
 0x1f9   :  { %v1449_v61 = vmul.f32 0.5, %v1417_v54  ;;  %v1857_v24 = vpop.eup %1856  ;;  %v1401_v53 = vadd.f32 1.0, %v1855_v10  ;;  %v1362_v55 = vmul.f32 0.7978846, %v1330_v44 }
 0x1fa   :  { %v1314_v52 = vadd.f32 %v1282_v40, %v3242_v59  ;;  %v1425_v31 = vadd.f32 1.0, %v1857_v24  ;;  %1862 = vtanh.f32 %v1338_v56 }
 0x1fb   :  { %v1859_v7 = vpop.eup %1858  ;;  %v1481_v51 = vmul.f32 %v1449_v61, %v3178_v6  ;;  %v1433_v3 = vmul.f32 0.5, %v1401_v53  ;;  %1864 = vtanh.f32 %v1362_v55  ;;  %v1180_v1 = vpop.f32.mrf.mxu2 }
 0x1fc   :  { %v1409_v38 = vadd.f32 1.0, %v1859_v7  ;;  %v1346_v2 = vmul.f32 0.7978846, %v1314_v52  ;;  %v1457_v18 = vmul.f32 0.5, %v1425_v31  ;;  %v3260_v50 = vadd.f32 %v1180_v1, %v3007_v5 }
 0x1fd   :  { %v1513_v21 = vpack.c.bf16 %v1481_v51, %v1481_v51  ;;  %v1465_v26 = vmul.f32 %v1433_v3, %v3188_v27 }
 0x1fe   :  { %v1861_v17 = vpop.eup %1860  ;;  %v1441_v42 = vmul.f32 0.5, %v1409_v38  ;;  %1866 = vtanh.f32 %v1346_v2  ;;  %v1489_v6 = vmul.f32 %v1457_v18, %v3193_v20  ;;  %v1227_v35 = vmul.f32 %v3260_v50, %v3260_v50 }
 0x1ff   :  { %1546 = vst.msk [vmem:[%s3398_s5 + $0x50] sm:$0xf] %vm1525_vm0, %v1513_v21  ;;  %v1418_v14 = vadd.f32 1.0, %v1861_v17  ;;  %v1497_v29 = vpack.c.bf16 %v1465_v26, %v1465_v26 }
 0x200   :  { %v1473_v62 = vmul.f32 %v1441_v42, %v3199_v23  ;;  %v1863_v27 = vpop.eup %1862  ;;  %v1521_v30 = vpack.c.bf16 %v1489_v6, %v1489_v6  ;;  %v1259_v20 = vmul.f32 %v1227_v35, %v3260_v50 }
 0x201   :  { %v1450_v25 = vmul.f32 0.5, %v1418_v14  ;;  %v1865_v4 = vpop.eup %1864  ;;  %1530 = vst.msk [vmem:[%s3398_s5 + $0x10] sm:$0xf] %vm1525_vm0, %v1497_v29  ;;  %v1402_v58 = vadd.f32 1.0, %v1863_v27  ;;  %v1140_v28 = vpop.f32.mrf.mxu0 }
 0x202   :  { %v1505_v9 = vpack.c.bf16 %v1473_v62, %v1473_v62  ;;  %1554 = vst.msk [vmem:[%s3398_s5 + $0x70] sm:$0xf] %vm1525_vm0, %v1521_v30  ;;  %v1426_v34 = vadd.f32 1.0, %v1865_v4  ;;  %v1291_v37 = vmul.f32 0.044715, %v1259_v20  ;;  %v3285_v8 = vadd.f32 %v1140_v28, %v3007_v5 }
 0x203   :  { %v1482_v23 = vmul.f32 %v1450_v25, %v3217_v36  ;;  %v1434_v63 = vmul.f32 0.5, %v1402_v58  ;;  %v1182_v60 = vpop.f32.mrf.mxu2  ;;  %v1160_v47 = vpop.f32.mrf.mxu1 }
 0x204   :  { %v1867_v41 = vpop.eup %1866  ;;  %1538 = vst.msk [vmem:[%s3398_s5 + $0x30] sm:$0xf] %vm1525_vm0, %v1505_v9  ;;  %v1458_v48 = vmul.f32 0.5, %v1426_v34  ;;  %v1323_v19 = vadd.f32 %v1291_v37, %v3260_v50  ;;  %v3290_v49 = vadd.f32 %v1182_v60, %v3007_v5  ;;  %v1211_v16 = vmul.f32 %v3285_v8, %v3285_v8 }
 0x205   :  { %v1514_v12 = vpack.c.bf16 %v1482_v23, %v1482_v23  ;;  %v1410_v32 = vadd.f32 1.0, %v1867_v41  ;;  %v1466_v36 = vmul.f32 %v1434_v63, %v3227_v11  ;;  %v1200_v33 = vpop.f32.mrf.mxu3  ;;  %v3303_v11 = vadd.f32 %v1160_v47, %v3007_v5 }
 0x206   :  { %v1490_v22 = vmul.f32 %v1458_v48, %v3233_v15  ;;  %v3300_v39 = vadd.f32 %v1200_v33, %v3007_v5  ;;  %v1355_v57 = vmul.f32 0.7978846, %v1323_v19  ;;  %v1228_v43 = vmul.f32 %v3290_v49, %v3290_v49 }
 0x207   :  { %1547 = vst.msk [vmem:[%s3398_s5 + $0x54] sm:$0xf] %vm1525_vm0, %v1514_v12  ;;  %v1442_v45 = vmul.f32 0.5, %v1410_v32  ;;  %v1498_v13 = vpack.c.bf16 %v1466_v36, %v1466_v36  ;;  %v1243_v0 = vmul.f32 %v1211_v16, %v3285_v8  ;;  %v1219_v44 = vmul.f32 %v3303_v11, %v3303_v11 }
 0x208   :  { %v1522_v54 = vpack.c.bf16 %v1490_v22, %v1490_v22  ;;  %v1235_v15 = vmul.f32 %v3300_v39, %v3300_v39  ;;  %1868 = vtanh.f32 %v1355_v57  ;;  %v1260_v40 = vmul.f32 %v1228_v43, %v3290_v49 }
 0x209   :  { %v1474_v46 = vmul.f32 %v1442_v45, %v3242_v59  ;;  %1531 = vst.msk [vmem:[%s3398_s5 + $0x14] sm:$0xf] %vm1525_vm0, %v1498_v13  ;;  %v1275_v10 = vmul.f32 0.044715, %v1243_v0  ;;  %v1251_v56 = vmul.f32 %v1219_v44, %v3303_v11  ;;  %v1142_v24 = vpop.f32.mrf.mxu0 }
 0x20a   :  { %1555 = vst.msk [vmem:[%s3398_s5 + $0x74] sm:$0xf] %vm1525_vm0, %v1522_v54  ;;  %v1267_v61 = vmul.f32 %v1235_v15, %v3300_v39  ;;  %v1292_v53 = vmul.f32 0.044715, %v1260_v40  ;;  %v3326_v52 = vadd.f32 %v1142_v24, %v3007_v5 }
 0x20b   :  { %v1506_v59 = vpack.c.bf16 %v1474_v46, %v1474_v46  ;;  %v1307_v55 = vadd.f32 %v1275_v10, %v3285_v8  ;;  %v1283_v51 = vmul.f32 0.044715, %v1251_v56  ;;  %v1162_v31 = vpop.f32.mrf.mxu1 }
 0x20c   :  { %v1299_v7 = vmul.f32 0.044715, %v1267_v61  ;;  %v1324_v3 = vadd.f32 %v1292_v53, %v3290_v49  ;;  %v1212_v21 = vmul.f32 %v3326_v52, %v3326_v52  ;;  %v3336_v18 = vadd.f32 %v1162_v31, %v3007_v5 }
 0x20d   :  { %1539 = vst.msk [vmem:[%s3398_s5 + $0x34] sm:$0xf] %vm1525_vm0, %v1506_v59  ;;  %v1339_v38 = vmul.f32 0.7978846, %v1307_v55  ;;  %v1202_v2 = vpop.f32.mrf.mxu3  ;;  %v1315_v17 = vadd.f32 %v1283_v51, %v3303_v11 }
 0x20e   :  { %v1331_v1 = vadd.f32 %v1299_v7, %v3300_v39  ;;  %v3341_v26 = vadd.f32 %v1202_v2, %v3007_v5  ;;  %v1869_v42 = vpop.eup %1868  ;;  %v1356_v6 = vmul.f32 0.7978846, %v1324_v3  ;;  %v1244_v14 = vmul.f32 %v1212_v21, %v3326_v52 }
 0x20f   :  { %1870 = vtanh.f32 %v1339_v38  ;;  %v1220_v29 = vmul.f32 %v3336_v18, %v3336_v18  ;;  %v1419_v62 = vadd.f32 1.0, %v1869_v42  ;;  %v1347_v27 = vmul.f32 0.7978846, %v1315_v17 }
 0x210   :  { %v1363_v35 = vmul.f32 0.7978846, %v1331_v1  ;;  %v1236_v30 = vmul.f32 %v3341_v26, %v3341_v26  ;;  %1872 = vtanh.f32 %v1356_v6  ;;  %v1276_v25 = vmul.f32 0.044715, %v1244_v14 }
 0x211   :  { %v1252_v4 = vmul.f32 %v1220_v29, %v3336_v18  ;;  %v1451_v5 = vmul.f32 0.5, %v1419_v62 }
 0x212   :  { %1874 = vtanh.f32 %v1363_v35  ;;  %v1268_v58 = vmul.f32 %v1236_v30, %v3341_v26  ;;  %v1308_v9 = vadd.f32 %v1276_v25, %v3326_v52 }
 0x213   :  { %1876 = vtanh.f32 %v1347_v27  ;;  %v1284_v20 = vmul.f32 0.044715, %v1252_v4  ;;  %v1483_v23 = vmul.f32 %v1451_v5, %v3260_v50 }
 0x214   :  { %v1300_v34 = vmul.f32 0.044715, %v1268_v58  ;;  %v1340_v41 = vmul.f32 0.7978846, %v1308_v9 }
 0x215   :  { %v1871_v28 = vpop.eup %1870  ;;  %v1316_v63 = vadd.f32 %v1284_v20, %v3336_v18  ;;  %v1515_v37 = vpack.c.bf16 %v1483_v23, %v1483_v23 }
 0x216   :  { %v1403_v12 = vadd.f32 1.0, %v1871_v28  ;;  %v1332_v48 = vadd.f32 %v1300_v34, %v3341_v26  ;;  %v1873_v32 = vpop.eup %1872  ;;  %1878 = vtanh.f32 %v1340_v41 }
 0x217   :  { %v1348_v60 = vmul.f32 0.7978846, %v1316_v63  ;;  %1548 = vst.msk [vmem:[%s3398_s5 + $0x58] sm:$0xf] %vm1525_vm0, %v1515_v37  ;;  %v1420_v36 = vadd.f32 1.0, %v1873_v32 }
 0x218   :  { %v1875_v47 = vpop.eup %1874  ;;  %v1435_v50 = vmul.f32 0.5, %v1403_v12  ;;  %v1364_v19 = vmul.f32 0.7978846, %v1332_v48 }
 0x219   :  { %v1877_v33 = vpop.eup %1876  ;;  %v1427_v16 = vadd.f32 1.0, %v1875_v47  ;;  %1880 = vtanh.f32 %v1348_v60  ;;  %v1452_v22 = vmul.f32 0.5, %v1420_v36 }
 0x21a   :  { %v1467_v45 = vmul.f32 %v1435_v50, %v3285_v8  ;;  %v1411_v13 = vadd.f32 1.0, %v1877_v33  ;;  %1882 = vtanh.f32 %v1364_v19 }
 0x21b   :  { %v1459_v57 = vmul.f32 0.5, %v1427_v16  ;;  %v1484_v43 = vmul.f32 %v1452_v22, %v3290_v49 }
 0x21c   :  { %v1499_v0 = vpack.c.bf16 %v1467_v45, %v1467_v45  ;;  %v1443_v54 = vmul.f32 0.5, %v1411_v13  ;;  %v1879_v46 = vpop.eup %1878 }
 0x21d   :  { %v1491_v15 = vmul.f32 %v1459_v57, %v3300_v39  ;;  %v1516_v44 = vpack.c.bf16 %v1484_v43, %v1484_v43  ;;  %v1404_v10 = vadd.f32 1.0, %v1879_v46 }
 0x21e   :  { %1532 = vst.msk [vmem:[%s3398_s5 + $0x18] sm:$0xf] %vm1525_vm0, %v1499_v0  ;;  %v1475_v40 = vmul.f32 %v1443_v54, %v3303_v11 }
 0x21f   :  { %v1881_v8 = vpop.eup %1880  ;;  %v1523_v59 = vpack.c.bf16 %v1491_v15, %v1491_v15  ;;  %1549 = vst.msk [vmem:[%s3398_s5 + $0x5c] sm:$0xf] %vm1525_vm0, %v1516_v44  ;;  %v1436_v56 = vmul.f32 0.5, %v1404_v10 }
 0x220   :  { %v1883_v61 = vpop.eup %1882  ;;  %v1507_v49 = vpack.c.bf16 %v1475_v40, %v1475_v40  ;;  %v1412_v39 = vadd.f32 1.0, %v1881_v8 }
 0x221   :  { %1556 = vst.msk [vmem:[%s3398_s5 + $0x78] sm:$0xf] %vm1525_vm0, %v1523_v59  ;;  %v1428_v24 = vadd.f32 1.0, %v1883_v61  ;;  %v1468_v11 = vmul.f32 %v1436_v56, %v3326_v52 }
 0x222   :  { %1540 = vst.msk [vmem:[%s3398_s5 + $0x38] sm:$0xf] %vm1525_vm0, %v1507_v49  ;;  %v1444_v53 = vmul.f32 0.5, %v1412_v39 }
 0x223   :  { %v1460_v55 = vmul.f32 0.5, %v1428_v24  ;;  %v1500_v7 = vpack.c.bf16 %v1468_v11, %v1468_v11 }
 0x224   :  { %v1476_v51 = vmul.f32 %v1444_v53, %v3336_v18 }
 0x225   :  { %v1492_v31 = vmul.f32 %v1460_v55, %v3341_v26  ;;  %1533 = vst.msk [vmem:[%s3398_s5 + $0x1c] sm:$0xf] %vm1525_vm0, %v1500_v7 }
 0x226   :  { %v1508_v3 = vpack.c.bf16 %v1476_v51, %v1476_v51 }
 0x227   :  { %v1524_v38 = vpack.c.bf16 %v1492_v31, %v1492_v31 }
 0x228   :  { %1541 = vst.msk [vmem:[%s3398_s5 + $0x3c] sm:$0xf] %vm1525_vm0, %v1508_v3 }
 0x229   :  { %1557 = vst.msk [vmem:[%s3398_s5 + $0x7c] sm:$0xf] %vm1525_vm0, %v1524_v38 }

// kernel: vit_forward.23
= control target key start
LH: loop header
LB: loop body
LE: loop exit
PB: predicated region body
PF: predicated region fallthrough
CT: control target
= control target key end

     0   :  { %vm23_vm0 = vcmask 261120   ;;  %s275_s0 = inlined_call_operand.vmem [shape: bf16[32,32], index: 0, kind: input, shape index: {}]   ;;  %s276_s1 = inlined_call_operand.vmem [shape: bf16[1,32], index: 1, kind: input, shape index: {}]   ;;  %s277_s2 = inlined_call_operand.vmem [shape: bf16[1,32], index: 2, kind: input, shape index: {}]   ;;  %s278_s3 = inlined_call_operand.hbm [shape: f32[32,32], index: 3, kind: output, shape index: {}]  }
   0x1   :  { %v163_v0 = vld [vmem:[%s275_s0 + $0x8] sm:$0xff]   ;;  %v156_v1 = vld [vmem:[%s275_s0] sm:$0xff]  }
   0x2   :  { %8 = vsyncpa [#allocation3], 0  ;;  %v161_v2 = vunpack.c.l.bf16 %v163_v0  ;;  %v157_v3 = vunpack.c.l.bf16 %v156_v1  ;;  %v162_v6 = vunpack.c.h.bf16 %v163_v0  ;;  %v158_v7 = vunpack.c.h.bf16 %v156_v1  ;;  %v119_v53 = vld [vmem:[%s276_s1] sm:$0x1]  ;;  %s205_s1 = smov [#allocation2]   ;;  %s143_s21 = sshll.u32 %s278_s3, 4  ;;  %s144_s21 = int_to_ptr.hbm [resolvable:$true] %s143_s21 }
   0x3   :  { %v204_v10 = vmov 32.0   ;;  %v126_v56 = vld [vmem:[%s277_s2] sm:$0x1]  ;;  %v120_v58 = vunpack.c.l.bf16 %v119_v53  ;;  %s141_s2 = sshll.u32 %s205_s1, 4  ;;  %s206_s22 = smov 128   ;;  %s142_s2 = int_to_ptr.vmem [resolvable:$true] %s141_s2 }
   0x4   :  { %v30_v4 = vsel %vm23_vm0, %v161_v2, 0.0  ;;  %v24_v5 = vsel %vm23_vm0, %v157_v3, 0.0  ;;  %v33_v8 = vsel %vm23_vm0, %v162_v6, 0.0  ;;  %v27_v9 = vsel %vm23_vm0, %v158_v7, 0.0  ;;  %s207_s23 = smov 8  }
   0x5   :  { %31 = vadd.xlane.f32.xlu1 %v30_v4  ;;  %25 = vadd.xlane.f32.xlu0 %v24_v5  ;;  %168 = vrcp.f32 %v204_v10  ;;  %v127_v62 = vunpack.c.l.bf16 %v126_v56 }
   0xb   :  { %v169_v11 = vpop.eup %168 }
   0xc   :  { %v37_v12 = vmul.f32 32.0, %v169_v11  ;;  %vm41_vm1 = vweird.f32 %v169_v11 }
   0xd   :  { %34 = vadd.xlane.f32.xlu1 %v33_v8  ;;  %28 = vadd.xlane.f32.xlu0 %v27_v9  ;;  %v128_v8 = vperm.slane %v127_v62, 0 }
   0xe   :  { %v38_v13 = vsub.f32 1.0, %v37_v12 }
  0x10   :  { %v39_v14 = vmul.f32 %v169_v11, %v38_v13 }
  0x12   :  { %v40_v15 = vadd.f32 %v169_v11, %v39_v14 }
  0x14   :  { %v42_v16 = vsel %vm41_vm1, %v169_v11, %v40_v15 }
  0x78   :  { %v32_v17 = vpop.xlane.xlu1 %31  ;;  %v26_v18 = vpop.xlane.xlu0 %25 }
  0x79   :  { %v45_v19 = vmul.f32 %v42_v16, %v32_v17  ;;  %v43_v20 = vmul.f32 %v42_v16, %v26_v18 }
  0x7b   :  { %v238_v21 = vsub.f32 %v161_v2, %v45_v19  ;;  %v240_v22 = vsub.f32 %v157_v3, %v43_v20  ;;  %v121_v3 = vperm.slane %v120_v58, 0 }
  0x7d   :  { %v53_v23 = vmul.f32 %v238_v21, %v238_v21  ;;  %v51_v24 = vmul.f32 %v240_v22, %v240_v22 }
  0x7f   :  { %v61_v25 = vsel %vm23_vm0, %v53_v23, 0.0  ;;  %v55_v26 = vsel %vm23_vm0, %v51_v24, 0.0 }
  0x80   :  { %v35_v27 = vpop.xlane.xlu1 %34  ;;  %62 = vadd.xlane.f32.xlu0 %v61_v25  ;;  %56 = vadd.xlane.f32.xlu2 %v55_v26  ;;  %v29_v28 = vpop.xlane.xlu0 %28 }
  0x81   :  { %v46_v29 = vmul.f32 %v42_v16, %v35_v27  ;;  %v44_v30 = vmul.f32 %v42_v16, %v29_v28 }
  0x83   :  { %v248_v31 = vsub.f32 %v162_v6, %v46_v29  ;;  %v250_v32 = vsub.f32 %v158_v7, %v44_v30 }
  0x85   :  { %v54_v33 = vmul.f32 %v248_v31, %v248_v31  ;;  %v52_v34 = vmul.f32 %v250_v32, %v250_v32 }
  0x87   :  { %v64_v35 = vsel %vm23_vm0, %v54_v33, 0.0  ;;  %v58_v36 = vsel %vm23_vm0, %v52_v34, 0.0 }
  0x88   :  { %65 = vadd.xlane.f32.xlu1 %v64_v35  ;;  %59 = vadd.xlane.f32.xlu2 %v58_v36 }
  0xf3   :  { %v57_v37 = vpop.xlane.xlu2 %56  ;;  %v63_v38 = vpop.xlane.xlu0 %62 }
  0xf4   :  { %v67_v39 = vmul.f32 %v57_v37, %v42_v16  ;;  %v69_v40 = vmul.f32 %v63_v38, %v42_v16 }
  0xf6   :  { %v71_v41 = vadd.f32 1e-06, %v67_v39  ;;  %v73_v42 = vadd.f32 1e-06, %v69_v40 }
  0xf8   :  { %170 = vrsqrt.f32 %v71_v41  ;;  %vm81_vm4 = vweird.f32 %v71_v41  ;;  %vm101_vm6 = vweird.f32 %v73_v42 }
  0xf9   :  { %172 = vrsqrt.f32 %v73_v42 }
  0xfb   :  { %v66_v43 = vpop.xlane.xlu1 %65  ;;  %v60_v44 = vpop.xlane.xlu2 %59 }
  0xfc   :  { %v70_v45 = vmul.f32 %v66_v43, %v42_v16  ;;  %v68_v46 = vmul.f32 %v60_v44, %v42_v16 }
  0xfe   :  { %v171_v47 = vpop.eup %170  ;;  %v74_v48 = vadd.f32 1e-06, %v70_v45  ;;  %v72_v49 = vadd.f32 1e-06, %v68_v46 }
  0xff   :  { %v173_v50 = vpop.eup %172  ;;  %v76_v51 = vmul.f32 %v171_v47, %v71_v41  ;;  %vm82_vm2 = vweird.f32 %v171_v47 }
 0x100   :  { %v96_v52 = vmul.f32 %v173_v50, %v73_v42  ;;  %174 = vrsqrt.f32 %v74_v48  ;;  %vm102_vm3 = vweird.f32 %v173_v50  ;;  %vm83_vm5 = vmor %vm81_vm4, %vm82_vm2  ;;  %vm111_vm10 = vweird.f32 %v74_v48 }
 0x101   :  { %v77_v54 = vmul.f32 %v171_v47, %v76_v51  ;;  %176 = vrsqrt.f32 %v72_v49  ;;  %vm103_vm7 = vmor %vm101_vm6, %vm102_vm3  ;;  %vm91_vm12 = vweird.f32 %v72_v49 }
 0x102   :  { %v97_v55 = vmul.f32 %v173_v50, %v96_v52 }
 0x103   :  { %v78_v57 = vmul.f32 0.5, %v77_v54 }
 0x104   :  { %v98_v59 = vmul.f32 0.5, %v97_v55 }
 0x105   :  { %v79_v60 = vsub.f32 1.5, %v78_v57 }
 0x106   :  { %v175_v61 = vpop.eup %174  ;;  %v99_v63 = vsub.f32 1.5, %v98_v59 }
 0x107   :  { %v177_v0 = vpop.eup %176  ;;  %v80_v1 = vmul.f32 %v171_v47, %v79_v60  ;;  %v106_v2 = vmul.f32 %v175_v61, %v74_v48  ;;  %vm112_vm8 = vweird.f32 %v175_v61 }
 0x108   :  { %v100_v4 = vmul.f32 %v173_v50, %v99_v63  ;;  %v86_v5 = vmul.f32 %v177_v0, %v72_v49  ;;  %vm92_vm9 = vweird.f32 %v177_v0  ;;  %vm113_vm11 = vmor %vm111_vm10, %vm112_vm8 }
 0x109   :  { %v84_v6 = vsel %vm83_vm5, %v171_v47, %v80_v1  ;;  %v107_v7 = vmul.f32 %v175_v61, %v106_v2  ;;  %vm93_vm13 = vmor %vm91_vm12, %vm92_vm9 }
 0x10a   :  { %v115_v9 = vmul.f32 %v84_v6, %v240_v22  ;;  %v104_v10 = vsel %vm103_vm7, %v173_v50, %v100_v4  ;;  %v87_v11 = vmul.f32 %v177_v0, %v86_v5 }
 0x10b   :  { %v117_v12 = vmul.f32 %v104_v10, %v238_v21  ;;  %v108_v13 = vmul.f32 0.5, %v107_v7 }
 0x10c   :  { %v122_v14 = vmul.f32 %v121_v3, %v115_v9  ;;  %v88_v15 = vmul.f32 0.5, %v87_v11 }
 0x10d   :  { %v124_v16 = vmul.f32 %v121_v3, %v117_v12  ;;  %v109_v17 = vsub.f32 1.5, %v108_v13 }
 0x10e   :  { %v129_v18 = vadd.f32 %v128_v8, %v122_v14  ;;  %v89_v19 = vsub.f32 1.5, %v88_v15 }
 0x10f   :  { %v131_v20 = vadd.f32 %v128_v8, %v124_v16  ;;  %v110_v23 = vmul.f32 %v175_v61, %v109_v17 }
 0x110   :  { %133 = vst.msk [vmem:[#allocation2] sm:$0xff] %vm23_vm0, %v129_v18  ;;  %v90_v22 = vmul.f32 %v177_v0, %v89_v19 }
 0x111   :  { %135 = vst.msk [vmem:[#allocation2 + $0x10] sm:$0xff] %vm23_vm0, %v131_v20  ;;  %v114_v21 = vsel %vm113_vm11, %v175_v61, %v110_v23 }
 0x112   :  { %v118_v24 = vmul.f32 %v114_v21, %v248_v31  ;;  %v94_v25 = vsel %vm93_vm13, %v177_v0, %v90_v22 }
 0x113   :  { %v116_v26 = vmul.f32 %v94_v25, %v250_v32 }
 0x114   :  { %v125_v27 = vmul.f32 %v121_v3, %v118_v24 }
 0x115   :  { %v123_v28 = vmul.f32 %v121_v3, %v116_v26 }
 0x116   :  { %v132_v29 = vadd.f32 %v128_v8, %v125_v27 }
 0x117   :  { %v130_v30 = vadd.f32 %v128_v8, %v123_v28 }
 0x118   :  { %136 = vst.msk [vmem:[#allocation2 + $0x18] sm:$0xff] %vm23_vm0, %v132_v29 }
 0x119   :  { %134 = vst.msk [vmem:[#allocation2 + $0x8] sm:$0xff] %vm23_vm0, %v130_v30 }
 0x11a   :  { %149 = dma.vmem_to_hbm [thread:$0]  %s142_s2, 512, %s144_s21, [#allocation3], %s206_s22, %s206_s22, %s207_s23  }
 0x11b   :  { %202 = dma.done.wait [#allocation3], 512  }
 0x11c   :  { %203 = vsyncadd [#allocation3], 4294966784 }
 0x11d   :  { %154 = vsyncpa [#allocation3], 1 }

// kernel: vit_forward.17
= control target key start
LH: loop header
LB: loop body
LE: loop exit
PB: predicated region body
PF: predicated region fallthrough
CT: control target
= control target key end

     0   :  { %vm231_vm0 = vcmask 523264   ;;  %vm22_vm1 = vcmask 261120   ;;  %v877_v12 = vmov 0.0   ;;  %vm632_vm2 = vcmask 257024   ;;  %s1312_s1 = inlined_call_operand.vmem [shape: bf16[64,32], index: 1, kind: input, shape index: {}]   ;;  %s1313_s0 = inlined_call_operand.vmem [shape: bf16[256,64], index: 0, kind: input, shape index: {}]   ;;  %s1314_s2 = inlined_call_operand.vmem [shape: bf16[1,32], index: 2, kind: input, shape index: {}]   ;;  %s1315_s3 = inlined_call_operand.vmem [shape: bf16[256,32], index: 3, kind: input, shape index: {}]   ;;  %s1316_s4 = inlined_call_operand.vmem [shape: bf16[256,32], index: 4, kind: output, shape index: {}]  }
   0x1   :  { %v784_v0 = vld [vmem:[%s1312_s1 + $0x18] sm:$0xff]  ;;  %v783_v1 = vld [vmem:[%s1312_s1 + $0x10] sm:$0xff]  ;;  %v782_v2 = vld [vmem:[%s1312_s1 + $0x8] sm:$0xff]  ;;  %23 = vst.msk [vmem:[#allocation2] sm:$0xff] %vm22_vm1, %v877_v12 }
   0x2   :  { %284 = vmatpush.bf16.msra.mxu0 %v784_v0  ;;  %864 = vmatpush.bf16.msra.mxu1 %v784_v0  ;;  %v781_v3 = vld [vmem:[%s1312_s1] sm:$0xff]  ;;  %v766_v8 = vld [vmem:[%s1313_s0 + $0x8] sm:$0xff]  ;;  %24 = vst.msk [vmem:[#allocation2 + $0x8] sm:$0xff] %vm22_vm1, %v877_v12  ;;  %v767_v13 = vld [vmem:[%s1313_s0 + $0x10] sm:$0xff] }
   0x3   :  { %865 = vmatpush.bf16.msra.mxu2 %v784_v0  ;;  %866 = vmatpush.bf16.msra.mxu3 %v784_v0  ;;  %v765_v4 = vld [vmem:[%s1313_s0] sm:$0xff]  ;;  %v770_v9 = vld [vmem:[%s1313_s0 + $0x28] sm:$0xff]  ;;  %25 = vst.msk [vmem:[#allocation2 + $0x10] sm:$0xff] %vm22_vm1, %v877_v12  ;;  %v771_v14 = vld [vmem:[%s1313_s0 + $0x30] sm:$0xff] }
   0x4   :  { %v769_v5 = vld [vmem:[%s1313_s0 + $0x20] sm:$0xff]  ;;  %v774_v10 = vld [vmem:[%s1313_s0 + $0x48] sm:$0xff]  ;;  %26 = vst.msk [vmem:[#allocation2 + $0x18] sm:$0xff] %vm22_vm1, %v877_v12  ;;  %v775_v15 = vld [vmem:[%s1313_s0 + $0x50] sm:$0xff] }
   0x5   :  { %v773_v6 = vld [vmem:[%s1313_s0 + $0x40] sm:$0xff]  ;;  %v778_v11 = vld [vmem:[%s1313_s0 + $0x68] sm:$0xff]  ;;  %27 = vst.msk [vmem:[#allocation2 + $0x20] sm:$0xff] %vm22_vm1, %v877_v12  ;;  %v779_v16 = vld [vmem:[%s1313_s0 + $0x70] sm:$0xff] }
   0x6   :  { %285 = vmatpush.bf16.msra.mxu0 %v783_v1  ;;  %867 = vmatpush.bf16.msra.mxu1 %v783_v1  ;;  %v777_v7 = vld [vmem:[%s1313_s0 + $0x60] sm:$0xff]  ;;  %28 = vst.msk [vmem:[#allocation2 + $0x28] sm:$0xff] %vm22_vm1, %v877_v12  ;;  %v768_v17 = vld [vmem:[%s1313_s0 + $0x18] sm:$0xff] }
   0x7   :  { %868 = vmatpush.bf16.msra.mxu2 %v783_v1  ;;  %869 = vmatpush.bf16.msra.mxu3 %v783_v1  ;;  %29 = vst.msk [vmem:[#allocation2 + $0x30] sm:$0xff] %vm22_vm1, %v877_v12  ;;  %v772_v18 = vld [vmem:[%s1313_s0 + $0x38] sm:$0xff]  ;;  %v469_v24 = vld [vmem:[%s1314_s2] sm:$0x1] }
   0x8   :  { %30 = vst.msk [vmem:[#allocation2 + $0x38] sm:$0xff] %vm22_vm1, %v877_v12  ;;  %v776_v19 = vld [vmem:[%s1313_s0 + $0x58] sm:$0xff]  ;;  %v55_v21 = vld [vmem:[#allocation2] sm:$0xff]  ;;  %v470_v28 = vunpack.c.l.bf16 %v469_v24 }
   0x9   :  { %31 = vst.msk [vmem:[#allocation2 + $0x40] sm:$0xff] %vm22_vm1, %v877_v12  ;;  %v780_v20 = vld [vmem:[%s1313_s0 + $0x78] sm:$0xff]  ;;  %v1019_v31 = vld [vmem:[%s1315_s3] sm:$0xff]   ;;  %v56_v32 = vld [vmem:[#allocation2 + $0x8] sm:$0xff] }
   0xa   :  { %286 = vmatpush.bf16.msra.mxu0 %v782_v2  ;;  %870 = vmatpush.bf16.msra.mxu1 %v782_v2  ;;  %32 = vst.msk [vmem:[#allocation2 + $0x48] sm:$0xff] %vm22_vm1, %v877_v12  ;;  %v1021_v34 = vperm.slane %v470_v28, 0  ;;  %v1026_v35 = vld [vmem:[%s1315_s3 + $0x20] sm:$0xff]   ;;  %v787_v42 = vunpack.c.l.bf16 %v1019_v31  ;;  %v57_v56 = vld [vmem:[#allocation2 + $0x10] sm:$0xff]  ;;  %v1073_v28 = vld [vmem:[%s1315_s3 + $0x8] sm:$0xff]  }
   0xb   :  { %871 = vmatpush.bf16.msra.mxu2 %v782_v2  ;;  %872 = vmatpush.bf16.msra.mxu3 %v782_v2  ;;  %33 = vst.msk [vmem:[#allocation2 + $0x50] sm:$0xff] %vm22_vm1, %v877_v12  ;;  %v803_v46 = vunpack.c.l.bf16 %v1026_v35  ;;  %v1038_v51 = vld [vmem:[%s1315_s3 + $0x40] sm:$0xff]  }
   0xc   :  { %34 = vst.msk [vmem:[#allocation2 + $0x58] sm:$0xff] %vm22_vm1, %v877_v12  ;;  %v1044_v55 = vld [vmem:[%s1315_s3 + $0x60] sm:$0xff]   ;;  %v819_v62 = vunpack.c.l.bf16 %v1038_v51 }
   0xd   :  { %35 = vst.msk [vmem:[#allocation2 + $0x60] sm:$0xff] %vm22_vm1, %v877_v12 }
   0xe   :  { %287 = vmatpush.bf16.msra.mxu0 %v781_v3  ;;  %873 = vmatpush.bf16.msra.mxu1 %v781_v3  ;;  %36 = vst.msk [vmem:[#allocation2 + $0x68] sm:$0xff] %vm22_vm1, %v877_v12 }
   0xf   :  { %874 = vmatpush.bf16.msra.mxu2 %v781_v3  ;;  %875 = vmatpush.bf16.msra.mxu3 %v781_v3  ;;  %37 = vst.msk [vmem:[#allocation2 + $0x70] sm:$0xff] %vm22_vm1, %v877_v12 }
  0x10   :  { %38 = vst.msk [vmem:[#allocation2 + $0x78] sm:$0xff] %vm22_vm1, %v877_v12  ;;  %v63_v22 = vld [vmem:[#allocation2 + $0x40] sm:$0xff] }
  0x11   :  { %749 = vmatmul.msk.bf16.vlgmr.msra.gmra.mxu0 %vm231_vm0, %v765_v4  ;;  %753 = vmatmul.msk.bf16.vlgmr.msra.gmra.mxu1 %vm231_vm0, %v769_v5  ;;  %39 = vst.msk [vmem:[#allocation2 + $0x80] sm:$0xff] %vm22_vm1, %v877_v12  ;;  %v64_v33 = vld [vmem:[#allocation2 + $0x48] sm:$0xff]  ;;  %v835_v4 = vunpack.c.l.bf16 %v1044_v55 }
  0x12   :  { %757 = vmatmul.msk.bf16.vlgmr.msra.gmra.mxu2 %vm231_vm0, %v773_v6  ;;  %761 = vmatmul.msk.bf16.vlgmr.msra.gmra.mxu3 %vm231_vm0, %v777_v7  ;;  %40 = vst.msk [vmem:[#allocation2 + $0x88] sm:$0xff] %vm22_vm1, %v877_v12  ;;  %v65_v60 = vld [vmem:[#allocation2 + $0x50] sm:$0xff] }
  0x13   :  { %41 = vst.msk [vmem:[#allocation2 + $0x90] sm:$0xff] %vm22_vm1, %v877_v12 }
  0x14   :  { %42 = vst.msk [vmem:[#allocation2 + $0x98] sm:$0xff] %vm22_vm1, %v877_v12 }
  0x15   :  { %43 = vst.msk [vmem:[#allocation2 + $0xa0] sm:$0xff] %vm22_vm1, %v877_v12 }
  0x16   :  { %44 = vst.msk [vmem:[#allocation2 + $0xa8] sm:$0xff] %vm22_vm1, %v877_v12 }
  0x17   :  { %45 = vst.msk [vmem:[#allocation2 + $0xb0] sm:$0xff] %vm22_vm1, %v877_v12 }
  0x18   :  { %46 = vst.msk [vmem:[#allocation2 + $0xb8] sm:$0xff] %vm22_vm1, %v877_v12  ;;  %v71_v29 = vld [vmem:[#allocation2 + $0x80] sm:$0xff] }
  0x19   :  { %47 = vst.msk [vmem:[#allocation2 + $0xc0] sm:$0xff] %vm22_vm1, %v877_v12  ;;  %v72_v52 = vld [vmem:[#allocation2 + $0x88] sm:$0xff] }
  0x1a   :  { %48 = vst.msk [vmem:[#allocation2 + $0xc8] sm:$0xff] %vm22_vm1, %v877_v12 }
  0x1b   :  { %49 = vst.msk [vmem:[#allocation2 + $0xd0] sm:$0xff] %vm22_vm1, %v877_v12 }
  0x1c   :  { %50 = vst.msk [vmem:[#allocation2 + $0xd8] sm:$0xff] %vm22_vm1, %v877_v12 }
  0x1d   :  { %51 = vst.msk [vmem:[#allocation2 + $0xe0] sm:$0xff] %vm22_vm1, %v877_v12 }
  0x1e   :  { %52 = vst.msk [vmem:[#allocation2 + $0xe8] sm:$0xff] %vm22_vm1, %v877_v12 }
  0x1f   :  { %53 = vst.msk [vmem:[#allocation2 + $0xf0] sm:$0xff] %vm22_vm1, %v877_v12 }
  0x20   :  { %54 = vst.msk [vmem:[#allocation2 + $0xf8] sm:$0xff] %vm22_vm1, %v877_v12  ;;  %v79_v30 = vld [vmem:[#allocation2 + $0xc0] sm:$0xff]  ;;  %v804_v12 = vunpack.c.h.bf16 %v1026_v35  ;;  %v820_v35 = vunpack.c.h.bf16 %v1038_v51 }
  0x21   :  { %750 = vmatmul.msk.bf16.gmra.mxu0 %vm231_vm0, %v766_v8  ;;  %754 = vmatmul.msk.bf16.gmra.mxu1 %vm231_vm0, %v770_v9  ;;  %v80_v53 = vld [vmem:[#allocation2 + $0xc8] sm:$0xff]  ;;  %v788_v8 = vunpack.c.h.bf16 %v1019_v31  ;;  %v66_v31 = vld [vmem:[#allocation2 + $0x58] sm:$0xff] }
  0x22   :  { %758 = vmatmul.msk.bf16.gmra.mxu2 %vm231_vm0, %v774_v10  ;;  %762 = vmatmul.msk.bf16.gmra.mxu3 %vm231_vm0, %v778_v11 }
  0x31   :  { %751 = vmatmul.msk.bf16.gmra.mxu0 %vm231_vm0, %v767_v13  ;;  %755 = vmatmul.msk.bf16.gmra.mxu1 %vm231_vm0, %v771_v14 }
  0x32   :  { %759 = vmatmul.msk.bf16.gmra.mxu2 %vm231_vm0, %v775_v15  ;;  %763 = vmatmul.msk.bf16.gmra.mxu3 %vm231_vm0, %v779_v16 }
  0x41   :  { %752 = vmatmul.msk.bf16.gmra.mxu0 %vm231_vm0, %v768_v17  ;;  %756 = vmatmul.msk.bf16.gmra.mxu1 %vm231_vm0, %v772_v18  ;;  %v73_v18 = vld [vmem:[#allocation2 + $0x90] sm:$0xff] }
  0x42   :  { %760 = vmatmul.msk.bf16.gmra.mxu2 %vm231_vm0, %v776_v19  ;;  %764 = vmatmul.msk.bf16.gmra.mxu3 %vm231_vm0, %v780_v20 }
  0x8e   :  { %v289_v23 = vpop.f32.mrf.mxu0  ;;  %v309_v25 = vpop.f32.mrf.mxu1 }
  0x8f   :  { %v369_v26 = vadd.f32 %v289_v23, %v55_v21  ;;  %v377_v27 = vadd.f32 %v309_v25, %v63_v22  ;;  %v81_v21 = vld [vmem:[#allocation2 + $0xd0] sm:$0xff] }
  0x91   :  { %402 = vst.msk [vmem:[#allocation2] sm:$0xff] %vm22_vm1, %v369_v26  ;;  %v58_v26 = vld [vmem:[#allocation2 + $0x18] sm:$0xff] }
  0x92   :  { %410 = vst.msk [vmem:[#allocation2 + $0x40] sm:$0xff] %vm22_vm1, %v377_v27 }
  0x95   :  { %v329_v36 = vpop.f32.mrf.mxu2  ;;  %v349_v37 = vpop.f32.mrf.mxu3 }
  0x96   :  { %v385_v38 = vadd.f32 %v329_v36, %v71_v29  ;;  %v393_v39 = vadd.f32 %v349_v37, %v79_v30  ;;  %v291_v40 = vpop.f32.mrf.mxu0  ;;  %v311_v41 = vpop.f32.mrf.mxu1  ;;  %v1083_v36 = vld [vmem:[%s1315_s3 + $0x28] sm:$0xff]  }
  0x97   :  { %v370_v43 = vadd.f32 %v291_v40, %v56_v32  ;;  %v378_v44 = vadd.f32 %v311_v41, %v64_v33 }
  0x98   :  { %v437_v45 = vld [vmem:[#allocation2] sm:$0xff]  ;;  %418 = vst.msk [vmem:[#allocation2 + $0x80] sm:$0xff] %vm22_vm1, %v385_v38 }
  0x99   :  { %v472_v47 = vadd.f32 %v1021_v34, %v437_v45  ;;  %v445_v48 = vld [vmem:[#allocation2 + $0x40] sm:$0xff]  ;;  %426 = vst.msk [vmem:[#allocation2 + $0xc0] sm:$0xff] %vm22_vm1, %v393_v39  ;;  %v836_v39 = vunpack.c.h.bf16 %v1044_v55 }
  0x9a   :  { %v480_v49 = vadd.f32 %v1021_v34, %v445_v48  ;;  %403 = vst.msk [vmem:[#allocation2 + $0x8] sm:$0xff] %vm22_vm1, %v370_v43  ;;  %v791_v43 = vunpack.c.l.bf16 %v1073_v28 }
  0x9b   :  { %v568_v50 = vadd.f32 %v787_v42, %v472_v47  ;;  %411 = vst.msk [vmem:[#allocation2 + $0x48] sm:$0xff] %vm22_vm1, %v378_v44  ;;  %v807_v47 = vunpack.c.l.bf16 %v1083_v36 }
  0x9c   :  { %v576_v54 = vadd.f32 %v803_v46, %v480_v49 }
  0x9d   :  { %v600_v57 = vpack.c.bf16 %v568_v50, %v568_v50  ;;  %v331_v58 = vpop.f32.mrf.mxu2  ;;  %v351_v59 = vpop.f32.mrf.mxu3 }
  0x9e   :  { %v608_v61 = vpack.c.bf16 %v576_v54, %v576_v54  ;;  %v386_v63 = vadd.f32 %v331_v58, %v72_v52  ;;  %v394_v0 = vadd.f32 %v351_v59, %v80_v53  ;;  %v294_v1 = vpop.f32.mrf.mxu0  ;;  %v314_v2 = vpop.f32.mrf.mxu1  ;;  %v74_v53 = vld [vmem:[#allocation2 + $0x98] sm:$0xff] }
  0x9f   :  { %633 = vst.msk [vmem:[%s1316_s4] sm:$0xf] %vm632_vm2, %v600_v57  ;;  %v453_v3 = vld [vmem:[#allocation2 + $0x80] sm:$0xff]  ;;  %v371_v5 = vadd.f32 %v294_v1, %v57_v56  ;;  %v379_v9 = vadd.f32 %v314_v2, %v65_v60  ;;  %v1106_v56 = vld [vmem:[%s1315_s3 + $0x48] sm:$0xff]   ;;  %v82_v58 = vld [vmem:[#allocation2 + $0xd8] sm:$0xff] }
  0xa0   :  { %641 = vst.msk [vmem:[%s1316_s4 + $0x20] sm:$0xf] %vm632_vm2, %v608_v61  ;;  %v488_v6 = vadd.f32 %v1021_v34, %v453_v3  ;;  %v461_v7 = vld [vmem:[#allocation2 + $0xc0] sm:$0xff] }
  0xa1   :  { %v496_v10 = vadd.f32 %v1021_v34, %v461_v7  ;;  %v438_v11 = vld [vmem:[#allocation2 + $0x8] sm:$0xff]  ;;  %419 = vst.msk [vmem:[#allocation2 + $0x88] sm:$0xff] %vm22_vm1, %v386_v63  ;;  %v59_v63 = vld [vmem:[#allocation2 + $0x20] sm:$0xff] }
  0xa2   :  { %v584_v13 = vadd.f32 %v819_v62, %v488_v6  ;;  %v473_v14 = vadd.f32 %v1021_v34, %v438_v11  ;;  %v446_v15 = vld [vmem:[#allocation2 + $0x48] sm:$0xff]  ;;  %427 = vst.msk [vmem:[#allocation2 + $0xc8] sm:$0xff] %vm22_vm1, %v394_v0  ;;  %v823_v6 = vunpack.c.l.bf16 %v1106_v56 }
  0xa3   :  { %v592_v16 = vadd.f32 %v835_v4, %v496_v10  ;;  %v481_v17 = vadd.f32 %v1021_v34, %v446_v15  ;;  %404 = vst.msk [vmem:[#allocation2 + $0x10] sm:$0xff] %vm22_vm1, %v371_v5  ;;  %v1112_v62 = vld [vmem:[%s1315_s3 + $0x68] sm:$0xff]   ;;  %v67_v4 = vld [vmem:[#allocation2 + $0x60] sm:$0xff] }
  0xa4   :  { %v616_v19 = vpack.c.bf16 %v584_v13, %v584_v13  ;;  %v569_v20 = vadd.f32 %v788_v8, %v473_v14  ;;  %412 = vst.msk [vmem:[#allocation2 + $0x50] sm:$0xff] %vm22_vm1, %v379_v9  ;;  %v839_v9 = vunpack.c.l.bf16 %v1112_v62  ;;  %v792_v13 = vunpack.c.h.bf16 %v1073_v28  ;;  %v83_v28 = vld [vmem:[#allocation2 + $0xe0] sm:$0xff] }
  0xa5   :  { %v624_v22 = vpack.c.bf16 %v592_v16, %v592_v16  ;;  %v577_v23 = vadd.f32 %v804_v12, %v481_v17  ;;  %v334_v24 = vpop.f32.mrf.mxu2  ;;  %v354_v25 = vpop.f32.mrf.mxu3  ;;  %v808_v17 = vunpack.c.h.bf16 %v1083_v36  ;;  %v1149_v36 = vld [vmem:[%s1315_s3 + $0x10] sm:$0xff]  }
  0xa6   :  { %649 = vst.msk [vmem:[%s1316_s4 + $0x40] sm:$0xf] %vm632_vm2, %v616_v19  ;;  %v601_v27 = vpack.c.bf16 %v569_v20, %v569_v20  ;;  %v387_v29 = vadd.f32 %v334_v24, %v73_v18  ;;  %v296_v30 = vpop.f32.mrf.mxu0  ;;  %v316_v32 = vpop.f32.mrf.mxu1  ;;  %v395_v37 = vadd.f32 %v354_v25, %v81_v21 }
  0xa7   :  { %657 = vst.msk [vmem:[%s1316_s4 + $0x60] sm:$0xf] %vm632_vm2, %v624_v22  ;;  %v609_v33 = vpack.c.bf16 %v577_v23, %v577_v23  ;;  %v372_v40 = vadd.f32 %v296_v30, %v58_v26  ;;  %v380_v44 = vadd.f32 %v316_v32, %v66_v31  ;;  %v75_v23 = vld [vmem:[#allocation2 + $0xa0] sm:$0xff] }
  0xa8   :  { %634 = vst.msk [vmem:[%s1316_s4 + $0x4] sm:$0xf] %vm632_vm2, %v601_v27  ;;  %v454_v38 = vld [vmem:[#allocation2 + $0x88] sm:$0xff] }
  0xa9   :  { %642 = vst.msk [vmem:[%s1316_s4 + $0x24] sm:$0xf] %vm632_vm2, %v609_v33  ;;  %v489_v41 = vadd.f32 %v1021_v34, %v454_v38  ;;  %v462_v42 = vld [vmem:[#allocation2 + $0xc8] sm:$0xff] }
  0xaa   :  { %v497_v45 = vadd.f32 %v1021_v34, %v462_v42  ;;  %v439_v46 = vld [vmem:[#allocation2 + $0x10] sm:$0xff]  ;;  %420 = vst.msk [vmem:[#allocation2 + $0x90] sm:$0xff] %vm22_vm1, %v387_v29  ;;  %v60_v33 = vld [vmem:[#allocation2 + $0x28] sm:$0xff] }
  0xab   :  { %v585_v48 = vadd.f32 %v820_v35, %v489_v41  ;;  %v474_v49 = vadd.f32 %v1021_v34, %v439_v46  ;;  %v447_v50 = vld [vmem:[#allocation2 + $0x50] sm:$0xff]  ;;  %428 = vst.msk [vmem:[#allocation2 + $0xd0] sm:$0xff] %vm22_vm1, %v395_v37  ;;  %v68_v38 = vld [vmem:[#allocation2 + $0x68] sm:$0xff] }
  0xac   :  { %v593_v51 = vadd.f32 %v836_v39, %v497_v45  ;;  %v482_v52 = vadd.f32 %v1021_v34, %v447_v50  ;;  %405 = vst.msk [vmem:[#allocation2 + $0x18] sm:$0xff] %vm22_vm1, %v372_v40  ;;  %v824_v40 = vunpack.c.h.bf16 %v1106_v56  ;;  %v1159_v41 = vld [vmem:[%s1315_s3 + $0x30] sm:$0xff]   ;;  %v76_v50 = vld [vmem:[#allocation2 + $0xa8] sm:$0xff] }
  0xad   :  { %v617_v54 = vpack.c.bf16 %v585_v48, %v585_v48  ;;  %v570_v55 = vadd.f32 %v791_v43, %v474_v49  ;;  %413 = vst.msk [vmem:[#allocation2 + $0x58] sm:$0xff] %vm22_vm1, %v380_v44  ;;  %v336_v57 = vpop.f32.mrf.mxu2  ;;  %v356_v59 = vpop.f32.mrf.mxu3  ;;  %v840_v44 = vunpack.c.h.bf16 %v1112_v62  ;;  %v795_v48 = vunpack.c.l.bf16 %v1149_v36  ;;  %v84_v62 = vld [vmem:[#allocation2 + $0xe8] sm:$0xff] }
  0xae   :  { %v625_v60 = vpack.c.bf16 %v593_v51, %v593_v51  ;;  %v578_v61 = vadd.f32 %v807_v47, %v482_v52  ;;  %v299_v0 = vpop.f32.mrf.mxu0  ;;  %v319_v1 = vpop.f32.mrf.mxu1  ;;  %v388_v3 = vadd.f32 %v336_v57, %v74_v53  ;;  %v396_v7 = vadd.f32 %v356_v59, %v82_v58 }
  0xaf   :  { %650 = vst.msk [vmem:[%s1316_s4 + $0x44] sm:$0xf] %vm632_vm2, %v617_v54  ;;  %v602_v2 = vpack.c.bf16 %v570_v55, %v570_v55  ;;  %v373_v10 = vadd.f32 %v299_v0, %v59_v63  ;;  %v381_v14 = vadd.f32 %v319_v1, %v67_v4  ;;  %v811_v53 = vunpack.c.l.bf16 %v1159_v41 }
  0xb0   :  { %658 = vst.msk [vmem:[%s1316_s4 + $0x64] sm:$0xf] %vm632_vm2, %v625_v60  ;;  %v610_v5 = vpack.c.bf16 %v578_v61, %v578_v61 }
  0xb1   :  { %635 = vst.msk [vmem:[%s1316_s4 + $0x8] sm:$0xf] %vm632_vm2, %v602_v2  ;;  %v455_v8 = vld [vmem:[#allocation2 + $0x90] sm:$0xff] }
  0xb2   :  { %643 = vst.msk [vmem:[%s1316_s4 + $0x28] sm:$0xf] %vm632_vm2, %v610_v5  ;;  %v490_v11 = vadd.f32 %v1021_v34, %v455_v8  ;;  %v463_v12 = vld [vmem:[#allocation2 + $0xd0] sm:$0xff] }
  0xb3   :  { %v498_v15 = vadd.f32 %v1021_v34, %v463_v12  ;;  %v440_v16 = vld [vmem:[#allocation2 + $0x18] sm:$0xff]  ;;  %421 = vst.msk [vmem:[#allocation2 + $0x98] sm:$0xff] %vm22_vm1, %v388_v3  ;;  %v858_v2 = vld [vmem:[%s1315_s3 + $0x50] sm:$0xff]  }
  0xb4   :  { %v586_v18 = vadd.f32 %v823_v6, %v490_v11  ;;  %v475_v19 = vadd.f32 %v1021_v34, %v440_v16  ;;  %v448_v20 = vld [vmem:[#allocation2 + $0x58] sm:$0xff]  ;;  %429 = vst.msk [vmem:[#allocation2 + $0xd8] sm:$0xff] %vm22_vm1, %v396_v7  ;;  %v61_v3 = vld [vmem:[#allocation2 + $0x30] sm:$0xff]  ;;  %v827_v12 = vunpack.c.l.bf16 %v858_v2 }
  0xb5   :  { %v594_v21 = vadd.f32 %v839_v9, %v498_v15  ;;  %v483_v22 = vadd.f32 %v1021_v34, %v448_v20  ;;  %406 = vst.msk [vmem:[#allocation2 + $0x20] sm:$0xff] %vm22_vm1, %v373_v10  ;;  %v339_v24 = vpop.f32.mrf.mxu2  ;;  %v359_v25 = vpop.f32.mrf.mxu3  ;;  %v1186_v7 = vld [vmem:[%s1315_s3 + $0x70] sm:$0xff]  }
  0xb6   :  { %v618_v26 = vpack.c.bf16 %v586_v18, %v586_v18  ;;  %v571_v27 = vadd.f32 %v792_v13, %v475_v19  ;;  %414 = vst.msk [vmem:[#allocation2 + $0x60] sm:$0xff] %vm22_vm1, %v381_v14  ;;  %v301_v29 = vpop.f32.mrf.mxu0  ;;  %v321_v30 = vpop.f32.mrf.mxu1  ;;  %v389_v37 = vadd.f32 %v339_v24, %v75_v23  ;;  %v397_v42 = vadd.f32 %v359_v25, %v83_v28  ;;  %v69_v8 = vld [vmem:[#allocation2 + $0x70] sm:$0xff] }
  0xb7   :  { %v626_v31 = vpack.c.bf16 %v594_v21, %v594_v21  ;;  %v579_v32 = vadd.f32 %v808_v17, %v483_v22  ;;  %v374_v45 = vadd.f32 %v301_v29, %v60_v33  ;;  %v382_v49 = vadd.f32 %v321_v30, %v68_v38  ;;  %v77_v17 = vld [vmem:[#allocation2 + $0xb0] sm:$0xff] }
  0xb8   :  { %651 = vst.msk [vmem:[%s1316_s4 + $0x48] sm:$0xf] %vm632_vm2, %v618_v26  ;;  %v603_v35 = vpack.c.bf16 %v571_v27, %v571_v27  ;;  %v843_v15 = vunpack.c.l.bf16 %v1186_v7  ;;  %v85_v18 = vld [vmem:[#allocation2 + $0xf0] sm:$0xff]  ;;  %v796_v21 = vunpack.c.h.bf16 %v1149_v36  ;;  %v812_v24 = vunpack.c.h.bf16 %v1159_v41 }
  0xb9   :  { %659 = vst.msk [vmem:[%s1316_s4 + $0x68] sm:$0xf] %vm632_vm2, %v626_v31  ;;  %v611_v39 = vpack.c.bf16 %v579_v32, %v579_v32  ;;  %v828_v25 = vunpack.c.h.bf16 %v858_v2 }
  0xba   :  { %636 = vst.msk [vmem:[%s1316_s4 + $0xc] sm:$0xf] %vm632_vm2, %v603_v35  ;;  %v456_v43 = vld [vmem:[#allocation2 + $0x98] sm:$0xff] }
  0xbb   :  { %644 = vst.msk [vmem:[%s1316_s4 + $0x2c] sm:$0xf] %vm632_vm2, %v611_v39  ;;  %v491_v46 = vadd.f32 %v1021_v34, %v456_v43  ;;  %v464_v47 = vld [vmem:[#allocation2 + $0xd8] sm:$0xff] }
  0xbc   :  { %v499_v51 = vadd.f32 %v1021_v34, %v464_v47  ;;  %v441_v52 = vld [vmem:[#allocation2 + $0x20] sm:$0xff]  ;;  %422 = vst.msk [vmem:[#allocation2 + $0xa0] sm:$0xff] %vm22_vm1, %v389_v37 }
  0xbd   :  { %v587_v54 = vadd.f32 %v824_v40, %v491_v46  ;;  %v476_v55 = vadd.f32 %v1021_v34, %v441_v52  ;;  %v449_v56 = vld [vmem:[#allocation2 + $0x60] sm:$0xff]  ;;  %430 = vst.msk [vmem:[#allocation2 + $0xe0] sm:$0xff] %vm22_vm1, %v397_v42  ;;  %v341_v57 = vpop.f32.mrf.mxu2  ;;  %v361_v58 = vpop.f32.mrf.mxu3  ;;  %v62_v40 = vld [vmem:[#allocation2 + $0x38] sm:$0xff] }
  0xbe   :  { %v595_v59 = vadd.f32 %v840_v44, %v499_v51  ;;  %v484_v60 = vadd.f32 %v1021_v34, %v449_v56  ;;  %407 = vst.msk [vmem:[#allocation2 + $0x28] sm:$0xff] %vm22_vm1, %v374_v45  ;;  %v390_v61 = vadd.f32 %v341_v57, %v76_v50  ;;  %v304_v63 = vpop.f32.mrf.mxu0  ;;  %v324_v4 = vpop.f32.mrf.mxu1  ;;  %v398_v10 = vadd.f32 %v361_v58, %v84_v62  ;;  %v1220_v44 = vld [vmem:[%s1315_s3 + $0x18] sm:$0xff]  }
  0xbf   :  { %v619_v0 = vpack.c.bf16 %v587_v54, %v587_v54  ;;  %v572_v1 = vadd.f32 %v795_v48, %v476_v55  ;;  %415 = vst.msk [vmem:[#allocation2 + $0x68] sm:$0xff] %vm22_vm1, %v382_v49  ;;  %v375_v13 = vadd.f32 %v304_v63, %v61_v3  ;;  %v383_v16 = vadd.f32 %v324_v4, %v69_v8  ;;  %v70_v45 = vld [vmem:[#allocation2 + $0x78] sm:$0xff] }
  0xc0   :  { %v627_v5 = vpack.c.bf16 %v595_v59, %v595_v59  ;;  %v580_v6 = vadd.f32 %v811_v53, %v484_v60  ;;  %423 = vst.msk [vmem:[#allocation2 + $0xa8] sm:$0xff] %vm22_vm1, %v390_v61  ;;  %v1230_v49 = vld [vmem:[%s1315_s3 + $0x38] sm:$0xff]   ;;  %v844_v51 = vunpack.c.h.bf16 %v1186_v7  ;;  %v799_v58 = vunpack.c.l.bf16 %v1220_v44 }
  0xc1   :  { %652 = vst.msk [vmem:[%s1316_s4 + $0x4c] sm:$0xf] %vm632_vm2, %v619_v0  ;;  %v604_v9 = vpack.c.bf16 %v572_v1, %v572_v1  ;;  %v1240_v52 = vld [vmem:[%s1315_s3 + $0x58] sm:$0xff]   ;;  %v815_v63 = vunpack.c.l.bf16 %v1230_v49 }
  0xc2   :  { %660 = vst.msk [vmem:[%s1316_s4 + $0x6c] sm:$0xf] %vm632_vm2, %v627_v5  ;;  %v612_v11 = vpack.c.bf16 %v580_v6, %v580_v6  ;;  %v78_v54 = vld [vmem:[#allocation2 + $0xb8] sm:$0xff]  ;;  %v831_v4 = vunpack.c.l.bf16 %v1240_v52 }
  0xc3   :  { %637 = vst.msk [vmem:[%s1316_s4 + $0x10] sm:$0xf] %vm632_vm2, %v604_v9  ;;  %v457_v14 = vld [vmem:[#allocation2 + $0xa0] sm:$0xff]  ;;  %v86_v55 = vld [vmem:[#allocation2 + $0xf8] sm:$0xff] }
  0xc4   :  { %645 = vst.msk [vmem:[%s1316_s4 + $0x30] sm:$0xf] %vm632_vm2, %v612_v11  ;;  %v492_v19 = vadd.f32 %v1021_v34, %v457_v14  ;;  %v465_v20 = vld [vmem:[#allocation2 + $0xe0] sm:$0xff]  ;;  %v863_v59 = vld [vmem:[%s1315_s3 + $0x78] sm:$0xff]  }
  0xc5   :  { %v500_v22 = vadd.f32 %v1021_v34, %v465_v20  ;;  %v442_v23 = vld [vmem:[#allocation2 + $0x28] sm:$0xff]  ;;  %431 = vst.msk [vmem:[#allocation2 + $0xe8] sm:$0xff] %vm22_vm1, %v398_v10  ;;  %v344_v26 = vpop.f32.mrf.mxu2  ;;  %v364_v27 = vpop.f32.mrf.mxu3  ;;  %v847_v10 = vunpack.c.l.bf16 %v863_v59 }
  0xc6   :  { %v588_v28 = vadd.f32 %v827_v12, %v492_v19  ;;  %v477_v29 = vadd.f32 %v1021_v34, %v442_v23  ;;  %v450_v30 = vld [vmem:[#allocation2 + $0x68] sm:$0xff]  ;;  %408 = vst.msk [vmem:[#allocation2 + $0x30] sm:$0xff] %vm22_vm1, %v375_v13  ;;  %v391_v31 = vadd.f32 %v344_v26, %v77_v17  ;;  %v399_v32 = vadd.f32 %v364_v27, %v85_v18  ;;  %v306_v41 = vpop.f32.mrf.mxu0  ;;  %v326_v46 = vpop.f32.mrf.mxu1 }
  0xc7   :  { %v596_v33 = vadd.f32 %v843_v15, %v500_v22  ;;  %v485_v35 = vadd.f32 %v1021_v34, %v450_v30  ;;  %v458_v36 = vld [vmem:[#allocation2 + $0xa8] sm:$0xff]  ;;  %416 = vst.msk [vmem:[#allocation2 + $0x70] sm:$0xff] %vm22_vm1, %v383_v16  ;;  %v376_v53 = vadd.f32 %v306_v41, %v62_v40  ;;  %v384_v60 = vadd.f32 %v326_v46, %v70_v45 }
  0xc8   :  { %v620_v37 = vpack.c.bf16 %v588_v28, %v588_v28  ;;  %v573_v38 = vadd.f32 %v796_v21, %v477_v29  ;;  %v493_v39 = vadd.f32 %v1021_v34, %v458_v36  ;;  %424 = vst.msk [vmem:[#allocation2 + $0xb0] sm:$0xff] %vm22_vm1, %v391_v31  ;;  %v800_v23 = vunpack.c.h.bf16 %v1220_v44 }
  0xc9   :  { %v628_v42 = vpack.c.bf16 %v596_v33, %v596_v33  ;;  %v581_v43 = vadd.f32 %v812_v24, %v485_v35  ;;  %432 = vst.msk [vmem:[#allocation2 + $0xf0] sm:$0xff] %vm22_vm1, %v399_v32  ;;  %v832_v28 = vunpack.c.h.bf16 %v1240_v52  ;;  %v848_v31 = vunpack.c.h.bf16 %v863_v59 }
  0xca   :  { %653 = vst.msk [vmem:[%s1316_s4 + $0x50] sm:$0xf] %vm632_vm2, %v620_v37  ;;  %v605_v47 = vpack.c.bf16 %v573_v38, %v573_v38  ;;  %v589_v48 = vadd.f32 %v828_v25, %v493_v39  ;;  %v816_v25 = vunpack.c.h.bf16 %v1230_v49 }
  0xcb   :  { %661 = vst.msk [vmem:[%s1316_s4 + $0x70] sm:$0xf] %vm632_vm2, %v628_v42  ;;  %v613_v50 = vpack.c.bf16 %v581_v43, %v581_v43 }
  0xcc   :  { %638 = vst.msk [vmem:[%s1316_s4 + $0x14] sm:$0xf] %vm632_vm2, %v605_v47  ;;  %v621_v56 = vpack.c.bf16 %v589_v48, %v589_v48  ;;  %v466_v57 = vld [vmem:[#allocation2 + $0xe8] sm:$0xff] }
  0xcd   :  { %646 = vst.msk [vmem:[%s1316_s4 + $0x34] sm:$0xf] %vm632_vm2, %v613_v50  ;;  %v501_v61 = vadd.f32 %v1021_v34, %v466_v57  ;;  %v443_v62 = vld [vmem:[#allocation2 + $0x30] sm:$0xff]  ;;  %v346_v0 = vpop.f32.mrf.mxu2  ;;  %v366_v1 = vpop.f32.mrf.mxu3 }
  0xce   :  { %654 = vst.msk [vmem:[%s1316_s4 + $0x54] sm:$0xf] %vm632_vm2, %v621_v56  ;;  %v478_v2 = vadd.f32 %v1021_v34, %v443_v62  ;;  %v451_v3 = vld [vmem:[#allocation2 + $0x70] sm:$0xff]  ;;  %v392_v5 = vadd.f32 %v346_v0, %v78_v54  ;;  %v400_v6 = vadd.f32 %v366_v1, %v86_v55 }
  0xcf   :  { %v597_v7 = vadd.f32 %v844_v51, %v501_v61  ;;  %v486_v8 = vadd.f32 %v1021_v34, %v451_v3  ;;  %v459_v9 = vld [vmem:[#allocation2 + $0xb0] sm:$0xff]  ;;  %409 = vst.msk [vmem:[#allocation2 + $0x38] sm:$0xff] %vm22_vm1, %v376_v53 }
  0xd0   :  { %v574_v11 = vadd.f32 %v799_v58, %v478_v2  ;;  %v494_v12 = vadd.f32 %v1021_v34, %v459_v9  ;;  %v467_v13 = vld [vmem:[#allocation2 + $0xf0] sm:$0xff]  ;;  %417 = vst.msk [vmem:[#allocation2 + $0x78] sm:$0xff] %vm22_vm1, %v384_v60 }
  0xd1   :  { %v629_v14 = vpack.c.bf16 %v597_v7, %v597_v7  ;;  %v582_v15 = vadd.f32 %v815_v63, %v486_v8  ;;  %v502_v16 = vadd.f32 %v1021_v34, %v467_v13  ;;  %425 = vst.msk [vmem:[#allocation2 + $0xb8] sm:$0xff] %vm22_vm1, %v392_v5 }
  0xd2   :  { %v606_v17 = vpack.c.bf16 %v574_v11, %v574_v11  ;;  %v590_v18 = vadd.f32 %v831_v4, %v494_v12  ;;  %433 = vst.msk [vmem:[#allocation2 + $0xf8] sm:$0xff] %vm22_vm1, %v400_v6 }
  0xd3   :  { %662 = vst.msk [vmem:[%s1316_s4 + $0x74] sm:$0xf] %vm632_vm2, %v629_v14  ;;  %v614_v19 = vpack.c.bf16 %v582_v15, %v582_v15  ;;  %v598_v20 = vadd.f32 %v847_v10, %v502_v16 }
  0xd4   :  { %639 = vst.msk [vmem:[%s1316_s4 + $0x18] sm:$0xf] %vm632_vm2, %v606_v17  ;;  %v622_v21 = vpack.c.bf16 %v590_v18, %v590_v18 }
  0xd5   :  { %647 = vst.msk [vmem:[%s1316_s4 + $0x38] sm:$0xf] %vm632_vm2, %v614_v19  ;;  %v630_v22 = vpack.c.bf16 %v598_v20, %v598_v20 }
  0xd6   :  { %655 = vst.msk [vmem:[%s1316_s4 + $0x58] sm:$0xf] %vm632_vm2, %v622_v21  ;;  %v444_v24 = vld [vmem:[#allocation2 + $0x38] sm:$0xff] }
  0xd7   :  { %663 = vst.msk [vmem:[%s1316_s4 + $0x78] sm:$0xf] %vm632_vm2, %v630_v22  ;;  %v479_v26 = vadd.f32 %v1021_v34, %v444_v24  ;;  %v452_v27 = vld [vmem:[#allocation2 + $0x78] sm:$0xff] }
  0xd8   :  { %v487_v29 = vadd.f32 %v1021_v34, %v452_v27  ;;  %v460_v30 = vld [vmem:[#allocation2 + $0xb8] sm:$0xff] }
  0xd9   :  { %v575_v32 = vadd.f32 %v800_v23, %v479_v26  ;;  %v495_v33 = vadd.f32 %v1021_v34, %v460_v30  ;;  %v468_v35 = vld [vmem:[#allocation2 + $0xf8] sm:$0xff] }
  0xda   :  { %v583_v36 = vadd.f32 %v816_v25, %v487_v29  ;;  %v503_v37 = vadd.f32 %v1021_v34, %v468_v35 }
  0xdb   :  { %v607_v38 = vpack.c.bf16 %v575_v32, %v575_v32  ;;  %v591_v39 = vadd.f32 %v832_v28, %v495_v33 }
  0xdc   :  { %v615_v40 = vpack.c.bf16 %v583_v36, %v583_v36  ;;  %v599_v41 = vadd.f32 %v848_v31, %v503_v37 }
  0xdd   :  { %640 = vst.msk [vmem:[%s1316_s4 + $0x1c] sm:$0xf] %vm632_vm2, %v607_v38  ;;  %v623_v42 = vpack.c.bf16 %v591_v39, %v591_v39 }
  0xde   :  { %648 = vst.msk [vmem:[%s1316_s4 + $0x3c] sm:$0xf] %vm632_vm2, %v615_v40  ;;  %v631_v43 = vpack.c.bf16 %v599_v41, %v599_v41 }
  0xdf   :  { %656 = vst.msk [vmem:[%s1316_s4 + $0x5c] sm:$0xf] %vm632_vm2, %v623_v42 }
  0xe0   :  { %664 = vst.msk [vmem:[%s1316_s4 + $0x7c] sm:$0xf] %vm632_vm2, %v631_v43 }

</bundles_post_ra>
